<compile_context>
chip_gen: v6e
topology: v6e:2x2x1
jax: 0.10.0
libtpu: 0.0.40
codegen_flags: <defaults>
</compile_context>

<pallas_src>
import functools

import jax
import jax.numpy as jnp
import numpy as np
from jax import lax
from jax.experimental import pallas as pl
from jax.experimental.pallas import tpu as pltpu


# ------------------------------ small helpers ---------------------------------

def _gelu_tanh(x):
    c = 0.7978845608028654  # sqrt(2/pi)
    return 0.5 * x * (1.0 + jnp.tanh(c * (x + 0.044715 * x * x * x)))


def _layernorm(x, g, b, eps=1e-5):
    mu = jnp.mean(x, axis=-1, keepdims=True)
    xc = x - mu
    var = jnp.mean(xc * xc, axis=-1, keepdims=True)
    return xc * lax.rsqrt(var + eps) * g + b


# --------------------------------- kernel --------------------------------------

def _block_kernel(x_ref, n1g_ref, n1b_ref, wqkv_ref, wproj_ref, bproj_ref,
                  n2g_ref, n2b_ref, wfc1_ref, bfc1_ref, wdw_ref, bdw_ref,
                  wfc2_ref, bfc2_ref, o_ref, pad_ref,
                  *, H, W, num_heads, batch_tile):
    """One batch tile per grid step: full PVTv2 Block forward."""
    N = H * W
    C = x_ref.shape[2]
    HID = wfc1_ref.shape[1]
    d = C // num_heads
    BT = batch_tile
    M = BT * N

    # ---- token slab (BT*N, C), f32
    x_all = x_ref[...].reshape(M, C).astype(jnp.float32)

    # ---- LayerNorm1 -> fused QKV projection (scale already folded into Wq)
    xn = _layernorm(x_all, n1g_ref[...], n1b_ref[...])
    qkv = jnp.dot(xn.astype(jnp.bfloat16), wqkv_ref[...],
                  preferred_element_type=jnp.float32)              # (M, 3C) f32
    qkv_bf = qkv.astype(jnp.bfloat16)

    # ---- per-head v @ Wproj_h on the whole slab (raises per-batch contraction
    #      depth to N and removes the head concatenate entirely)
    wproj_bf = wproj_ref[...]                                      # (C, C) bf16
    vp = []
    for h in range(num_heads):
        vsl = slice(2 * C + h * d, 2 * C + (h + 1) * d)
        vph = jnp.dot(qkv_bf[:, vsl], wproj_bf[h * d:(h + 1) * d, :],
                      preferred_element_type=jnp.float32)          # (M, C)
        vp.append(vph.astype(jnp.bfloat16))

    # ---- dwconv constants, hoisted out of the per-batch / tap loops
    Hp, Wp = H + 2, W + 9
    pad_ref[0:1, :, :] = jnp.zeros((1, Wp, HID), jnp.float32)
    pad_ref[Hp - 1:Hp, :, :] = jnp.zeros((1, Wp, HID), jnp.float32)
    pad_ref[1:1 + H, 0:8, :] = jnp.zeros((H, 8, HID), jnp.float32)
    pad_ref[1:1 + H, 8 + W:Wp, :] = jnp.zeros((H, Wp - 8 - W, HID), jnp.float32)
    w_dw = wdw_ref[...].astype(jnp.float32)                        # (3, 3, HID)
    w_taps = [[w_dw[kh, kw].reshape(1, 1, HID) for kw in range(3)]
              for kh in range(3)]
    b_dw = bdw_ref[...].reshape(1, 1, HID)

    bproj = bproj_ref[...]
    n2g, n2b = n2g_ref[...], n2b_ref[...]
    wfc1_bf, bfc1 = wfc1_ref[...], bfc1_ref[...]
    wfc2_bf, bfc2 = wfc2_ref[...], bfc2_ref[...]

    # ---- per-batch attention + MLP (static Python loop over the batch tile)
    for b in range(BT):
        rows = slice(b * N, (b + 1) * N)
        x_b = x_all[rows]                                          # (N, C)

        attn_b = None
        for h in range(num_heads):
            qsl = slice(h * d, (h + 1) * d)
            ksl = slice(C + h * d, C + (h + 1) * d)
            q_bh = qkv_bf[rows, qsl]                               # (N, d) bf16
            k_bh = qkv_bf[rows, ksl]                               # (N, d) bf16
            s = lax.dot_general(q_bh, k_bh, (((1,), (1,)), ((), ())),
                                preferred_element_type=jnp.float32)  # (N, N)
            s = s - jnp.max(s, axis=-1, keepdims=True)
            e = jnp.exp(s)
            p = e * pl.reciprocal(jnp.sum(e, axis=-1, keepdims=True),
                                  approx=True)
            contrib = jnp.dot(p.astype(jnp.bfloat16), vp[h][rows],
                              preferred_element_type=jnp.float32)  # (N, C)
            attn_b = contrib if attn_b is None else attn_b + contrib

        x1_b = x_b + attn_b + bproj                                # residual 1

        # ---- LayerNorm2 -> fc1
        xn2 = _layernorm(x1_b, n2g, n2b)
        h1 = jnp.dot(xn2.astype(jnp.bfloat16), wfc1_bf,
                     preferred_element_type=jnp.float32) + bfc1    # (N, HID)

        # ---- depthwise 3x3 conv, padding=1, on the (H, W, HID) image.
        # The interior write lands at column 8 (sublane aligned, unmasked
        # stores); only the thin halo was zeroed above, once per grid step.
        pad_ref[1:1 + H, 8:8 + W, :] = h1.reshape(H, W, HID)
        acc = None
        for kh in range(3):
            strip = pad_ref[kh:kh + H, :, :]        # one aligned strip load
            for kw in range(3):
                term = strip[:, 7 + kw:7 + kw + W, :] * w_taps[kh][kw]
                acc = term if acc is None else acc + term

        # ---- GELU -> fc2 -> residual 2
        act = _gelu_tanh(acc + b_dw).reshape(N, HID)
        mlp = jnp.dot(act.astype(jnp.bfloat16), wfc2_bf,
                      preferred_element_type=jnp.float32) + bfc2   # (N, C)

        o_ref[b] = (x1_b + mlp).astype(o_ref.dtype)


# --------------------------------- wrapper --------------------------------------

def pvtv2_block(x, kparams, H, W, num_heads, batch_tile=None):
    """x: (B, N, C) float32 with N == H*W.  Returns (B, N, C)."""
    B, N, C = x.shape
    assert N == H * W
    (n1g, n1b, wqkv, wproj, bproj, n2g, n2b,
     wfc1, bfc1, wdw, bdw, wfc2, bfc2) = kparams
    hid = wfc1.shape[1]

    if batch_tile is None:
        batch_tile = B            # fold whole batch; toy sizes fit VMEM easily
    assert B % batch_tile == 0
    BT = batch_tile

    kernel = functools.partial(_block_kernel, H=H, W=W,
                               num_heads=num_heads, batch_tile=BT)

    out = pl.pallas_call(
        kernel,
        out_shape=jax.ShapeDtypeStruct((B, N, C), x.dtype),
        grid_spec=pltpu.PrefetchScalarGridSpec(
            num_scalar_prefetch=0,
            grid=(B // BT,),
            in_specs=[
                pl.BlockSpec((BT, N, C), lambda b: (b, 0, 0)),      # x
                pl.BlockSpec((1, C), lambda b: (0, 0)),             # norm1 gamma
                pl.BlockSpec((1, C), lambda b: (0, 0)),             # norm1 beta
                pl.BlockSpec((C, 3 * C), lambda b: (0, 0)),         # Wqkv (bf16)
                pl.BlockSpec((C, C), lambda b: (0, 0)),             # Wproj (bf16)
                pl.BlockSpec((1, C), lambda b: (0, 0)),             # bproj
                pl.BlockSpec((1, C), lambda b: (0, 0)),             # norm2 gamma
                pl.BlockSpec((1, C), lambda b: (0, 0)),             # norm2 beta
                pl.BlockSpec((C, hid), lambda b: (0, 0)),           # Wfc1 (bf16)
                pl.BlockSpec((1, hid), lambda b: (0, 0)),           # bfc1
                pl.BlockSpec((3, 3, hid), lambda b: (0, 0, 0)),     # dw 3x3 weight
                pl.BlockSpec((1, hid), lambda b: (0, 0)),           # dw bias
                pl.BlockSpec((hid, C), lambda b: (0, 0)),           # Wfc2 (bf16)
                pl.BlockSpec((1, C), lambda b: (0, 0)),             # bfc2
            ],
            out_specs=pl.BlockSpec((BT, N, C), lambda b: (b, 0, 0)),
            scratch_shapes=[
                pltpu.VMEM((H + 2, W + 9, hid), jnp.float32),       # padded dwconv image
            ],
        ),
        compiler_params=pltpu.CompilerParams(
            dimension_semantics=("parallel",)),                     # batch tiles independent
    )(x, n1g, n1b, wqkv, wproj, bproj, n2g, n2b,
      wfc1, bfc1, wdw, bdw, wfc2, bfc2)
    return out


# ----------------------- parameter setup (deterministic) -----------------------

def init_torch_params(key, dim, num_heads, mlp_ratio=4.0):
    """PyTorch-convention shapes for Block(dim, num_heads) with qkv_bias=False."""
    hid = int(dim * mlp_ratio)
    ks = jax.random.split(key, 14)
    return dict(
        norm1_w=1.0 + 0.05 * jax.random.normal(ks[0], (dim,), jnp.float32),
        norm1_b=0.05 * jax.random.normal(ks[1], (dim,), jnp.float32),
        q_w=0.05 * jax.random.normal(ks[2], (dim, dim), jnp.float32),
        kv_w=0.05 * jax.random.normal(ks[3], (2 * dim, dim), jnp.float32),
        proj_w=0.05 * jax.random.normal(ks[4], (dim, dim), jnp.float32),
        proj_b=0.05 * jax.random.normal(ks[5], (dim,), jnp.float32),
        norm2_w=1.0 + 0.05 * jax.random.normal(ks[6], (dim,), jnp.float32),
        norm2_b=0.05 * jax.random.normal(ks[7], (dim,), jnp.float32),
        fc1_w=0.05 * jax.random.normal(ks[8], (hid, dim), jnp.float32),
        fc1_b=0.05 * jax.random.normal(ks[9], (hid,), jnp.float32),
        dw_w=0.2 * jax.random.normal(ks[10], (hid, 1, 3, 3), jnp.float32),
        dw_b=0.05 * jax.random.normal(ks[11], (hid,), jnp.float32),
        fc2_w=0.05 * jax.random.normal(ks[12], (dim, hid), jnp.float32),
        fc2_b=0.05 * jax.random.normal(ks[13], (dim,), jnp.float32),
    )


def torch_to_kernel_params(p, num_heads):
    """Fused/bf16 kernel-side parameters (matmul weights bf16, elementwise f32)."""
    C = p['q_w'].shape[0]
    d = C // num_heads
    scale = float(d) ** -0.5
    wq = p['q_w'].T * scale                       # fold attention scale into Wq
    wk = p['kv_w'][:C].T                          # k = kv columns [0, C)
    wv = p['kv_w'][C:].T                          # v = kv columns [C, 2C)
    wqkv = jnp.concatenate([wq, wk, wv], axis=1).astype(jnp.bfloat16)  # (C, 3C)
    return (
        p['norm1_w'].reshape(1, -1), p['norm1_b'].reshape(1, -1),
        wqkv,
        p['proj_w'].T.astype(jnp.bfloat16), p['proj_b'].reshape(1, -1),
        p['norm2_w'].reshape(1, -1), p['norm2_b'].reshape(1, -1),
        p['fc1_w'].T.astype(jnp.bfloat16), p['fc1_b'].reshape(1, -1),
        jnp.transpose(p['dw_w'][:, 0], (1, 2, 0)),        # (3, 3, hid) f32
        p['dw_b'].reshape(1, -1),
        p['fc2_w'].T.astype(jnp.bfloat16), p['fc2_b'].reshape(1, -1),
    )


# --------------------------- pure-JAX reference (B, N, C) ----------------------

def reference_block(x, p, H, W, num_heads):
    B, N, C = x.shape
    d = C // num_heads
    scale = d ** -0.5

    def ln(t, g, b, eps=1e-5):
        mu = t.mean(-1, keepdims=True)
        var = ((t - mu) ** 2).mean(-1, keepdims=True)
        return (t - mu) * lax.rsqrt(var + eps) * g + b

    xn = ln(x, p['norm1_w'], p['norm1_b'])
    q = xn @ p['q_w'].T
    kv = xn @ p['kv_w'].T
    k, v = kv[..., :C], kv[..., C:]
    qh = q.reshape(B, N, num_heads, d).transpose(0, 2, 1, 3)
    kh = k.reshape(B, N, num_heads, d).transpose(0, 2, 1, 3)
    vh = v.reshape(B, N, num_heads, d).transpose(0, 2, 1, 3)
    a = jnp.einsum('bhnd,bhmd->bhnm', qh, kh) * scale
    a = jax.nn.softmax(a, axis=-1)
    o = jnp.einsum('bhnm,bhmd->bhnd', a, vh).transpose(0, 2, 1, 3).reshape(B, N, C)
    o = o @ p['proj_w'].T + p['proj_b']
    x = x + o

    xn2 = ln(x, p['norm2_w'], p['norm2_b'])
    h1 = xn2 @ p['fc1_w'].T + p['fc1_b']
    hid = h1.shape[-1]
    img = h1.transpose(0, 2, 1).reshape(B, hid, H, W)
    img = lax.conv_general_dilated(img, p['dw_w'], (1, 1), [(1, 1), (1, 1)],
                                   dimension_numbers=('NCHW', 'OIHW', 'NCHW'),
                                   feature_group_count=hid)
    img = img + p['dw_b'][None, :, None, None]
    h1 = img.reshape(B, hid, N).transpose(0, 2, 1)
    h1 = _gelu_tanh(h1)
    mlp = h1 @ p['fc2_w'].T + p['fc2_b']
    return x + mlp


if __name__ == "__main__":
    B, H, W = 2, 8, 8
    dim, num_heads, mlp_ratio = 32, 4, 4.0    # head_dim = 8, mlp hidden = 128
    N = H * W

    key = jax.random.PRNGKey(0)
    kx, kp = jax.random.split(key)
    x = jax.random.normal(kx, (B, N, dim), jnp.float32)

    torch_params = init_torch_params(kp, dim, num_heads, mlp_ratio)
    kernel_params = torch_to_kernel_params(torch_params, num_heads)

    out = pvtv2_block(x, kernel_params, H, W, num_heads)
    out = jax.block_until_ready(out)

    with jax.default_matmul_precision("float32"):
        ref = reference_block(x, torch_params, H, W, num_heads)

    # bf16 MXU operands (f32 accumulation) vs. the f32 reference: tolerance 1e-2.
    np.testing.assert_allclose(np.asarray(out), np.asarray(ref), rtol=1e-2, atol=1e-2)
    print("KERNEL_OK")
</pallas_src>

<mosaic_0001>
module attributes {stable_mosaic.version = 11 : i64} {
  func.func @_block_kernel(%arg0: i32, %arg1: memref<2x64x32xf32, #tpu.memory_space<vmem>>, %arg2: memref<1x32xf32, #tpu.memory_space<vmem>>, %arg3: memref<1x32xf32, #tpu.memory_space<vmem>>, %arg4: memref<32x96xbf16, #tpu.memory_space<vmem>>, %arg5: memref<32x32xbf16, #tpu.memory_space<vmem>>, %arg6: memref<1x32xf32, #tpu.memory_space<vmem>>, %arg7: memref<1x32xf32, #tpu.memory_space<vmem>>, %arg8: memref<1x32xf32, #tpu.memory_space<vmem>>, %arg9: memref<32x128xbf16, #tpu.memory_space<vmem>>, %arg10: memref<1x128xf32, #tpu.memory_space<vmem>>, %arg11: memref<3x3x128xf32, #tpu.memory_space<vmem>>, %arg12: memref<1x128xf32, #tpu.memory_space<vmem>>, %arg13: memref<128x32xbf16, #tpu.memory_space<vmem>>, %arg14: memref<1x32xf32, #tpu.memory_space<vmem>>, %arg15: memref<2x64x32xf32, #tpu.memory_space<vmem>>, %arg16: memref<10x17x128xf32, #tpu.memory_space<vmem>>) attributes {dimension_semantics = [#tpu.dimension_semantics<parallel>], iteration_bounds = array<i64: 1>, scalar_prefetch = 0 : i64, scratch_operands = 1 : i64, tpu.core_type = #tpu.core_type<tc>, window_params = [{transform_indices = @transform_0, window_bounds = array<i64: 2, 64, 32>}, {pipeline_mode = #tpu.pipeline_mode<synchronous>, transform_indices = @transform_1, window_bounds = array<i64: 1, 32>}, {pipeline_mode = #tpu.pipeline_mode<synchronous>, transform_indices = @transform_2, window_bounds = array<i64: 1, 32>}, {pipeline_mode = #tpu.pipeline_mode<synchronous>, transform_indices = @transform_3, window_bounds = array<i64: 32, 96>}, {pipeline_mode = #tpu.pipeline_mode<synchronous>, transform_indices = @transform_4, window_bounds = array<i64: 32, 32>}, {pipeline_mode = #tpu.pipeline_mode<synchronous>, transform_indices = @transform_5, window_bounds = array<i64: 1, 32>}, {pipeline_mode = #tpu.pipeline_mode<synchronous>, transform_indices = @transform_6, window_bounds = array<i64: 1, 32>}, {pipeline_mode = #tpu.pipeline_mode<synchronous>, transform_indices = @transform_7, window_bounds = array<i64: 1, 32>}, {pipeline_mode = #tpu.pipeline_mode<synchronous>, transform_indices = @transform_8, window_bounds = array<i64: 32, 128>}, {pipeline_mode = #tpu.pipeline_mode<synchronous>, transform_indices = @transform_9, window_bounds = array<i64: 1, 128>}, {pipeline_mode = #tpu.pipeline_mode<synchronous>, transform_indices = @transform_10, window_bounds = array<i64: 3, 3, 128>}, {pipeline_mode = #tpu.pipeline_mode<synchronous>, transform_indices = @transform_11, window_bounds = array<i64: 1, 128>}, {pipeline_mode = #tpu.pipeline_mode<synchronous>, transform_indices = @transform_12, window_bounds = array<i64: 128, 32>}, {pipeline_mode = #tpu.pipeline_mode<synchronous>, transform_indices = @transform_13, window_bounds = array<i64: 1, 32>}, {transform_indices = @transform_14, window_bounds = array<i64: 2, 64, 32>}]} {
    %c0 = arith.constant 0 : index
    %c0_0 = arith.constant 0 : index
    %c0_1 = arith.constant 0 : index
    %0 = vector.load %arg1[%c0, %c0_0, %c0_1] : memref<2x64x32xf32, #tpu.memory_space<vmem>>, vector<2x64x32xf32>
    %1 = vector.shape_cast %0 : vector<2x64x32xf32> to vector<128x32xf32>
    %c0_2 = arith.constant 0 : index
    %c0_3 = arith.constant 0 : index
    %2 = vector.load %arg2[%c0_2, %c0_3] : memref<1x32xf32, #tpu.memory_space<vmem>>, vector<1x32xf32>
    %c0_4 = arith.constant 0 : index
    %c0_5 = arith.constant 0 : index
    %3 = vector.load %arg3[%c0_4, %c0_5] : memref<1x32xf32, #tpu.memory_space<vmem>>, vector<1x32xf32>
    %cst = arith.constant dense<0.000000e+00> : vector<128xf32>
    %4 = vector.multi_reduction <add>, %1, %cst [1] : vector<128x32xf32> to vector<128xf32>
    %5 = vector.shape_cast %4 : vector<128xf32> to vector<128x1xf32>
    %cst_6 = arith.constant 3.200000e+01 : f32
    %6 = vector.broadcast %cst_6 : f32 to vector<128x1xf32>
    %7 = arith.divf %5, %6 : vector<128x1xf32>
    %8 = vector.broadcast %7 : vector<128x1xf32> to vector<128x32xf32>
    %9 = arith.subf %1, %8 : vector<128x32xf32>
    %10 = arith.mulf %9, %9 : vector<128x32xf32>
    %cst_7 = arith.constant dense<0.000000e+00> : vector<128xf32>
    %11 = vector.multi_reduction <add>, %10, %cst_7 [1] : vector<128x32xf32> to vector<128xf32>
    %12 = vector.shape_cast %11 : vector<128xf32> to vector<128x1xf32>
    %cst_8 = arith.constant 3.200000e+01 : f32
    %13 = vector.broadcast %cst_8 : f32 to vector<128x1xf32>
    %14 = arith.divf %12, %13 : vector<128x1xf32>
    %cst_9 = arith.constant 9.99999974E-6 : f32
    %15 = vector.broadcast %cst_9 : f32 to vector<128x1xf32>
    %16 = arith.addf %14, %15 : vector<128x1xf32>
    %17 = math.rsqrt %16 : vector<128x1xf32>
    %18 = vector.broadcast %17 : vector<128x1xf32> to vector<128x32xf32>
    %19 = arith.mulf %9, %18 : vector<128x32xf32>
    %20 = vector.broadcast %2 : vector<1x32xf32> to vector<128x32xf32>
    %21 = arith.mulf %19, %20 : vector<128x32xf32>
    %22 = vector.broadcast %3 : vector<1x32xf32> to vector<128x32xf32>
    %23 = arith.addf %21, %22 : vector<128x32xf32>
    %24 = arith.truncf %23 : vector<128x32xf32> to vector<128x32xbf16>
    %c0_10 = arith.constant 0 : index
    %c0_11 = arith.constant 0 : index
    %25 = vector.load %arg4[%c0_10, %c0_11] : memref<32x96xbf16, #tpu.memory_space<vmem>>, vector<32x96xbf16>
    %cst_12 = arith.constant dense<0.000000e+00> : vector<128x96xf32>
    %26 = tpu.matmul %24, %25, %cst_12 {dimension_numbers = #tpu.dot_dimension_numbers<[1], [0], [0], [1], [0, 0, 1, 1], [], []>} : vector<128x32xbf16>, vector<32x96xbf16>, vector<128x96xf32> -> vector<128x96xf32>
    %27 = arith.truncf %26 : vector<128x96xf32> to vector<128x96xbf16>
    %c0_13 = arith.constant 0 : index
    %c0_14 = arith.constant 0 : index
    %28 = vector.load %arg5[%c0_13, %c0_14] : memref<32x32xbf16, #tpu.memory_space<vmem>>, vector<32x32xbf16>
    %29 = vector.extract_strided_slice %27 {offsets = [0, 64], sizes = [128, 8], strides = [1, 1]} : vector<128x96xbf16> to vector<128x8xbf16>
    %30 = vector.extract_strided_slice %28 {offsets = [0, 0], sizes = [8, 32], strides = [1, 1]} : vector<32x32xbf16> to vector<8x32xbf16>
    %cst_15 = arith.constant dense<0.000000e+00> : vector<128x32xf32>
    %31 = tpu.matmul %29, %30, %cst_15 {dimension_numbers = #tpu.dot_dimension_numbers<[1], [0], [0], [1], [0, 0, 1, 1], [], []>} : vector<128x8xbf16>, vector<8x32xbf16>, vector<128x32xf32> -> vector<128x32xf32>
    %32 = arith.truncf %31 : vector<128x32xf32> to vector<128x32xbf16>
    %33 = vector.extract_strided_slice %27 {offsets = [0, 72], sizes = [128, 8], strides = [1, 1]} : vector<128x96xbf16> to vector<128x8xbf16>
    %34 = vector.extract_strided_slice %28 {offsets = [8, 0], sizes = [8, 32], strides = [1, 1]} : vector<32x32xbf16> to vector<8x32xbf16>
    %cst_16 = arith.constant dense<0.000000e+00> : vector<128x32xf32>
    %35 = tpu.matmul %33, %34, %cst_16 {dimension_numbers = #tpu.dot_dimension_numbers<[1], [0], [0], [1], [0, 0, 1, 1], [], []>} : vector<128x8xbf16>, vector<8x32xbf16>, vector<128x32xf32> -> vector<128x32xf32>
    %36 = arith.truncf %35 : vector<128x32xf32> to vector<128x32xbf16>
    %37 = vector.extract_strided_slice %27 {offsets = [0, 80], sizes = [128, 8], strides = [1, 1]} : vector<128x96xbf16> to vector<128x8xbf16>
    %38 = vector.extract_strided_slice %28 {offsets = [16, 0], sizes = [8, 32], strides = [1, 1]} : vector<32x32xbf16> to vector<8x32xbf16>
    %cst_17 = arith.constant dense<0.000000e+00> : vector<128x32xf32>
    %39 = tpu.matmul %37, %38, %cst_17 {dimension_numbers = #tpu.dot_dimension_numbers<[1], [0], [0], [1], [0, 0, 1, 1], [], []>} : vector<128x8xbf16>, vector<8x32xbf16>, vector<128x32xf32> -> vector<128x32xf32>
    %40 = arith.truncf %39 : vector<128x32xf32> to vector<128x32xbf16>
    %41 = vector.extract_strided_slice %27 {offsets = [0, 88], sizes = [128, 8], strides = [1, 1]} : vector<128x96xbf16> to vector<128x8xbf16>
    %42 = vector.extract_strided_slice %28 {offsets = [24, 0], sizes = [8, 32], strides = [1, 1]} : vector<32x32xbf16> to vector<8x32xbf16>
    %cst_18 = arith.constant dense<0.000000e+00> : vector<128x32xf32>
    %43 = tpu.matmul %41, %42, %cst_18 {dimension_numbers = #tpu.dot_dimension_numbers<[1], [0], [0], [1], [0, 0, 1, 1], [], []>} : vector<128x8xbf16>, vector<8x32xbf16>, vector<128x32xf32> -> vector<128x32xf32>
    %44 = arith.truncf %43 : vector<128x32xf32> to vector<128x32xbf16>
    %cst_19 = arith.constant 0.000000e+00 : f32
    %45 = vector.broadcast %cst_19 : f32 to vector<1x17x128xf32>
    %c0_20 = arith.constant 0 : index
    %c0_21 = arith.constant 0 : index
    %c0_22 = arith.constant 0 : index
    %46 = vector.load %arg16[%c0_20, %c0_21, %c0_22] : memref<10x17x128xf32, #tpu.memory_space<vmem>>, vector<1x17x128xf32>
    tpu.vector_store %arg16[%c0_20, %c0_21, %c0_22], %45 {strides = array<i32>} : memref<10x17x128xf32, #tpu.memory_space<vmem>>, vector<1x17x128xf32>,
    %cst_23 = arith.constant 0.000000e+00 : f32
    %47 = vector.broadcast %cst_23 : f32 to vector<1x17x128xf32>
    %c9 = arith.constant 9 : index
    %c0_24 = arith.constant 0 : index
    %c0_25 = arith.constant 0 : index
    %48 = vector.load %arg16[%c9, %c0_24, %c0_25] : memref<10x17x128xf32, #tpu.memory_space<vmem>>, vector<1x17x128xf32>
    tpu.vector_store %arg16[%c9, %c0_24, %c0_25], %47 {strides = array<i32>} : memref<10x17x128xf32, #tpu.memory_space<vmem>>, vector<1x17x128xf32>,
    %cst_26 = arith.constant 0.000000e+00 : f32
    %49 = vector.broadcast %cst_26 : f32 to vector<8x8x128xf32>
    %c1 = arith.constant 1 : index
    %c0_27 = arith.constant 0 : index
    %c0_28 = arith.constant 0 : index
    %50 = vector.load %arg16[%c1, %c0_27, %c0_28] : memref<10x17x128xf32, #tpu.memory_space<vmem>>, vector<8x8x128xf32>
    tpu.vector_store %arg16[%c1, %c0_27, %c0_28], %49 {strides = array<i32>} : memref<10x17x128xf32, #tpu.memory_space<vmem>>, vector<8x8x128xf32>,
    %cst_29 = arith.constant 0.000000e+00 : f32
    %51 = vector.broadcast %cst_29 : f32 to vector<8x1x128xf32>
    %c1_30 = arith.constant 1 : index
    %c16 = arith.constant 16 : index
    %c0_31 = arith.constant 0 : index
    %52 = vector.load %arg16[%c1_30, %c16, %c0_31] : memref<10x17x128xf32, #tpu.memory_space<vmem>>, vector<8x1x128xf32>
    tpu.vector_store %arg16[%c1_30, %c16, %c0_31], %51 {strides = array<i32>} : memref<10x17x128xf32, #tpu.memory_space<vmem>>, vector<8x1x128xf32>,
    %c0_32 = arith.constant 0 : index
    %c0_33 = arith.constant 0 : index
    %c0_34 = arith.constant 0 : index
    %53 = vector.load %arg11[%c0_32, %c0_33, %c0_34] : memref<3x3x128xf32, #tpu.memory_space<vmem>>, vector<3x3x128xf32>
    %54 = vector.extract_strided_slice %53 {offsets = [0, 0, 0], sizes = [1, 1, 128], strides = [1, 1, 1]} : vector<3x3x128xf32> to vector<1x1x128xf32>
    %55 = vector.shape_cast %54 : vector<1x1x128xf32> to vector<128xf32>
    %56 = vector.shape_cast %55 : vector<128xf32> to vector<1x1x128xf32>
    %57 = vector.extract_strided_slice %53 {offsets = [0, 1, 0], sizes = [1, 1, 128], strides = [1, 1, 1]} : vector<3x3x128xf32> to vector<1x1x128xf32>
    %58 = vector.shape_cast %57 : vector<1x1x128xf32> to vector<128xf32>
    %59 = vector.shape_cast %58 : vector<128xf32> to vector<1x1x128xf32>
    %60 = vector.extract_strided_slice %53 {offsets = [0, 2, 0], sizes = [1, 1, 128], strides = [1, 1, 1]} : vector<3x3x128xf32> to vector<1x1x128xf32>
    %61 = vector.shape_cast %60 : vector<1x1x128xf32> to vector<128xf32>
    %62 = vector.shape_cast %61 : vector<128xf32> to vector<1x1x128xf32>
    %63 = vector.extract_strided_slice %53 {offsets = [1, 0, 0], sizes = [1, 1, 128], strides = [1, 1, 1]} : vector<3x3x128xf32> to vector<1x1x128xf32>
    %64 = vector.shape_cast %63 : vector<1x1x128xf32> to vector<128xf32>
    %65 = vector.shape_cast %64 : vector<128xf32> to vector<1x1x128xf32>
    %66 = vector.extract_strided_slice %53 {offsets = [1, 1, 0], sizes = [1, 1, 128], strides = [1, 1, 1]} : vector<3x3x128xf32> to vector<1x1x128xf32>
    %67 = vector.shape_cast %66 : vector<1x1x128xf32> to vector<128xf32>
    %68 = vector.shape_cast %67 : vector<128xf32> to vector<1x1x128xf32>
    %69 = vector.extract_strided_slice %53 {offsets = [1, 2, 0], sizes = [1, 1, 128], strides = [1, 1, 1]} : vector<3x3x128xf32> to vector<1x1x128xf32>
    %70 = vector.shape_cast %69 : vector<1x1x128xf32> to vector<128xf32>
    %71 = vector.shape_cast %70 : vector<128xf32> to vector<1x1x128xf32>
    %72 = vector.extract_strided_slice %53 {offsets = [2, 0, 0], sizes = [1, 1, 128], strides = [1, 1, 1]} : vector<3x3x128xf32> to vector<1x1x128xf32>
    %73 = vector.shape_cast %72 : vector<1x1x128xf32> to vector<128xf32>
    %74 = vector.shape_cast %73 : vector<128xf32> to vector<1x1x128xf32>
    %75 = vector.extract_strided_slice %53 {offsets = [2, 1, 0], sizes = [1, 1, 128], strides = [1, 1, 1]} : vector<3x3x128xf32> to vector<1x1x128xf32>
    %76 = vector.shape_cast %75 : vector<1x1x128xf32> to vector<128xf32>
    %77 = vector.shape_cast %76 : vector<128xf32> to vector<1x1x128xf32>
    %78 = vector.extract_strided_slice %53 {offsets = [2, 2, 0], sizes = [1, 1, 128], strides = [1, 1, 1]} : vector<3x3x128xf32> to vector<1x1x128xf32>
    %79 = vector.shape_cast %78 : vector<1x1x128xf32> to vector<128xf32>
    %80 = vector.shape_cast %79 : vector<128xf32> to vector<1x1x128xf32>
    %c0_35 = arith.constant 0 : index
    %c0_36 = arith.constant 0 : index
    %81 = vector.load %arg12[%c0_35, %c0_36] : memref<1x128xf32, #tpu.memory_space<vmem>>, vector<1x128xf32>
    %82 = vector.shape_cast %81 : vector<1x128xf32> to vector<1x1x128xf32>
    %c0_37 = arith.constant 0 : index
    %c0_38 = arith.constant 0 : index
    %83 = vector.load %arg6[%c0_37, %c0_38] : memref<1x32xf32, #tpu.memory_space<vmem>>, vector<1x32xf32>
    %c0_39 = arith.constant 0 : index
    %c0_40 = arith.constant 0 : index
    %84 = vector.load %arg7[%c0_39, %c0_40] : memref<1x32xf32, #tpu.memory_space<vmem>>, vector<1x32xf32>
    %c0_41 = arith.constant 0 : index
    %c0_42 = arith.constant 0 : index
    %85 = vector.load %arg8[%c0_41, %c0_42] : memref<1x32xf32, #tpu.memory_space<vmem>>, vector<1x32xf32>
    %c0_43 = arith.constant 0 : index
    %c0_44 = arith.constant 0 : index
    %86 = vector.load %arg9[%c0_43, %c0_44] : memref<32x128xbf16, #tpu.memory_space<vmem>>, vector<32x128xbf16>
    %c0_45 = arith.constant 0 : index
    %c0_46 = arith.constant 0 : index
    %87 = vector.load %arg10[%c0_45, %c0_46] : memref<1x128xf32, #tpu.memory_space<vmem>>, vector<1x128xf32>
    %c0_47 = arith.constant 0 : index
    %c0_48 = arith.constant 0 : index
    %88 = vector.load %arg13[%c0_47, %c0_48] : memref<128x32xbf16, #tpu.memory_space<vmem>>, vector<128x32xbf16>
    %c0_49 = arith.constant 0 : index
    %c0_50 = arith.constant 0 : index
    %89 = vector.load %arg14[%c0_49, %c0_50] : memref<1x32xf32, #tpu.memory_space<vmem>>, vector<1x32xf32>
    %90 = vector.extract_strided_slice %1 {offsets = [0, 0], sizes = [64, 32], strides = [1, 1]} : vector<128x32xf32> to vector<64x32xf32>
    %91 = vector.extract_strided_slice %27 {offsets = [0, 0], sizes = [64, 8], strides = [1, 1]} : vector<128x96xbf16> to vector<64x8xbf16>
    %92 = vector.extract_strided_slice %27 {offsets = [0, 32], sizes = [64, 8], strides = [1, 1]} : vector<128x96xbf16> to vector<64x8xbf16>
    %cst_51 = arith.constant dense<0.000000e+00> : vector<64x64xf32>
    %93 = tpu.matmul %91, %92, %cst_51 {dimension_numbers = #tpu.dot_dimension_numbers<[1], [1], [0], [0], [0, 0, 1, 0], [], []>} : vector<64x8xbf16>, vector<64x8xbf16>, vector<64x64xf32> -> vector<64x64xf32>
    %cst_52 = arith.constant dense<0xFF800000> : vector<64xf32>
    %94 = vector.multi_reduction <maximumf>, %93, %cst_52 [1] : vector<64x64xf32> to vector<64xf32>
    %95 = vector.shape_cast %94 : vector<64xf32> to vector<64x1xf32>
    %96 = vector.broadcast %95 : vector<64x1xf32> to vector<64x64xf32>
    %97 = arith.subf %93, %96 : vector<64x64xf32>
    %98 = math.exp %97 : vector<64x64xf32>
    %cst_53 = arith.constant dense<0.000000e+00> : vector<64xf32>
    %99 = vector.multi_reduction <add>, %98, %cst_53 [1] : vector<64x64xf32> to vector<64xf32>
    %100 = vector.shape_cast %99 : vector<64xf32> to vector<64x1xf32>
    %101 = tpu.reciprocal %100 {approx = true} : vector<64x1xf32> -> vector<64x1xf32>
    %102 = vector.broadcast %101 : vector<64x1xf32> to vector<64x64xf32>
    %103 = arith.mulf %98, %102 : vector<64x64xf32>
    %104 = arith.truncf %103 : vector<64x64xf32> to vector<64x64xbf16>
    %105 = vector.extract_strided_slice %32 {offsets = [0, 0], sizes = [64, 32], strides = [1, 1]} : vector<128x32xbf16> to vector<64x32xbf16>
    %cst_54 = arith.constant dense<0.000000e+00> : vector<64x32xf32>
    %106 = tpu.matmul %104, %105, %cst_54 {dimension_numbers = #tpu.dot_dimension_numbers<[1], [0], [0], [1], [0, 0, 1, 1], [], []>} : vector<64x64xbf16>, vector<64x32xbf16>, vector<64x32xf32> -> vector<64x32xf32>
    %107 = vector.extract_strided_slice %27 {offsets = [0, 8], sizes = [64, 8], strides = [1, 1]} : vector<128x96xbf16> to vector<64x8xbf16>
    %108 = vector.extract_strided_slice %27 {offsets = [0, 40], sizes = [64, 8], strides = [1, 1]} : vector<128x96xbf16> to vector<64x8xbf16>
    %cst_55 = arith.constant dense<0.000000e+00> : vector<64x64xf32>
    %109 = tpu.matmul %107, %108, %cst_55 {dimension_numbers = #tpu.dot_dimension_numbers<[1], [1], [0], [0], [0, 0, 1, 0], [], []>} : vector<64x8xbf16>, vector<64x8xbf16>, vector<64x64xf32> -> vector<64x64xf32>
    %cst_56 = arith.constant dense<0xFF800000> : vector<64xf32>
    %110 = vector.multi_reduction <maximumf>, %109, %cst_56 [1] : vector<64x64xf32> to vector<64xf32>
    %111 = vector.shape_cast %110 : vector<64xf32> to vector<64x1xf32>
    %112 = vector.broadcast %111 : vector<64x1xf32> to vector<64x64xf32>
    %113 = arith.subf %109, %112 : vector<64x64xf32>
    %114 = math.exp %113 : vector<64x64xf32>
    %cst_57 = arith.constant dense<0.000000e+00> : vector<64xf32>
    %115 = vector.multi_reduction <add>, %114, %cst_57 [1] : vector<64x64xf32> to vector<64xf32>
    %116 = vector.shape_cast %115 : vector<64xf32> to vector<64x1xf32>
    %117 = tpu.reciprocal %116 {approx = true} : vector<64x1xf32> -> vector<64x1xf32>
    %118 = vector.broadcast %117 : vector<64x1xf32> to vector<64x64xf32>
    %119 = arith.mulf %114, %118 : vector<64x64xf32>
    %120 = arith.truncf %119 : vector<64x64xf32> to vector<64x64xbf16>
    %121 = vector.extract_strided_slice %36 {offsets = [0, 0], sizes = [64, 32], strides = [1, 1]} : vector<128x32xbf16> to vector<64x32xbf16>
    %cst_58 = arith.constant dense<0.000000e+00> : vector<64x32xf32>
    %122 = tpu.matmul %120, %121, %cst_58 {dimension_numbers = #tpu.dot_dimension_numbers<[1], [0], [0], [1], [0, 0, 1, 1], [], []>} : vector<64x64xbf16>, vector<64x32xbf16>, vector<64x32xf32> -> vector<64x32xf32>
    %123 = arith.addf %106, %122 : vector<64x32xf32>
    %124 = vector.extract_strided_slice %27 {offsets = [0, 16], sizes = [64, 8], strides = [1, 1]} : vector<128x96xbf16> to vector<64x8xbf16>
    %125 = vector.extract_strided_slice %27 {offsets = [0, 48], sizes = [64, 8], strides = [1, 1]} : vector<128x96xbf16> to vector<64x8xbf16>
    %cst_59 = arith.constant dense<0.000000e+00> : vector<64x64xf32>
    %126 = tpu.matmul %124, %125, %cst_59 {dimension_numbers = #tpu.dot_dimension_numbers<[1], [1], [0], [0], [0, 0, 1, 0], [], []>} : vector<64x8xbf16>, vector<64x8xbf16>, vector<64x64xf32> -> vector<64x64xf32>
    %cst_60 = arith.constant dense<0xFF800000> : vector<64xf32>
    %127 = vector.multi_reduction <maximumf>, %126, %cst_60 [1] : vector<64x64xf32> to vector<64xf32>
    %128 = vector.shape_cast %127 : vector<64xf32> to vector<64x1xf32>
    %129 = vector.broadcast %128 : vector<64x1xf32> to vector<64x64xf32>
    %130 = arith.subf %126, %129 : vector<64x64xf32>
    %131 = math.exp %130 : vector<64x64xf32>
    %cst_61 = arith.constant dense<0.000000e+00> : vector<64xf32>
    %132 = vector.multi_reduction <add>, %131, %cst_61 [1] : vector<64x64xf32> to vector<64xf32>
    %133 = vector.shape_cast %132 : vector<64xf32> to vector<64x1xf32>
    %134 = tpu.reciprocal %133 {approx = true} : vector<64x1xf32> -> vector<64x1xf32>
    %135 = vector.broadcast %134 : vector<64x1xf32> to vector<64x64xf32>
    %136 = arith.mulf %131, %135 : vector<64x64xf32>
    %137 = arith.truncf %136 : vector<64x64xf32> to vector<64x64xbf16>
    %138 = vector.extract_strided_slice %40 {offsets = [0, 0], sizes = [64, 32], strides = [1, 1]} : vector<128x32xbf16> to vector<64x32xbf16>
    %cst_62 = arith.constant dense<0.000000e+00> : vector<64x32xf32>
    %139 = tpu.matmul %137, %138, %cst_62 {dimension_numbers = #tpu.dot_dimension_numbers<[1], [0], [0], [1], [0, 0, 1, 1], [], []>} : vector<64x64xbf16>, vector<64x32xbf16>, vector<64x32xf32> -> vector<64x32xf32>
    %140 = arith.addf %123, %139 : vector<64x32xf32>
    %141 = vector.extract_strided_slice %27 {offsets = [0, 24], sizes = [64, 8], strides = [1, 1]} : vector<128x96xbf16> to vector<64x8xbf16>
    %142 = vector.extract_strided_slice %27 {offsets = [0, 56], sizes = [64, 8], strides = [1, 1]} : vector<128x96xbf16> to vector<64x8xbf16>
    %cst_63 = arith.constant dense<0.000000e+00> : vector<64x64xf32>
    %143 = tpu.matmul %141, %142, %cst_63 {dimension_numbers = #tpu.dot_dimension_numbers<[1], [1], [0], [0], [0, 0, 1, 0], [], []>} : vector<64x8xbf16>, vector<64x8xbf16>, vector<64x64xf32> -> vector<64x64xf32>
    %cst_64 = arith.constant dense<0xFF800000> : vector<64xf32>
    %144 = vector.multi_reduction <maximumf>, %143, %cst_64 [1] : vector<64x64xf32> to vector<64xf32>
    %145 = vector.shape_cast %144 : vector<64xf32> to vector<64x1xf32>
    %146 = vector.broadcast %145 : vector<64x1xf32> to vector<64x64xf32>
    %147 = arith.subf %143, %146 : vector<64x64xf32>
    %148 = math.exp %147 : vector<64x64xf32>
    %cst_65 = arith.constant dense<0.000000e+00> : vector<64xf32>
    %149 = vector.multi_reduction <add>, %148, %cst_65 [1] : vector<64x64xf32> to vector<64xf32>
    %150 = vector.shape_cast %149 : vector<64xf32> to vector<64x1xf32>
    %151 = tpu.reciprocal %150 {approx = true} : vector<64x1xf32> -> vector<64x1xf32>
    %152 = vector.broadcast %151 : vector<64x1xf32> to vector<64x64xf32>
    %153 = arith.mulf %148, %152 : vector<64x64xf32>
    %154 = arith.truncf %153 : vector<64x64xf32> to vector<64x64xbf16>
    %155 = vector.extract_strided_slice %44 {offsets = [0, 0], sizes = [64, 32], strides = [1, 1]} : vector<128x32xbf16> to vector<64x32xbf16>
    %cst_66 = arith.constant dense<0.000000e+00> : vector<64x32xf32>
    %156 = tpu.matmul %154, %155, %cst_66 {dimension_numbers = #tpu.dot_dimension_numbers<[1], [0], [0], [1], [0, 0, 1, 1], [], []>} : vector<64x64xbf16>, vector<64x32xbf16>, vector<64x32xf32> -> vector<64x32xf32>
    %157 = arith.addf %140, %156 : vector<64x32xf32>
    %158 = arith.addf %90, %157 : vector<64x32xf32>
    %159 = vector.broadcast %83 : vector<1x32xf32> to vector<64x32xf32>
    %160 = arith.addf %158, %159 : vector<64x32xf32>
    %cst_67 = arith.constant dense<0.000000e+00> : vector<64xf32>
    %161 = vector.multi_reduction <add>, %160, %cst_67 [1] : vector<64x32xf32> to vector<64xf32>
    %162 = vector.shape_cast %161 : vector<64xf32> to vector<64x1xf32>
    %cst_68 = arith.constant 3.200000e+01 : f32
    %163 = vector.broadcast %cst_68 : f32 to vector<64x1xf32>
    %164 = arith.divf %162, %163 : vector<64x1xf32>
    %165 = vector.broadcast %164 : vector<64x1xf32> to vector<64x32xf32>
    %166 = arith.subf %160, %165 : vector<64x32xf32>
    %167 = arith.mulf %166, %166 : vector<64x32xf32>
    %cst_69 = arith.constant dense<0.000000e+00> : vector<64xf32>
    %168 = vector.multi_reduction <add>, %167, %cst_69 [1] : vector<64x32xf32> to vector<64xf32>
    %169 = vector.shape_cast %168 : vector<64xf32> to vector<64x1xf32>
    %cst_70 = arith.constant 3.200000e+01 : f32
    %170 = vector.broadcast %cst_70 : f32 to vector<64x1xf32>
    %171 = arith.divf %169, %170 : vector<64x1xf32>
    %cst_71 = arith.constant 9.99999974E-6 : f32
    %172 = vector.broadcast %cst_71 : f32 to vector<64x1xf32>
    %173 = arith.addf %171, %172 : vector<64x1xf32>
    %174 = math.rsqrt %173 : vector<64x1xf32>
    %175 = vector.broadcast %174 : vector<64x1xf32> to vector<64x32xf32>
    %176 = arith.mulf %166, %175 : vector<64x32xf32>
    %177 = vector.broadcast %84 : vector<1x32xf32> to vector<64x32xf32>
    %178 = arith.mulf %176, %177 : vector<64x32xf32>
    %179 = vector.broadcast %85 : vector<1x32xf32> to vector<64x32xf32>
    %180 = arith.addf %178, %179 : vector<64x32xf32>
    %181 = arith.truncf %180 : vector<64x32xf32> to vector<64x32xbf16>
    %cst_72 = arith.constant dense<0.000000e+00> : vector<64x128xf32>
    %182 = tpu.matmul %181, %86, %cst_72 {dimension_numbers = #tpu.dot_dimension_numbers<[1], [0], [0], [1], [0, 0, 1, 1], [], []>} : vector<64x32xbf16>, vector<32x128xbf16>, vector<64x128xf32> -> vector<64x128xf32>
    %183 = vector.broadcast %87 : vector<1x128xf32> to vector<64x128xf32>
    %184 = arith.addf %182, %183 : vector<64x128xf32>
    %185 = vector.shape_cast %184 : vector<64x128xf32> to vector<8x8x128xf32>
    %c1_73 = arith.constant 1 : index
    %c8 = arith.constant 8 : index
    %c0_74 = arith.constant 0 : index
    %186 = vector.load %arg16[%c1_73, %c8, %c0_74] : memref<10x17x128xf32, #tpu.memory_space<vmem>>, vector<8x8x128xf32>
    tpu.vector_store %arg16[%c1_73, %c8, %c0_74], %185 {strides = array<i32>} : memref<10x17x128xf32, #tpu.memory_space<vmem>>, vector<8x8x128xf32>,
    %c0_75 = arith.constant 0 : index
    %c0_76 = arith.constant 0 : index
    %c0_77 = arith.constant 0 : index
    %187 = vector.load %arg16[%c0_75, %c0_76, %c0_77] : memref<10x17x128xf32, #tpu.memory_space<vmem>>, vector<8x17x128xf32>
    %188 = vector.extract_strided_slice %187 {offsets = [0, 7, 0], sizes = [8, 8, 128], strides = [1, 1, 1]} : vector<8x17x128xf32> to vector<8x8x128xf32>
    %189 = vector.broadcast %56 : vector<1x1x128xf32> to vector<8x8x128xf32>
    %190 = arith.mulf %188, %189 : vector<8x8x128xf32>
    %191 = vector.extract_strided_slice %187 {offsets = [0, 8, 0], sizes = [8, 8, 128], strides = [1, 1, 1]} : vector<8x17x128xf32> to vector<8x8x128xf32>
    %192 = vector.broadcast %59 : vector<1x1x128xf32> to vector<8x8x128xf32>
    %193 = arith.mulf %191, %192 : vector<8x8x128xf32>
    %194 = arith.addf %190, %193 : vector<8x8x128xf32>
    %195 = vector.extract_strided_slice %187 {offsets = [0, 9, 0], sizes = [8, 8, 128], strides = [1, 1, 1]} : vector<8x17x128xf32> to vector<8x8x128xf32>
    %196 = vector.broadcast %62 : vector<1x1x128xf32> to vector<8x8x128xf32>
    %197 = arith.mulf %195, %196 : vector<8x8x128xf32>
    %198 = arith.addf %194, %197 : vector<8x8x128xf32>
    %c1_78 = arith.constant 1 : index
    %c0_79 = arith.constant 0 : index
    %c0_80 = arith.constant 0 : index
    %199 = vector.load %arg16[%c1_78, %c0_79, %c0_80] : memref<10x17x128xf32, #tpu.memory_space<vmem>>, vector<8x17x128xf32>
    %200 = vector.extract_strided_slice %199 {offsets = [0, 7, 0], sizes = [8, 8, 128], strides = [1, 1, 1]} : vector<8x17x128xf32> to vector<8x8x128xf32>
    %201 = vector.broadcast %65 : vector<1x1x128xf32> to vector<8x8x128xf32>
    %202 = arith.mulf %200, %201 : vector<8x8x128xf32>
    %203 = arith.addf %198, %202 : vector<8x8x128xf32>
    %204 = vector.extract_strided_slice %199 {offsets = [0, 8, 0], sizes = [8, 8, 128], strides = [1, 1, 1]} : vector<8x17x128xf32> to vector<8x8x128xf32>
    %205 = vector.broadcast %68 : vector<1x1x128xf32> to vector<8x8x128xf32>
    %206 = arith.mulf %204, %205 : vector<8x8x128xf32>
    %207 = arith.addf %203, %206 : vector<8x8x128xf32>
    %208 = vector.extract_strided_slice %199 {offsets = [0, 9, 0], sizes = [8, 8, 128], strides = [1, 1, 1]} : vector<8x17x128xf32> to vector<8x8x128xf32>
    %209 = vector.broadcast %71 : vector<1x1x128xf32> to vector<8x8x128xf32>
    %210 = arith.mulf %208, %209 : vector<8x8x128xf32>
    %211 = arith.addf %207, %210 : vector<8x8x128xf32>
    %c2 = arith.constant 2 : index
    %c0_81 = arith.constant 0 : index
    %c0_82 = arith.constant 0 : index
    %212 = vector.load %arg16[%c2, %c0_81, %c0_82] : memref<10x17x128xf32, #tpu.memory_space<vmem>>, vector<8x17x128xf32>
    %213 = vector.extract_strided_slice %212 {offsets = [0, 7, 0], sizes = [8, 8, 128], strides = [1, 1, 1]} : vector<8x17x128xf32> to vector<8x8x128xf32>
    %214 = vector.broadcast %74 : vector<1x1x128xf32> to vector<8x8x128xf32>
    %215 = arith.mulf %213, %214 : vector<8x8x128xf32>
    %216 = arith.addf %211, %215 : vector<8x8x128xf32>
    %217 = vector.extract_strided_slice %212 {offsets = [0, 8, 0], sizes = [8, 8, 128], strides = [1, 1, 1]} : vector<8x17x128xf32> to vector<8x8x128xf32>
    %218 = vector.broadcast %77 : vector<1x1x128xf32> to vector<8x8x128xf32>
    %219 = arith.mulf %217, %218 : vector<8x8x128xf32>
    %220 = arith.addf %216, %219 : vector<8x8x128xf32>
    %221 = vector.extract_strided_slice %212 {offsets = [0, 9, 0], sizes = [8, 8, 128], strides = [1, 1, 1]} : vector<8x17x128xf32> to vector<8x8x128xf32>
    %222 = vector.broadcast %80 : vector<1x1x128xf32> to vector<8x8x128xf32>
    %223 = arith.mulf %221, %222 : vector<8x8x128xf32>
    %224 = arith.addf %220, %223 : vector<8x8x128xf32>
    %225 = vector.broadcast %82 : vector<1x1x128xf32> to vector<8x8x128xf32>
    %226 = arith.addf %224, %225 : vector<8x8x128xf32>
    %cst_83 = arith.constant 5.000000e-01 : f32
    %227 = vector.broadcast %cst_83 : f32 to vector<8x8x128xf32>
    %228 = arith.mulf %227, %226 : vector<8x8x128xf32>
    %cst_84 = arith.constant 4.471500e-02 : f32
    %229 = vector.broadcast %cst_84 : f32 to vector<8x8x128xf32>
    %230 = arith.mulf %229, %226 : vector<8x8x128xf32>
    %231 = arith.mulf %230, %226 : vector<8x8x128xf32>
    %232 = arith.mulf %231, %226 : vector<8x8x128xf32>
    %233 = arith.addf %226, %232 : vector<8x8x128xf32>
    %cst_85 = arith.constant 0.797884583 : f32
    %234 = vector.broadcast %cst_85 : f32 to vector<8x8x128xf32>
    %235 = arith.mulf %234, %233 : vector<8x8x128xf32>
    %236 = math.tanh %235 : vector<8x8x128xf32>
    %cst_86 = arith.constant 1.000000e+00 : f32
    %237 = vector.broadcast %cst_86 : f32 to vector<8x8x128xf32>
    %238 = arith.addf %237, %236 : vector<8x8x128xf32>
    %239 = arith.mulf %228, %238 : vector<8x8x128xf32>
    %240 = vector.shape_cast %239 : vector<8x8x128xf32> to vector<64x128xf32>
    %241 = arith.truncf %240 : vector<64x128xf32> to vector<64x128xbf16>
    %cst_87 = arith.constant dense<0.000000e+00> : vector<64x32xf32>
    %242 = tpu.matmul %241, %88, %cst_87 {dimension_numbers = #tpu.dot_dimension_numbers<[1], [0], [0], [1], [0, 0, 1, 1], [], []>} : vector<64x128xbf16>, vector<128x32xbf16>, vector<64x32xf32> -> vector<64x32xf32>
    %243 = vector.broadcast %89 : vector<1x32xf32> to vector<64x32xf32>
    %244 = arith.addf %242, %243 : vector<64x32xf32>
    %245 = arith.addf %160, %244 : vector<64x32xf32>
    %c0_88 = arith.constant 0 : index
    %c0_89 = arith.constant 0 : index
    %c0_90 = arith.constant 0 : index
    %246 = vector.load %arg15[%c0_88, %c0_89, %c0_90] : memref<2x64x32xf32, #tpu.memory_space<vmem>>, vector<1x64x32xf32>
    %247 = vector.shape_cast %246 : vector<1x64x32xf32> to vector<64x32xf32>
    %248 = vector.shape_cast %245 : vector<64x32xf32> to vector<1x64x32xf32>
    tpu.vector_store %arg15[%c0_88, %c0_89, %c0_90], %248 {strides = array<i32>} : memref<2x64x32xf32, #tpu.memory_space<vmem>>, vector<1x64x32xf32>,
    %249 = vector.extract_strided_slice %1 {offsets = [64, 0], sizes = [64, 32], strides = [1, 1]} : vector<128x32xf32> to vector<64x32xf32>
    %250 = vector.extract_strided_slice %27 {offsets = [64, 0], sizes = [64, 8], strides = [1, 1]} : vector<128x96xbf16> to vector<64x8xbf16>
    %251 = vector.extract_strided_slice %27 {offsets = [64, 32], sizes = [64, 8], strides = [1, 1]} : vector<128x96xbf16> to vector<64x8xbf16>
    %cst_91 = arith.constant dense<0.000000e+00> : vector<64x64xf32>
    %252 = tpu.matmul %250, %251, %cst_91 {dimension_numbers = #tpu.dot_dimension_numbers<[1], [1], [0], [0], [0, 0, 1, 0], [], []>} : vector<64x8xbf16>, vector<64x8xbf16>, vector<64x64xf32> -> vector<64x64xf32>
    %cst_92 = arith.constant dense<0xFF800000> : vector<64xf32>
    %253 = vector.multi_reduction <maximumf>, %252, %cst_92 [1] : vector<64x64xf32> to vector<64xf32>
    %254 = vector.shape_cast %253 : vector<64xf32> to vector<64x1xf32>
    %255 = vector.broadcast %254 : vector<64x1xf32> to vector<64x64xf32>
    %256 = arith.subf %252, %255 : vector<64x64xf32>
    %257 = math.exp %256 : vector<64x64xf32>
    %cst_93 = arith.constant dense<0.000000e+00> : vector<64xf32>
    %258 = vector.multi_reduction <add>, %257, %cst_93 [1] : vector<64x64xf32> to vector<64xf32>
    %259 = vector.shape_cast %258 : vector<64xf32> to vector<64x1xf32>
    %260 = tpu.reciprocal %259 {approx = true} : vector<64x1xf32> -> vector<64x1xf32>
    %261 = vector.broadcast %260 : vector<64x1xf32> to vector<64x64xf32>
    %262 = arith.mulf %257, %261 : vector<64x64xf32>
    %263 = arith.truncf %262 : vector<64x64xf32> to vector<64x64xbf16>
    %264 = vector.extract_strided_slice %32 {offsets = [64, 0], sizes = [64, 32], strides = [1, 1]} : vector<128x32xbf16> to vector<64x32xbf16>
    %cst_94 = arith.constant dense<0.000000e+00> : vector<64x32xf32>
    %265 = tpu.matmul %263, %264, %cst_94 {dimension_numbers = #tpu.dot_dimension_numbers<[1], [0], [0], [1], [0, 0, 1, 1], [], []>} : vector<64x64xbf16>, vector<64x32xbf16>, vector<64x32xf32> -> vector<64x32xf32>
    %266 = vector.extract_strided_slice %27 {offsets = [64, 8], sizes = [64, 8], strides = [1, 1]} : vector<128x96xbf16> to vector<64x8xbf16>
    %267 = vector.extract_strided_slice %27 {offsets = [64, 40], sizes = [64, 8], strides = [1, 1]} : vector<128x96xbf16> to vector<64x8xbf16>
    %cst_95 = arith.constant dense<0.000000e+00> : vector<64x64xf32>
    %268 = tpu.matmul %266, %267, %cst_95 {dimension_numbers = #tpu.dot_dimension_numbers<[1], [1], [0], [0], [0, 0, 1, 0], [], []>} : vector<64x8xbf16>, vector<64x8xbf16>, vector<64x64xf32> -> vector<64x64xf32>
    %cst_96 = arith.constant dense<0xFF800000> : vector<64xf32>
    %269 = vector.multi_reduction <maximumf>, %268, %cst_96 [1] : vector<64x64xf32> to vector<64xf32>
    %270 = vector.shape_cast %269 : vector<64xf32> to vector<64x1xf32>
    %271 = vector.broadcast %270 : vector<64x1xf32> to vector<64x64xf32>
    %272 = arith.subf %268, %271 : vector<64x64xf32>
    %273 = math.exp %272 : vector<64x64xf32>
    %cst_97 = arith.constant dense<0.000000e+00> : vector<64xf32>
    %274 = vector.multi_reduction <add>, %273, %cst_97 [1] : vector<64x64xf32> to vector<64xf32>
    %275 = vector.shape_cast %274 : vector<64xf32> to vector<64x1xf32>
    %276 = tpu.reciprocal %275 {approx = true} : vector<64x1xf32> -> vector<64x1xf32>
    %277 = vector.broadcast %276 : vector<64x1xf32> to vector<64x64xf32>
    %278 = arith.mulf %273, %277 : vector<64x64xf32>
    %279 = arith.truncf %278 : vector<64x64xf32> to vector<64x64xbf16>
    %280 = vector.extract_strided_slice %36 {offsets = [64, 0], sizes = [64, 32], strides = [1, 1]} : vector<128x32xbf16> to vector<64x32xbf16>
    %cst_98 = arith.constant dense<0.000000e+00> : vector<64x32xf32>
    %281 = tpu.matmul %279, %280, %cst_98 {dimension_numbers = #tpu.dot_dimension_numbers<[1], [0], [0], [1], [0, 0, 1, 1], [], []>} : vector<64x64xbf16>, vector<64x32xbf16>, vector<64x32xf32> -> vector<64x32xf32>
    %282 = arith.addf %265, %281 : vector<64x32xf32>
    %283 = vector.extract_strided_slice %27 {offsets = [64, 16], sizes = [64, 8], strides = [1, 1]} : vector<128x96xbf16> to vector<64x8xbf16>
    %284 = vector.extract_strided_slice %27 {offsets = [64, 48], sizes = [64, 8], strides = [1, 1]} : vector<128x96xbf16> to vector<64x8xbf16>
    %cst_99 = arith.constant dense<0.000000e+00> : vector<64x64xf32>
    %285 = tpu.matmul %283, %284, %cst_99 {dimension_numbers = #tpu.dot_dimension_numbers<[1], [1], [0], [0], [0, 0, 1, 0], [], []>} : vector<64x8xbf16>, vector<64x8xbf16>, vector<64x64xf32> -> vector<64x64xf32>
    %cst_100 = arith.constant dense<0xFF800000> : vector<64xf32>
    %286 = vector.multi_reduction <maximumf>, %285, %cst_100 [1] : vector<64x64xf32> to vector<64xf32>
    %287 = vector.shape_cast %286 : vector<64xf32> to vector<64x1xf32>
    %288 = vector.broadcast %287 : vector<64x1xf32> to vector<64x64xf32>
    %289 = arith.subf %285, %288 : vector<64x64xf32>
    %290 = math.exp %289 : vector<64x64xf32>
    %cst_101 = arith.constant dense<0.000000e+00> : vector<64xf32>
    %291 = vector.multi_reduction <add>, %290, %cst_101 [1] : vector<64x64xf32> to vector<64xf32>
    %292 = vector.shape_cast %291 : vector<64xf32> to vector<64x1xf32>
    %293 = tpu.reciprocal %292 {approx = true} : vector<64x1xf32> -> vector<64x1xf32>
    %294 = vector.broadcast %293 : vector<64x1xf32> to vector<64x64xf32>
    %295 = arith.mulf %290, %294 : vector<64x64xf32>
    %296 = arith.truncf %295 : vector<64x64xf32> to vector<64x64xbf16>
    %297 = vector.extract_strided_slice %40 {offsets = [64, 0], sizes = [64, 32], strides = [1, 1]} : vector<128x32xbf16> to vector<64x32xbf16>
    %cst_102 = arith.constant dense<0.000000e+00> : vector<64x32xf32>
    %298 = tpu.matmul %296, %297, %cst_102 {dimension_numbers = #tpu.dot_dimension_numbers<[1], [0], [0], [1], [0, 0, 1, 1], [], []>} : vector<64x64xbf16>, vector<64x32xbf16>, vector<64x32xf32> -> vector<64x32xf32>
    %299 = arith.addf %282, %298 : vector<64x32xf32>
    %300 = vector.extract_strided_slice %27 {offsets = [64, 24], sizes = [64, 8], strides = [1, 1]} : vector<128x96xbf16> to vector<64x8xbf16>
    %301 = vector.extract_strided_slice %27 {offsets = [64, 56], sizes = [64, 8], strides = [1, 1]} : vector<128x96xbf16> to vector<64x8xbf16>
    %cst_103 = arith.constant dense<0.000000e+00> : vector<64x64xf32>
    %302 = tpu.matmul %300, %301, %cst_103 {dimension_numbers = #tpu.dot_dimension_numbers<[1], [1], [0], [0], [0, 0, 1, 0], [], []>} : vector<64x8xbf16>, vector<64x8xbf16>, vector<64x64xf32> -> vector<64x64xf32>
    %cst_104 = arith.constant dense<0xFF800000> : vector<64xf32>
    %303 = vector.multi_reduction <maximumf>, %302, %cst_104 [1] : vector<64x64xf32> to vector<64xf32>
    %304 = vector.shape_cast %303 : vector<64xf32> to vector<64x1xf32>
    %305 = vector.broadcast %304 : vector<64x1xf32> to vector<64x64xf32>
    %306 = arith.subf %302, %305 : vector<64x64xf32>
    %307 = math.exp %306 : vector<64x64xf32>
    %cst_105 = arith.constant dense<0.000000e+00> : vector<64xf32>
    %308 = vector.multi_reduction <add>, %307, %cst_105 [1] : vector<64x64xf32> to vector<64xf32>
    %309 = vector.shape_cast %308 : vector<64xf32> to vector<64x1xf32>
    %310 = tpu.reciprocal %309 {approx = true} : vector<64x1xf32> -> vector<64x1xf32>
    %311 = vector.broadcast %310 : vector<64x1xf32> to vector<64x64xf32>
    %312 = arith.mulf %307, %311 : vector<64x64xf32>
    %313 = arith.truncf %312 : vector<64x64xf32> to vector<64x64xbf16>
    %314 = vector.extract_strided_slice %44 {offsets = [64, 0], sizes = [64, 32], strides = [1, 1]} : vector<128x32xbf16> to vector<64x32xbf16>
    %cst_106 = arith.constant dense<0.000000e+00> : vector<64x32xf32>
    %315 = tpu.matmul %313, %314, %cst_106 {dimension_numbers = #tpu.dot_dimension_numbers<[1], [0], [0], [1], [0, 0, 1, 1], [], []>} : vector<64x64xbf16>, vector<64x32xbf16>, vector<64x32xf32> -> vector<64x32xf32>
    %316 = arith.addf %299, %315 : vector<64x32xf32>
    %317 = arith.addf %249, %316 : vector<64x32xf32>
    %318 = vector.broadcast %83 : vector<1x32xf32> to vector<64x32xf32>
    %319 = arith.addf %317, %318 : vector<64x32xf32>
    %cst_107 = arith.constant dense<0.000000e+00> : vector<64xf32>
    %320 = vector.multi_reduction <add>, %319, %cst_107 [1] : vector<64x32xf32> to vector<64xf32>
    %321 = vector.shape_cast %320 : vector<64xf32> to vector<64x1xf32>
    %cst_108 = arith.constant 3.200000e+01 : f32
    %322 = vector.broadcast %cst_108 : f32 to vector<64x1xf32>
    %323 = arith.divf %321, %322 : vector<64x1xf32>
    %324 = vector.broadcast %323 : vector<64x1xf32> to vector<64x32xf32>
    %325 = arith.subf %319, %324 : vector<64x32xf32>
    %326 = arith.mulf %325, %325 : vector<64x32xf32>
    %cst_109 = arith.constant dense<0.000000e+00> : vector<64xf32>
    %327 = vector.multi_reduction <add>, %326, %cst_109 [1] : vector<64x32xf32> to vector<64xf32>
    %328 = vector.shape_cast %327 : vector<64xf32> to vector<64x1xf32>
    %cst_110 = arith.constant 3.200000e+01 : f32
    %329 = vector.broadcast %cst_110 : f32 to vector<64x1xf32>
    %330 = arith.divf %328, %329 : vector<64x1xf32>
    %cst_111 = arith.constant 9.99999974E-6 : f32
    %331 = vector.broadcast %cst_111 : f32 to vector<64x1xf32>
    %332 = arith.addf %330, %331 : vector<64x1xf32>
    %333 = math.rsqrt %332 : vector<64x1xf32>
    %334 = vector.broadcast %333 : vector<64x1xf32> to vector<64x32xf32>
    %335 = arith.mulf %325, %334 : vector<64x32xf32>
    %336 = vector.broadcast %84 : vector<1x32xf32> to vector<64x32xf32>
    %337 = arith.mulf %335, %336 : vector<64x32xf32>
    %338 = vector.broadcast %85 : vector<1x32xf32> to vector<64x32xf32>
    %339 = arith.addf %337, %338 : vector<64x32xf32>
    %340 = arith.truncf %339 : vector<64x32xf32> to vector<64x32xbf16>
    %cst_112 = arith.constant dense<0.000000e+00> : vector<64x128xf32>
    %341 = tpu.matmul %340, %86, %cst_112 {dimension_numbers = #tpu.dot_dimension_numbers<[1], [0], [0], [1], [0, 0, 1, 1], [], []>} : vector<64x32xbf16>, vector<32x128xbf16>, vector<64x128xf32> -> vector<64x128xf32>
    %342 = vector.broadcast %87 : vector<1x128xf32> to vector<64x128xf32>
    %343 = arith.addf %341, %342 : vector<64x128xf32>
    %344 = vector.shape_cast %343 : vector<64x128xf32> to vector<8x8x128xf32>
    %c1_113 = arith.constant 1 : index
    %c8_114 = arith.constant 8 : index
    %c0_115 = arith.constant 0 : index
    %345 = vector.load %arg16[%c1_113, %c8_114, %c0_115] : memref<10x17x128xf32, #tpu.memory_space<vmem>>, vector<8x8x128xf32>
    tpu.vector_store %arg16[%c1_113, %c8_114, %c0_115], %344 {strides = array<i32>} : memref<10x17x128xf32, #tpu.memory_space<vmem>>, vector<8x8x128xf32>,
    %c0_116 = arith.constant 0 : index
    %c0_117 = arith.constant 0 : index
    %c0_118 = arith.constant 0 : index
    %346 = vector.load %arg16[%c0_116, %c0_117, %c0_118] : memref<10x17x128xf32, #tpu.memory_space<vmem>>, vector<8x17x128xf32>
    %347 = vector.extract_strided_slice %346 {offsets = [0, 7, 0], sizes = [8, 8, 128], strides = [1, 1, 1]} : vector<8x17x128xf32> to vector<8x8x128xf32>
    %348 = vector.broadcast %56 : vector<1x1x128xf32> to vector<8x8x128xf32>
    %349 = arith.mulf %347, %348 : vector<8x8x128xf32>
    %350 = vector.extract_strided_slice %346 {offsets = [0, 8, 0], sizes = [8, 8, 128], strides = [1, 1, 1]} : vector<8x17x128xf32> to vector<8x8x128xf32>
    %351 = vector.broadcast %59 : vector<1x1x128xf32> to vector<8x8x128xf32>
    %352 = arith.mulf %350, %351 : vector<8x8x128xf32>
    %353 = arith.addf %349, %352 : vector<8x8x128xf32>
    %354 = vector.extract_strided_slice %346 {offsets = [0, 9, 0], sizes = [8, 8, 128], strides = [1, 1, 1]} : vector<8x17x128xf32> to vector<8x8x128xf32>
    %355 = vector.broadcast %62 : vector<1x1x128xf32> to vector<8x8x128xf32>
    %356 = arith.mulf %354, %355 : vector<8x8x128xf32>
    %357 = arith.addf %353, %356 : vector<8x8x128xf32>
    %c1_119 = arith.constant 1 : index
    %c0_120 = arith.constant 0 : index
    %c0_121 = arith.constant 0 : index
    %358 = vector.load %arg16[%c1_119, %c0_120, %c0_121] : memref<10x17x128xf32, #tpu.memory_space<vmem>>, vector<8x17x128xf32>
    %359 = vector.extract_strided_slice %358 {offsets = [0, 7, 0], sizes = [8, 8, 128], strides = [1, 1, 1]} : vector<8x17x128xf32> to vector<8x8x128xf32>
    %360 = vector.broadcast %65 : vector<1x1x128xf32> to vector<8x8x128xf32>
    %361 = arith.mulf %359, %360 : vector<8x8x128xf32>
    %362 = arith.addf %357, %361 : vector<8x8x128xf32>
    %363 = vector.extract_strided_slice %358 {offsets = [0, 8, 0], sizes = [8, 8, 128], strides = [1, 1, 1]} : vector<8x17x128xf32> to vector<8x8x128xf32>
    %364 = vector.broadcast %68 : vector<1x1x128xf32> to vector<8x8x128xf32>
    %365 = arith.mulf %363, %364 : vector<8x8x128xf32>
    %366 = arith.addf %362, %365 : vector<8x8x128xf32>
    %367 = vector.extract_strided_slice %358 {offsets = [0, 9, 0], sizes = [8, 8, 128], strides = [1, 1, 1]} : vector<8x17x128xf32> to vector<8x8x128xf32>
    %368 = vector.broadcast %71 : vector<1x1x128xf32> to vector<8x8x128xf32>
    %369 = arith.mulf %367, %368 : vector<8x8x128xf32>
    %370 = arith.addf %366, %369 : vector<8x8x128xf32>
    %c2_122 = arith.constant 2 : index
    %c0_123 = arith.constant 0 : index
    %c0_124 = arith.constant 0 : index
    %371 = vector.load %arg16[%c2_122, %c0_123, %c0_124] : memref<10x17x128xf32, #tpu.memory_space<vmem>>, vector<8x17x128xf32>
    %372 = vector.extract_strided_slice %371 {offsets = [0, 7, 0], sizes = [8, 8, 128], strides = [1, 1, 1]} : vector<8x17x128xf32> to vector<8x8x128xf32>
    %373 = vector.broadcast %74 : vector<1x1x128xf32> to vector<8x8x128xf32>
    %374 = arith.mulf %372, %373 : vector<8x8x128xf32>
    %375 = arith.addf %370, %374 : vector<8x8x128xf32>
    %376 = vector.extract_strided_slice %371 {offsets = [0, 8, 0], sizes = [8, 8, 128], strides = [1, 1, 1]} : vector<8x17x128xf32> to vector<8x8x128xf32>
    %377 = vector.broadcast %77 : vector<1x1x128xf32> to vector<8x8x128xf32>
    %378 = arith.mulf %376, %377 : vector<8x8x128xf32>
    %379 = arith.addf %375, %378 : vector<8x8x128xf32>
    %380 = vector.extract_strided_slice %371 {offsets = [0, 9, 0], sizes = [8, 8, 128], strides = [1, 1, 1]} : vector<8x17x128xf32> to vector<8x8x128xf32>
    %381 = vector.broadcast %80 : vector<1x1x128xf32> to vector<8x8x128xf32>
    %382 = arith.mulf %380, %381 : vector<8x8x128xf32>
    %383 = arith.addf %379, %382 : vector<8x8x128xf32>
    %384 = vector.broadcast %82 : vector<1x1x128xf32> to vector<8x8x128xf32>
    %385 = arith.addf %383, %384 : vector<8x8x128xf32>
    %cst_125 = arith.constant 5.000000e-01 : f32
    %386 = vector.broadcast %cst_125 : f32 to vector<8x8x128xf32>
    %387 = arith.mulf %386, %385 : vector<8x8x128xf32>
    %cst_126 = arith.constant 4.471500e-02 : f32
    %388 = vector.broadcast %cst_126 : f32 to vector<8x8x128xf32>
    %389 = arith.mulf %388, %385 : vector<8x8x128xf32>
    %390 = arith.mulf %389, %385 : vector<8x8x128xf32>
    %391 = arith.mulf %390, %385 : vector<8x8x128xf32>
    %392 = arith.addf %385, %391 : vector<8x8x128xf32>
    %cst_127 = arith.constant 0.797884583 : f32
    %393 = vector.broadcast %cst_127 : f32 to vector<8x8x128xf32>
    %394 = arith.mulf %393, %392 : vector<8x8x128xf32>
    %395 = math.tanh %394 : vector<8x8x128xf32>
    %cst_128 = arith.constant 1.000000e+00 : f32
    %396 = vector.broadcast %cst_128 : f32 to vector<8x8x128xf32>
    %397 = arith.addf %396, %395 : vector<8x8x128xf32>
    %398 = arith.mulf %387, %397 : vector<8x8x128xf32>
    %399 = vector.shape_cast %398 : vector<8x8x128xf32> to vector<64x128xf32>
    %400 = arith.truncf %399 : vector<64x128xf32> to vector<64x128xbf16>
    %cst_129 = arith.constant dense<0.000000e+00> : vector<64x32xf32>
    %401 = tpu.matmul %400, %88, %cst_129 {dimension_numbers = #tpu.dot_dimension_numbers<[1], [0], [0], [1], [0, 0, 1, 1], [], []>} : vector<64x128xbf16>, vector<128x32xbf16>, vector<64x32xf32> -> vector<64x32xf32>
    %402 = vector.broadcast %89 : vector<1x32xf32> to vector<64x32xf32>
    %403 = arith.addf %401, %402 : vector<64x32xf32>
    %404 = arith.addf %319, %403 : vector<64x32xf32>
    %c1_130 = arith.constant 1 : index
    %c0_131 = arith.constant 0 : index
    %c0_132 = arith.constant 0 : index
    %405 = vector.load %arg15[%c1_130, %c0_131, %c0_132] : memref<2x64x32xf32, #tpu.memory_space<vmem>>, vector<1x64x32xf32>
    %406 = vector.shape_cast %405 : vector<1x64x32xf32> to vector<64x32xf32>
    %407 = vector.shape_cast %404 : vector<64x32xf32> to vector<1x64x32xf32>
    tpu.vector_store %arg15[%c1_130, %c0_131, %c0_132], %407 {strides = array<i32>} : memref<2x64x32xf32, #tpu.memory_space<vmem>>, vector<1x64x32xf32>,
    return
  }
  func.func @transform_0(%arg0: i32) -> (i32, i32, i32) {
    %c0_i32 = arith.constant 0 : i32
    %c0_i32_0 = arith.constant 0 : i32
    %c0_i32_1 = arith.constant 0 : i32
    return %arg0, %c0_i32, %c0_i32_0 : i32, i32, i32
  }
  func.func @transform_1(%arg0: i32) -> (i32, i32) {
    %c0_i32 = arith.constant 0 : i32
    %c0_i32_0 = arith.constant 0 : i32
    %c0_i32_1 = arith.constant 0 : i32
    return %c0_i32, %c0_i32_0 : i32, i32
  }
  func.func @transform_2(%arg0: i32) -> (i32, i32) {
    %c0_i32 = arith.constant 0 : i32
    %c0_i32_0 = arith.constant 0 : i32
    %c0_i32_1 = arith.constant 0 : i32
    return %c0_i32, %c0_i32_0 : i32, i32
  }
  func.func @transform_3(%arg0: i32) -> (i32, i32) {
    %c0_i32 = arith.constant 0 : i32
    %c0_i32_0 = arith.constant 0 : i32
    %c0_i32_1 = arith.constant 0 : i32
    return %c0_i32, %c0_i32_0 : i32, i32
  }
  func.func @transform_4(%arg0: i32) -> (i32, i32) {
    %c0_i32 = arith.constant 0 : i32
    %c0_i32_0 = arith.constant 0 : i32
    %c0_i32_1 = arith.constant 0 : i32
    return %c0_i32, %c0_i32_0 : i32, i32
  }
  func.func @transform_5(%arg0: i32) -> (i32, i32) {
    %c0_i32 = arith.constant 0 : i32
    %c0_i32_0 = arith.constant 0 : i32
    %c0_i32_1 = arith.constant 0 : i32
    return %c0_i32, %c0_i32_0 : i32, i32
  }
  func.func @transform_6(%arg0: i32) -> (i32, i32) {
    %c0_i32 = arith.constant 0 : i32
    %c0_i32_0 = arith.constant 0 : i32
    %c0_i32_1 = arith.constant 0 : i32
    return %c0_i32, %c0_i32_0 : i32, i32
  }
  func.func @transform_7(%arg0: i32) -> (i32, i32) {
    %c0_i32 = arith.constant 0 : i32
    %c0_i32_0 = arith.constant 0 : i32
    %c0_i32_1 = arith.constant 0 : i32
    return %c0_i32, %c0_i32_0 : i32, i32
  }
  func.func @transform_8(%arg0: i32) -> (i32, i32) {
    %c0_i32 = arith.constant 0 : i32
    %c0_i32_0 = arith.constant 0 : i32
    %c0_i32_1 = arith.constant 0 : i32
    return %c0_i32, %c0_i32_0 : i32, i32
  }
  func.func @transform_9(%arg0: i32) -> (i32, i32) {
    %c0_i32 = arith.constant 0 : i32
    %c0_i32_0 = arith.constant 0 : i32
    %c0_i32_1 = arith.constant 0 : i32
    return %c0_i32, %c0_i32_0 : i32, i32
  }
  func.func @transform_10(%arg0: i32) -> (i32, i32, i32) {
    %c0_i32 = arith.constant 0 : i32
    %c0_i32_0 = arith.constant 0 : i32
    %c0_i32_1 = arith.constant 0 : i32
    %c0_i32_2 = arith.constant 0 : i32
    return %c0_i32, %c0_i32_0, %c0_i32_1 : i32, i32, i32
  }
  func.func @transform_11(%arg0: i32) -> (i32, i32) {
    %c0_i32 = arith.constant 0 : i32
    %c0_i32_0 = arith.constant 0 : i32
    %c0_i32_1 = arith.constant 0 : i32
    return %c0_i32, %c0_i32_0 : i32, i32
  }
  func.func @transform_12(%arg0: i32) -> (i32, i32) {
    %c0_i32 = arith.constant 0 : i32
    %c0_i32_0 = arith.constant 0 : i32
    %c0_i32_1 = arith.constant 0 : i32
    return %c0_i32, %c0_i32_0 : i32, i32
  }
  func.func @transform_13(%arg0: i32) -> (i32, i32) {
    %c0_i32 = arith.constant 0 : i32
    %c0_i32_0 = arith.constant 0 : i32
    %c0_i32_1 = arith.constant 0 : i32
    return %c0_i32, %c0_i32_0 : i32, i32
  }
  func.func @transform_14(%arg0: i32) -> (i32, i32, i32) {
    %c0_i32 = arith.constant 0 : i32
    %c0_i32_0 = arith.constant 0 : i32
    %c0_i32_1 = arith.constant 0 : i32
    return %arg0, %c0_i32, %c0_i32_0 : i32, i32, i32
  }
}

</mosaic_0001>

<bundles_post_ra>
// kernel: tpu_custom_call.1
= control target key start
LH: loop header
LB: loop body
LE: loop exit
PB: predicated region body
PF: predicated region fallthrough
CT: control target
= control target key end

     0   :  { %vm66_vm0 = vcmask 261120   ;;  %vm526_vm1 = vcmask 1043456   ;;  %s6885_s22 = smov 64   ;;  %s6886_s23 = smov 56   ;;  %vm501_vm2 = vcmask 64512   ;;  %vm1229_vm3 = vcmask 523264   ;;  %s9813_s0 = inlined_call_operand.vmem [shape: f32[2,64,32], index: 0, kind: input, shape index: {}]   ;;  %s9814_s3 = inlined_call_operand.vmem [shape: bf16[32,96], index: 3, kind: input, shape index: {}]   ;;  %s9815_s1 = inlined_call_operand.vmem [shape: f32[1,32], index: 1, kind: input, shape index: {}]   ;;  %s9816_s2 = inlined_call_operand.vmem [shape: f32[1,32], index: 2, kind: input, shape index: {}]   ;;  %s9817_s4 = inlined_call_operand.vmem [shape: bf16[32,32], index: 4, kind: input, shape index: {}]   ;;  %s9818_s5 = inlined_call_operand.vmem [shape: f32[1,32], index: 5, kind: input, shape index: {}]   ;;  %s9819_s12 = inlined_call_operand.vmem [shape: bf16[128,32], index: 12, kind: input, shape index: {}]   ;;  %s9820_s8 = inlined_call_operand.vmem [shape: bf16[32,128], index: 8, kind: input, shape index: {}]   ;;  %s9821_s6 = inlined_call_operand.vmem [shape: f32[1,32], index: 6, kind: input, shape index: {}]   ;;  %s9822_s7 = inlined_call_operand.vmem [shape: f32[1,32], index: 7, kind: input, shape index: {}]   ;;  %s9823_s10 = inlined_call_operand.vmem [shape: f32[3,3,128], index: 10, kind: input, shape index: {}]   ;;  %s9824_s9 = inlined_call_operand.vmem [shape: f32[1,128], index: 9, kind: input, shape index: {}]   ;;  %s9825_s11 = inlined_call_operand.vmem [shape: f32[1,128], index: 11, kind: input, shape index: {}]   ;;  %s9826_s13 = inlined_call_operand.vmem [shape: f32[1,32], index: 13, kind: input, shape index: {}]   ;;  %s9827_s14 = inlined_call_operand.vmem [shape: f32[2,64,32], index: 14, kind: output, shape index: {}]  }
   0x1   :  { %v48_v0 = vld [vmem:[%s9813_s0] sm:$0xff]  ;;  %v50_v1 = vld [vmem:[%s9813_s0 + $0x10] sm:$0xff]  ;;  %v49_v2 = vld [vmem:[%s9813_s0 + $0x8] sm:$0xff]  ;;  %s6887_s26 = smov 40   ;;  %s6888_s27 = smov 88   ;;  %vm2630_vm4 = vcmask 1045504  }
   0x2   :  { %v67_v3 = vsel %vm66_vm0, %v48_v0, 0.0  ;;  %v73_v4 = vsel %vm66_vm0, %v50_v1, 0.0  ;;  %v51_v5 = vld [vmem:[%s9813_s0 + $0x18] sm:$0xff]  ;;  %v70_v6 = vsel %vm66_vm0, %v49_v2, 0.0  ;;  %v52_v8 = vld [vmem:[%s9813_s0 + $0x20] sm:$0xff]  ;;  %v53_v9 = vld [vmem:[%s9813_s0 + $0x28] sm:$0xff] }
   0x3   :  { %68 = vadd.xlane.f32.xlu0 %v67_v3  ;;  %74 = vadd.xlane.f32.xlu1 %v73_v4  ;;  %v76_v7 = vsel %vm66_vm0, %v51_v5, 0.0  ;;  %v79_v10 = vsel %vm66_vm0, %v52_v8, 0.0  ;;  %v82_v11 = vsel %vm66_vm0, %v53_v9, 0.0  ;;  %v6999_v12 = vld [vmem:[%s9813_s0 + $0x30] sm:$0xff]  ;;  %v7004_v13 = vld [vmem:[%s9813_s0 + $0x38] sm:$0xff]  ;;  %v7013_v16 = vld [vmem:[%s9813_s0 + $0x40] sm:$0xff] }
   0x4   :  { %v85_v14 = vsel %vm66_vm0, %v6999_v12, 0.0  ;;  %v88_v15 = vsel %vm66_vm0, %v7004_v13, 0.0  ;;  %v7018_v17 = vld [vmem:[%s9813_s0 + $0x48] sm:$0xff]  ;;  %v91_v18 = vsel %vm66_vm0, %v7013_v16, 0.0  ;;  %v7027_v20 = vld [vmem:[%s9813_s0 + $0x50] sm:$0xff]  ;;  %v7032_v21 = vld [vmem:[%s9813_s0 + $0x58] sm:$0xff] }
   0x5   :  { %v94_v19 = vsel %vm66_vm0, %v7018_v17, 0.0  ;;  %v97_v22 = vsel %vm66_vm0, %v7027_v20, 0.0  ;;  %v100_v23 = vsel %vm66_vm0, %v7032_v21, 0.0  ;;  %v7041_v24 = vld [vmem:[%s9813_s0 + $0x60] sm:$0xff]  ;;  %v7046_v25 = vld [vmem:[%s9813_s0 + $0x68] sm:$0xff]  ;;  %v7055_v28 = vld [vmem:[%s9813_s0 + $0x70] sm:$0xff] }
   0x6   :  { %v103_v26 = vsel %vm66_vm0, %v7041_v24, 0.0  ;;  %v106_v27 = vsel %vm66_vm0, %v7046_v25, 0.0  ;;  %v7060_v29 = vld [vmem:[%s9813_s0 + $0x78] sm:$0xff]  ;;  %v109_v30 = vsel %vm66_vm0, %v7055_v28, 0.0  ;;  %s6889_s28 = smov 48   ;;  %s6890_s29 = smov 96  }
   0x7   :  { %71 = vadd.xlane.f32.xlu0 %v70_v6  ;;  %77 = vadd.xlane.f32.xlu1 %v76_v7  ;;  %v112_v31 = vsel %vm66_vm0, %v7060_v29, 0.0  ;;  %s6891_s30 = smov 120   ;;  %s6892_s15 = smov 80   ;;  %vm3278_vm5 = vcmask 1040384  }
   0x8   :  { %s6893_s16 = smov 112   ;;  %s6895_s18 = smov 104  }
   0xb   :  { %80 = vadd.xlane.f32.xlu0 %v79_v10  ;;  %83 = vadd.xlane.f32.xlu1 %v82_v11 }
   0xf   :  { %86 = vadd.xlane.f32.xlu0 %v85_v14  ;;  %89 = vadd.xlane.f32.xlu1 %v88_v15 }
  0x13   :  { %92 = vadd.xlane.f32.xlu0 %v91_v18  ;;  %95 = vadd.xlane.f32.xlu1 %v94_v19 }
  0x17   :  { %98 = vadd.xlane.f32.xlu0 %v97_v22  ;;  %101 = vadd.xlane.f32.xlu1 %v100_v23 }
  0x1b   :  { %104 = vadd.xlane.f32.xlu0 %v103_v26  ;;  %107 = vadd.xlane.f32.xlu1 %v106_v27 }
  0x1f   :  { %110 = vadd.xlane.f32.xlu0 %v109_v30  ;;  %113 = vadd.xlane.f32.xlu1 %v112_v31 }
  0x8c   :  { %v69_v32 = vpop.xlane.xlu0 %68  ;;  %v75_v33 = vpop.xlane.xlu1 %74 }
  0x8d   :  { %v116_v34 = vmul.f32 0.03125, %v69_v32  ;;  %v118_v35 = vmul.f32 0.03125, %v75_v33 }
  0x8f   :  { %v7066_v36 = vsub.f32 %v48_v0, %v116_v34  ;;  %v7068_v37 = vsub.f32 %v50_v1, %v118_v35 }
  0x90   :  { %v72_v38 = vpop.xlane.xlu0 %71  ;;  %v78_v39 = vpop.xlane.xlu1 %77 }
  0x91   :  { %v117_v40 = vmul.f32 0.03125, %v72_v38  ;;  %v119_v41 = vmul.f32 0.03125, %v78_v39  ;;  %v148_v42 = vmul.f32 %v7066_v36, %v7066_v36  ;;  %v150_v43 = vmul.f32 %v7068_v37, %v7068_v37 }
  0x93   :  { %v7074_v44 = vsub.f32 %v49_v2, %v117_v40  ;;  %v7076_v45 = vsub.f32 %v51_v5, %v119_v41  ;;  %v164_v46 = vsel %vm66_vm0, %v148_v42, 0.0  ;;  %v170_v49 = vsel %vm66_vm0, %v150_v43, 0.0 }
  0x94   :  { %165 = vadd.xlane.f32.xlu0 %v164_v46  ;;  %v81_v47 = vpop.xlane.xlu0 %80  ;;  %v84_v48 = vpop.xlane.xlu1 %83 }
  0x95   :  { %v120_v50 = vmul.f32 0.03125, %v81_v47  ;;  %v121_v51 = vmul.f32 0.03125, %v84_v48  ;;  %v149_v52 = vmul.f32 %v7074_v44, %v7074_v44  ;;  %v151_v53 = vmul.f32 %v7076_v45, %v7076_v45 }
  0x97   :  { %v7084_v54 = vsub.f32 %v52_v8, %v120_v50  ;;  %v7086_v55 = vsub.f32 %v53_v9, %v121_v51  ;;  %v167_v56 = vsel %vm66_vm0, %v149_v52, 0.0  ;;  %v173_v59 = vsel %vm66_vm0, %v151_v53, 0.0  ;;  %v6456_v53 = vld [vmem:[%s9814_s3] sm:$0xff]  }
  0x98   :  { %171 = vadd.xlane.f32.xlu0 %v170_v49  ;;  %168 = vadd.xlane.f32.xlu1 %v167_v56  ;;  %v87_v57 = vpop.xlane.xlu0 %86  ;;  %v90_v58 = vpop.xlane.xlu1 %89 }
  0x99   :  { %v122_v60 = vmul.f32 0.03125, %v87_v57  ;;  %v123_v61 = vmul.f32 0.03125, %v90_v58  ;;  %v152_v62 = vmul.f32 %v7084_v54, %v7084_v54  ;;  %v153_v63 = vmul.f32 %v7086_v55, %v7086_v55 }
  0x9b   :  { %v7095_v0 = vsub.f32 %v6999_v12, %v122_v60  ;;  %v7098_v1 = vsub.f32 %v7004_v13, %v123_v61  ;;  %v176_v2 = vsel %vm66_vm0, %v152_v62, 0.0  ;;  %v179_v5 = vsel %vm66_vm0, %v153_v63, 0.0 }
  0x9c   :  { %174 = vadd.xlane.f32.xlu1 %v173_v59  ;;  %177 = vadd.xlane.f32.xlu0 %v176_v2  ;;  %v93_v3 = vpop.xlane.xlu0 %92  ;;  %v96_v4 = vpop.xlane.xlu1 %95 }
  0x9d   :  { %v124_v6 = vmul.f32 0.03125, %v93_v3  ;;  %v125_v7 = vmul.f32 0.03125, %v96_v4  ;;  %v154_v8 = vmul.f32 %v7095_v0, %v7095_v0  ;;  %v155_v9 = vmul.f32 %v7098_v1, %v7098_v1 }
  0x9f   :  { %v7107_v10 = vsub.f32 %v7013_v16, %v124_v6  ;;  %v7110_v11 = vsub.f32 %v7018_v17, %v125_v7  ;;  %v182_v12 = vsel %vm66_vm0, %v154_v8, 0.0  ;;  %v185_v15 = vsel %vm66_vm0, %v155_v9, 0.0 }
  0xa0   :  { %180 = vadd.xlane.f32.xlu1 %v179_v5  ;;  %183 = vadd.xlane.f32.xlu0 %v182_v12  ;;  %v99_v13 = vpop.xlane.xlu0 %98  ;;  %v102_v14 = vpop.xlane.xlu1 %101 }
  0xa1   :  { %v126_v18 = vmul.f32 0.03125, %v99_v13  ;;  %v127_v19 = vmul.f32 0.03125, %v102_v14  ;;  %v156_v22 = vmul.f32 %v7107_v10, %v7107_v10  ;;  %v157_v16 = vmul.f32 %v7110_v11, %v7110_v11 }
  0xa3   :  { %v7119_v23 = vsub.f32 %v7027_v20, %v126_v18  ;;  %v7122_v17 = vsub.f32 %v7032_v21, %v127_v19  ;;  %v188_v26 = vsel %vm66_vm0, %v156_v22, 0.0  ;;  %v191_v31 = vsel %vm66_vm0, %v157_v16, 0.0 }
  0xa4   :  { %186 = vadd.xlane.f32.xlu1 %v185_v15  ;;  %189 = vadd.xlane.f32.xlu0 %v188_v26  ;;  %v105_v27 = vpop.xlane.xlu0 %104  ;;  %v108_v30 = vpop.xlane.xlu1 %107 }
  0xa5   :  { %v128_v32 = vmul.f32 0.03125, %v105_v27  ;;  %v129_v33 = vmul.f32 0.03125, %v108_v30  ;;  %v158_v34 = vmul.f32 %v7119_v23, %v7119_v23  ;;  %v159_v20 = vmul.f32 %v7122_v17, %v7122_v17 }
  0xa7   :  { %v7131_v35 = vsub.f32 %v7041_v24, %v128_v32  ;;  %v7134_v21 = vsub.f32 %v7046_v25, %v129_v33  ;;  %v194_v38 = vsel %vm66_vm0, %v158_v34, 0.0  ;;  %v197_v41 = vsel %vm66_vm0, %v159_v20, 0.0  ;;  %v7165_v32 = vld [vmem:[%s9815_s1] ss:$0 sm:$0xff] }
  0xa8   :  { %192 = vadd.xlane.f32.xlu1 %v191_v31  ;;  %195 = vadd.xlane.f32.xlu0 %v194_v38  ;;  %v111_v39 = vpop.xlane.xlu0 %110  ;;  %v114_v40 = vpop.xlane.xlu1 %113 }
  0xa9   :  { %v130_v42 = vmul.f32 0.03125, %v111_v39  ;;  %v131_v43 = vmul.f32 0.03125, %v114_v40  ;;  %v160_v46 = vmul.f32 %v7131_v35, %v7131_v35  ;;  %v161_v24 = vmul.f32 %v7134_v21, %v7134_v21 }
  0xab   :  { %v7143_v47 = vsub.f32 %v7055_v28, %v130_v42  ;;  %v7146_v25 = vsub.f32 %v7060_v29, %v131_v43  ;;  %v200_v48 = vsel %vm66_vm0, %v160_v46, 0.0  ;;  %v203_v49 = vsel %vm66_vm0, %v161_v24, 0.0  ;;  %v6455_v29 = vld [vmem:[%s9814_s3 + $0x8] sm:$0xff]   ;;  %v7172_v24 = vld [vmem:[%s9816_s2] ss:$0 sm:$0xff] }
  0xac   :  { %198 = vadd.xlane.f32.xlu1 %v197_v41  ;;  %201 = vadd.xlane.f32.xlu0 %v200_v48 }
  0xad   :  { %v162_v50 = vmul.f32 %v7143_v47, %v7143_v47  ;;  %v163_v51 = vmul.f32 %v7146_v25, %v7146_v25  ;;  %5987 = vmatprep.subr.bf16.mxu0 %v6455_v29 }
  0xae   :  { %5988 = vmatpush3.bf16.msra.mxu0 %v6455_v29 }
  0xaf   :  { %v206_v52 = vsel %vm66_vm0, %v162_v50, 0.0  ;;  %v209_v28 = vsel %vm66_vm0, %v163_v51, 0.0  ;;  %5989 = vmatprep.subr.bf16.mxu0 %v6456_v53 }
  0xb0   :  { %204 = vadd.xlane.f32.xlu1 %v203_v49  ;;  %207 = vadd.xlane.f32.xlu0 %v206_v52 }
  0xb2   :  { %5990 = vmatpush3.bf16.msra.mxu0 %v6456_v53 }
  0xb4   :  { %210 = vadd.xlane.f32.xlu1 %v209_v28 }
 0x11d   :  { %v166_v56 = vpop.xlane.xlu0 %165 }
 0x11e   :  { %v212_v57 = vmul.f32 0.03125, %v166_v56 }
 0x120   :  { %v228_v58 = vadd.f32 1e-05, %v212_v57 }
 0x121   :  { %v169_v59 = vpop.xlane.xlu1 %168  ;;  %v172_v60 = vpop.xlane.xlu0 %171 }
 0x122   :  { %6467 = vrsqrt.f32 %v228_v58  ;;  %v213_v61 = vmul.f32 0.03125, %v169_v59  ;;  %v214_v62 = vmul.f32 0.03125, %v172_v60 }
 0x124   :  { %v229_v63 = vadd.f32 1e-05, %v213_v61  ;;  %v230_v2 = vadd.f32 1e-05, %v214_v62 }
 0x125   :  { %v175_v3 = vpop.xlane.xlu1 %174  ;;  %v178_v4 = vpop.xlane.xlu0 %177 }
 0x126   :  { %6469 = vrsqrt.f32 %v229_v63  ;;  %v215_v5 = vmul.f32 0.03125, %v175_v3  ;;  %v216_v6 = vmul.f32 0.03125, %v178_v4 }
 0x127   :  { %6471 = vrsqrt.f32 %v230_v2 }
 0x128   :  { %v231_v7 = vadd.f32 1e-05, %v215_v5  ;;  %v232_v8 = vadd.f32 1e-05, %v216_v6 }
 0x129   :  { %v181_v9 = vpop.xlane.xlu1 %180  ;;  %v184_v12 = vpop.xlane.xlu0 %183 }
 0x12a   :  { %6473 = vrsqrt.f32 %v231_v7  ;;  %v217_v13 = vmul.f32 0.03125, %v181_v9  ;;  %v218_v14 = vmul.f32 0.03125, %v184_v12 }
 0x12b   :  { %6475 = vrsqrt.f32 %v232_v8 }
 0x12c   :  { %v233_v15 = vadd.f32 1e-05, %v217_v13  ;;  %v234_v18 = vadd.f32 1e-05, %v218_v14 }
 0x12d   :  { %v187_v19 = vpop.xlane.xlu1 %186  ;;  %v190_v22 = vpop.xlane.xlu0 %189 }
 0x12e   :  { %6477 = vrsqrt.f32 %v233_v15  ;;  %v219_v16 = vmul.f32 0.03125, %v187_v19  ;;  %v220_v26 = vmul.f32 0.03125, %v190_v22 }
 0x12f   :  { %v6468_v27 = vpop.eup %6467  ;;  %6479 = vrsqrt.f32 %v234_v18 }
 0x130   :  { %v235_v30 = vadd.f32 1e-05, %v219_v16  ;;  %v236_v31 = vadd.f32 1e-05, %v220_v26  ;;  %v260_v33 = vmul.f32 %v6468_v27, %v7066_v36 }
 0x131   :  { %v193_v34 = vpop.xlane.xlu1 %192  ;;  %v196_v20 = vpop.xlane.xlu0 %195 }
 0x132   :  { %6481 = vrsqrt.f32 %v235_v30  ;;  %v221_v38 = vmul.f32 0.03125, %v193_v34  ;;  %v222_v39 = vmul.f32 0.03125, %v196_v20  ;;  %v282_v41 = vmul.f32 %v7165_v32, %v260_v33 }
 0x133   :  { %v6470_v40 = vpop.eup %6469  ;;  %6483 = vrsqrt.f32 %v236_v31 }
 0x134   :  { %v6472_v42 = vpop.eup %6471  ;;  %v237_v43 = vadd.f32 1e-05, %v221_v38  ;;  %v238_v46 = vadd.f32 1e-05, %v222_v39  ;;  %v261_v48 = vmul.f32 %v6470_v40, %v7074_v44  ;;  %v304_v53 = vadd.f32 %v7172_v24, %v282_v41 }
 0x135   :  { %v199_v36 = vpop.xlane.xlu1 %198  ;;  %v202_v49 = vpop.xlane.xlu0 %201  ;;  %v262_v50 = vmul.f32 %v6472_v42, %v7068_v37 }
 0x136   :  { %6485 = vrsqrt.f32 %v237_v43  ;;  %v223_v51 = vmul.f32 0.03125, %v199_v36  ;;  %v224_v52 = vmul.f32 0.03125, %v202_v49  ;;  %v283_v28 = vmul.f32 %v7165_v32, %v261_v48 }
 0x137   :  { %v6474_v29 = vpop.eup %6473  ;;  %6487 = vrsqrt.f32 %v238_v46  ;;  %v284_v37 = vmul.f32 %v7165_v32, %v262_v50 }
 0x138   :  { %v6476_v56 = vpop.eup %6475  ;;  %v239_v57 = vadd.f32 1e-05, %v223_v51  ;;  %v240_v58 = vadd.f32 1e-05, %v224_v52  ;;  %v305_v59 = vadd.f32 %v7172_v24, %v283_v28  ;;  %v263_v44 = vmul.f32 %v6474_v29, %v7076_v45 }
 0x139   :  { %v205_v60 = vpop.xlane.xlu1 %204  ;;  %v208_v61 = vpop.xlane.xlu0 %207  ;;  %v264_v62 = vmul.f32 %v6476_v56, %v7084_v54  ;;  %v306_v54 = vadd.f32 %v7172_v24, %v284_v37 }
 0x13a   :  { %6489 = vrsqrt.f32 %v239_v57  ;;  %v225_v63 = vmul.f32 0.03125, %v205_v60  ;;  %v226_v2 = vmul.f32 0.03125, %v208_v61  ;;  %v320_v3 = vpack.c.bf16 %v305_v59, %v304_v53 }
 0x13b   :  { %v6478_v4 = vpop.eup %6477  ;;  %6491 = vrsqrt.f32 %v240_v58  ;;  %v285_v5 = vmul.f32 %v7165_v32, %v263_v44  ;;  %v286_v6 = vmul.f32 %v7165_v32, %v264_v62 }
 0x13c   :  { %v6480_v7 = vpop.eup %6479  ;;  %v241_v8 = vadd.f32 1e-05, %v225_v63  ;;  %v242_v9 = vadd.f32 1e-05, %v226_v2  ;;  %5991 = vmatprep.mubr.msk.bf16.mxu0 %vm66_vm0, %v320_v3  ;;  %v265_v45 = vmul.f32 %v6478_v4, %v7086_v55 }
 0x13d   :  { %v211_v12 = vpop.xlane.xlu1 %210  ;;  %v307_v13 = vadd.f32 %v7172_v24, %v285_v5  ;;  %v266_v14 = vmul.f32 %v6480_v7, %v7095_v0  ;;  %v308_v16 = vadd.f32 %v7172_v24, %v286_v6 }
 0x13e   :  { %6493 = vrsqrt.f32 %v241_v8  ;;  %v227_v15 = vmul.f32 0.03125, %v211_v12  ;;  %v287_v18 = vmul.f32 %v7165_v32, %v265_v45 }
 0x13f   :  { %v6482_v19 = vpop.eup %6481  ;;  %6495 = vrsqrt.f32 %v242_v9  ;;  %v321_v22 = vpack.c.bf16 %v307_v13, %v306_v54  ;;  %v288_v31 = vmul.f32 %v7165_v32, %v266_v14 }
 0x140   :  { %v6484_v26 = vpop.eup %6483  ;;  %v243_v27 = vadd.f32 1e-05, %v227_v15  ;;  %v309_v55 = vadd.f32 %v7172_v24, %v287_v18  ;;  %v267_v30 = vmul.f32 %v6482_v19, %v7098_v1 }
 0x141   :  { %5992 = vmatmul.mubr.msk.bf16.vlgmr.msra.gmra.mxu0 %vm66_vm0, %v321_v22  ;;  %v268_v0 = vmul.f32 %v6484_v26, %v7107_v10  ;;  %v310_v39 = vadd.f32 %v7172_v24, %v288_v31 }
 0x142   :  { %6497 = vrsqrt.f32 %v243_v27  ;;  %v322_v33 = vpack.c.bf16 %v309_v55, %v308_v16  ;;  %v289_v34 = vmul.f32 %v7165_v32, %v267_v30 }
 0x143   :  { %v6486_v20 = vpop.eup %6485  ;;  %v290_v41 = vmul.f32 %v7165_v32, %v268_v0 }
 0x144   :  { %v6488_v38 = vpop.eup %6487  ;;  %5995 = vmatprep.mubr.msk.bf16.mxu0 %vm66_vm0, %v322_v33  ;;  %v311_v40 = vadd.f32 %v7172_v24, %v289_v34  ;;  %v269_v1 = vmul.f32 %v6486_v20, %v7110_v11  ;;  %v475_v20 = vld [vmem:[%s9817_s4 + $0x8] sm:$0xf] }
 0x145   :  { %v270_v42 = vmul.f32 %v6488_v38, %v7119_v23  ;;  %v312_v36 = vadd.f32 %v7172_v24, %v290_v41  ;;  %6409 = vmatprep.subr.msk.bf16.mxu0 %vm526_vm1, %v475_v20  ;;  %v824_v38 = vsel %vm526_vm1, %v475_v20, 0  ;;  %v476_v41 = vld [vmem:[%s9817_s4 + $0xc] sm:$0xf] }
 0x146   :  { %v323_v43 = vpack.c.bf16 %v311_v40, %v310_v39  ;;  %v291_v10 = vmul.f32 %v7165_v32, %v269_v1  ;;  %6044 = vmatpush3.bf16.msra.mxu0 %v824_v38 }
 0x147   :  { %v6490_v46 = vpop.eup %6489  ;;  %v292_v51 = vmul.f32 %v7165_v32, %v270_v42 }
 0x148   :  { %v6492_v48 = vpop.eup %6491  ;;  %v313_v49 = vadd.f32 %v7172_v24, %v291_v10  ;;  %v271_v50 = vmul.f32 %v6490_v46, %v7122_v17 }
 0x149   :  { %5996 = vmatmul.mubr.msk.bf16.gmra.mxu0 %vm66_vm0, %v323_v43  ;;  %v272_v11 = vmul.f32 %v6492_v48, %v7131_v35  ;;  %v314_v53 = vadd.f32 %v7172_v24, %v292_v51 }
 0x14a   :  { %v324_v52 = vpack.c.bf16 %v313_v49, %v312_v36  ;;  %v293_v23 = vmul.f32 %v7165_v32, %v271_v50 }
 0x14b   :  { %v6494_v28 = vpop.eup %6493  ;;  %v294_v17 = vmul.f32 %v7165_v32, %v272_v11 }
 0x14c   :  { %v6496_v29 = vpop.eup %6495  ;;  %5999 = vmatprep.mubr.msk.bf16.mxu0 %vm66_vm0, %v324_v52  ;;  %v315_v56 = vadd.f32 %v7172_v24, %v293_v23  ;;  %v273_v57 = vmul.f32 %v6494_v28, %v7134_v21  ;;  %v972_v23 = vsel %vm526_vm1, %v476_v41, 0 }
 0x14d   :  { %v274_v58 = vmul.f32 %v6496_v29, %v7143_v47  ;;  %v316_v60 = vadd.f32 %v7172_v24, %v294_v17 }
 0x14e   :  { %v325_v59 = vpack.c.bf16 %v315_v56, %v314_v53  ;;  %v295_v35 = vmul.f32 %v7165_v32, %v273_v57 }
 0x14f   :  { %v6498_v44 = vpop.eup %6497  ;;  %v296_v62 = vmul.f32 %v7165_v32, %v274_v58 }
 0x150   :  { %v317_v61 = vadd.f32 %v7172_v24, %v295_v35  ;;  %v275_v37 = vmul.f32 %v6498_v44, %v7146_v25  ;;  %v473_v25 = vld [vmem:[%s9817_s4] sm:$0xf] }
 0x151   :  { %6000 = vmatmul.mubr.msk.bf16.gmra.mxu0 %vm66_vm0, %v325_v59  ;;  %v318_v47 = vadd.f32 %v7172_v24, %v296_v62  ;;  %6407 = vmatprep.subr.msk.bf16.mxu1 %vm526_vm1, %v473_v25  ;;  %v528_v4 = vsel %vm526_vm1, %v473_v25, 0 }
 0x152   :  { %v326_v63 = vpack.c.bf16 %v317_v61, %v316_v60  ;;  %v297_v21 = vmul.f32 %v7165_v32, %v275_v37  ;;  %6008 = vmatpush3.bf16.msra.mxu1 %v528_v4  ;;  %v7236_v32 = vld [vmem:[%s9817_s4 + $0x4] sm:$0xf]  ;;  %s6894_s4 = smov 72  }
 0x153   :  { %6408 = vmatprep.subr.msk.bf16.mxu1 %vm526_vm1, %v7236_v32  ;;  %v676_v40 = vsel %vm526_vm1, %v7236_v32, 0 }
 0x154   :  { %6003 = vmatprep.mubr.msk.bf16.mxu0 %vm66_vm0, %v326_v63  ;;  %v319_v2 = vadd.f32 %v7172_v24, %v297_v21 }
 0x156   :  { %v327_v3 = vpack.c.bf16 %v319_v2, %v318_v47 }
 0x159   :  { %6004 = vmatmul.mubr.msk.bf16.gmra.mxu0 %vm66_vm0, %v327_v3 }
 0x201   :  { %v5993_v24 = vpop.f32.mrf.mxu0 }
 0x203   :  { %v402_v5 = vpop.f32.mrf.mxu0 }
 0x205   :  { %v5994_v6 = vpop.f32.mrf.mxu0 }
 0x206   :  { %v7240_v7 = vpack.c.bf16 %v5994_v6, %v5993_v24 }
 0x207   :  { %v405_v8 = vpop.f32.mrf.mxu0 }
 0x208   :  { %v7242_v9 = vpack.c.bf16 %v405_v8, %v402_v5  ;;  %487 = vrot.lane.b32.xlu1 %v7240_v7, %s6885_s22 }
 0x209   :  { %v5997_v45 = vpop.f32.mrf.mxu0 }
 0x20a   :  { %485 = vrot.lane.b32.xlu0 %v7242_v9, %s6885_s22 }
 0x20b   :  { %v418_v12 = vpop.f32.mrf.mxu0 }
 0x20d   :  { %v5998_v54 = vpop.f32.mrf.mxu0 }
 0x20e   :  { %v7249_v19 = vpack.c.bf16 %v5998_v54, %v5997_v45 }
 0x20f   :  { %v421_v13 = vpop.f32.mrf.mxu0 }
 0x210   :  { %v7246_v14 = vpack.c.bf16 %v421_v13, %v418_v12 }
 0x211   :  { %v6001_v15 = vpop.f32.mrf.mxu0 }
 0x212   :  { %489 = vrot.lane.b32.xlu1 %v7246_v14, %s6885_s22 }
 0x213   :  { %v434_v18 = vpop.f32.mrf.mxu0 }
 0x215   :  { %v6002_v22 = vpop.f32.mrf.mxu0 }
 0x216   :  { %491 = vrot.lane.b32.xlu1 %v7249_v19, %s6885_s22  ;;  %v7252_v26 = vpack.c.bf16 %v6002_v22, %v6001_v15 }
 0x217   :  { %v437_v16 = vpop.f32.mrf.mxu0 }
 0x218   :  { %9915 = vst [vmem:[#allocation3_spill] sm:$0xff] %v7252_v26  ;;  %v7254_v27 = vpack.c.bf16 %v437_v16, %v434_v18 }
 0x219   :  { %v6005_v55 = vpop.f32.mrf.mxu0 }
 0x21a   :  { %9916 = vst [vmem:[#allocation4_spill] sm:$0xff] %v7254_v27  ;;  %495 = vrot.lane.b32.xlu1 %v7252_v26, %s6885_s22  ;;  %493 = vrot.lane.b32.xlu0 %v7254_v27, %s6885_s22 }
 0x21b   :  { %v450_v30 = vpop.f32.mrf.mxu0 }
 0x21d   :  { %v6006_v31 = vpop.f32.mrf.mxu0 }
 0x21e   :  { %v7258_v0 = vpack.c.bf16 %v6006_v31, %v6005_v55 }
 0x21f   :  { %v453_v33 = vpop.f32.mrf.mxu0 }
 0x220   :  { %9917 = vst [vmem:[#allocation5_spill] sm:$0xff] %v7258_v0  ;;  %v7260_v34 = vpack.c.bf16 %v453_v33, %v450_v30  ;;  %499 = vrot.lane.b32.xlu1 %v7258_v0, %s6885_s22 }
 0x222   :  { %9918 = vst [vmem:[#allocation6_spill] sm:$0xff] %v7260_v34  ;;  %497 = vrot.lane.b32.xlu0 %v7260_v34, %s6885_s22 }
 0x224   :  { %637 = vrot.lane.b32.xlu1 %v7240_v7, %s6886_s23 }
 0x226   :  { %635 = vrot.lane.b32.xlu0 %v7242_v9, %s6886_s23 }
 0x228   :  { %641 = vrot.lane.b32.xlu1 %v7249_v19, %s6886_s23 }
 0x22a   :  { %639 = vrot.lane.b32.xlu0 %v7246_v14, %s6886_s23 }
 0x22c   :  { %645 = vrot.lane.b32.xlu1 %v7252_v26, %s6886_s23 }
 0x22e   :  { %643 = vrot.lane.b32.xlu0 %v7254_v27, %s6886_s23 }
 0x230   :  { %649 = vrot.lane.b32.xlu1 %v7258_v0, %s6886_s23 }
 0x232   :  { %931 = vrot.lane.b32.xlu0 %v7242_v9, %s6887_s26 }
 0x234   :  { %933 = vrot.lane.b32.xlu1 %v7240_v7, %s6887_s26 }
 0x236   :  { %1336 = vrot.lane.b32.xlu0 %v7249_v19, %s6888_s27 }
 0x238   :  { %935 = vrot.lane.b32.xlu1 %v7246_v14, %s6887_s26 }
 0x23a   :  { %647 = vrot.lane.b32.xlu0 %v7260_v34, %s6886_s23 }
 0x23c   :  { %1334 = vrot.lane.b32.xlu1 %v7246_v14, %s6888_s27 }
 0x23e   :  { %937 = vrot.lane.b32.xlu0 %v7249_v19, %s6887_s26 }
 0x240   :  { %939 = vrot.lane.b32.xlu1 %v7254_v27, %s6887_s26 }
 0x242   :  { %783 = vrot.lane.b32.xlu0 %v7242_v9, %s6889_s28 }
 0x244   :  { %941 = vrot.lane.b32.xlu1 %v7252_v26, %s6887_s26 }
 0x246   :  { %785 = vrot.lane.b32.xlu0 %v7240_v7, %s6889_s28 }
 0x248   :  { %1332 = vrot.lane.b32.xlu1 %v7240_v7, %s6888_s27 }
 0x24a   :  { %1138 = vrot.lane.b32.xlu0 %v7249_v19, %s6890_s29 }
 0x24c   :  { %945 = vrot.lane.b32.xlu1 %v7258_v0, %s6887_s26 }
 0x24e   :  { %787 = vrot.lane.b32.xlu0 %v7246_v14, %s6889_s28 }
 0x250   :  { %1330 = vrot.lane.b32.xlu1 %v7242_v9, %s6888_s27 }
 0x252   :  { %789 = vrot.lane.b32.xlu0 %v7249_v19, %s6889_s28 }
 0x254   :  { %1322 = vrot.lane.b32.xlu1 %v7242_v9, %s6891_s30 }
 0x256   :  { %1136 = vrot.lane.b32.xlu0 %v7246_v14, %s6890_s29 }
 0x258   :  { %943 = vrot.lane.b32.xlu1 %v7260_v34, %s6887_s26 }
 0x25a   :  { %791 = vrot.lane.b32.xlu0 %v7254_v27, %s6889_s28 }
 0x25c   :  { %1134 = vrot.lane.b32.xlu1 %v7240_v7, %s6890_s29 }
 0x25e   :  { %793 = vrot.lane.b32.xlu0 %v7252_v26, %s6889_s28 }
 0x260   :  { %1687 = vrot.lane.b32.xlu1 %v7249_v19, %s6892_s15 }
 0x262   :  { %1324 = vrot.lane.b32.xlu0 %v7240_v7, %s6891_s30 }
 0x264   :  { %1326 = vrot.lane.b32.xlu1 %v7246_v14, %s6891_s30 }
 0x266   :  { %797 = vrot.lane.b32.xlu0 %v7258_v0, %s6889_s28 }
 0x268   :  { %1132 = vrot.lane.b32.xlu1 %v7242_v9, %s6890_s29 }
 0x26a   :  { %795 = vrot.lane.b32.xlu0 %v7260_v34, %s6889_s28 }
 0x26c   :  { %1685 = vrot.lane.b32.xlu1 %v7246_v14, %s6892_s15 }
 0x26e   :  { %1328 = vrot.lane.b32.xlu0 %v7249_v19, %s6891_s30 }
 0x270   :  { %1681 = vrot.lane.b32.xlu1 %v7242_v9, %s6892_s15 }
 0x272   :  { %1683 = vrot.lane.b32.xlu0 %v7240_v7, %s6892_s15 }
 0x274   :  { %1675 = vrot.lane.b32.xlu1 %v7240_v7, %s6893_s16 }
 0x276   :  { %1673 = vrot.lane.b32.xlu0 %v7242_v9, %s6893_s16 }
 0x278   :  { %1679 = vrot.lane.b32.xlu1 %v7249_v19, %s6893_s16 }
 0x27a   :  { %1677 = vrot.lane.b32.xlu0 %v7246_v14, %s6893_s16  ;;  %v488_v1 = vpop.permute.xlu1 %487 }
 0x27c   :  { %v486_v39 = vpop.permute.xlu0 %485 }
 0x27d   :  { %6009 = vmatprep.mubr.msk.bf16.mxu1 %vm501_vm2, %v486_v39 }
 0x27e   :  { %6010 = vmatmul.mubr.msk.bf16.vlgmr.msra.gmra.mxu1 %vm501_vm2, %v488_v1 }
 0x27f   :  { %6026 = vmatpush3.bf16.msra.mxu1 %v676_v40 }
 0x280   :  { %6410 = vmatprep.subr.msk.bf16.mxu1 %vm526_vm1, %v476_v41 }
 0x284   :  { %v490_v42 = vpop.permute.xlu1 %489 }
 0x285   :  { %6013 = vmatprep.mubr.msk.bf16.mxu1 %vm501_vm2, %v490_v42 }
 0x288   :  { %v492_v43 = vpop.permute.xlu1 %491 }
 0x289   :  { %6014 = vmatmul.mubr.msk.bf16.gmra.mxu1 %vm501_vm2, %v492_v43 }
 0x28c   :  { %v494_v10 = vpop.permute.xlu0 %493  ;;  %v496_v46 = vpop.permute.xlu1 %495 }
 0x28d   :  { %6017 = vmatprep.mubr.msk.bf16.mxu1 %vm501_vm2, %v494_v10 }
 0x291   :  { %6018 = vmatmul.mubr.msk.bf16.gmra.mxu1 %vm501_vm2, %v496_v46 }
 0x292   :  { %v500_v48 = vpop.permute.xlu1 %499 }
 0x294   :  { %v498_v36 = vpop.permute.xlu0 %497 }
 0x295   :  { %6021 = vmatprep.mubr.msk.bf16.mxu1 %vm501_vm2, %v498_v36 }
 0x296   :  { %v638_v49 = vpop.permute.xlu1 %637 }
 0x298   :  { %v636_v50 = vpop.permute.xlu0 %635 }
 0x299   :  { %6022 = vmatmul.mubr.msk.bf16.gmra.mxu1 %vm501_vm2, %v500_v48 }
 0x29a   :  { %v642_v51 = vpop.permute.xlu1 %641  ;;  %6027 = vmatprep.mubr.msk.bf16.mxu1 %vm501_vm2, %v636_v50 }
 0x29c   :  { %v640_v11 = vpop.permute.xlu0 %639 }
 0x29e   :  { %v646_v52 = vpop.permute.xlu1 %645 }
 0x2a0   :  { %v644_v28 = vpop.permute.xlu0 %643 }
 0x2a1   :  { %6028 = vmatmul.mubr.msk.bf16.vlgmr.msra.gmra.mxu1 %vm501_vm2, %v638_v49 }
 0x2a2   :  { %6062 = vmatpush3.bf16.msra.mxu1 %v972_v23  ;;  %v650_v29 = vpop.permute.xlu1 %649  ;;  %6031 = vmatprep.mubr.msk.bf16.mxu1 %vm501_vm2, %v640_v11 }
 0x2a4   :  { %v932_v53 = vpop.permute.xlu0 %931 }
 0x2a6   :  { %v934_v56 = vpop.permute.xlu1 %933 }
 0x2a8   :  { %v1337_v57 = vpop.permute.xlu0 %1336 }
 0x2a9   :  { %6032 = vmatmul.mubr.msk.bf16.gmra.mxu1 %vm501_vm2, %v642_v51  ;;  %6415 = vmatprep.subr.msk.bf16.mxu1 %vm501_vm2, %v1337_v57  ;;  %v1360_v3 = vsel %vm501_vm2, %v1337_v57, 0 }
 0x2aa   :  { %v936_v17 = vpop.permute.xlu1 %935  ;;  %6035 = vmatprep.mubr.msk.bf16.mxu1 %vm501_vm2, %v644_v28 }
 0x2ac   :  { %v648_v58 = vpop.permute.xlu0 %647 }
 0x2ae   :  { %v1335_v59 = vpop.permute.xlu1 %1334 }
 0x2af   :  { %v1357_v5 = vsel %vm501_vm2, %v1335_v59, 0 }
 0x2b0   :  { %v938_v35 = vpop.permute.xlu0 %937 }
 0x2b1   :  { %6036 = vmatmul.mubr.msk.bf16.gmra.mxu1 %vm501_vm2, %v646_v52 }
 0x2b2   :  { %v940_v44 = vpop.permute.xlu1 %939  ;;  %6039 = vmatprep.mubr.msk.bf16.mxu1 %vm501_vm2, %v648_v58 }
 0x2b4   :  { %v784_v60 = vpop.permute.xlu0 %783 }
 0x2b5   :  { %6045 = vmatprep.mubr.msk.bf16.mxu0 %vm501_vm2, %v784_v60 }
 0x2b6   :  { %v942_v61 = vpop.permute.xlu1 %941 }
 0x2b8   :  { %v786_v37 = vpop.permute.xlu0 %785 }
 0x2b9   :  { %6040 = vmatmul.mubr.msk.bf16.gmra.mxu1 %vm501_vm2, %v650_v29  ;;  %6046 = vmatmul.mubr.msk.bf16.vlgmr.msra.gmra.mxu0 %vm501_vm2, %v786_v37 }
 0x2ba   :  { %v1333_v62 = vpop.permute.xlu1 %1332  ;;  %6063 = vmatprep.mubr.msk.bf16.mxu1 %vm501_vm2, %v932_v53 }
 0x2bb   :  { %v1354_v13 = vsel %vm501_vm2, %v1333_v62, 0 }
 0x2bc   :  { %v1139_v63 = vpop.permute.xlu0 %1138 }
 0x2bd   :  { %6411 = vmatprep.subr.msk.bf16.mxu0 %vm501_vm2, %v1139_v63  ;;  %v1162_v21 = vsel %vm501_vm2, %v1139_v63, 0 }
 0x2be   :  { %v946_v47 = vpop.permute.xlu1 %945  ;;  %6080 = vmatpush3.bf16.xpose.msra.mxu0 %v1162_v21 }
 0x2c0   :  { %v788_v2 = vpop.permute.xlu0 %787 }
 0x2c1   :  { %6049 = vmatprep.mubr.msk.bf16.mxu0 %vm501_vm2, %v788_v2  ;;  %6064 = vmatmul.mubr.msk.bf16.vlgmr.msra.gmra.mxu1 %vm501_vm2, %v934_v56 }
 0x2c2   :  { %6096 = vmatpush3.bf16.xpose.msra.mxu1 %v1360_v3  ;;  %v1331_v25 = vpop.permute.xlu1 %1330  ;;  %6067 = vmatprep.mubr.msk.bf16.mxu1 %vm501_vm2, %v936_v17 }
 0x2c3   :  { %6416 = vmatprep.subr.msk.bf16.mxu1 %vm501_vm2, %v1335_v59  ;;  %v1351_v30 = vsel %vm501_vm2, %v1331_v25, 0 }
 0x2c4   :  { %v790_v4 = vpop.permute.xlu0 %789 }
 0x2c5   :  { %6050 = vmatmul.mubr.msk.bf16.gmra.mxu0 %vm501_vm2, %v790_v4 }
 0x2c6   :  { %v1323_v32 = vpop.permute.xlu1 %1322 }
 0x2c8   :  { %v1137_v24 = vpop.permute.xlu0 %1136 }
 0x2c9   :  { %6068 = vmatmul.mubr.msk.bf16.gmra.mxu1 %vm501_vm2, %v938_v35  ;;  %6412 = vmatprep.subr.msk.bf16.mxu0 %vm501_vm2, %v1137_v24  ;;  %v1159_v6 = vsel %vm501_vm2, %v1137_v24, 0 }
 0x2ca   :  { %6098 = vmatpush3.bf16.xpose.msra.mxu1 %v1357_v5  ;;  %v944_v8 = vpop.permute.xlu1 %943  ;;  %6071 = vmatprep.mubr.msk.bf16.mxu1 %vm501_vm2, %v940_v44 }
 0x2cb   :  { %6082 = vmatpush3.bf16.xpose.msra.mxu0 %v1159_v6  ;;  %6417 = vmatprep.subr.msk.bf16.mxu1 %vm501_vm2, %v1333_v62 }
 0x2cc   :  { %v792_v45 = vpop.permute.xlu0 %791 }
 0x2cd   :  { %6053 = vmatprep.mubr.msk.bf16.mxu0 %vm501_vm2, %v792_v45 }
 0x2ce   :  { %v1135_v12 = vpop.permute.xlu1 %1134 }
 0x2cf   :  { %6413 = vmatprep.subr.msk.bf16.mxu0 %vm501_vm2, %v1135_v12  ;;  %v1156_v18 = vsel %vm501_vm2, %v1135_v12, 0 }
 0x2d0   :  { %v794_v54 = vpop.permute.xlu0 %793 }
 0x2d1   :  { %6054 = vmatmul.mubr.msk.bf16.gmra.mxu0 %vm501_vm2, %v794_v54  ;;  %6072 = vmatmul.mubr.msk.bf16.gmra.mxu1 %vm501_vm2, %v942_v61 }
 0x2d2   :  { %6100 = vmatpush3.bf16.xpose.msra.mxu1 %v1354_v13  ;;  %v1688_v15 = vpop.permute.xlu1 %1687  ;;  %6075 = vmatprep.mubr.msk.bf16.mxu1 %vm501_vm2, %v944_v8 }
 0x2d3   :  { %6084 = vmatpush3.bf16.xpose.msra.mxu0 %v1156_v18  ;;  %6418 = vmatprep.subr.msk.bf16.mxu1 %vm501_vm2, %v1331_v25  ;;  %v1711_v39 = vsel %vm501_vm2, %v1688_v15, 0 }
 0x2d4   :  { %v1325_v22 = vpop.permute.xlu0 %1324 }
 0x2d6   :  { %v1327_v16 = vpop.permute.xlu1 %1326 }
 0x2d8   :  { %v798_v55 = vpop.permute.xlu0 %797 }
 0x2d9   :  { %6076 = vmatmul.mubr.msk.bf16.gmra.mxu1 %vm501_vm2, %v946_v47 }
 0x2da   :  { %6102 = vmatpush3.bf16.xpose.msra.mxu1 %v1351_v30  ;;  %v1133_v31 = vpop.permute.xlu1 %1132  ;;  %6103 = vmatprep.mubr.msk.bf16.mxu1 %vm501_vm2, %v1323_v32 }
 0x2db   :  { %6419 = vmatprep.subr.msk.bf16.mxu1 %vm501_vm2, %v1688_v15  ;;  %6414 = vmatprep.subr.msk.bf16.mxu0 %vm501_vm2, %v1133_v31  ;;  %v1153_v33 = vsel %vm501_vm2, %v1133_v31, 0 }
 0x2dc   :  { %6086 = vmatpush3.bf16.xpose.msra.mxu0 %v1153_v33  ;;  %v796_v20 = vpop.permute.xlu0 %795 }
 0x2dd   :  { %6057 = vmatprep.mubr.msk.bf16.mxu0 %vm501_vm2, %v796_v20 }
 0x2de   :  { %6058 = vmatmul.mubr.msk.bf16.gmra.mxu0 %vm501_vm2, %v798_v55  ;;  %v1686_v40 = vpop.permute.xlu1 %1685 }
 0x2df   :  { %6087 = vmatprep.mubr.msk.bf16.mxu0 %vm501_vm2, %v7242_v9  ;;  %v1708_v42 = vsel %vm501_vm2, %v1686_v40, 0 }
 0x2e0   :  { %v1329_v38 = vpop.permute.xlu0 %1328 }
 0x2e1   :  { %6104 = vmatmul.mubr.msk.bf16.vlgmr.msra.gmra.mxu1 %vm501_vm2, %v1325_v22 }
 0x2e2   :  { %6144 = vmatpush3.bf16.xpose.msra.mxu1 %v1711_v39  ;;  %6107 = vmatprep.mubr.msk.bf16.mxu1 %vm501_vm2, %v1327_v16  ;;  %v1682_v10 = vpop.permute.xlu1 %1681 }
 0x2e3   :  { %6420 = vmatprep.subr.msk.bf16.mxu1 %vm501_vm2, %v1686_v40  ;;  %v1702_v46 = vsel %vm501_vm2, %v1682_v10, 0 }
 0x2e4   :  { %v1684_v1 = vpop.permute.xlu0 %1683 }
 0x2e5   :  { %v1705_v43 = vsel %vm501_vm2, %v1684_v1, 0 }
 0x2e6   :  { %6088 = vmatmul.mubr.msk.bf16.vlgmr.msra.gmra.mxu0 %vm501_vm2, %v7240_v7  ;;  %v1676_v48 = vpop.permute.xlu1 %1675 }
 0x2e7   :  { %6091 = vmatprep.mubr.msk.bf16.mxu0 %vm501_vm2, %v7246_v14 }
 0x2e8   :  { %v1674_v41 = vpop.permute.xlu0 %1673 }
 0x2e9   :  { %6108 = vmatmul.mubr.msk.bf16.gmra.mxu1 %vm501_vm2, %v1329_v38 }
 0x2ea   :  { %6146 = vmatpush3.bf16.xpose.msra.mxu1 %v1708_v42  ;;  %6151 = vmatprep.mubr.msk.bf16.mxu1 %vm501_vm2, %v1674_v41  ;;  %v1680_v49 = vpop.permute.xlu1 %1679 }
 0x2eb   :  { %6421 = vmatprep.subr.msk.bf16.mxu1 %vm501_vm2, %v1684_v1 }
 0x2ec   :  { %v1678_v36 = vpop.permute.xlu0 %1677 }
 0x2ee   :  { %6092 = vmatmul.mubr.msk.bf16.gmra.mxu0 %vm501_vm2, %v7249_v19 }
 0x2f2   :  { %6148 = vmatpush3.bf16.xpose.msra.mxu1 %v1705_v43 }
 0x2f3   :  { %6422 = vmatprep.subr.msk.bf16.mxu1 %vm501_vm2, %v1682_v10 }
 0x2fa   :  { %6150 = vmatpush3.bf16.xpose.msra.mxu1 %v1702_v46 }
 0x301   :  { %6152 = vmatmul.mubr.msk.bf16.vlgmr.msra.gmra.mxu1 %vm501_vm2, %v1676_v48 }
 0x302   :  { %6155 = vmatprep.mubr.msk.bf16.mxu1 %vm501_vm2, %v1678_v36 }
 0x309   :  { %6156 = vmatmul.mubr.msk.bf16.gmra.mxu1 %vm501_vm2, %v1680_v49 }
 0x33e   :  { %v6011_v50 = vpop.f32.mrf.mxu1 }
 0x340   :  { %v7412_v51 = vpop.f32.mrf.mxu1 }
 0x342   :  { %v6012_v11 = vpop.f32.mrf.mxu1 }
 0x343   :  { %v7414_v52 = vpack.c.bf16 %v6012_v11, %v6011_v50 }
 0x344   :  { %v7416_v23 = vpop.f32.mrf.mxu1 }
 0x349   :  { %v6015_v28 = vpop.f32.mrf.mxu1 }
 0x34b   :  { %v7418_v29 = vpop.f32.mrf.mxu1 }
 0x34d   :  { %v6016_v53 = vpop.f32.mrf.mxu1 }
 0x34e   :  { %v7434_v20 = vpack.c.bf16 %v6016_v53, %v6015_v28 }
 0x34f   :  { %v7420_v56 = vpop.f32.mrf.mxu1 }
 0x351   :  { %v6019_v57 = vpop.f32.mrf.mxu1 }
 0x353   :  { %v596_v17 = vpop.f32.mrf.mxu1 }
 0x355   :  { %v6020_v58 = vpop.f32.mrf.mxu1 }
 0x356   :  { %v7422_v59 = vpack.c.bf16 %v6020_v58, %v6019_v57 }
 0x357   :  { %v599_v35 = vpop.f32.mrf.mxu1 }
 0x358   :  { %9919 = vst [vmem:[#allocation7_spill] sm:$0xff] %v7422_v59  ;;  %v7424_v44 = vpack.c.bf16 %v599_v35, %v596_v17 }
 0x359   :  { %v6023_v60 = vpop.f32.mrf.mxu1 }
 0x35a   :  { %9920 = vst [vmem:[#allocation8_spill] sm:$0xff] %v7424_v44 }
 0x35b   :  { %v612_v61 = vpop.f32.mrf.mxu1 }
 0x35d   :  { %v6024_v37 = vpop.f32.mrf.mxu1 }
 0x35e   :  { %v7426_v62 = vpack.c.bf16 %v6024_v37, %v6023_v60 }
 0x35f   :  { %v615_v63 = vpop.f32.mrf.mxu1 }
 0x360   :  { %9921 = vst [vmem:[#allocation9_spill] sm:$0xff] %v7426_v62  ;;  %v7428_v21 = vpack.c.bf16 %v615_v63, %v612_v61 }
 0x361   :  { %v6029_v47 = vpop.f32.mrf.mxu1 }
 0x362   :  { %9922 = vst [vmem:[#allocation10_spill] sm:$0xff] %v7428_v21 }
 0x363   :  { %v712_v2 = vpop.f32.mrf.mxu1 }
 0x365   :  { %v6030_v3 = vpop.f32.mrf.mxu1 }
 0x366   :  { %v776_v54 = vpack.c.bf16 %v6030_v3, %v6029_v47 }
 0x367   :  { %v715_v25 = vpop.f32.mrf.mxu1 }
 0x368   :  { %v775_v22 = vpack.c.bf16 %v715_v25, %v712_v2 }
 0x369   :  { %v6033_v4 = vpop.f32.mrf.mxu1 }
 0x36b   :  { %v728_v32 = vpop.f32.mrf.mxu1 }
 0x36d   :  { %v6034_v24 = vpop.f32.mrf.mxu1 }
 0x36e   :  { %v778_v5 = vpack.c.bf16 %v6034_v24, %v6033_v4 }
 0x36f   :  { %v731_v6 = vpop.f32.mrf.mxu1 }
 0x370   :  { %v777_v8 = vpack.c.bf16 %v731_v6, %v728_v32  ;;  %6111 = vmatprep.subr.bf16.mxu0 %v778_v5 }
 0x371   :  { %v6037_v45 = vpop.f32.mrf.mxu1  ;;  %6112 = vmatpush3.bf16.msra.mxu0 %v778_v5 }
 0x372   :  { %6113 = vmatprep.subr.bf16.mxu0 %v777_v8 }
 0x373   :  { %v744_v12 = vpop.f32.mrf.mxu1 }
 0x375   :  { %v6038_v13 = vpop.f32.mrf.mxu1  ;;  %6114 = vmatpush3.bf16.msra.mxu0 %v777_v8 }
 0x376   :  { %v7430_v15 = vpack.c.bf16 %v6038_v13, %v6037_v45  ;;  %6115 = vmatprep.subr.bf16.mxu0 %v776_v54 }
 0x377   :  { %v747_v18 = vpop.f32.mrf.mxu1 }
 0x378   :  { %9923 = vst [vmem:[#allocation11_spill] sm:$0xff] %v7430_v15  ;;  %v7432_v16 = vpack.c.bf16 %v747_v18, %v744_v12 }
 0x379   :  { %v6041_v55 = vpop.f32.mrf.mxu1  ;;  %v6047_v30 = vpop.f32.mrf.mxu0  ;;  %6116 = vmatpush3.bf16.msra.mxu0 %v776_v54 }
 0x37a   :  { %9924 = vst [vmem:[#allocation12_spill] sm:$0xff] %v7432_v16  ;;  %6117 = vmatprep.subr.bf16.mxu0 %v775_v22 }
 0x37b   :  { %v760_v31 = vpop.f32.mrf.mxu1  ;;  %v860_v33 = vpop.f32.mrf.mxu0 }
 0x37d   :  { %v6042_v38 = vpop.f32.mrf.mxu1  ;;  %v6048_v39 = vpop.f32.mrf.mxu0  ;;  %6118 = vmatpush3.bf16.msra.mxu0 %v775_v22 }
 0x37e   :  { %v7436_v40 = vpack.c.bf16 %v6042_v38, %v6041_v55  ;;  %v7438_v1 = vpack.c.bf16 %v6048_v39, %v6047_v30  ;;  %6127 = vmatprep.subr.bf16.mxu0 %v7434_v20 }
 0x37f   :  { %v763_v41 = vpop.f32.mrf.mxu1  ;;  %v863_v42 = vpop.f32.mrf.mxu0 }
 0x380   :  { %9925 = vst [vmem:[#allocation13_spill] sm:$0xff] %v7436_v40  ;;  %v7441_v43 = vpack.c.bf16 %v763_v41, %v760_v31  ;;  %v7443_v10 = vpack.c.bf16 %v863_v42, %v860_v33 }
 0x381   :  { %v6065_v46 = vpop.f32.mrf.mxu1 }
 0x382   :  { %9926 = vst [vmem:[#allocation14_spill] sm:$0xff] %v7441_v43 }
 0x383   :  { %v1008_v48 = vpop.f32.mrf.mxu1 }
 0x385   :  { %v6051_v36 = vpop.f32.mrf.mxu0  ;;  %v6066_v49 = vpop.f32.mrf.mxu1 }
 0x386   :  { %v7445_v50 = vpack.c.bf16 %v6066_v49, %v6065_v46 }
 0x387   :  { %v876_v11 = vpop.f32.mrf.mxu0  ;;  %v1011_v28 = vpop.f32.mrf.mxu1 }
 0x388   :  { %v7447_v53 = vpack.c.bf16 %v1011_v28, %v1008_v48 }
 0x389   :  { %v6052_v57 = vpop.f32.mrf.mxu0  ;;  %v6069_v17 = vpop.f32.mrf.mxu1 }
 0x38a   :  { %9927 = vst [vmem:[#allocation15_spill] sm:$0xff] %v7447_v53  ;;  %v7449_v58 = vpack.c.bf16 %v6052_v57, %v6051_v36 }
 0x38b   :  { %v879_v35 = vpop.f32.mrf.mxu0  ;;  %v1024_v60 = vpop.f32.mrf.mxu1 }
 0x38c   :  { %v7451_v61 = vpack.c.bf16 %v879_v35, %v876_v11 }
 0x38d   :  { %v6070_v37 = vpop.f32.mrf.mxu1 }
 0x38e   :  { %v7453_v63 = vpack.c.bf16 %v6070_v37, %v6069_v17 }
 0x38f   :  { %v1027_v47 = vpop.f32.mrf.mxu1 }
 0x390   :  { %v7455_v2 = vpack.c.bf16 %v1027_v47, %v1024_v60 }
 0x391   :  { %v6055_v3 = vpop.f32.mrf.mxu0  ;;  %v6073_v25 = vpop.f32.mrf.mxu1 }
 0x393   :  { %v892_v4 = vpop.f32.mrf.mxu0  ;;  %v1040_v32 = vpop.f32.mrf.mxu1 }
 0x395   :  { %v6056_v24 = vpop.f32.mrf.mxu0  ;;  %v6074_v5 = vpop.f32.mrf.mxu1 }
 0x396   :  { %v7457_v6 = vpack.c.bf16 %v6056_v24, %v6055_v3  ;;  %v7459_v8 = vpack.c.bf16 %v6074_v5, %v6073_v25 }
 0x397   :  { %v895_v45 = vpop.f32.mrf.mxu0  ;;  %v1043_v12 = vpop.f32.mrf.mxu1 }
 0x398   :  { %9928 = vst [vmem:[#allocation16_spill] sm:$0xff] %v7457_v6  ;;  %9929 = vst [vmem:[#allocation17_spill] sm:$0xff] %v7459_v8  ;;  %v7461_v54 = vpack.c.bf16 %v895_v45, %v892_v4  ;;  %v7463_v13 = vpack.c.bf16 %v1043_v12, %v1040_v32 }
 0x399   :  { %v6077_v18 = vpop.f32.mrf.mxu1 }
 0x39a   :  { %9930 = vst [vmem:[#allocation18_spill] sm:$0xff] %v7461_v54  ;;  %9931 = vst [vmem:[#allocation19_spill] sm:$0xff] %v7463_v13 }
 0x39b   :  { %v1056_v22 = vpop.f32.mrf.mxu1 }
 0x39d   :  { %v6078_v55 = vpop.f32.mrf.mxu1 }
 0x39e   :  { %v7465_v30 = vpack.c.bf16 %v6078_v55, %v6077_v18  ;;  %v6059_v31 = vpop.f32.mrf.mxu0 }
 0x39f   :  { %v1059_v33 = vpop.f32.mrf.mxu1 }
 0x3a0   :  { %9932 = vst [vmem:[#allocation20_spill] sm:$0xff] %v7465_v30  ;;  %v7467_v38 = vpack.c.bf16 %v1059_v33, %v1056_v22  ;;  %v908_v39 = vpop.f32.mrf.mxu0 }
 0x3a1   :  { %v7469_v41 = vpop.f32.mrf.mxu1 }
 0x3a2   :  { %9933 = vst [vmem:[#allocation21_spill] sm:$0xff] %v7467_v38  ;;  %v6060_v42 = vpop.f32.mrf.mxu0  ;;  %v1433_v46 = vsel %vm1229_vm3, %v7469_v41, -inf }
 0x3a3   :  { %v7473_v48 = vpack.c.bf16 %v6060_v42, %v6059_v31  ;;  %1434 = vmax.xlane.f32.xlu0 %v1433_v46  ;;  %v7475_v36 = vpop.f32.mrf.mxu1 }
 0x3a4   :  { %v911_v49 = vpop.f32.mrf.mxu0  ;;  %v1427_v17 = vsel %vm1229_vm3, %v7475_v36, -inf }
 0x3a5   :  { %9934 = vst [vmem:[#allocation22_spill] sm:$0xff] %v7473_v48  ;;  %v7477_v11 = vpack.c.bf16 %v911_v49, %v908_v39  ;;  %v7479_v28 = vpop.f32.mrf.mxu1 }
 0x3a6   :  { %v7481_v57 = vpop.f32.mrf.mxu0  ;;  %v1436_v25 = vsel %vm1229_vm3, %v7479_v28, -inf }
 0x3a7   :  { %9935 = vst [vmem:[#allocation23_spill] sm:$0xff] %v7477_v11  ;;  %1428 = vmax.xlane.f32.xlu0 %v1427_v17  ;;  %v7485_v35 = vpop.f32.mrf.mxu1  ;;  %v1236_v46 = vsel %vm1229_vm3, %v7481_v57, -inf }
 0x3a8   :  { %v7487_v60 = vpop.f32.mrf.mxu0  ;;  %v1430_v37 = vsel %vm1229_vm3, %v7485_v35, -inf }
 0x3a9   :  { %1431 = vmax.xlane.f32.xlu1 %v1430_v37  ;;  %v7491_v47 = vpop.f32.mrf.mxu1  ;;  %v1230_v33 = vsel %vm1229_vm3, %v7487_v60, -inf }
 0x3aa   :  { %v7493_v3 = vpop.f32.mrf.mxu0  ;;  %v1445_v22 = vsel %vm1229_vm3, %v7491_v47, -inf }
 0x3ab   :  { %1437 = vmax.xlane.f32.xlu0 %v1436_v25  ;;  %v7497_v4 = vpop.f32.mrf.mxu1  ;;  %v1239_v49 = vsel %vm1229_vm3, %v7493_v3, -inf }
 0x3ac   :  { %v7499_v32 = vpop.f32.mrf.mxu0  ;;  %v1439_v5 = vsel %vm1229_vm3, %v7497_v4, -inf }
 0x3ad   :  { %v7501_v24 = vpop.f32.mrf.mxu1  ;;  %v1233_v39 = vsel %vm1229_vm3, %v7499_v32, -inf }
 0x3ae   :  { %v1448_v45 = vsel %vm1229_vm3, %v7501_v24, -inf  ;;  %v7507_v12 = vpop.f32.mrf.mxu0 }
 0x3af   :  { %1440 = vmax.xlane.f32.xlu0 %v1439_v5  ;;  %1449 = vmax.xlane.f32.xlu1 %v1448_v45  ;;  %v7509_v18 = vpop.f32.mrf.mxu1  ;;  %v1248_v45 = vsel %vm1229_vm3, %v7507_v12, -inf }
 0x3b0   :  { %v1442_v55 = vsel %vm1229_vm3, %v7509_v18, -inf  ;;  %v7515_v31 = vpop.f32.mrf.mxu0 }
 0x3b1   :  { %v1242_v37 = vsel %vm1229_vm3, %v7515_v31, -inf }
 0x3b2   :  { %v7521_v42 = vpop.f32.mrf.mxu0 }
 0x3b3   :  { %1446 = vmax.xlane.f32.xlu0 %v1445_v22  ;;  %1443 = vmax.xlane.f32.xlu1 %v1442_v55  ;;  %v1251_v22 = vsel %vm1229_vm3, %v7521_v42, -inf }
 0x3b4   :  { %v7527_v17 = vpop.f32.mrf.mxu0 }
 0x3b5   :  { %v1245_v25 = vsel %vm1229_vm3, %v7527_v17, -inf }
 0x3b7   :  { %1231 = vmax.xlane.f32.xlu0 %v1230_v33  ;;  %1234 = vmax.xlane.f32.xlu1 %v1233_v39 }
 0x3bb   :  { %1237 = vmax.xlane.f32.xlu0 %v1236_v46  ;;  %1240 = vmax.xlane.f32.xlu1 %v1239_v49 }
 0x3bf   :  { %1243 = vmax.xlane.f32.xlu0 %v1242_v37  ;;  %1246 = vmax.xlane.f32.xlu1 %v1245_v25 }
 0x3c1   :  { %v7533_v5 = vpop.f32.mrf.mxu1 }
 0x3c2   :  { %v1784_v25 = vsel %vm1229_vm3, %v7533_v5, -inf }
 0x3c3   :  { %v7539_v55 = vpop.f32.mrf.mxu1  ;;  %1249 = vmax.xlane.f32.xlu0 %v1248_v45  ;;  %1252 = vmax.xlane.f32.xlu1 %v1251_v22 }
 0x3c4   :  { %v1778_v39 = vsel %vm1229_vm3, %v7539_v55, -inf }
 0x3c5   :  { %v7541_v33 = vpop.f32.mrf.mxu1 }
 0x3c6   :  { %v1787_v46 = vsel %vm1229_vm3, %v7541_v33, -inf }
 0x3c7   :  { %v7547_v49 = vpop.f32.mrf.mxu1  ;;  %1779 = vmax.xlane.f32.xlu0 %v1778_v39  ;;  %1788 = vmax.xlane.f32.xlu1 %v1787_v46 }
 0x3c8   :  { %v1781_v45 = vsel %vm1229_vm3, %v7547_v49, -inf }
 0x3c9   :  { %v7549_v37 = vpop.f32.mrf.mxu1 }
 0x3ca   :  { %v1796_v11 = vsel %vm1229_vm3, %v7549_v37, -inf }
 0x3cb   :  { %v7555_v22 = vpop.f32.mrf.mxu1  ;;  %1785 = vmax.xlane.f32.xlu0 %v1784_v25  ;;  %1782 = vmax.xlane.f32.xlu1 %v1781_v45 }
 0x3cc   :  { %v1790_v6 = vsel %vm1229_vm3, %v7555_v22, -inf }
 0x3cd   :  { %v7557_v54 = vpop.f32.mrf.mxu1 }
 0x3ce   :  { %v1799_v39 = vsel %vm1229_vm3, %v7557_v54, -inf }
 0x3cf   :  { %v7563_v46 = vpop.f32.mrf.mxu1  ;;  %1791 = vmax.xlane.f32.xlu0 %v1790_v6  ;;  %1800 = vmax.xlane.f32.xlu1 %v1799_v39 }
 0x3d0   :  { %v1793_v48 = vsel %vm1229_vm3, %v7563_v46, -inf }
 0x3d3   :  { %1797 = vmax.xlane.f32.xlu0 %v1796_v11  ;;  %1794 = vmax.xlane.f32.xlu1 %v1793_v48 }
 0x42c   :  { %v1435_v25 = vpop.xlane.xlu0 %1434 }
 0x42d   :  { %v1453_v0 = vsub.f32 %v7469_v41, %v1435_v25 }
 0x430   :  { %v1429_v45 = vpop.xlane.xlu0 %1428 }
 0x432   :  { %v1432_v44 = vpop.xlane.xlu1 %1431 }
 0x434   :  { %v1438_v59 = vpop.xlane.xlu0 %1437 }
 0x435   :  { %v1454_v43 = vsub.f32 %v7479_v28, %v1438_v59 }
 0x438   :  { %v1450_v21 = vpop.xlane.xlu1 %1449  ;;  %v1441_v13 = vpop.xlane.xlu0 %1440 }
 0x43c   :  { %v7569_v8 = vpop.xlane.xlu1 %1443  ;;  %v1447_v38 = vpop.xlane.xlu0 %1446 }
 0x43d   :  { %v1456_v25 = vsub.f32 %v7509_v18, %v7569_v8 }
 0x440   :  { %v1235_v30 = vpop.xlane.xlu1 %1234  ;;  %v1232_v6 = vpop.xlane.xlu0 %1231 }
 0x441   :  { %v1255_v39 = vsub.f32 %v7499_v32, %v1235_v30  ;;  %v1254_v62 = vsub.f32 %v7487_v60, %v1232_v6  ;;  %v1452_v60 = vsub.f32 %v7485_v35, %v1432_v44  ;;  %v1465_v32 = vmul.f32 1.442695, %v1454_v43 }
 0x442   :  { %v1463_v6 = vmul.f32 1.442695, %v1453_v0  ;;  %v1455_v0 = vsub.f32 %v7497_v4, %v1441_v13 }
 0x443   :  { %v1264_v40 = vmul.f32 1.442695, %v1255_v39  ;;  %v1262_v34 = vmul.f32 1.442695, %v1254_v62  ;;  %v1461_v59 = vmul.f32 1.442695, %v1452_v60  ;;  %v1457_v62 = vsub.f32 %v7491_v47, %v1447_v38 }
 0x444   :  { %v1241_v16 = vpop.xlane.xlu1 %1240  ;;  %v1238_v15 = vpop.xlane.xlu0 %1237 }
 0x445   :  { %v1257_v11 = vsub.f32 %v7493_v3, %v1241_v16  ;;  %v1256_v48 = vsub.f32 %v7481_v57, %v1238_v15  ;;  %v1451_v16 = vsub.f32 %v7475_v36, %v1429_v45  ;;  %v1458_v57 = vsub.f32 %v7501_v24, %v1450_v21 }
 0x446   :  { %v1467_v3 = vmul.f32 1.442695, %v1455_v0 }
 0x447   :  { %v1268_v27 = vmul.f32 1.442695, %v1257_v11  ;;  %v1266_v26 = vmul.f32 1.442695, %v1256_v48  ;;  %v1459_v41 = vmul.f32 1.442695, %v1451_v16 }
 0x448   :  { %v1244_v53 = vpop.xlane.xlu0 %1243  ;;  %v1247_v30 = vpop.xlane.xlu1 %1246  ;;  %v1473_v24 = vmul.f32 1.442695, %v1458_v57 }
 0x449   :  { %6499 = vpow2.f32 %v1268_v27  ;;  %v1259_v28 = vsub.f32 %v7527_v17, %v1247_v30  ;;  %v1469_v30 = vmul.f32 1.442695, %v1456_v25 }
 0x44a   :  { %6501 = vpow2.f32 %v1266_v26 }
 0x44b   :  { %6503 = vpow2.f32 %v1264_v40  ;;  %v1272_v26 = vmul.f32 1.442695, %v1259_v28 }
 0x44c   :  { %6505 = vpow2.f32 %v1262_v34  ;;  %v1250_v15 = vpop.xlane.xlu0 %1249  ;;  %v1253_v27 = vpop.xlane.xlu1 %1252  ;;  %v1471_v34 = vmul.f32 1.442695, %v1457_v62 }
 0x44d   :  { %6507 = vpow2.f32 %v1465_v32  ;;  %v1261_v44 = vsub.f32 %v7521_v42, %v1253_v27  ;;  %v1258_v42 = vsub.f32 %v7515_v31, %v1244_v53  ;;  %v1260_v31 = vsub.f32 %v7507_v12, %v1250_v15 }
 0x44e   :  { %6509 = vpow2.f32 %v1463_v6 }
 0x44f   :  { %6511 = vpow2.f32 %v1461_v59  ;;  %v1276_v35 = vmul.f32 1.442695, %v1261_v44  ;;  %v1270_v53 = vmul.f32 1.442695, %v1258_v42  ;;  %v1274_v6 = vmul.f32 1.442695, %v1260_v31 }
 0x450   :  { %v7582_v43 = vpop.xlane.xlu0 %1779  ;;  %6513 = vpow2.f32 %v1459_v41  ;;  %v1789_v21 = vpop.xlane.xlu1 %1788 }
 0x451   :  { %6515 = vpow2.f32 %v1272_v26  ;;  %v1805_v8 = vsub.f32 %v7541_v33, %v1789_v21 }
 0x452   :  { %6517 = vpow2.f32 %v1471_v34 }
 0x453   :  { %6519 = vpow2.f32 %v1276_v35  ;;  %v1816_v33 = vmul.f32 1.442695, %v1805_v8 }
 0x454   :  { %v1786_v17 = vpop.xlane.xlu0 %1785  ;;  %6521 = vpow2.f32 %v1467_v3  ;;  %v1783_v12 = vpop.xlane.xlu1 %1782 }
 0x455   :  { %6523 = vpow2.f32 %v1473_v24  ;;  %v1804_v16 = vsub.f32 %v7533_v5, %v1786_v17  ;;  %v1803_v28 = vsub.f32 %v7547_v49, %v1783_v12  ;;  %v1802_v5 = vsub.f32 %v7539_v55, %v7582_v43 }
 0x456   :  { %v7585_v40 = vpop.eup %6499  ;;  %6525 = vpow2.f32 %v1270_v53 }
 0x457   :  { %v7587_v36 = vpop.eup %6501  ;;  %v1287_v38 = vsel %vm1229_vm3, %v7585_v40, 0.0  ;;  %6527 = vpow2.f32 %v1469_v30  ;;  %v1814_v27 = vmul.f32 1.442695, %v1804_v16  ;;  %v1812_v49 = vmul.f32 1.442695, %v1803_v28 }
 0x458   :  { %v7592_v47 = vpop.eup %6503  ;;  %1288 = vadd.xlane.f32.xlu1 %v1287_v38  ;;  %v1284_v13 = vsel %vm1229_vm3, %v7587_v36, 0.0  ;;  %v1792_v18 = vpop.xlane.xlu0 %1791  ;;  %6529 = vpow2.f32 %v1274_v6  ;;  %v1810_v35 = vmul.f32 1.442695, %v1802_v5 }
 0x459   :  { %v7597_v4 = vpop.eup %6505  ;;  %1285 = vadd.xlane.f32.xlu0 %v1284_v13  ;;  %v1281_v45 = vsel %vm1229_vm3, %v7592_v47, 0.0  ;;  %6531 = vpow2.f32 %v1816_v33  ;;  %v1806_v13 = vsub.f32 %v7555_v22, %v1792_v18 }
 0x45a   :  { %v7603_v39 = vpop.eup %6507  ;;  %v1278_v11 = vsel %vm1229_vm3, %v7597_v4, 0.0  ;;  %6533 = vpow2.f32 %v1814_v27  ;;  %v1801_v27 = vpop.xlane.xlu1 %1800 }
 0x45b   :  { %v7608_v48 = vpop.eup %6509  ;;  %v1484_v60 = vsel %vm1229_vm3, %v7603_v39, 0.0  ;;  %6535 = vpow2.f32 %v1812_v49 }
 0x45c   :  { %1282 = vadd.xlane.f32.xlu1 %v1281_v45  ;;  %v7613_v32 = vpop.eup %6511  ;;  %v1481_v15 = vsel %vm1229_vm3, %v7608_v48, 0.0  ;;  %v1798_v0 = vpop.xlane.xlu0 %1797  ;;  %6537 = vpow2.f32 %v1810_v35  ;;  %v1818_v45 = vmul.f32 1.442695, %v1806_v13 }
 0x45d   :  { %1279 = vadd.xlane.f32.xlu0 %v1278_v11  ;;  %v7618_v59 = vpop.eup %6513  ;;  %v1478_v41 = vsel %vm1229_vm3, %v7613_v32, 0.0  ;;  %v1808_v55 = vsub.f32 %v7549_v37, %v1798_v0 }
 0x45e   :  { %v7623_v62 = vpop.eup %6515  ;;  %v1475_v26 = vsel %vm1229_vm3, %v7618_v59, 0.0  ;;  %v1795_v0 = vpop.xlane.xlu1 %1794 }
 0x45f   :  { %v7629_v44 = vpop.eup %6517  ;;  %v1293_v34 = vsel %vm1229_vm3, %v7623_v62, 0.0  ;;  %v1822_v17 = vmul.f32 1.442695, %v1808_v55 }
 0x460   :  { %1485 = vadd.xlane.f32.xlu1 %v1484_v60  ;;  %v7633_v57 = vpop.eup %6519  ;;  %v1493_v43 = vsel %vm1229_vm3, %v7629_v44, 0.0 }
 0x461   :  { %1482 = vadd.xlane.f32.xlu0 %v1481_v15  ;;  %v7638_v38 = vpop.eup %6521  ;;  %v1299_v3 = vsel %vm1229_vm3, %v7633_v57, 0.0  ;;  %6539 = vpow2.f32 %v1822_v17 }
 0x462   :  { %v7642_v42 = vpop.eup %6523  ;;  %v1487_v37 = vsel %vm1229_vm3, %v7638_v38, 0.0  ;;  %6541 = vpow2.f32 %v1818_v45 }
 0x463   :  { %v7647_v21 = vpop.eup %6525  ;;  %v1496_v24 = vsel %vm1229_vm3, %v7642_v42, 0.0 }
 0x464   :  { %1479 = vadd.xlane.f32.xlu1 %v1478_v41  ;;  %v7651_v25 = vpop.eup %6527  ;;  %v1290_v53 = vsel %vm1229_vm3, %v7647_v21, 0.0 }
 0x465   :  { %1476 = vadd.xlane.f32.xlu0 %v1475_v26  ;;  %v7655_v22 = vpop.eup %6529  ;;  %v1490_v31 = vsel %vm1229_vm3, %v7651_v25, 0.0  ;;  %v1809_v26 = vsub.f32 %v7557_v54, %v1801_v27 }
 0x466   :  { %v7659_v11 = vpop.eup %6531  ;;  %v1296_v30 = vsel %vm1229_vm3, %v7655_v22, 0.0 }
 0x467   :  { %v7663_v8 = vpop.eup %6533  ;;  %v1835_v18 = vsel %vm1229_vm3, %v7659_v11, 0.0  ;;  %v1824_v49 = vmul.f32 1.442695, %v1809_v26 }
 0x468   :  { %1294 = vadd.xlane.f32.xlu1 %v1293_v34  ;;  %v7667_v60 = vpop.eup %6535  ;;  %v1832_v6 = vsel %vm1229_vm3, %v7663_v8, 0.0  ;;  %v1807_v34 = vsub.f32 %v7563_v46, %v1795_v0 }
 0x469   :  { %1494 = vadd.xlane.f32.xlu0 %v1493_v43  ;;  %v7671_v12 = vpop.eup %6537  ;;  %v1829_v16 = vsel %vm1229_vm3, %v7667_v60, 0.0  ;;  %6543 = vpow2.f32 %v1824_v49 }
 0x46a   :  { %v1826_v15 = vsel %vm1229_vm3, %v7671_v12, 0.0  ;;  %v1820_v35 = vmul.f32 1.442695, %v1807_v34 }
 0x46c   :  { %1300 = vadd.xlane.f32.xlu1 %v1299_v3  ;;  %6545 = vpow2.f32 %v1820_v35 }
 0x46d   :  { %1488 = vadd.xlane.f32.xlu0 %v1487_v37 }
 0x46e   :  { %v7677_v33 = vpop.eup %6539 }
 0x46f   :  { %v1844_v28 = vsel %vm1229_vm3, %v7677_v33, 0.0  ;;  %v7681_v41 = vpop.eup %6541 }
 0x470   :  { %1497 = vadd.xlane.f32.xlu1 %v1496_v24  ;;  %v1838_v5 = vsel %vm1229_vm3, %v7681_v41, 0.0 }
 0x471   :  { %1291 = vadd.xlane.f32.xlu0 %v1290_v53 }
 0x474   :  { %1491 = vadd.xlane.f32.xlu1 %v1490_v31 }
 0x475   :  { %1297 = vadd.xlane.f32.xlu0 %v1296_v30 }
 0x476   :  { %v7697_v55 = vpop.eup %6543 }
 0x477   :  { %v1847_v43 = vsel %vm1229_vm3, %v7697_v55, 0.0 }
 0x478   :  { %1836 = vadd.xlane.f32.xlu1 %v1835_v18 }
 0x479   :  { %1833 = vadd.xlane.f32.xlu0 %v1832_v6  ;;  %v7701_v54 = vpop.eup %6545 }
 0x47a   :  { %v1841_v3 = vsel %vm1229_vm3, %v7701_v54, 0.0 }
 0x47c   :  { %1830 = vadd.xlane.f32.xlu1 %v1829_v16 }
 0x47d   :  { %1827 = vadd.xlane.f32.xlu0 %v1826_v15 }
 0x481   :  { %1845 = vadd.xlane.f32.xlu0 %v1844_v28 }
 0x485   :  { %1839 = vadd.xlane.f32.xlu0 %v1838_v5 }
 0x48d   :  { %1967 = vrot.lane.b32.xlu1 %v7246_v14, %s6894_s4 }
 0x491   :  { %1965 = vrot.lane.b32.xlu1 %v7240_v7, %s6894_s4 }
 0x49b   :  { %1969 = vrot.lane.b32.xlu0 %v7249_v19, %s6894_s4 }
 0x49f   :  { %1955 = vrot.lane.b32.xlu0 %v7242_v9, %s6895_s18 }
 0x4a3   :  { %1959 = vrot.lane.b32.xlu0 %v7246_v14, %s6895_s18 }
 0x4b5   :  { %1848 = vadd.xlane.f32.xlu1 %v1847_v43 }
 0x4b9   :  { %1842 = vadd.xlane.f32.xlu1 %v1841_v3  ;;  %v629_v3 = vpack.c.bf16 %v7420_v56, %v7418_v29 }
 0x4ca   :  { %1963 = vrot.lane.b32.xlu1 %v7242_v9, %s6894_s4 }
 0x4ce   :  { %1957 = vrot.lane.b32.xlu1 %v7240_v7, %s6895_s18 }
 0x4d2   :  { %1961 = vrot.lane.b32.xlu1 %v7249_v19, %s6895_s18 }
 0x4e1   :  { %v1289_v14 = vpop.xlane.xlu1 %1288 }
 0x4e2   :  { %v1286_v46 = vpop.xlane.xlu0 %1285 }
 0x4e5   :  { %v1283_v13 = vpop.xlane.xlu1 %1282 }
 0x4e6   :  { %v1280_v17 = vpop.xlane.xlu0 %1279 }
 0x4e9   :  { %v1486_v37 = vpop.xlane.xlu1 %1485 }
 0x4ea   :  { %v1483_v24 = vpop.xlane.xlu0 %1482  ;;  %6547 = vrcp.f32 %v1486_v37 }
 0x4eb   :  { %6549 = vrcp.f32 %v1483_v24 }
 0x4ed   :  { %v1480_v45 = vpop.xlane.xlu1 %1479 }
 0x4ee   :  { %6551 = vrcp.f32 %v1480_v45  ;;  %v1477_v53 = vpop.xlane.xlu0 %1476 }
 0x4ef   :  { %6553 = vrcp.f32 %v1477_v53 }
 0x4f0   :  { %6555 = vrcp.f32 %v1283_v13 }
 0x4f1   :  { %v1295_v31 = vpop.xlane.xlu1 %1294  ;;  %6557 = vrcp.f32 %v1280_v17 }
 0x4f2   :  { %v1495_v9 = vpop.xlane.xlu0 %1494 }
 0x4f5   :  { %v1301_v30 = vpop.xlane.xlu1 %1300 }
 0x4f6   :  { %v1489_v18 = vpop.xlane.xlu0 %1488 }
 0x4f7   :  { %v6548_v7 = vpop.eup %6547 }
 0x4f8   :  { %v6550_v6 = vpop.eup %6549  ;;  %v1510_v5 = vmul.f32 %v6548_v7, %v7603_v39 }
 0x4f9   :  { %v1498_v19 = vpop.xlane.xlu1 %1497  ;;  %v1509_v27 = vmul.f32 %v6550_v6, %v7608_v48 }
 0x4fa   :  { %v1292_v16 = vpop.xlane.xlu0 %1291  ;;  %6559 = vrcp.f32 %v1498_v19 }
 0x4fb   :  { %v6552_v15 = vpop.eup %6551  ;;  %6561 = vrcp.f32 %v1489_v18  ;;  %v1516_v43 = vpack.c.bf16 %v1510_v5, %v1509_v27 }
 0x4fc   :  { %v6554_v28 = vpop.eup %6553  ;;  %v1508_v26 = vmul.f32 %v6552_v15, %v7613_v32  ;;  %6563 = vrcp.f32 %v1495_v9 }
 0x4fd   :  { %v1492_v0 = vpop.xlane.xlu1 %1491  ;;  %v1507_v49 = vmul.f32 %v6554_v28, %v7618_v59  ;;  %v6556_v32 = vpop.eup %6555 }
 0x4fe   :  { %6565 = vrcp.f32 %v1492_v0  ;;  %v1298_v34 = vpop.xlane.xlu0 %1297  ;;  %v6558_v59 = vpop.eup %6557  ;;  %v1311_v24 = vmul.f32 %v6556_v32, %v7592_v47 }
 0x4ff   :  { %v1515_v35 = vpack.c.bf16 %v1508_v26, %v1507_v49  ;;  %6567 = vrcp.f32 %v1289_v14  ;;  %v627_v14 = vpack.c.bf16 %v7416_v23, %v7412_v51 }
 0x500   :  { %6569 = vrcp.f32 %v1286_v46 }
 0x501   :  { %6119 = vmatprep.mubr.msk.bf16.mxu0 %vm1229_vm3, %v1515_v35  ;;  %v1837_v39 = vpop.xlane.xlu1 %1836  ;;  %6571 = vrcp.f32 %v1292_v16 }
 0x502   :  { %6120 = vmatmul.mubr.msk.bf16.vlgmr.msra.gmra.mxu0 %vm1229_vm3, %v1516_v43  ;;  %v1834_v48 = vpop.xlane.xlu0 %1833  ;;  %6573 = vrcp.f32 %v1295_v31  ;;  %v1310_v31 = vmul.f32 %v6558_v59, %v7597_v4 }
 0x503   :  { %6128 = vmatpush3.bf16.msra.mxu0 %v7434_v20  ;;  %6575 = vrcp.f32 %v1298_v34 }
 0x504   :  { %6129 = vmatprep.subr.bf16.mxu0 %v629_v3  ;;  %v1318_v47 = vpack.c.bf16 %v1311_v24, %v1310_v31 }
 0x505   :  { %v1831_v17 = vpop.xlane.xlu1 %1830 }
 0x506   :  { %v1828_v29 = vpop.xlane.xlu0 %1827  ;;  %6577 = vrcp.f32 %v1831_v17 }
 0x507   :  { %6130 = vmatpush3.bf16.msra.mxu0 %v629_v3  ;;  %v6560_v13 = vpop.eup %6559  ;;  %6579 = vrcp.f32 %v1828_v29 }
 0x508   :  { %6131 = vmatprep.subr.bf16.mxu0 %v7414_v52  ;;  %v6562_v37 = vpop.eup %6561  ;;  %v1514_v20 = vmul.f32 %v6560_v13, %v7642_v42  ;;  %6581 = vrcp.f32 %v1301_v30 }
 0x509   :  { %v6564_v56 = vpop.eup %6563  ;;  %v1511_v45 = vmul.f32 %v6562_v37, %v7638_v38  ;;  %6583 = vrcp.f32 %v1837_v39  ;;  %v1968_v34 = vpop.permute.xlu1 %1967 }
 0x50a   :  { %v1513_v51 = vmul.f32 %v6564_v56, %v7629_v44  ;;  %6585 = vrcp.f32 %v1834_v48  ;;  %v1846_v5 = vpop.xlane.xlu0 %1845 }
 0x50b   :  { %v6566_v46 = vpop.eup %6565  ;;  %6132 = vmatpush3.bf16.msra.mxu0 %v7414_v52 }
 0x50c   :  { %6133 = vmatprep.subr.bf16.mxu0 %v627_v14  ;;  %v1512_v53 = vmul.f32 %v6566_v46, %v7651_v25  ;;  %v6568_v9 = vpop.eup %6567  ;;  %v1518_v18 = vpack.c.bf16 %v1514_v20, %v1513_v51 }
 0x50d   :  { %v6570_v52 = vpop.eup %6569  ;;  %v1313_v38 = vmul.f32 %v6568_v9, %v7585_v40 }
 0x50e   :  { %v1517_v23 = vpack.c.bf16 %v1512_v53, %v1511_v45  ;;  %v6572_v42 = vpop.eup %6571  ;;  %v1312_v44 = vmul.f32 %v6570_v52, %v7587_v36 }
 0x50f   :  { %6134 = vmatpush3.bf16.msra.mxu0 %v627_v14  ;;  %v6574_v4 = vpop.eup %6573  ;;  %v1314_v25 = vmul.f32 %v6572_v42, %v7647_v21 }
 0x510   :  { %6159 = vmatprep.subr.bf16.mxu0 %v7449_v58  ;;  %6123 = vmatprep.mubr.msk.bf16.mxu0 %vm1229_vm3, %v1517_v23  ;;  %v1315_v30 = vmul.f32 %v6574_v4, %v7623_v62  ;;  %v6576_v7 = vpop.eup %6575  ;;  %v1319_v6 = vpack.c.bf16 %v1313_v38, %v1312_v44 }
 0x511   :  { %6124 = vmatmul.mubr.msk.bf16.gmra.mxu0 %vm1229_vm3, %v1518_v18  ;;  %v1316_v40 = vmul.f32 %v6576_v7, %v7655_v22 }
 0x512   :  { %6135 = vmatprep.mubr.msk.bf16.mxu0 %vm1229_vm3, %v1318_v47  ;;  %v1320_v16 = vpack.c.bf16 %v1315_v30, %v1314_v25 }
 0x513   :  { %v6578_v19 = vpop.eup %6577 }
 0x514   :  { %v6580_v15 = vpop.eup %6579  ;;  %v1859_v62 = vmul.f32 %v6578_v19, %v7667_v60 }
 0x515   :  { %v6582_v28 = vpop.eup %6581  ;;  %v1858_v36 = vmul.f32 %v6580_v15, %v7671_v12 }
 0x516   :  { %v1317_v21 = vmul.f32 %v6582_v28, %v7633_v57  ;;  %v6584_v27 = vpop.eup %6583 }
 0x517   :  { %v6586_v0 = vpop.eup %6585  ;;  %v1866_v49 = vpack.c.bf16 %v1859_v62, %v1858_v36  ;;  %v1861_v22 = vmul.f32 %v6584_v27, %v7659_v11  ;;  %v1966_v11 = vpop.permute.xlu1 %1965 }
 0x518   :  { %v1321_v26 = vpack.c.bf16 %v1317_v21, %v1316_v40  ;;  %v1860_v60 = vmul.f32 %v6586_v0, %v7663_v8  ;;  %v1987_v8 = vsel %vm501_vm2, %v1966_v11, 0 }
 0x519   :  { %6136 = vmatmul.mubr.msk.bf16.vlgmr.msra.gmra.mxu0 %vm1229_vm3, %v1319_v6 }
 0x51a   :  { %6160 = vmatpush3.bf16.msra.mxu0 %v7449_v58  ;;  %6139 = vmatprep.mubr.msk.bf16.mxu0 %vm1229_vm3, %v1320_v16  ;;  %v1840_v58 = vpop.xlane.xlu0 %1839  ;;  %v1867_v57 = vpack.c.bf16 %v1861_v22, %v1860_v60 }
 0x51b   :  { %6161 = vmatprep.subr.bf16.mxu0 %v7451_v61 }
 0x51e   :  { %6162 = vmatpush3.bf16.msra.mxu0 %v7451_v61  ;;  %v1970_v61 = vpop.permute.xlu0 %1969 }
 0x51f   :  { %6163 = vmatprep.subr.bf16.mxu0 %v7438_v1  ;;  %v1993_v12 = vsel %vm501_vm2, %v1970_v61, 0 }
 0x521   :  { %6140 = vmatmul.mubr.msk.bf16.gmra.mxu0 %vm1229_vm3, %v1321_v26 }
 0x522   :  { %6164 = vmatpush3.bf16.msra.mxu0 %v7438_v1  ;;  %6167 = vmatprep.mubr.msk.bf16.mxu0 %vm1229_vm3, %v1866_v49  ;;  %v1990_v1 = vsel %vm501_vm2, %v1968_v34, 0  ;;  %v1956_v46 = vpop.permute.xlu0 %1955 }
 0x523   :  { %6165 = vmatprep.subr.bf16.mxu0 %v7443_v10 }
 0x526   :  { %6166 = vmatpush3.bf16.msra.mxu0 %v7443_v10  ;;  %v1960_v24 = vpop.permute.xlu0 %1959 }
 0x527   :  { %6423 = vmatprep.subr.msk.bf16.mxu0 %vm501_vm2, %v1970_v61 }
 0x529   :  { %6168 = vmatmul.mubr.msk.bf16.vlgmr.msra.gmra.mxu0 %vm1229_vm3, %v1867_v57 }
 0x52a   :  { %6176 = vmatpush3.bf16.xpose.msra.mxu0 %v1993_v12 }
 0x52b   :  { %6424 = vmatprep.subr.msk.bf16.mxu0 %vm501_vm2, %v1968_v34 }
 0x532   :  { %6178 = vmatpush3.bf16.xpose.msra.mxu0 %v1990_v1 }
 0x533   :  { %6425 = vmatprep.subr.msk.bf16.mxu0 %vm501_vm2, %v1966_v11 }
 0x53a   :  { %6180 = vmatpush3.bf16.xpose.msra.mxu0 %v1987_v8 }
 0x53e   :  { %v1849_v10 = vpop.xlane.xlu1 %1848 }
 0x53f   :  { %6587 = vrcp.f32 %v1849_v10 }
 0x540   :  { %6589 = vrcp.f32 %v1840_v58 }
 0x541   :  { %6591 = vrcp.f32 %v1846_v5 }
 0x542   :  { %v1843_v35 = vpop.xlane.xlu1 %1842 }
 0x543   :  { %6593 = vrcp.f32 %v1843_v35 }
 0x546   :  { %v1964_v43 = vpop.permute.xlu1 %1963 }
 0x547   :  { %6426 = vmatprep.subr.msk.bf16.mxu0 %vm501_vm2, %v1964_v43  ;;  %v1984_v3 = vsel %vm501_vm2, %v1964_v43, 0 }
 0x548   :  { %6182 = vmatpush3.bf16.xpose.msra.mxu0 %v1984_v3 }
 0x549   :  { %6191 = vmatprep.subr.bf16.mxu0 %v7453_v63 }
 0x54a   :  { %v1958_v20 = vpop.permute.xlu1 %1957 }
 0x54c   :  { %v6588_v39 = vpop.eup %6587 }
 0x54d   :  { %v6590_v48 = vpop.eup %6589  ;;  %v1865_v13 = vmul.f32 %v6588_v39, %v7697_v55 }
 0x54e   :  { %v6592_v32 = vpop.eup %6591  ;;  %v1862_v17 = vmul.f32 %v6590_v48, %v7681_v41  ;;  %v9936_v41 = vld [vmem:[#allocation15_spill] sm:$0xff] }
 0x54f   :  { %v1864_v29 = vmul.f32 %v6592_v32, %v7677_v33  ;;  %v1962_v33 = vpop.permute.xlu1 %1961 }
 0x550   :  { %v6594_v59 = vpop.eup %6593 }
 0x551   :  { %v1863_v37 = vmul.f32 %v6594_v59, %v7701_v54  ;;  %v1869_v14 = vpack.c.bf16 %v1865_v13, %v1864_v29 }
 0x553   :  { %v1868_v56 = vpack.c.bf16 %v1863_v37, %v1862_v17 }
 0x555   :  { %6171 = vmatprep.mubr.msk.bf16.mxu0 %vm1229_vm3, %v1868_v56 }
 0x556   :  { %6172 = vmatmul.mubr.msk.bf16.gmra.mxu0 %vm1229_vm3, %v1869_v14 }
 0x557   :  { %6183 = vmatprep.mubr.msk.bf16.mxu0 %vm501_vm2, %v1956_v46 }
 0x55e   :  { %6184 = vmatmul.mubr.msk.bf16.vlgmr.msra.gmra.mxu0 %vm501_vm2, %v1958_v20 }
 0x55f   :  { %6192 = vmatpush3.bf16.msra.mxu0 %v7453_v63  ;;  %6187 = vmatprep.mubr.msk.bf16.mxu0 %vm501_vm2, %v1960_v24 }
 0x560   :  { %6193 = vmatprep.subr.bf16.mxu0 %v7455_v2 }
 0x563   :  { %6194 = vmatpush3.bf16.msra.mxu0 %v7455_v2 }
 0x564   :  { %6195 = vmatprep.subr.bf16.mxu0 %v7445_v50 }
 0x566   :  { %6188 = vmatmul.mubr.msk.bf16.gmra.mxu0 %vm501_vm2, %v1962_v33 }
 0x567   :  { %6196 = vmatpush3.bf16.msra.mxu0 %v7445_v50 }
 0x568   :  { %6197 = vmatprep.subr.bf16.mxu0 %v9936_v41 }
 0x56b   :  { %6198 = vmatpush3.bf16.msra.mxu0 %v9936_v41 }
 0x5c2   :  { %v6121_v55 = vpop.f32.mrf.mxu0 }
 0x5c4   :  { %v1565_v54 = vpop.f32.mrf.mxu0 }
 0x5c6   :  { %v6122_v63 = vpop.f32.mrf.mxu0 }
 0x5c8   :  { %v1568_v45 = vpop.f32.mrf.mxu0 }
 0x5d1   :  { %v6125_v53 = vpop.f32.mrf.mxu0 }
 0x5d3   :  { %v1581_v31 = vpop.f32.mrf.mxu0 }
 0x5d5   :  { %v6126_v51 = vpop.f32.mrf.mxu0 }
 0x5d7   :  { %v1584_v23 = vpop.f32.mrf.mxu0 }
 0x5d9   :  { %v6137_v2 = vpop.f32.mrf.mxu0 }
 0x5da   :  { %v1651_v9 = vadd.f32 %v6137_v2, %v6121_v55 }
 0x5db   :  { %v1642_v18 = vpop.f32.mrf.mxu0 }
 0x5dc   :  { %v1643_v52 = vadd.f32 %v1642_v18, %v1565_v54 }
 0x5dd   :  { %v6138_v47 = vpop.f32.mrf.mxu0 }
 0x5de   :  { %v1654_v42 = vadd.f32 %v6138_v47, %v6122_v63 }
 0x5df   :  { %v1645_v4 = vpop.f32.mrf.mxu0 }
 0x5e0   :  { %v1646_v50 = vadd.f32 %v1645_v4, %v1568_v45 }
 0x5e1   :  { %v6141_v38 = vpop.f32.mrf.mxu0 }
 0x5e2   :  { %v1667_v44 = vadd.f32 %v6141_v38, %v6125_v53 }
 0x5e3   :  { %v1658_v25 = vpop.f32.mrf.mxu0 }
 0x5e4   :  { %v1659_v30 = vadd.f32 %v1658_v25, %v1581_v31 }
 0x5e5   :  { %v6142_v7 = vpop.f32.mrf.mxu0 }
 0x5e6   :  { %v1670_v6 = vadd.f32 %v6142_v7, %v6126_v51 }
 0x5e7   :  { %v1661_v19 = vpop.f32.mrf.mxu0 }
 0x5e8   :  { %v1662_v16 = vadd.f32 %v1661_v19, %v1584_v23 }
 0x5e9   :  { %v6169_v15 = vpop.f32.mrf.mxu0 }
 0x5ea   :  { %v7782_v28 = vadd.f32 %v6169_v15, %v1651_v9 }
 0x5eb   :  { %v1916_v5 = vpop.f32.mrf.mxu0 }
 0x5ec   :  { %v7784_v40 = vadd.f32 %v1916_v5, %v1643_v52 }
 0x5ed   :  { %v6170_v36 = vpop.f32.mrf.mxu0 }
 0x5ee   :  { %v7786_v62 = vadd.f32 %v6170_v36, %v1654_v42 }
 0x5ef   :  { %v1919_v21 = vpop.f32.mrf.mxu0 }
 0x5f0   :  { %v7788_v27 = vadd.f32 %v1919_v21, %v1646_v50 }
 0x616   :  { %v6173_v26 = vpop.f32.mrf.mxu0 }
 0x617   :  { %v7790_v0 = vadd.f32 %v6173_v26, %v1667_v44 }
 0x618   :  { %v1932_v58 = vpop.f32.mrf.mxu0 }
 0x619   :  { %v7792_v49 = vadd.f32 %v1932_v58, %v1659_v30 }
 0x61a   :  { %v6174_v22 = vpop.f32.mrf.mxu0 }
 0x61b   :  { %v7794_v60 = vadd.f32 %v6174_v22, %v1670_v6 }
 0x61c   :  { %v1935_v61 = vpop.f32.mrf.mxu0 }
 0x61d   :  { %v7796_v57 = vadd.f32 %v1935_v61, %v1662_v16 }
 0x61e   :  { %v6185_v12 = vpop.f32.mrf.mxu0 }
 0x61f   :  { %v2066_v10 = vsel %vm1229_vm3, %v6185_v12, -inf }
 0x620   :  { %v2029_v34 = vpop.f32.mrf.mxu0 }
 0x621   :  { %v2060_v1 = vsel %vm1229_vm3, %v2029_v34, -inf }
 0x622   :  { %2061 = vmax.xlane.f32.xlu0 %v2060_v1  ;;  %v6186_v11 = vpop.f32.mrf.mxu0 }
 0x623   :  { %v2069_v39 = vsel %vm1229_vm3, %v6186_v11, -inf }
 0x624   :  { %v2032_v8 = vpop.f32.mrf.mxu0 }
 0x625   :  { %v2063_v35 = vsel %vm1229_vm3, %v2032_v8, -inf }
 0x626   :  { %2067 = vmax.xlane.f32.xlu0 %v2066_v10  ;;  %2064 = vmax.xlane.f32.xlu1 %v2063_v35  ;;  %v6189_v43 = vpop.f32.mrf.mxu0 }
 0x627   :  { %v2078_v17 = vsel %vm1229_vm3, %v6189_v43, -inf }
 0x628   :  { %v2045_v3 = vpop.f32.mrf.mxu0 }
 0x629   :  { %v2072_v59 = vsel %vm1229_vm3, %v2045_v3, -inf }
 0x62a   :  { %2070 = vmax.xlane.f32.xlu0 %v2069_v39  ;;  %v6190_v48 = vpop.f32.mrf.mxu0 }
 0x62b   :  { %v2081_v37 = vsel %vm1229_vm3, %v6190_v48, -inf }
 0x62c   :  { %v2048_v32 = vpop.f32.mrf.mxu0 }
 0x62d   :  { %v2075_v13 = vsel %vm1229_vm3, %v2048_v32, -inf }
 0x62e   :  { %2073 = vmax.xlane.f32.xlu0 %v2072_v59  ;;  %2076 = vmax.xlane.f32.xlu1 %v2075_v13 }
 0x632   :  { %2079 = vmax.xlane.f32.xlu0 %v2078_v17  ;;  %2082 = vmax.xlane.f32.xlu1 %v2081_v37 }
 0x6ab   :  { %v2062_v29 = vpop.xlane.xlu0 %2061 }
 0x6ac   :  { %v2084_v56 = vsub.f32 %v2029_v34, %v2062_v29 }
 0x6ae   :  { %v2092_v14 = vmul.f32 1.442695, %v2084_v56 }
 0x6af   :  { %v2065_v46 = vpop.xlane.xlu1 %2064  ;;  %v2068_v20 = vpop.xlane.xlu0 %2067 }
 0x6b0   :  { %6595 = vpow2.f32 %v2092_v14  ;;  %v2085_v24 = vsub.f32 %v2032_v8, %v2065_v46  ;;  %v2086_v33 = vsub.f32 %v6185_v12, %v2068_v20 }
 0x6b2   :  { %v2094_v41 = vmul.f32 1.442695, %v2085_v24  ;;  %v2096_v55 = vmul.f32 1.442695, %v2086_v33 }
 0x6b3   :  { %v2071_v54 = vpop.xlane.xlu0 %2070 }
 0x6b4   :  { %6597 = vpow2.f32 %v2094_v41  ;;  %v2087_v63 = vsub.f32 %v6186_v11, %v2071_v54 }
 0x6b5   :  { %6599 = vpow2.f32 %v2096_v55 }
 0x6b6   :  { %v2098_v45 = vmul.f32 1.442695, %v2087_v63 }
 0x6b7   :  { %v2077_v53 = vpop.xlane.xlu1 %2076  ;;  %v2074_v31 = vpop.xlane.xlu0 %2073 }
 0x6b8   :  { %6601 = vpow2.f32 %v2098_v45  ;;  %v2089_v51 = vsub.f32 %v2048_v32, %v2077_v53  ;;  %v2088_v23 = vsub.f32 %v2045_v3, %v2074_v31 }
 0x6ba   :  { %v2102_v2 = vmul.f32 1.442695, %v2089_v51  ;;  %v2100_v9 = vmul.f32 1.442695, %v2088_v23 }
 0x6bb   :  { %v2083_v18 = vpop.xlane.xlu1 %2082  ;;  %v2080_v52 = vpop.xlane.xlu0 %2079 }
 0x6bc   :  { %6603 = vpow2.f32 %v2102_v2  ;;  %v2091_v47 = vsub.f32 %v6190_v48, %v2083_v18  ;;  %v2090_v42 = vsub.f32 %v6189_v43, %v2080_v52  ;;  %v6852_v52 = vld [vmem:[%s9813_s0] sm:$0xff] }
 0x6bd   :  { %v6596_v4 = vpop.eup %6595  ;;  %6605 = vpow2.f32 %v2100_v9  ;;  %v6851_v9 = vld [vmem:[%s9813_s0 + $0x10] sm:$0xff] }
 0x6be   :  { %v2106_v50 = vmul.f32 1.442695, %v2091_v47  ;;  %v2104_v38 = vmul.f32 1.442695, %v2090_v42  ;;  %v2108_v44 = vsel %vm1229_vm3, %v6596_v4, 0.0 }
 0x6bf   :  { %2109 = vadd.xlane.f32.xlu0 %v2108_v44  ;;  %v6853_v44 = vld [vmem:[%s9813_s0 + $0x18] sm:$0xff] }
 0x6c0   :  { %6607 = vpow2.f32 %v2106_v50 }
 0x6c1   :  { %v6598_v25 = vpop.eup %6597  ;;  %6609 = vpow2.f32 %v2104_v38 }
 0x6c2   :  { %v6600_v30 = vpop.eup %6599  ;;  %v2111_v7 = vsel %vm1229_vm3, %v6598_v25, 0.0 }
 0x6c3   :  { %2112 = vadd.xlane.f32.xlu1 %v2111_v7  ;;  %v2114_v6 = vsel %vm1229_vm3, %v6600_v30, 0.0 }
 0x6c4   :  { %2115 = vadd.xlane.f32.xlu0 %v2114_v6 }
 0x6c5   :  { %v6602_v19 = vpop.eup %6601 }
 0x6c6   :  { %v2117_v16 = vsel %vm1229_vm3, %v6602_v19, 0.0 }
 0x6c7   :  { %2118 = vadd.xlane.f32.xlu1 %v2117_v16 }
 0x6c9   :  { %v6604_v15 = vpop.eup %6603 }
 0x6ca   :  { %v6606_v5 = vpop.eup %6605  ;;  %v2123_v36 = vsel %vm1229_vm3, %v6604_v15, 0.0 }
 0x6cb   :  { %2124 = vadd.xlane.f32.xlu1 %v2123_v36  ;;  %v2120_v21 = vsel %vm1229_vm3, %v6606_v5, 0.0 }
 0x6cc   :  { %2121 = vadd.xlane.f32.xlu0 %v2120_v21 }
 0x6cd   :  { %v6608_v26 = vpop.eup %6607 }
 0x6ce   :  { %v6610_v58 = vpop.eup %6609  ;;  %v2129_v22 = vsel %vm1229_vm3, %v6608_v26, 0.0 }
 0x6cf   :  { %2130 = vadd.xlane.f32.xlu1 %v2129_v22  ;;  %v2126_v61 = vsel %vm1229_vm3, %v6610_v58, 0.0  ;;  %v6856_v22 = vld [vmem:[%s9813_s0 + $0x20] sm:$0xff] }
 0x6d0   :  { %2127 = vadd.xlane.f32.xlu0 %v2126_v61 }
 0x748   :  { %v2110_v12 = vpop.xlane.xlu0 %2109 }
 0x749   :  { %6611 = vrcp.f32 %v2110_v12 }
 0x74c   :  { %v2113_v34 = vpop.xlane.xlu1 %2112 }
 0x74d   :  { %6613 = vrcp.f32 %v2113_v34  ;;  %v2116_v1 = vpop.xlane.xlu0 %2115 }
 0x74e   :  { %6615 = vrcp.f32 %v2116_v1 }
 0x750   :  { %v2119_v11 = vpop.xlane.xlu1 %2118 }
 0x751   :  { %6617 = vrcp.f32 %v2119_v11 }
 0x754   :  { %v2125_v8 = vpop.xlane.xlu1 %2124 }
 0x755   :  { %6619 = vrcp.f32 %v2125_v8  ;;  %v2122_v10 = vpop.xlane.xlu0 %2121 }
 0x756   :  { %6621 = vrcp.f32 %v2122_v10  ;;  %v6612_v35 = vpop.eup %6611  ;;  %v6857_v10 = vld [vmem:[%s9813_s0 + $0x38] sm:$0xff] }
 0x757   :  { %v2140_v48 = vmul.f32 %v6612_v35, %v6596_v4 }
 0x758   :  { %v2131_v43 = vpop.xlane.xlu1 %2130 }
 0x759   :  { %6623 = vrcp.f32 %v2131_v43  ;;  %v2128_v3 = vpop.xlane.xlu0 %2127 }
 0x75a   :  { %v6614_v39 = vpop.eup %6613  ;;  %6625 = vrcp.f32 %v2128_v3 }
 0x75b   :  { %v2141_v32 = vmul.f32 %v6614_v39, %v6598_v25  ;;  %v6616_v59 = vpop.eup %6615 }
 0x75c   :  { %v2142_v37 = vmul.f32 %v6616_v59, %v6600_v30 }
 0x75d   :  { %v2148_v13 = vpack.c.bf16 %v2141_v32, %v2140_v48 }
 0x75e   :  { %v6618_v17 = vpop.eup %6617 }
 0x75f   :  { %v2143_v29 = vmul.f32 %v6618_v17, %v6602_v19  ;;  %6199 = vmatprep.mubr.msk.bf16.mxu0 %vm1229_vm3, %v2148_v13  ;;  %v6457_v13 = vld [vmem:[%s9819_s12 + $0x38] sm:$0xff]   ;;  %v6458_v17 = vld [vmem:[%s9819_s12 + $0x30] sm:$0xff]  }
 0x760   :  { %6219 = vmatprep.subr.bf16.mxu0 %v6457_v13 }
 0x761   :  { %v2149_v56 = vpack.c.bf16 %v2143_v29, %v2142_v37  ;;  %v6459_v37 = vld [vmem:[%s9819_s12 + $0x28] sm:$0xff]   ;;  %v6460_v29 = vld [vmem:[%s9819_s12 + $0x20] sm:$0xff]  }
 0x762   :  { %v6620_v14 = vpop.eup %6619 }
 0x763   :  { %v6622_v46 = vpop.eup %6621  ;;  %6200 = vmatmul.mubr.msk.bf16.vlgmr.msra.gmra.mxu0 %vm1229_vm3, %v2149_v56  ;;  %v2145_v20 = vmul.f32 %v6620_v14, %v6604_v15 }
 0x764   :  { %v2144_v24 = vmul.f32 %v6622_v46, %v6606_v5  ;;  %6220 = vmatpush3.bf16.msra.mxu0 %v6457_v13 }
 0x765   :  { %6221 = vmatprep.subr.bf16.mxu0 %v6458_v17 }
 0x766   :  { %v6624_v33 = vpop.eup %6623  ;;  %v2150_v41 = vpack.c.bf16 %v2145_v20, %v2144_v24 }
 0x767   :  { %v6626_v55 = vpop.eup %6625  ;;  %v2147_v54 = vmul.f32 %v6624_v33, %v6608_v26 }
 0x768   :  { %6203 = vmatprep.mubr.msk.bf16.mxu0 %vm1229_vm3, %v2150_v41  ;;  %v2146_v63 = vmul.f32 %v6626_v55, %v6610_v58  ;;  %v6855_v58 = vld [vmem:[%s9813_s0 + $0x30] sm:$0xff]  ;;  %6222 = vmatpush3.bf16.msra.mxu0 %v6458_v17 }
 0x769   :  { %6223 = vmatprep.subr.bf16.mxu0 %v6459_v37 }
 0x76a   :  { %v2151_v45 = vpack.c.bf16 %v2147_v54, %v2146_v63 }
 0x76c   :  { %6204 = vmatmul.mubr.msk.bf16.gmra.mxu0 %vm1229_vm3, %v2151_v45 }
 0x76d   :  { %6224 = vmatpush3.bf16.msra.mxu0 %v6459_v37 }
 0x76e   :  { %6225 = vmatprep.subr.bf16.mxu0 %v6460_v29 }
 0x771   :  { %6226 = vmatpush3.bf16.msra.mxu0 %v6460_v29 }
 0x823   :  { %v6201_v53 = vpop.f32.mrf.mxu0 }
 0x824   :  { %v2231_v31 = vadd.f32 %v6201_v53, %v7782_v28  ;;  %v5713_v28 = vld [vmem:[%s9818_s5] ss:$0 sm:$0xff] }
 0x825   :  { %v2198_v51 = vpop.f32.mrf.mxu0 }
 0x826   :  { %v2229_v23 = vadd.f32 %v2198_v51, %v7784_v40  ;;  %v2239_v18 = vadd.f32 %v6851_v9, %v2231_v31 }
 0x827   :  { %v6202_v2 = vpop.f32.mrf.mxu0 }
 0x828   :  { %v2237_v47 = vadd.f32 %v6852_v52, %v2229_v23  ;;  %v2232_v42 = vadd.f32 %v6202_v2, %v7786_v62  ;;  %v7833_v38 = vadd.f32 %v5713_v28, %v2239_v18  ;;  %v6854_v62 = vld [vmem:[%s9813_s0 + $0x8] sm:$0xff] }
 0x829   :  { %v2201_v4 = vpop.f32.mrf.mxu0 }
 0x82a   :  { %v7830_v50 = vadd.f32 %v5713_v28, %v2237_v47  ;;  %v2230_v40 = vadd.f32 %v2201_v4, %v7788_v27  ;;  %9938 = vst [vmem:[#allocation24_spill] sm:$0xff] %v7833_v38  ;;  %v2240_v25 = vadd.f32 %v6853_v44, %v2232_v42  ;;  %v2265_v21 = vsel %vm66_vm0, %v7833_v38, 0.0 }
 0x82c   :  { %9937 = vst [vmem:[#allocation15_spill] sm:$0xff] %v7830_v50  ;;  %v2238_v30 = vadd.f32 %v6854_v62, %v2230_v40  ;;  %v6205_v7 = vpop.f32.mrf.mxu0  ;;  %v2259_v6 = vsel %vm66_vm0, %v7830_v50, 0.0  ;;  %v7847_v5 = vadd.f32 %v5713_v28, %v2240_v25 }
 0x82d   :  { %v2235_v19 = vadd.f32 %v6205_v7, %v7790_v0  ;;  %2260 = vadd.xlane.f32.xlu0 %v2259_v6 }
 0x82e   :  { %v7844_v27 = vadd.f32 %v5713_v28, %v2238_v30  ;;  %v2214_v16 = vpop.f32.mrf.mxu0  ;;  %9940 = vst [vmem:[#allocation26_spill] sm:$0xff] %v7847_v5  ;;  %v2268_v11 = vsel %vm66_vm0, %v7847_v5, 0.0 }
 0x82f   :  { %v2233_v15 = vadd.f32 %v2214_v16, %v7792_v49  ;;  %v2243_v0 = vadd.f32 %v6855_v58, %v2235_v19 }
 0x830   :  { %9939 = vst [vmem:[#allocation25_spill] sm:$0xff] %v7844_v27  ;;  %v6206_v36 = vpop.f32.mrf.mxu0  ;;  %v2262_v26 = vsel %vm66_vm0, %v7844_v27, 0.0 }
 0x831   :  { %v2241_v61 = vadd.f32 %v6856_v22, %v2233_v15  ;;  %v2236_v49 = vadd.f32 %v6206_v36, %v7794_v60  ;;  %2266 = vadd.xlane.f32.xlu0 %v2265_v21  ;;  %2263 = vadd.xlane.f32.xlu1 %v2262_v26  ;;  %v7865_v8 = vadd.f32 %v5713_v28, %v2243_v0  ;;  %v6858_v60 = vld [vmem:[%s9813_s0 + $0x28] sm:$0xff]  ;;  %v6461_v22 = vld [vmem:[%s9819_s12 + $0x18] sm:$0xff]  }
 0x832   :  { %v2217_v12 = vpop.f32.mrf.mxu0  ;;  %6227 = vmatprep.subr.bf16.mxu0 %v6461_v22 }
 0x833   :  { %v7860_v34 = vadd.f32 %v5713_v28, %v2241_v61  ;;  %v2234_v1 = vadd.f32 %v2217_v12, %v7796_v57  ;;  %9942 = vst [vmem:[#allocation28_spill] sm:$0xff] %v7865_v8  ;;  %v2244_v35 = vadd.f32 %v6857_v10, %v2236_v49  ;;  %v2277_v48 = vsel %vm66_vm0, %v7865_v8, 0.0  ;;  %6228 = vmatpush3.bf16.msra.mxu0 %v6461_v22  ;;  %v6462_v12 = vld [vmem:[%s9819_s12 + $0x10] sm:$0xff]   ;;  %v6465_v10 = vld [vmem:[%s9820_s8 + $0x8] sm:$0xff]  }
 0x834   :  { %6229 = vmatprep.subr.bf16.mxu0 %v6462_v12  ;;  %6207 = vmatprep.subr.bf16.mxu1 %v6465_v10 }
 0x835   :  { %9941 = vst [vmem:[#allocation27_spill] sm:$0xff] %v7860_v34  ;;  %v2242_v43 = vadd.f32 %v6858_v60, %v2234_v1  ;;  %2269 = vadd.xlane.f32.xlu1 %v2268_v11  ;;  %v2271_v3 = vsel %vm66_vm0, %v7860_v34, 0.0  ;;  %v7877_v39 = vadd.f32 %v5713_v28, %v2244_v35  ;;  %v6463_v1 = vld [vmem:[%s9819_s12 + $0x8] sm:$0xff]   ;;  %v6464_v11 = vld [vmem:[%s9819_s12] sm:$0xff]   ;;  %6208 = vmatpush3.bf16.msra.mxu1 %v6465_v10 }
 0x836   :  { %2272 = vadd.xlane.f32.xlu0 %v2271_v3  ;;  %v6466_v35 = vld [vmem:[%s9820_s8] sm:$0xff]   ;;  %v9945_v60 = vld [vmem:[#allocation6_spill] sm:$0xff]  ;;  %v9947_v3 = vld [vmem:[#allocation3_spill] sm:$0xff] }
 0x837   :  { %v7875_v57 = vadd.f32 %v5713_v28, %v2242_v43  ;;  %9944 = vst [vmem:[#allocation30_spill] sm:$0xff] %v7877_v39  ;;  %v2280_v59 = vsel %vm66_vm0, %v7877_v39, 0.0  ;;  %6230 = vmatpush3.bf16.msra.mxu0 %v6462_v12  ;;  %6209 = vmatprep.subr.bf16.mxu1 %v6466_v35  ;;  %v9946_v43 = vld [vmem:[#allocation5_spill] sm:$0xff] }
 0x838   :  { %6231 = vmatprep.subr.bf16.mxu0 %v6463_v1 }
 0x839   :  { %9943 = vst [vmem:[#allocation29_spill] sm:$0xff] %v7875_v57  ;;  %v2274_v32 = vsel %vm66_vm0, %v7875_v57, 0.0  ;;  %6210 = vmatpush3.bf16.msra.mxu1 %v6466_v35 }
 0x83a   :  { %2278 = vadd.xlane.f32.xlu0 %v2277_v48  ;;  %2275 = vadd.xlane.f32.xlu1 %v2274_v32  ;;  %v9948_v48 = vld [vmem:[#allocation4_spill] sm:$0xff]  ;;  %v6896_v32 = vmov 0.0  }
 0x83b   :  { %6232 = vmatpush3.bf16.msra.mxu0 %v6463_v1  ;;  %1089 = vst [vmem:[#allocation2 + $0x58] sm:$0xff] %v6896_v32  ;;  %1081 = vst [vmem:[#allocation2 + $0x98] sm:$0x1] %v6896_v32 }
 0x83c   :  { %6233 = vmatprep.subr.bf16.mxu0 %v6464_v11  ;;  %1085 = vst [vmem:[#allocation2 + $0xc0] sm:$0x1] %v6896_v32  ;;  %1095 = vst [vmem:[#allocation2 + $0x28] sm:$0x1] %v6896_v32 }
 0x83d   :  { %1096 = vst [vmem:[#allocation2 + $0x48] sm:$0x1] %v6896_v32  ;;  %1097 = vst [vmem:[#allocation2 + $0x8] sm:$0x1] %v6896_v32 }
 0x83e   :  { %2281 = vadd.xlane.f32.xlu1 %v2280_v59  ;;  %1098 = vst [vmem:[#allocation2 + $0x40] sm:$0x1] %v6896_v32  ;;  %1099 = vst [vmem:[#allocation2 + $0x50] sm:$0x1] %v6896_v32 }
 0x83f   :  { %6234 = vmatpush3.bf16.msra.mxu0 %v6464_v11  ;;  %1100 = vst [vmem:[#allocation2 + $0x10] sm:$0x1] %v6896_v32  ;;  %1101 = vst [vmem:[#allocation2 + $0x30] sm:$0x1] %v6896_v32 }
 0x840   :  { %1102 = vst [vmem:[#allocation2 + $0xe8] sm:$0x1] %v6896_v32 }
 0x8b6   :  { %v2261_v56 = vpop.xlane.xlu0 %2260 }
 0x8b7   :  { %v2283_v14 = vmul.f32 0.03125, %v2261_v56 }
 0x8b9   :  { %v7898_v46 = vsub.f32 %v7830_v50, %v2283_v14 }
 0x8ba   :  { %v2264_v20 = vpop.xlane.xlu1 %2263  ;;  %v2267_v24 = vpop.xlane.xlu0 %2266 }
 0x8bb   :  { %v2284_v33 = vmul.f32 0.03125, %v2264_v20  ;;  %v2285_v41 = vmul.f32 0.03125, %v2267_v24  ;;  %v2299_v55 = vmul.f32 %v7898_v46, %v7898_v46 }
 0x8bd   :  { %v7903_v54 = vsub.f32 %v7844_v27, %v2284_v33  ;;  %v7906_v63 = vsub.f32 %v7833_v38, %v2285_v41  ;;  %v2307_v45 = vsel %vm66_vm0, %v2299_v55, 0.0 }
 0x8be   :  { %v2270_v53 = vpop.xlane.xlu1 %2269  ;;  %2308 = vadd.xlane.f32.xlu0 %v2307_v45 }
 0x8bf   :  { %v2286_v31 = vmul.f32 0.03125, %v2270_v53  ;;  %v2273_v51 = vpop.xlane.xlu0 %2272  ;;  %v2300_v23 = vmul.f32 %v7903_v54, %v7903_v54  ;;  %v2301_v2 = vmul.f32 %v7906_v63, %v7906_v63 }
 0x8c0   :  { %v2287_v9 = vmul.f32 0.03125, %v2273_v51 }
 0x8c1   :  { %v7914_v18 = vsub.f32 %v7847_v5, %v2286_v31  ;;  %v2310_v52 = vsel %vm66_vm0, %v2300_v23, 0.0  ;;  %v2313_v47 = vsel %vm66_vm0, %v2301_v2, 0.0 }
 0x8c2   :  { %v7919_v42 = vsub.f32 %v7860_v34, %v2287_v9  ;;  %2311 = vadd.xlane.f32.xlu1 %v2310_v52  ;;  %2314 = vadd.xlane.f32.xlu0 %v2313_v47 }
 0x8c3   :  { %v2276_v28 = vpop.xlane.xlu1 %2275  ;;  %v2279_v4 = vpop.xlane.xlu0 %2278  ;;  %v2302_v40 = vmul.f32 %v7914_v18, %v7914_v18 }
 0x8c4   :  { %v2288_v44 = vmul.f32 0.03125, %v2276_v28  ;;  %v2289_v25 = vmul.f32 0.03125, %v2279_v4  ;;  %v2303_v62 = vmul.f32 %v7919_v42, %v7919_v42 }
 0x8c5   :  { %v2316_v30 = vsel %vm66_vm0, %v2302_v40, 0.0 }
 0x8c6   :  { %v7927_v7 = vsub.f32 %v7875_v57, %v2288_v44  ;;  %v7930_v6 = vsub.f32 %v7865_v8, %v2289_v25  ;;  %2317 = vadd.xlane.f32.xlu1 %v2316_v30  ;;  %v2319_v19 = vsel %vm66_vm0, %v2303_v62, 0.0  ;;  %v5714_v62 = vld [vmem:[%s9821_s6] ss:$0 sm:$0xff] }
 0x8c7   :  { %v2282_v16 = vpop.xlane.xlu1 %2281  ;;  %2320 = vadd.xlane.f32.xlu0 %v2319_v19 }
 0x8c8   :  { %v2290_v15 = vmul.f32 0.03125, %v2282_v16  ;;  %v2304_v36 = vmul.f32 %v7927_v7, %v7927_v7  ;;  %v2305_v21 = vmul.f32 %v7930_v6, %v7930_v6 }
 0x8ca   :  { %v7938_v26 = vsub.f32 %v7877_v39, %v2290_v15  ;;  %v2322_v58 = vsel %vm66_vm0, %v2304_v36, 0.0  ;;  %v2325_v0 = vsel %vm66_vm0, %v2305_v21, 0.0 }
 0x8cb   :  { %2323 = vadd.xlane.f32.xlu1 %v2322_v58  ;;  %2326 = vadd.xlane.f32.xlu0 %v2325_v0  ;;  %v5715_v0 = vld [vmem:[%s9822_s7] ss:$0 sm:$0xff] }
 0x8cc   :  { %v2306_v61 = vmul.f32 %v7938_v26, %v7938_v26 }
 0x8ce   :  { %v2328_v49 = vsel %vm66_vm0, %v2306_v61, 0.0 }
 0x8cf   :  { %2329 = vadd.xlane.f32.xlu1 %v2328_v49 }
 0x8e0   :  { %3651 = vrot.lane.b32.xlu1 %v9945_v60, %s6888_s27 }
 0x8e1   :  { %3653 = vrot.lane.b32.xlu0 %v9946_v43, %s6888_s27 }
 0x8e4   :  { %3456 = vrot.lane.b32.xlu1 %v9946_v43, %s6890_s29 }
 0x8e5   :  { %3454 = vrot.lane.b32.xlu0 %v9945_v60, %s6890_s29 }
 0x8e8   :  { %3649 = vrot.lane.b32.xlu1 %v9947_v3, %s6888_s27 }
 0x8e9   :  { %3639 = vrot.lane.b32.xlu0 %v9948_v48, %s6891_s30 }
 0x8ec   :  { %3647 = vrot.lane.b32.xlu1 %v9948_v48, %s6888_s27 }
 0x8ed   :  { %3641 = vrot.lane.b32.xlu0 %v9947_v3, %s6891_s30 }
 0x8f0   :  { %3452 = vrot.lane.b32.xlu1 %v9947_v3, %s6890_s29 }
 0x8f1   :  { %3643 = vrot.lane.b32.xlu0 %v9945_v60, %s6891_s30 }
 0x8f4   :  { %4004 = vrot.lane.b32.xlu1 %v9946_v43, %s6892_s15 }
 0x8f5   :  { %3645 = vrot.lane.b32.xlu0 %v9946_v43, %s6891_s30 }
 0x8f8   :  { %3450 = vrot.lane.b32.xlu1 %v9948_v48, %s6890_s29 }
 0x8f9   :  { %4000 = vrot.lane.b32.xlu0 %v9947_v3, %s6892_s15 }
 0x8fc   :  { %4002 = vrot.lane.b32.xlu1 %v9945_v60, %s6892_s15 }
 0x8fd   :  { %3990 = vrot.lane.b32.xlu0 %v9948_v48, %s6893_s16 }
 0x900   :  { %3998 = vrot.lane.b32.xlu1 %v9948_v48, %s6892_s15 }
 0x901   :  { %3994 = vrot.lane.b32.xlu0 %v9945_v60, %s6893_s16 }
 0x904   :  { %3992 = vrot.lane.b32.xlu1 %v9947_v3, %s6893_s16 }
 0x908   :  { %3996 = vrot.lane.b32.xlu1 %v9946_v43, %s6893_s16 }
 0x947   :  { %v2309_v59 = vpop.xlane.xlu0 %2308 }
 0x948   :  { %v2331_v13 = vmul.f32 0.03125, %v2309_v59 }
 0x94a   :  { %v2339_v17 = vadd.f32 1e-05, %v2331_v13 }
 0x94b   :  { %v2312_v37 = vpop.xlane.xlu1 %2311  ;;  %v2315_v29 = vpop.xlane.xlu0 %2314 }
 0x94c   :  { %6627 = vrsqrt.f32 %v2339_v17  ;;  %v2332_v56 = vmul.f32 0.03125, %v2312_v37  ;;  %v2333_v14 = vmul.f32 0.03125, %v2315_v29 }
 0x94e   :  { %v2340_v20 = vadd.f32 1e-05, %v2332_v56  ;;  %v2341_v24 = vadd.f32 1e-05, %v2333_v14 }
 0x94f   :  { %v2318_v33 = vpop.xlane.xlu1 %2317 }
 0x950   :  { %6629 = vrsqrt.f32 %v2340_v20  ;;  %v2334_v41 = vmul.f32 0.03125, %v2318_v33  ;;  %v2321_v55 = vpop.xlane.xlu0 %2320 }
 0x951   :  { %6631 = vrsqrt.f32 %v2341_v24  ;;  %v2335_v45 = vmul.f32 0.03125, %v2321_v55 }
 0x952   :  { %v2342_v53 = vadd.f32 1e-05, %v2334_v41 }
 0x953   :  { %v2343_v31 = vadd.f32 1e-05, %v2335_v45 }
 0x954   :  { %6633 = vrsqrt.f32 %v2342_v53  ;;  %v2324_v51 = vpop.xlane.xlu1 %2323  ;;  %v2327_v23 = vpop.xlane.xlu0 %2326 }
 0x955   :  { %6635 = vrsqrt.f32 %v2343_v31  ;;  %v2336_v2 = vmul.f32 0.03125, %v2324_v51  ;;  %v2337_v9 = vmul.f32 0.03125, %v2327_v23 }
 0x957   :  { %v2344_v52 = vadd.f32 1e-05, %v2336_v2  ;;  %v2345_v47 = vadd.f32 1e-05, %v2337_v9 }
 0x958   :  { %v2330_v28 = vpop.xlane.xlu1 %2329  ;;  %v8003_v4 = vpop.permute.xlu0 %3653 }
 0x959   :  { %v6628_v40 = vpop.eup %6627  ;;  %6637 = vrsqrt.f32 %v2344_v52  ;;  %v2338_v44 = vmul.f32 0.03125, %v2330_v28  ;;  %6431 = vmatprep.subr.msk.bf16.mxu0 %vm501_vm2, %v8003_v4 }
 0x95a   :  { %6639 = vrsqrt.f32 %v2345_v47  ;;  %v2355_v25 = vmul.f32 %v6628_v40, %v7898_v46 }
 0x95b   :  { %v2346_v30 = vadd.f32 1e-05, %v2338_v44  ;;  %v9953_v44 = vld [vmem:[#allocation13_spill] sm:$0xff] }
 0x95c   :  { %v8011_v19 = vpop.permute.xlu1 %3651  ;;  %v2369_v21 = vmul.f32 %v5714_v62, %v2355_v25  ;;  %v3455_v41 = vpop.permute.xlu0 %3454  ;;  %v9954_v25 = vld [vmem:[#allocation14_spill] sm:$0xff] }
 0x95d   :  { %9949 = vst [vmem:[#allocation31_spill] sm:$0xff] %v8011_v19  ;;  %v6630_v16 = vpop.eup %6629  ;;  %6641 = vrsqrt.f32 %v2346_v30  ;;  %v3477_v52 = vsel %vm501_vm2, %v3455_v41, 0  ;;  %v9956_v30 = vld [vmem:[#allocation12_spill] sm:$0xff] }
 0x95e   :  { %v6632_v15 = vpop.eup %6631  ;;  %v2356_v36 = vmul.f32 %v6630_v16, %v7903_v54  ;;  %v2383_v11 = vadd.f32 %v5715_v0, %v2369_v21  ;;  %v9957_v16 = vld [vmem:[#allocation9_spill] sm:$0xff] }
 0x95f   :  { %v2357_v58 = vmul.f32 %v6632_v15, %v7906_v63  ;;  %v2522_v15 = vlaneseq }
 0x960   :  { %v3457_v46 = vpop.permute.xlu1 %3456  ;;  %v2370_v22 = vmul.f32 %v5714_v62, %v2356_v36 }
 0x961   :  { %v6634_v61 = vpop.eup %6633  ;;  %6427 = vmatprep.subr.msk.bf16.mxu1 %vm501_vm2, %v3457_v46  ;;  %v2371_v12 = vmul.f32 %v5714_v62, %v2357_v58  ;;  %v2523_v36 = vshrl.u32 %v2522_v15, 7  ;;  %v1103_v58 = vld [vmem:[%s9823_s10] sm:$0x7]  ;;  %v2894_v15 = vld [vmem:[#allocation2 + $0x48] sm:$0x1] }
 0x962   :  { %v6636_v49 = vpop.eup %6635  ;;  %v2358_v1 = vmul.f32 %v6634_v61, %v7914_v18  ;;  %v2384_v10 = vadd.f32 %v5715_v0, %v2370_v22 }
 0x963   :  { %v2359_v54 = vmul.f32 %v6636_v49, %v7919_v42  ;;  %v2385_v13 = vadd.f32 %v5715_v0, %v2371_v12  ;;  %v3480_v42 = vsel %vm501_vm2, %v3457_v46, 0  ;;  %v2544_v21 = vsub.s32 1, %v2523_v36 }
 0x964   :  { %v2372_v35 = vmul.f32 %v5714_v62, %v2358_v1  ;;  %v8021_v32 = vpop.permute.xlu1 %3649  ;;  %v2391_v63 = vpack.c.bf16 %v2384_v10, %v2383_v11  ;;  %v2596_v22 = vsub.s32 2, %v2523_v36  ;;  %v2500_v1 = vld [vmem:[#allocation2 + $0x98] sm:$0x1]  ;;  %v1105_v11 = vld [vmem:[%s9823_s10 + $0x8] sm:$0x7] }
 0x965   :  { %9950 = vst [vmem:[#allocation32_spill] sm:$0xff] %v8021_v32  ;;  %v2373_v56 = vmul.f32 %v5714_v62, %v2359_v54  ;;  %v8061_v46 = vrot.slane %v1103_v58, %v2544_v21  ;;  %v1104_v10 = vld [vmem:[%s9823_s10 + $0x4] sm:$0x7] }
 0x966   :  { %v6638_v59 = vpop.eup %6637  ;;  %6211 = vmatprep.mubr.msk.bf16.mxu1 %vm66_vm0, %v2391_v63  ;;  %v2386_v17 = vadd.f32 %v5715_v0, %v2372_v35  ;;  %v8065_v49 = vrot.slane %v1103_v58, %v2596_v22  ;;  %v2509_v35 = vld [vmem:[#allocation2 + $0x8] sm:$0x1] }
 0x967   :  { %v6640_v37 = vpop.eup %6639  ;;  %v2360_v29 = vmul.f32 %v6638_v59, %v7927_v7  ;;  %v2387_v55 = vadd.f32 %v5715_v0, %v2373_v56  ;;  %9958 = vst [vmem:[#allocation13_spill] sm:$0xff] %v8061_v46  ;;  %v2546_v12 = vmul.f32 0.0, %v8061_v46  ;;  %v2689_v56 = vld [vmem:[#allocation2 + $0x28] sm:$0x1] }
 0x968   :  { %v2392_v14 = vpack.c.bf16 %v2386_v17, %v2385_v13  ;;  %v2361_v18 = vmul.f32 %v6640_v37, %v7930_v6  ;;  %v8026_v33 = vpop.permute.xlu1 %3647  ;;  %v2598_v59 = vmul.f32 0.0, %v8065_v49  ;;  %v2599_v13 = vmul.f32 %v8065_v49, %v2500_v1  ;;  %v2506_v37 = vld [vmem:[#allocation2 + $0x48] sm:$0x1] }
 0x969   :  { %v2374_v20 = vmul.f32 %v5714_v62, %v2360_v29  ;;  %9951 = vst [vmem:[#allocation33_spill] sm:$0xff] %v8026_v33  ;;  %v2562_v63 = vrot.slane %v2546_v12, 1  ;;  %v8079_v17 = vrot.slane %v1105_v11, %v2596_v22  ;;  %v2503_v29 = vld [vmem:[#allocation2 + $0x28] sm:$0x1]  ;;  %v2512_v12 = vld [vmem:[#allocation2 + $0x40] sm:$0x1]  ;;  %v8121_v1 = vrot.slane %v1104_v10, %v2544_v21 }
 0x96a   :  { %v6642_v24 = vpop.eup %6641  ;;  %6212 = vmatmul.mubr.msk.bf16.vlgmr.msra.gmra.mxu1 %vm66_vm0, %v2392_v14  ;;  %v2375_v31 = vmul.f32 %v5714_v62, %v2361_v18  ;;  %v2692_v14 = vld [vmem:[#allocation2 + $0x48] sm:$0x1] }
 0x96b   :  { %6244 = vmatpush3.bf16.xpose.msra.mxu1 %v3480_v42  ;;  %v2388_v45 = vadd.f32 %v5715_v0, %v2374_v20  ;;  %v2362_v53 = vmul.f32 %v6642_v24, %v7938_v26  ;;  %v2897_v18 = vld [vmem:[#allocation2 + $0x8] sm:$0x1]  ;;  %v8081_v20 = vrot.slane %v1104_v10, %v2596_v22  ;;  %v8084_v24 = vmul.f32 %v8065_v49, %v2509_v35  ;;  %v2903_v22 = vld [vmem:[#allocation2 + $0x50] sm:$0x1] }
 0x96c   :  { %6428 = vmatprep.subr.msk.bf16.mxu1 %vm501_vm2, %v3455_v41  ;;  %v2389_v6 = vadd.f32 %v5715_v0, %v2375_v31  ;;  %v3453_v2 = vpop.permute.xlu1 %3452  ;;  %v8088_v41 = vmul.f32 %v8065_v49, %v2503_v29  ;;  %v8128_v29 = vrot.slane %v1105_v11, %v2544_v21  ;;  %v8145_v21 = vmul.f32 %v8079_v17, %v2903_v22 }
 0x96d   :  { %v2393_v7 = vpack.c.bf16 %v2388_v45, %v2387_v55  ;;  %v2376_v51 = vmul.f32 %v5714_v62, %v2362_v53  ;;  %v3474_v47 = vsel %vm501_vm2, %v3453_v2, 0  ;;  %v9955_v62 = vld [vmem:[#allocation11_spill] sm:$0xff]  ;;  %v2631_v55 = vrot.slane %v2598_v59, 2 }
 0x96e   :  { %9960 = vst [vmem:[#allocation11_spill] sm:$0xff] %v8065_v49  ;;  %v2632_v45 = vrot.slane %v2599_v13, 2  ;;  %v8091_v53 = vmul.f32 %v8065_v49, %v2506_v37  ;;  %v8094_v31 = vmul.f32 %v8081_v20, %v2689_v56  ;;  %v2515_v59 = vld [vmem:[#allocation2 + $0x50] sm:$0x1]  ;;  %9963 = vst [vmem:[#allocation36_spill] sm:$0xff] %v8145_v21  ;;  %v9979_v32 = vrot.slane %v8084_v24, 2 }
 0x96f   :  { %6215 = vmatprep.mubr.msk.bf16.mxu1 %vm66_vm0, %v2393_v7  ;;  %v2390_v23 = vadd.f32 %v5715_v0, %v2376_v51  ;;  %v2524_v0 = vsub.s32 0, %v2523_v36  ;;  %v8097_v7 = vmul.f32 %v8081_v20, %v2692_v14  ;;  %v8100_v51 = vmul.f32 %v8079_v17, %v2897_v18  ;;  %v2701_v13 = vld [vmem:[#allocation2 + $0x50] sm:$0x1] }
 0x970   :  { %v8038_v26 = vpop.permute.xlu1 %4004  ;;  %v2704_v37 = vld [vmem:[#allocation2 + $0x10] sm:$0x1]  ;;  %v8136_v18 = vmul.f32 %v8079_v17, %v2894_v15  ;;  %v8152_v15 = vmul.f32 %v8065_v49, %v2515_v59  ;;  %v8155_v36 = vmul.f32 %v8081_v20, %v2701_v13  ;;  %v8173_v59 = vld [vmem:[%s9824_s9] ss:$0 sm:$0xff] }
 0x971   :  { %v2394_v9 = vpack.c.bf16 %v2390_v23, %v2389_v6  ;;  %9952 = vst [vmem:[#allocation34_spill] sm:$0xff] %v8038_v26  ;;  %v8063_v61 = vrot.slane %v1103_v58, %v2524_v0  ;;  %v8102_v6 = vrot.slane %v1104_v10, %v2524_v0  ;;  %v2900_v58 = vld [vmem:[#allocation2 + $0x40] sm:$0x1]  ;;  %v8123_v35 = vrot.slane %v1105_v11, %v2524_v0  ;;  %v2906_v10 = vld [vmem:[#allocation2 + $0x10] sm:$0x1] }
 0x972   :  { %v2521_v0 = vld [vmem:[#allocation2 + $0x30] sm:$0x1]  ;;  %v8148_v11 = vmul.f32 %v8065_v49, %v2512_v12  ;;  %9965 = vst [vmem:[#allocation38_spill] sm:$0xff] %v8152_v15  ;;  %9966 = vst [vmem:[#allocation39_spill] sm:$0xff] %v8155_v36 }
 0x973   :  { %6216 = vmatmul.mubr.msk.bf16.gmra.mxu1 %vm66_vm0, %v2394_v9  ;;  %9959 = vst [vmem:[#allocation14_spill] sm:$0xff] %v8063_v61  ;;  %v8075_v54 = vmul.f32 0.0, %v8063_v61  ;;  %v8107_v9 = vsel %vm501_vm2, %v8003_v4, 0 }
 0x974   :  { %6246 = vmatpush3.bf16.xpose.msra.mxu1 %v3477_v52  ;;  %6251 = vmatprep.mubr.msk.bf16.mxu1 %vm501_vm2, %v9948_v48  ;;  %v3451_v28 = vpop.permute.xlu1 %3450  ;;  %9961 = vst [vmem:[#allocation12_spill] sm:$0xff] %v8107_v9  ;;  %v8110_v52 = vmul.f32 0.0, %v8102_v6  ;;  %9964 = vst [vmem:[#allocation37_spill] sm:$0xff] %v8148_v11 }
 0x975   :  { %6429 = vmatprep.subr.msk.bf16.mxu1 %vm501_vm2, %v3453_v2  ;;  %v3471_v40 = vsel %vm501_vm2, %v3451_v28, 0  ;;  %v2578_v42 = vadd.f32 %v2562_v63, %v8075_v54  ;;  %v2695_v2 = vld [vmem:[#allocation2 + $0x8] sm:$0x1] }
 0x976   :  { %v8119_v4 = vmul.f32 %v8081_v20, %v2695_v2  ;;  %v8142_v2 = vmul.f32 %v8079_v17, %v2900_v58  ;;  %v8158_v58 = vmul.f32 %v8081_v20, %v2704_v37 }
 0x978   :  { %9962 = vst [vmem:[#allocation35_spill] sm:$0xff] %v8142_v2  ;;  %9967 = vst [vmem:[#allocation40_spill] sm:$0xff] %v8158_v58 }
 0x97c   :  { %6248 = vmatpush3.bf16.xpose.msra.mxu1 %v3474_v47  ;;  %v2633_v47 = vsel %vm2630_vm4, %v2631_v55, %v2632_v45  ;;  %v8139_v45 = vmul.f32 0.0, %v8123_v35 }
 0x97d   :  { %6430 = vmatprep.subr.msk.bf16.mxu1 %vm501_vm2, %v3451_v28  ;;  %v8130_v56 = vadd.f32 %v2633_v47, %v2578_v42  ;;  %v2707_v47 = vld [vmem:[#allocation2 + $0x30] sm:$0x1]  ;;  %v2915_v28 = vld [vmem:[#allocation2 + $0xc0] sm:$0x1] }
 0x97e   :  { %v8180_v22 = vmul.f32 %v8081_v20, %v2707_v47 }
 0x980   :  { %9972 = vst [vmem:[#allocation45_spill] sm:$0xff] %v8180_v22 }
 0x984   :  { %6250 = vmatpush3.bf16.xpose.msra.mxu1 %v3471_v40  ;;  %v2671_v40 = vadd.f32 %v2631_v55, %v2578_v42  ;;  %v2909_v55 = vld [vmem:[#allocation2 + $0x30] sm:$0x1] }
 0x985   :  { %6275 = vmatprep.subr.bf16.mxu1 %v9953_v44  ;;  %v2518_v42 = vld [vmem:[#allocation2 + $0x10] sm:$0x1]  ;;  %v8165_v12 = vmul.f32 %v8079_v17, %v2909_v55 }
 0x986   :  { %v8133_v14 = vadd.f32 %v8110_v52, %v2671_v40  ;;  %v2710_v40 = vld [vmem:[#allocation2 + $0xe8] sm:$0x1]  ;;  %v8177_v37 = vmul.f32 %v8065_v49, %v2518_v42 }
 0x987   :  { %9969 = vst [vmem:[#allocation42_spill] sm:$0xff] %v8165_v12 }
 0x988   :  { %9971 = vst [vmem:[#allocation44_spill] sm:$0xff] %v8177_v37 }
 0x98b   :  { %6252 = vmatmul.mubr.msk.bf16.vlgmr.msra.gmra.mxu1 %vm501_vm2, %v9947_v3  ;;  %v8207_v3 = vmul.f32 %v8079_v17, %v2915_v28 }
 0x98c   :  { %6255 = vmatprep.mubr.msk.bf16.mxu1 %vm501_vm2, %v9945_v60  ;;  %6276 = vmatpush3.bf16.msra.mxu1 %v9953_v44  ;;  %v2698_v44 = vld [vmem:[#allocation2 + $0x40] sm:$0x1] }
 0x98d   :  { %6277 = vmatprep.subr.bf16.mxu1 %v9954_v25  ;;  %v8126_v63 = vmul.f32 %v8081_v20, %v2698_v44  ;;  %9976 = vst [vmem:[#allocation49_spill] sm:$0xff] %v8207_v3 }
 0x990   :  { %6278 = vmatpush3.bf16.msra.mxu1 %v9954_v25  ;;  %v8189_v25 = vmul.f32 0.0, %v8128_v29 }
 0x991   :  { %6279 = vmatprep.subr.bf16.mxu1 %v9955_v62 }
 0x992   :  { %9974 = vst [vmem:[#allocation47_spill] sm:$0xff] %v8189_v25 }
 0x993   :  { %6256 = vmatmul.mubr.msk.bf16.gmra.mxu1 %vm501_vm2, %v9946_v43 }
 0x994   :  { %6280 = vmatpush3.bf16.msra.mxu1 %v9955_v62  ;;  %v8168_v62 = vmul.f32 %v8065_v49, %v2521_v0 }
 0x995   :  { %6281 = vmatprep.subr.bf16.mxu1 %v9956_v30 }
 0x996   :  { %9970 = vst [vmem:[#allocation43_spill] sm:$0xff] %v8168_v62 }
 0x998   :  { %6282 = vmatpush3.bf16.msra.mxu1 %v9956_v30  ;;  %v8162_v30 = vmul.f32 %v8079_v17, %v2906_v10  ;;  %v8183_v10 = vmul.f32 %v8081_v20, %v2710_v40  ;;  %v8195_v40 = vmul.f32 0.0, %v8079_v17 }
 0x999   :  { %6291 = vmatprep.subr.bf16.mxu1 %v9957_v16  ;;  %v2912_v16 = vld [vmem:[#allocation2 + $0xe8] sm:$0x1] }
 0x99a   :  { %9968 = vst [vmem:[#allocation41_spill] sm:$0xff] %v8162_v30  ;;  %9973 = vst [vmem:[#allocation46_spill] sm:$0xff] %v8183_v10  ;;  %v8215_v48 = vmul.f32 %v8079_v17, %v2912_v16 }
 0x99b   :  { %9975 = vst [vmem:[#allocation48_spill] sm:$0xff] %v8195_v40 }
 0x99c   :  { %9977 = vst [vmem:[#allocation50_spill] sm:$0xff] %v8215_v48 }
 0xa2a   :  { %v6213_v13 = vpop.f32.mrf.mxu1 }
 0xa2b   :  { %v8198_v55 = vadd.f32 %v6213_v13, %v8173_v59 }
 0xa2c   :  { %v2459_v43 = vpop.f32.mrf.mxu1 }
 0xa2d   :  { %v2549_v13 = vmul.f32 %v8061_v46, %v8198_v55  ;;  %v2604_v44 = vmul.f32 %v8065_v49, %v8198_v55  ;;  %v8219_v42 = vmul.f32 %v8121_v1, %v8198_v55  ;;  %v8223_v47 = vmul.f32 %v8081_v20, %v8198_v55 }
 0xa2e   :  { %v8226_v28 = vadd.f32 %v8173_v59, %v2459_v43  ;;  %v6214_v23 = vpop.f32.mrf.mxu1  ;;  %v2533_v0 = vmul.f32 %v8063_v61, %v8198_v55  ;;  %v8236_v34 = vmul.f32 %v8102_v6, %v8198_v55  ;;  %v8242_v27 = vmul.f32 %v8123_v35, %v8198_v55 }
 0xa2f   :  { %v2565_v57 = vrot.slane %v2549_v13, 1  ;;  %v2640_v16 = vrot.slane %v2604_v44, 2  ;;  %v8232_v39 = vadd.f32 %v6214_v23, %v8173_v59  ;;  %v8252_v5 = vmul.f32 %v8128_v29, %v8198_v55 }
 0xa30   :  { %v2547_v8 = vmul.f32 %v8061_v46, %v8226_v28  ;;  %v2462_v43 = vpop.f32.mrf.mxu1  ;;  %v8248_v23 = vmul.f32 %v8065_v49, %v8226_v28 }
 0xa31   :  { %v2584_v13 = vadd.f32 %v2565_v57, %v8075_v54  ;;  %v2585_v44 = vadd.f32 %v2565_v57, %v2533_v0  ;;  %v2550_v33 = vmul.f32 %v8061_v46, %v8232_v39  ;;  %v2529_v57 = vmul.f32 %v8063_v61, %v8226_v28 }
 0xa32   :  { %v2563_v26 = vrot.slane %v2547_v8, 1  ;;  %v8262_v0 = vmul.f32 %v8065_v49, %v8232_v39  ;;  %v2642_v25 = vsel %vm2630_vm4, %v2640_v16, %v9979_v32  ;;  %v2634_v50 = vrot.slane %v8248_v23, 2 }
 0xa33   :  { %v2677_v60 = vadd.f32 %v2640_v16, %v2584_v13  ;;  %v6217_v40 = vpop.f32.mrf.mxu1  ;;  %v8270_v8 = vmul.f32 %v8102_v6, %v8226_v28  ;;  %v2535_v13 = vmul.f32 %v8063_v61, %v8232_v39  ;;  %v2566_v38 = vrot.slane %v2550_v33, 1 }
 0xa34   :  { %9978 = vst [vmem:[#allocation51_spill] sm:$0xff] %v8262_v0  ;;  %v2678_v3 = vadd.f32 %v2642_v25, %v2585_v44  ;;  %v2722_v48 = vmul.f32 %v8102_v6, %v8232_v39  ;;  %v2754_v24 = vmul.f32 %v8121_v1, %v8232_v39  ;;  %v8280_v32 = vmul.f32 %v8081_v20, %v8232_v39 }
 0xa35   :  { %v2475_v16 = vpop.f32.mrf.mxu1  ;;  %v2580_v23 = vadd.f32 %v2563_v26, %v8075_v54  ;;  %v2581_v10 = vadd.f32 %v2563_v26, %v2529_v57  ;;  %v2737_v22 = vadd.f32 %v8110_v52, %v2677_v60  ;;  %v8286_v33 = vmul.f32 %v8128_v29, %v8232_v39 }
 0xa36   :  { %v8289_v25 = vadd.f32 %v2566_v38, %v8075_v54  ;;  %v2738_v19 = vadd.f32 %v2722_v48, %v2678_v3  ;;  %v8293_v9 = vadd.f32 %v8173_v59, %v2462_v43  ;;  %v8295_v37 = vadd.f32 %v2566_v38, %v2535_v13 }
 0xa37   :  { %v6218_v62 = vpop.f32.mrf.mxu1  ;;  %v2770_v12 = vrot.slane %v2754_v24, 1  ;;  %v8298_v26 = vadd.f32 %v6217_v40, %v8173_v59  ;;  %v8301_v60 = vadd.f32 %v8173_v59, %v2475_v16  ;;  %v8306_v30 = vmul.f32 %v8123_v35, %v8232_v39 }
 0xa38   :  { %9980 = vst [vmem:[#allocation52_spill] sm:$0xff] %v8289_v25  ;;  %9981 = vst [vmem:[#allocation53_spill] sm:$0xff] %v8295_v37  ;;  %v2548_v48 = vmul.f32 %v8061_v46, %v8293_v9  ;;  %v2602_v43 = vmul.f32 %v8065_v49, %v8293_v9  ;;  %v8316_v13 = vadd.f32 %v6218_v62, %v8173_v59  ;;  %v9983_v37 = vrot.slane %v8280_v32, 2 }
 0xa39   :  { %v2789_v38 = vadd.f32 %v2770_v12, %v2737_v22  ;;  %v2553_v40 = vmul.f32 %v8061_v46, %v8298_v26  ;;  %v8318_v24 = vadd.f32 %v2770_v12, %v2738_v19  ;;  %v2531_v16 = vmul.f32 %v8063_v61, %v8293_v9 }
 0xa3a   :  { %9982 = vst [vmem:[#allocation54_spill] sm:$0xff] %v8316_v13  ;;  %v2564_v44 = vrot.slane %v2548_v48, 1  ;;  %v8324_v3 = vmul.f32 %v8065_v49, %v8298_v26  ;;  %v2637_v22 = vrot.slane %v2602_v43, 2  ;;  %v2718_v57 = vmul.f32 %v8102_v6, %v8293_v9 }
 0xa3b   :  { %v2569_v58 = vrot.slane %v2553_v40, 1  ;;  %v2551_v36 = vmul.f32 %v8061_v46, %v8301_v60  ;;  %v2541_v12 = vmul.f32 %v8063_v61, %v8298_v26  ;;  %v8335_v48 = vmul.f32 %v8065_v49, %v8301_v60 }
 0xa3c   :  { %v2582_v62 = vadd.f32 %v2564_v44, %v8075_v54  ;;  %v2583_v19 = vadd.f32 %v2564_v44, %v2531_v16  ;;  %v8339_v43 = vadd.f32 %v9983_v37, %v2789_v38  ;;  %v9984_v25 = vrot.slane %v8091_v53, 2  ;;  %v2478_v16 = vpop.f32.mrf.mxu1 }
 0xa3d   :  { %v8346_v15 = vmul.f32 %v8102_v6, %v8298_v26  ;;  %v2567_v44 = vrot.slane %v2551_v36, 1  ;;  %v2537_v2 = vmul.f32 %v8063_v61, %v8301_v60  ;;  %v8352_v37 = vadd.f32 %v2569_v58, %v8075_v54 }
 0xa3e   :  { %v2639_v40 = vsel %vm2630_vm4, %v2637_v22, %v9984_v25  ;;  %v2675_v0 = vadd.f32 %v2637_v22, %v2582_v62  ;;  %v8354_v38 = vadd.f32 %v2569_v58, %v2541_v12  ;;  %v8359_v25 = vmul.f32 %v8102_v6, %v8301_v60 }
 0xa3f   :  { %9985 = vst [vmem:[#allocation55_spill] sm:$0xff] %v8346_v15  ;;  %v2676_v11 = vadd.f32 %v2639_v40, %v2583_v19  ;;  %9986 = vst [vmem:[#allocation56_spill] sm:$0xff] %v8352_v37  ;;  %v8362_v36 = vadd.f32 %v2567_v44, %v8075_v54  ;;  %v8364_v22 = vadd.f32 %v2567_v44, %v2537_v2  ;;  %v9988_v40 = vrot.slane %v8088_v41, 2 }
 0xa40   :  { %9987 = vst [vmem:[#allocation57_spill] sm:$0xff] %v8354_v38  ;;  %v8368_v62 = vmul.f32 %v8128_v29, %v8301_v60  ;;  %v8371_v19 = vadd.f32 %v8173_v59, %v2478_v16  ;;  %v2735_v58 = vadd.f32 %v8110_v52, %v2675_v0  ;;  %v8376_v12 = vmul.f32 %v8123_v35, %v8301_v60 }
 0xa41   :  { %v2636_v21 = vsel %vm2630_vm4, %v2634_v50, %v9988_v40  ;;  %v2673_v53 = vadd.f32 %v2634_v50, %v2580_v23  ;;  %v2736_v2 = vadd.f32 %v8236_v34, %v2676_v11  ;;  %v8384_v44 = vmul.f32 %v8102_v6, %v8316_v13 }
 0xa42   :  { %v8388_v59 = vmul.f32 %v8061_v46, %v8371_v19  ;;  %v2732_v0 = vadd.f32 %v8270_v8, %v8130_v56  ;;  %v2674_v16 = vadd.f32 %v2636_v21, %v2581_v10  ;;  %v2751_v41 = vmul.f32 %v8121_v1, %v8226_v28 }
 0xa43   :  { %9989 = vst [vmem:[#allocation58_spill] sm:$0xff] %v8384_v44  ;;  %v2733_v15 = vadd.f32 %v8110_v52, %v2673_v53  ;;  %v2752_v50 = vmul.f32 %v8121_v1, %v8293_v9  ;;  %v2539_v11 = vmul.f32 %v8063_v61, %v8371_v19  ;;  %v2803_v23 = vmul.f32 %v8081_v20, %v8226_v28 }
 0xa44   :  { %v2805_v56 = vmul.f32 %v8081_v20, %v8293_v9  ;;  %v8406_v21 = vmul.f32 %v8065_v49, %v8371_v19  ;;  %v2734_v10 = vadd.f32 %v2718_v57, %v2674_v16  ;;  %v2767_v8 = vrot.slane %v2751_v41, 1 }
 0xa45   :  { %v2768_v53 = vrot.slane %v2752_v50, 1  ;;  %v2568_v40 = vrot.slane %v8388_v59, 1  ;;  %v2835_v46 = vrot.slane %v2803_v23, 2  ;;  %v2921_v61 = vmul.f32 %v8123_v35, %v8293_v9 }
 0xa46   :  { %v2838_v34 = vrot.slane %v2805_v56, 2  ;;  %v2783_v13 = vadd.f32 %v2767_v8, %v8133_v14  ;;  %v2784_v28 = vadd.f32 %v2767_v8, %v2732_v0  ;;  %v9990_v37 = vrot.slane %v8094_v31, 2 }
 0xa47   :  { %v2785_v44 = vadd.f32 %v2768_v53, %v2733_v15  ;;  %v2786_v38 = vadd.f32 %v2768_v53, %v2734_v10  ;;  %v9991_v57 = vrot.slane %v8097_v7, 2  ;;  %v2956_v59 = vmul.f32 %v8128_v29, %v8293_v9 }
 0xa48   :  { %v2837_v49 = vsel %vm2630_vm4, %v2835_v46, %v9990_v37  ;;  %v2973_v41 = vrot.slane %v8252_v5, 1  ;;  %v2875_v50 = vadd.f32 %v2835_v46, %v2783_v13  ;;  %v3008_v15 = vmul.f32 %v8079_v17, %v8293_v9 }
 0xa49   :  { %v2840_v16 = vsel %vm2630_vm4, %v2838_v34, %v9991_v57  ;;  %v2876_v23 = vadd.f32 %v2837_v49, %v2784_v28  ;;  %v2877_v56 = vadd.f32 %v2838_v34, %v2785_v44  ;;  %v2972_v0 = vrot.slane %v2956_v59, 1 }
 0xa4a   :  { %v2878_v14 = vadd.f32 %v2840_v16, %v2786_v38  ;;  %v3010_v31 = vmul.f32 %v8079_v17, %v8198_v55  ;;  %v9992_v7 = vrot.slane %v8219_v42, 1  ;;  %v2936_v10 = vadd.f32 %v8139_v45, %v2875_v50 }
 0xa4b   :  { %v2937_v8 = vadd.f32 %v2921_v61, %v2876_v23  ;;  %v2938_v53 = vadd.f32 %v8139_v45, %v2877_v56  ;;  %v3040_v46 = vrot.slane %v3008_v15, 2  ;;  %v9994_v9 = vrot.slane %v8119_v4, 2  ;;  %v8440_v61 = vld [vmem:[%s9825_s11] ss:$0 sm:$0xff] }
 0xa4c   :  { %v2787_v37 = vadd.f32 %v9992_v7, %v2735_v58  ;;  %v2939_v5 = vadd.f32 %v8242_v27, %v2878_v14  ;;  %v3043_v49 = vrot.slane %v3010_v31, 2  ;;  %v9993_v13 = vmov %v9992_v7 }
 0xa4d   :  { %v2788_v38 = vadd.f32 %v9993_v13, %v2736_v2  ;;  %v9995_v44 = vrot.slane %v8223_v47, 2  ;;  %v2988_v34 = vadd.f32 %v2972_v0, %v2936_v10  ;;  %v2989_v58 = vadd.f32 %v2972_v0, %v2937_v8 }
 0xa4e   :  { %v2990_v28 = vadd.f32 %v2973_v41, %v2938_v53  ;;  %v2991_v57 = vadd.f32 %v2973_v41, %v2939_v5  ;;  %v9996_v27 = vrot.slane %v8136_v18, 2  ;;  %v9997_v2 = vrot.slane %v8100_v51, 2 }
 0xa4f   :  { %v2843_v55 = vsel %vm2630_vm4, %v9995_v44, %v9994_v9  ;;  %v9998_v16 = vrot.slane %v8126_v63, 2  ;;  %v9999_v59 = vrot.slane %v8280_v32, 2  ;;  %v10000_v41 = vmov %v9995_v44 }
 0xa50   :  { %v3042_v42 = vsel %vm2630_vm4, %v3040_v46, %v9996_v27  ;;  %v3045_v4 = vsel %vm2630_vm4, %v3043_v49, %v9997_v2  ;;  %v2879_v23 = vadd.f32 %v10000_v41, %v2787_v37  ;;  %v3080_v56 = vadd.f32 %v3040_v46, %v2988_v34 }
 0xa51   :  { %v2846_v50 = vsel %vm2630_vm4, %v9999_v59, %v9998_v16  ;;  %v3081_v14 = vadd.f32 %v3042_v42, %v2989_v58  ;;  %v3082_v0 = vadd.f32 %v3043_v49, %v2990_v28  ;;  %v3083_v15 = vadd.f32 %v3045_v4, %v2991_v57 }
 0xa52   :  { %v2880_v18 = vadd.f32 %v2843_v55, %v2788_v38  ;;  %v2882_v31 = vadd.f32 %v2846_v50, %v8318_v24  ;;  %v2940_v51 = vadd.f32 %v8139_v45, %v2879_v23  ;;  %v2942_v7 = vadd.f32 %v8139_v45, %v8339_v43 }
 0xa53   :  { %v3102_v63 = vadd.f32 %v8440_v61, %v3080_v56  ;;  %v3103_v32 = vadd.f32 %v8440_v61, %v3081_v14  ;;  %v3104_v10 = vadd.f32 %v8440_v61, %v3082_v0  ;;  %v3105_v47 = vadd.f32 %v8440_v61, %v3083_v15  ;;  %v10005_v14 = vld [vmem:[#allocation35_spill] sm:$0xff] }
 0xa54   :  { %v8464_v37 = vadd.f32 %v2568_v40, %v8075_v54  ;;  %v2649_v8 = vrot.slane %v8406_v21, 2  ;;  %v8469_v24 = vmul.f32 %v8102_v6, %v8371_v19  ;;  %v2941_v53 = vadd.f32 %v8306_v30, %v2880_v18  ;;  %v10007_v18 = vld [vmem:[#allocation36_spill] sm:$0xff] }
 0xa55   :  { %v8472_v43 = vadd.f32 %v2568_v40, %v2539_v11  ;;  %v8474_v5 = vmul.f32 0.5, %v3102_v63  ;;  %v2943_v46 = vadd.f32 %v8376_v12, %v2882_v31  ;;  %v10001_v49 = vrot.slane %v8286_v33, 1 }
 0xa56   :  { %v3134_v38 = vmul.f32 0.044715, %v3102_v63  ;;  %v3135_v54 = vmul.f32 0.044715, %v3103_v32  ;;  %v3136_v9 = vmul.f32 0.044715, %v3104_v10  ;;  %v3012_v30 = vmul.f32 %v8079_v17, %v8232_v39 }
 0xa57   :  { %v2992_v13 = vadd.f32 %v10001_v49, %v2940_v51  ;;  %v10002_v44 = vrot.slane %v8368_v62, 1  ;;  %v8481_v34 = vmul.f32 0.5, %v3103_v32  ;;  %v3137_v58 = vmul.f32 0.044715, %v3105_v47 }
 0xa58   :  { %v3014_v11 = vmul.f32 %v8079_v17, %v8301_v60  ;;  %v3150_v40 = vmul.f32 %v3134_v38, %v3102_v63  ;;  %v3151_v12 = vmul.f32 %v3135_v54, %v3103_v32  ;;  %v3152_v28 = vmul.f32 %v3136_v9, %v3104_v10 }
 0xa59   :  { %v2994_v55 = vadd.f32 %v10002_v44, %v2942_v7  ;;  %v10003_v57 = vmov %v10001_v49  ;;  %v3153_v42 = vmul.f32 %v3137_v58, %v3105_v47  ;;  %v10004_v2 = vmov %v10002_v44 }
 0xa5a   :  { %v2993_v27 = vadd.f32 %v10003_v57, %v2941_v53  ;;  %v2995_v4 = vadd.f32 %v10004_v2, %v2943_v46  ;;  %v3046_v16 = vrot.slane %v3012_v30, 2  ;;  %v3049_v59 = vrot.slane %v3014_v11, 2  ;;  %v10011_v57 = vld [vmem:[#allocation51_spill] sm:$0xff]  ;;  %v10013_v2 = vld [vmem:[#allocation38_spill] sm:$0xff] }
 0xa5b   :  { %v8491_v50 = vmul.f32 0.5, %v3104_v10  ;;  %v3166_v41 = vmul.f32 %v3150_v40, %v3102_v63  ;;  %v3167_v23 = vmul.f32 %v3151_v12, %v3103_v32  ;;  %v3168_v39 = vmul.f32 %v3152_v28, %v3104_v10 }
 0xa5c   :  { %v3169_v56 = vmul.f32 %v3153_v42, %v3105_v47  ;;  %v10006_v0 = vrot.slane %v10005_v14, 2  ;;  %v10008_v31 = vrot.slane %v10007_v18, 2  ;;  %v3084_v51 = vadd.f32 %v3046_v16, %v2992_v13  ;;  %v10018_v18 = vld [vmem:[#allocation53_spill] sm:$0xff] }
 0xa5d   :  { %v3182_v7 = vadd.f32 %v3166_v41, %v3102_v63  ;;  %v3183_v62 = vadd.f32 %v3167_v23, %v3103_v32  ;;  %v3184_v53 = vadd.f32 %v3168_v39, %v3104_v10  ;;  %v3086_v38 = vadd.f32 %v3049_v59, %v2994_v55  ;;  %v10009_v55 = vld [vmem:[#allocation37_spill] sm:$0xff]  ;;  %v10016_v41 = vld [vmem:[#allocation52_spill] sm:$0xff] }
 0xa5e   :  { %v3048_v15 = vsel %vm2630_vm4, %v3046_v16, %v10006_v0  ;;  %v3051_v33 = vsel %vm2630_vm4, %v3049_v59, %v10008_v31  ;;  %v3185_v49 = vadd.f32 %v3169_v56, %v3105_v47  ;;  %v8500_v9 = vadd.f32 %v8440_v61, %v3084_v51 }
 0xa5f   :  { %v3085_v46 = vadd.f32 %v3048_v15, %v2993_v27  ;;  %v3087_v54 = vadd.f32 %v3051_v33, %v2995_v4  ;;  %v3198_v44 = vmul.f32 0.7978846, %v3182_v7  ;;  %v3199_v58 = vmul.f32 0.7978846, %v3183_v62 }
 0xa60   :  { %v3200_v30 = vmul.f32 0.7978846, %v3184_v53  ;;  %v8505_v40 = vmul.f32 0.5, %v3105_v47  ;;  %v3201_v12 = vmul.f32 0.7978846, %v3185_v49  ;;  %v8508_v63 = vadd.f32 %v8440_v61, %v3086_v38 }
 0xa61   :  { %v8503_v11 = vadd.f32 %v8440_v61, %v3085_v46  ;;  %v8511_v32 = vadd.f32 %v8440_v61, %v3087_v54  ;;  %6643 = vtanh.f32 %v3198_v44  ;;  %v3138_v10 = vmul.f32 0.044715, %v8500_v9 }
 0xa62   :  { %v10010_v28 = vrot.slane %v10009_v55, 2  ;;  %v10012_v27 = vrot.slane %v10011_v57, 2  ;;  %6645 = vtanh.f32 %v3199_v58  ;;  %v3140_v47 = vmul.f32 0.044715, %v8508_v63 }
 0xa63   :  { %v3139_v13 = vmul.f32 0.044715, %v8503_v11  ;;  %v10014_v4 = vrot.slane %v10013_v2, 2  ;;  %v10015_v16 = vrot.slane %v8335_v48, 2  ;;  %6647 = vtanh.f32 %v3200_v30 }
 0xa64   :  { %v2645_v42 = vsel %vm2630_vm4, %v10012_v27, %v10010_v28  ;;  %v10017_v23 = vmov %v10012_v27  ;;  %v3141_v56 = vmul.f32 0.044715, %v8511_v32  ;;  %v3154_v14 = vmul.f32 %v3138_v10, %v8500_v9 }
 0xa65   :  { %v2648_v59 = vsel %vm2630_vm4, %v10015_v16, %v10014_v4  ;;  %v2679_v39 = vadd.f32 %v10017_v23, %v10016_v41  ;;  %v3155_v0 = vmul.f32 %v3139_v13, %v8503_v11  ;;  %6649 = vtanh.f32 %v3201_v12 }
 0xa66   :  { %v3156_v15 = vmul.f32 %v3140_v47, %v8508_v63  ;;  %v2680_v31 = vadd.f32 %v2645_v42, %v10018_v18  ;;  %v10019_v33 = vmov %v10015_v16  ;;  %v3157_v7 = vmul.f32 %v3141_v56, %v8511_v32 }
 0xa67   :  { %v2681_v51 = vadd.f32 %v10019_v33, %v8362_v36  ;;  %v3170_v62 = vmul.f32 %v3154_v14, %v8500_v9  ;;  %v3171_v53 = vmul.f32 %v3155_v0, %v8503_v11  ;;  %v2682_v46 = vadd.f32 %v2648_v59, %v8364_v22  ;;  %v10022_v0 = vld [vmem:[#allocation40_spill] sm:$0xff] }
 0xa68   :  { %v3172_v49 = vmul.f32 %v3156_v15, %v8508_v63  ;;  %v2739_v38 = vadd.f32 %v8110_v52, %v2679_v39  ;;  %v2740_v54 = vadd.f32 %v8359_v25, %v2680_v31  ;;  %v3173_v58 = vmul.f32 %v3157_v7, %v8511_v32  ;;  %v10020_v39 = vld [vmem:[#allocation39_spill] sm:$0xff] }
 0xa69   :  { %v2741_v44 = vadd.f32 %v8110_v52, %v2681_v51  ;;  %v3186_v48 = vadd.f32 %v3170_v62, %v8500_v9  ;;  %v3187_v36 = vadd.f32 %v3171_v53, %v8503_v11  ;;  %v2742_v30 = vadd.f32 %v8469_v24, %v2682_v46 }
 0xa6a   :  { %v3188_v12 = vadd.f32 %v3172_v49, %v8508_v63  ;;  %v2755_v22 = vmul.f32 %v8121_v1, %v8301_v60  ;;  %v2756_v10 = vmul.f32 %v8121_v1, %v8371_v19  ;;  %v2811_v25 = vmul.f32 %v8081_v20, %v8301_v60 }
 0xa6b   :  { %v3189_v13 = vadd.f32 %v3173_v58, %v8511_v32  ;;  %v3202_v55 = vmul.f32 0.7978846, %v3186_v48  ;;  %v3203_v28 = vmul.f32 0.7978846, %v3187_v36  ;;  %v2813_v57 = vmul.f32 %v8081_v20, %v8371_v19 }
 0xa6c   :  { %v3204_v27 = vmul.f32 0.7978846, %v3188_v12  ;;  %v2771_v24 = vrot.slane %v2755_v22, 1  ;;  %v2772_v42 = vrot.slane %v2756_v10, 1  ;;  %v2847_v47 = vrot.slane %v2811_v25, 2 }
 0xa6d   :  { %v3205_v2 = vmul.f32 0.7978846, %v3189_v13  ;;  %6651 = vtanh.f32 %v3202_v55  ;;  %v2850_v4 = vrot.slane %v2813_v57, 2  ;;  %v2929_v16 = vmul.f32 %v8123_v35, %v8371_v19 }
 0xa6e   :  { %6653 = vtanh.f32 %v3203_v28  ;;  %v2791_v60 = vadd.f32 %v2771_v24, %v2739_v38  ;;  %v2792_v59 = vadd.f32 %v2771_v24, %v2740_v54  ;;  %v2793_v41 = vadd.f32 %v2772_v42, %v2741_v44  ;;  %v6644_v31 = vpop.eup %6643 }
 0xa6f   :  { %6655 = vtanh.f32 %v3204_v27  ;;  %v2794_v23 = vadd.f32 %v2772_v42, %v2742_v30  ;;  %v10021_v56 = vrot.slane %v10020_v39, 2  ;;  %v10023_v15 = vrot.slane %v10022_v0, 2  ;;  %v6646_v62 = vpop.eup %6645  ;;  %v10024_v0 = vld [vmem:[#allocation41_spill] sm:$0xff] }
 0xa70   :  { %6657 = vtanh.f32 %v3205_v2  ;;  %v2883_v33 = vadd.f32 %v2847_v47, %v2791_v60  ;;  %v2885_v7 = vadd.f32 %v2850_v4, %v2793_v41  ;;  %v3230_v53 = vadd.f32 1.0, %v6644_v31  ;;  %v6648_v54 = vpop.eup %6647 }
 0xa71   :  { %v2849_v14 = vsel %vm2630_vm4, %v2847_v47, %v10021_v56  ;;  %v2852_v18 = vsel %vm2630_vm4, %v2850_v4, %v10023_v15  ;;  %v2931_v49 = vmul.f32 %v8123_v35, %v8298_v26  ;;  %v2960_v38 = vmul.f32 %v8128_v29, %v8371_v19 }
 0xa72   :  { %v2884_v51 = vadd.f32 %v2849_v14, %v2792_v59  ;;  %v2886_v46 = vadd.f32 %v2852_v18, %v2794_v23  ;;  %v3231_v44 = vadd.f32 1.0, %v6646_v62  ;;  %v2944_v58 = vadd.f32 %v8139_v45, %v2883_v33  ;;  %v6650_v30 = vpop.eup %6649 }
 0xa73   :  { %v2946_v36 = vadd.f32 %v8139_v45, %v2885_v7  ;;  %v3232_v12 = vadd.f32 1.0, %v6648_v54  ;;  %v3246_v22 = vmul.f32 %v3230_v53, %v8474_v5  ;;  %v2961_v25 = vmul.f32 %v8128_v29, %v8298_v26 }
 0xa74   :  { %v2945_v48 = vadd.f32 %v2929_v16, %v2884_v51  ;;  %v2947_v10 = vadd.f32 %v2931_v49, %v2886_v46  ;;  %v3233_v13 = vadd.f32 1.0, %v6650_v30  ;;  %v3247_v55 = vmul.f32 %v3231_v44, %v8481_v34  ;;  %v10026_v51 = vld [vmem:[#allocation42_spill] sm:$0xff] }
 0xa75   :  { %v2976_v28 = vrot.slane %v2960_v38, 1  ;;  %v3016_v57 = vmul.f32 %v8079_v17, %v8371_v19  ;;  %v3248_v27 = vmul.f32 %v3232_v12, %v8491_v50  ;;  %v3279_v24 = vrot.slane %v3246_v22, 7 }
 0xa76   :  { %v2977_v42 = vrot.slane %v2961_v25, 1  ;;  %v3018_v47 = vmul.f32 %v8079_v17, %v8298_v26  ;;  %v3249_v5 = vmul.f32 %v3233_v13, %v8505_v40  ;;  %v3280_v2 = vrot.slane %v3247_v55, 7 }
 0xa77   :  { %v2996_v4 = vadd.f32 %v2976_v28, %v2944_v58  ;;  %v2997_v16 = vadd.f32 %v2976_v28, %v2945_v48  ;;  %v3282_v60 = vrot.slane %v3248_v27, 7  ;;  %v3052_v34 = vrot.slane %v3016_v57, 2  ;;  %v10030_v27 = vld [vmem:[#allocation43_spill] sm:$0xff] }
 0xa78   :  { %v2998_v59 = vadd.f32 %v2977_v42, %v2946_v36  ;;  %v2999_v41 = vadd.f32 %v2977_v42, %v2947_v10  ;;  %v3283_v23 = vrot.slane %v3249_v5, 7  ;;  %v3122_v39 = vmul.f32 0.5, %v8500_v9  ;;  %v10028_v36 = vld [vmem:[#allocation44_spill] sm:$0xff] }
 0xa79   :  { %v3123_v19 = vmul.f32 0.5, %v8503_v11  ;;  %v3055_v50 = vrot.slane %v3018_v47, 2  ;;  %v3281_v56 = vsel %vm3278_vm5, %v3279_v24, %v3280_v2  ;;  %v3124_v14 = vmul.f32 0.5, %v8508_v63 }
 0xa7a   :  { %v10025_v15 = vrot.slane %v10024_v0, 2  ;;  %v3088_v18 = vadd.f32 %v3052_v34, %v2996_v4  ;;  %v6652_v31 = vpop.eup %6651  ;;  %v3284_v33 = vsel %vm3278_vm5, %v3282_v60, %v3283_v23  ;;  %v10027_v7 = vrot.slane %v10026_v51, 2 }
 0xa7b   :  { %v3090_v53 = vadd.f32 %v3055_v50, %v2998_v59  ;;  %v6654_v11 = vpop.eup %6653  ;;  %v3311_v46 = vpack.c.bf16 %v3284_v33, %v3281_v56  ;;  %v3234_v49 = vadd.f32 1.0, %v6652_v31  ;;  %v10029_v30 = vrot.slane %v10028_v36, 2 }
 0xa7c   :  { %v3054_v40 = vsel %vm2630_vm4, %v3052_v34, %v10025_v15  ;;  %v3057_v62 = vsel %vm2630_vm4, %v3055_v50, %v10027_v7  ;;  %v8595_v63 = vadd.f32 %v8440_v61, %v3088_v18  ;;  %v6656_v54 = vpop.eup %6655  ;;  %v3235_v44 = vadd.f32 1.0, %v6654_v11  ;;  %v10033_v50 = vld [vmem:[#allocation56_spill] sm:$0xff]  ;;  %v10036_v7 = vld [vmem:[#allocation55_spill] sm:$0xff] }
 0xa7d   :  { %v3089_v9 = vadd.f32 %v3054_v40, %v2997_v16  ;;  %v3091_v38 = vadd.f32 %v3057_v62, %v2999_v41  ;;  %v8601_v48 = vadd.f32 %v8440_v61, %v3090_v53  ;;  %v2651_v12 = vsel %vm2630_vm4, %v2649_v8, %v10029_v30  ;;  %v6658_v22 = vpop.eup %6657  ;;  %6235 = vmatprep.mubr.bf16.mxu0 %v3311_v46  ;;  %v10035_v40 = vld [vmem:[#allocation57_spill] sm:$0xff] }
 0xa7e   :  { %v3125_v10 = vmul.f32 0.5, %v8511_v32  ;;  %v3236_v25 = vadd.f32 1.0, %v6656_v54  ;;  %v3250_v13 = vmul.f32 %v3234_v49, %v3122_v39  ;;  %v3237_v28 = vadd.f32 1.0, %v6658_v22  ;;  %v10037_v54 = vld [vmem:[#allocation58_spill] sm:$0xff] }
 0xa7f   :  { %v8598_v58 = vadd.f32 %v8440_v61, %v3089_v9  ;;  %v8610_v55 = vadd.f32 %v8440_v61, %v3091_v38  ;;  %v3251_v57 = vmul.f32 %v3235_v44, %v3123_v19  ;;  %v10031_v24 = vrot.slane %v10030_v27, 2  ;;  %v10038_v22 = vld [vmem:[#allocation54_spill] sm:$0xff] }
 0xa80   :  { %v10032_v42 = vrot.slane %v8324_v3, 2  ;;  %v2683_v5 = vadd.f32 %v2649_v8, %v8464_v37  ;;  %v3252_v2 = vmul.f32 %v3236_v25, %v3124_v14  ;;  %v3285_v4 = vrot.slane %v3250_v13, 7 }
 0xa81   :  { %v3142_v32 = vmul.f32 0.044715, %v8595_v63  ;;  %v2684_v16 = vadd.f32 %v2651_v12, %v8472_v43  ;;  %v3253_v60 = vmul.f32 %v3237_v28, %v3125_v10  ;;  %v3286_v59 = vrot.slane %v3251_v57, 7 }
 0xa82   :  { %v2654_v47 = vsel %vm2630_vm4, %v10032_v42, %v10031_v24  ;;  %v3143_v41 = vmul.f32 0.044715, %v8598_v58  ;;  %v3144_v34 = vmul.f32 0.044715, %v8601_v48  ;;  %v3288_v23 = vrot.slane %v3252_v2, 7  ;;  %v10040_v24 = vld [vmem:[#allocation31_spill] sm:$0xff] }
 0xa83   :  { %v3145_v39 = vmul.f32 0.044715, %v8610_v55  ;;  %v3158_v19 = vmul.f32 %v3142_v32, %v8595_v63  ;;  %v10034_v21 = vmov %v10032_v42  ;;  %v3287_v8 = vsel %vm3278_vm5, %v3285_v4, %v3286_v59 }
 0xa84   :  { %v2685_v37 = vadd.f32 %v10034_v21, %v10033_v50  ;;  %v3289_v56 = vrot.slane %v3253_v60, 7  ;;  %v3159_v43 = vmul.f32 %v3143_v41, %v8598_v58  ;;  %v3160_v14 = vmul.f32 %v3144_v34, %v8601_v48  ;;  %v10041_v60 = vld [vmem:[#allocation45_spill] sm:$0xff]  ;;  %v10043_v34 = vld [vmem:[#allocation46_spill] sm:$0xff] }
 0xa85   :  { %v3161_v0 = vmul.f32 %v3145_v39, %v8610_v55  ;;  %v3174_v15 = vmul.f32 %v3158_v19, %v8595_v63  ;;  %v2686_v18 = vadd.f32 %v2654_v47, %v10035_v40  ;;  %v2743_v31 = vadd.f32 %v8110_v52, %v2683_v5 }
 0xa86   :  { %v3290_v33 = vsel %vm3278_vm5, %v3288_v23, %v3289_v56  ;;  %v3175_v3 = vmul.f32 %v3159_v43, %v8598_v58  ;;  %v3176_v51 = vmul.f32 %v3160_v14, %v8601_v48  ;;  %v2744_v62 = vadd.f32 %v10036_v7, %v2684_v16  ;;  %v10046_v7 = vld [vmem:[#allocation49_spill] sm:$0xff] }
 0xa87   :  { %v3312_v9 = vpack.c.bf16 %v3290_v33, %v3287_v8  ;;  %v3177_v53 = vmul.f32 %v3161_v0, %v8610_v55  ;;  %v3190_v11 = vadd.f32 %v3174_v15, %v8595_v63  ;;  %v2745_v46 = vadd.f32 %v8110_v52, %v2685_v37  ;;  %v10039_v52 = vld [vmem:[#allocation12_spill] sm:$0xff]  ;;  %v10045_v0 = vld [vmem:[#allocation50_spill] sm:$0xff] }
 0xa88   :  { %v3191_v49 = vadd.f32 %v3175_v3, %v8598_v58  ;;  %v3192_v38 = vadd.f32 %v3176_v51, %v8601_v48  ;;  %v2746_v44 = vadd.f32 %v10037_v54, %v2686_v18  ;;  %v2757_v36 = vmul.f32 %v8121_v1, %v8298_v26 }
 0xa89   :  { %6236 = vmatmul.mubr.bf16.vlgmr.msra.gmra.mxu0 %v3312_v9  ;;  %v3193_v30 = vadd.f32 %v3177_v53, %v8610_v55  ;;  %v3206_v12 = vmul.f32 0.7978846, %v3190_v11  ;;  %v2758_v10 = vmul.f32 %v8121_v1, %v10038_v22  ;;  %v2815_v25 = vmul.f32 %v8081_v20, %v8298_v26  ;;  %v10048_v9 = vld [vmem:[#allocation48_spill] sm:$0xff] }
 0xa8a   :  { %6260 = vmatpush3.bf16.xpose.msra.mxu0 %v10039_v52  ;;  %v3207_v13 = vmul.f32 0.7978846, %v3191_v49  ;;  %v3208_v28 = vmul.f32 0.7978846, %v3192_v38  ;;  %v2773_v57 = vrot.slane %v2757_v36, 1  ;;  %v2817_v27 = vmul.f32 %v8081_v20, %v10038_v22  ;;  %v10050_v38 = vld [vmem:[#allocation47_spill] sm:$0xff] }
 0xa8b   :  { %6432 = vmatprep.subr.msk.bf16.mxu0 %vm501_vm2, %v10040_v24  ;;  %v3209_v42 = vmul.f32 0.7978846, %v3193_v30  ;;  %6659 = vtanh.f32 %v3206_v12  ;;  %v2774_v47 = vrot.slane %v2758_v10, 1  ;;  %v2853_v5 = vrot.slane %v2815_v25, 2  ;;  %v10053_v12 = vld [vmem:[#allocation32_spill] sm:$0xff] }
 0xa8c   :  { %6661 = vtanh.f32 %v3207_v13  ;;  %v2795_v2 = vadd.f32 %v2773_v57, %v2743_v31  ;;  %v2796_v4 = vadd.f32 %v2773_v57, %v2744_v62  ;;  %v2856_v32 = vrot.slane %v2817_v27, 2 }
 0xa8d   :  { %6663 = vtanh.f32 %v3208_v28  ;;  %v2797_v26 = vadd.f32 %v2774_v47, %v2745_v46  ;;  %v2798_v16 = vadd.f32 %v2774_v47, %v2746_v44  ;;  %v10042_v59 = vrot.slane %v10041_v60, 2 }
 0xa8e   :  { %6665 = vtanh.f32 %v3209_v42  ;;  %v10044_v23 = vrot.slane %v10043_v34, 2  ;;  %v2887_v19 = vadd.f32 %v2853_v5, %v2795_v2  ;;  %v2933_v8 = vmul.f32 %v8123_v35, %v10038_v22 }
 0xa8f   :  { %v2855_v41 = vsel %vm2630_vm4, %v2853_v5, %v10042_v59  ;;  %v2889_v21 = vadd.f32 %v2856_v32, %v2797_v26  ;;  %v2962_v56 = vmul.f32 %v8128_v29, %v10038_v22  ;;  %v3020_v14 = vmul.f32 %v8079_v17, %v10038_v22 }
 0xa90   :  { %v2858_v39 = vsel %vm2630_vm4, %v2856_v32, %v10044_v23  ;;  %v2888_v50 = vadd.f32 %v2855_v41, %v2796_v4  ;;  %v2948_v43 = vadd.f32 %v8139_v45, %v2887_v19  ;;  %v3059_v15 = vrot.slane %v10045_v0, 2 }
 0xa91   :  { %v2890_v37 = vadd.f32 %v2858_v39, %v2798_v16  ;;  %v3674_v40 = vsel %vm501_vm2, %v10040_v24, 0  ;;  %v2950_v31 = vadd.f32 %v8139_v45, %v2889_v21  ;;  %v2978_v3 = vrot.slane %v2962_v56, 1 }
 0xa92   :  { %v2949_v18 = vadd.f32 %v2933_v8, %v2888_v50  ;;  %v3058_v51 = vrot.slane %v3020_v14, 2  ;;  %v10047_v62 = vrot.slane %v10046_v7, 2  ;;  %v10049_v53 = vrot.slane %v10048_v9, 2  ;;  %6262 = vmatpush3.bf16.xpose.msra.mxu0 %v3674_v40 }
 0xa93   :  { %v2951_v33 = vadd.f32 %v8139_v45, %v2890_v37  ;;  %v3000_v46 = vadd.f32 %v2978_v3, %v2948_v43  ;;  %v10051_v54 = vrot.slane %v10050_v38, 1  ;;  %6433 = vmatprep.subr.msk.bf16.mxu0 %vm501_vm2, %v10053_v12  ;;  %v3671_v47 = vsel %vm501_vm2, %v10053_v12, 0  ;;  %v3640_v12 = vpop.permute.xlu0 %3639 }
 0xa94   :  { %v3063_v11 = vsel %vm2630_vm4, %v10049_v53, %v10047_v62  ;;  %v3001_v49 = vadd.f32 %v2978_v3, %v2949_v18  ;;  %v3060_v45 = vsel %vm2630_vm4, %v3058_v51, %v3059_v15  ;;  %v10054_v25 = vmov %v10049_v53 }
 0xa95   :  { %v3002_v44 = vadd.f32 %v10051_v54, %v2950_v31  ;;  %v10052_v36 = vmov %v10051_v54  ;;  %v3092_v22 = vadd.f32 %v3058_v51, %v3000_v46  ;;  %v3126_v2 = vmul.f32 0.5, %v8595_v63  ;;  %v10055_v63 = vld [vmem:[#allocation33_spill] sm:$0xff] }
 0xa96   :  { %v3003_v30 = vadd.f32 %v10052_v36, %v2951_v33  ;;  %v3093_v10 = vadd.f32 %v3060_v45, %v3001_v49  ;;  %v3127_v4 = vmul.f32 0.5, %v8598_v58  ;;  %v3128_v32 = vmul.f32 0.5, %v8601_v48 }
 0xa97   :  { %v3094_v52 = vadd.f32 %v10054_v25, %v3002_v44  ;;  %v3114_v28 = vadd.f32 %v8440_v61, %v3092_v22  ;;  %v3129_v60 = vmul.f32 0.5, %v8610_v55  ;;  %v3668_v53 = vsel %vm501_vm2, %v10055_v63, 0 }
 0xa98   :  { %v3095_v13 = vadd.f32 %v3063_v11, %v3003_v30  ;;  %v3115_v57 = vadd.f32 %v8440_v61, %v3093_v10  ;;  %v6660_v42 = vpop.eup %6659  ;;  %v10056_v30 = vld [vmem:[#allocation34_spill] sm:$0xff] }
 0xa99   :  { %v8693_v27 = vadd.f32 %v8440_v61, %v3094_v52  ;;  %v6662_v5 = vpop.eup %6661  ;;  %v3238_v26 = vadd.f32 1.0, %v6660_v42  ;;  %v3146_v41 = vmul.f32 0.044715, %v3114_v28  ;;  %v3130_v10 = vmul.f32 0.5, %v3114_v28 }
 0xa9a   :  { %v8696_v24 = vadd.f32 %v8440_v61, %v3095_v13  ;;  %v6664_v16 = vpop.eup %6663  ;;  %v3239_v59 = vadd.f32 1.0, %v6662_v5  ;;  %v3147_v34 = vmul.f32 0.044715, %v3115_v57  ;;  %6264 = vmatpush3.bf16.xpose.msra.mxu0 %v3671_v47  ;;  %v3131_v13 = vmul.f32 0.5, %v3115_v57 }
 0xa9b   :  { %v6666_v61 = vpop.eup %6665  ;;  %v3240_v23 = vadd.f32 1.0, %v6664_v16  ;;  %v3254_v39 = vmul.f32 %v3238_v26, %v3126_v2  ;;  %v3148_v19 = vmul.f32 0.044715, %v8693_v27  ;;  %6434 = vmatprep.subr.msk.bf16.mxu0 %vm501_vm2, %v10055_v63  ;;  %v3162_v21 = vmul.f32 %v3146_v41, %v3114_v28  ;;  %v4003_v63 = vpop.permute.xlu1 %4002 }
 0xa9c   :  { %v3149_v50 = vmul.f32 0.044715, %v8696_v24  ;;  %v3241_v58 = vadd.f32 1.0, %v6666_v61  ;;  %v3255_v48 = vmul.f32 %v3239_v59, %v3127_v4  ;;  %v3163_v37 = vmul.f32 %v3147_v34, %v3115_v57 }
 0xa9d   :  { %v3256_v8 = vmul.f32 %v3240_v23, %v3128_v32  ;;  %v3291_v55 = vrot.slane %v3254_v39, 7  ;;  %v3164_v56 = vmul.f32 %v3148_v19, %v8693_v27  ;;  %v3178_v15 = vmul.f32 %v3162_v21, %v3114_v28 }
 0xa9e   :  { %v3165_v43 = vmul.f32 %v3149_v50, %v8696_v24  ;;  %v3257_v14 = vmul.f32 %v3241_v58, %v3129_v60  ;;  %v3292_v0 = vrot.slane %v3255_v48, 7  ;;  %v3179_v40 = vmul.f32 %v3163_v37, %v3115_v57  ;;  %v3642_v60 = vpop.permute.xlu0 %3641 }
 0xa9f   :  { %v3294_v18 = vrot.slane %v3256_v8, 7  ;;  %v3180_v31 = vmul.f32 %v3164_v56, %v8693_v27  ;;  %v3194_v51 = vadd.f32 %v3178_v15, %v3114_v28  ;;  %v3132_v5 = vmul.f32 0.5, %v8693_v27  ;;  %v3999_v8 = vpop.permute.xlu1 %3998  ;;  %v10057_v56 = vld [vmem:[#allocation20_spill] sm:$0xff]  ;;  %v10059_v15 = vld [vmem:[#allocation17_spill] sm:$0xff] }
 0xaa0   :  { %v3181_v33 = vmul.f32 %v3165_v43, %v8696_v24  ;;  %v3295_v3 = vrot.slane %v3257_v14, 7  ;;  %v3195_v7 = vadd.f32 %v3179_v40, %v3115_v57  ;;  %v3293_v11 = vsel %vm3278_vm5, %v3291_v55, %v3292_v0  ;;  %v10058_v0 = vld [vmem:[#allocation21_spill] sm:$0xff] }
 0xaa1   :  { %v3196_v62 = vadd.f32 %v3180_v31, %v8693_v27  ;;  %v3210_v49 = vmul.f32 0.7978846, %v3194_v51  ;;  %v3133_v32 = vmul.f32 0.5, %v8696_v24  ;;  %v4025_v21 = vsel %vm501_vm2, %v4003_v63, 0  ;;  %v6859_v31 = vld [vmem:[%s9820_s8 + $0x8] sm:$0xff]  }
 0xaa2   :  { %v3197_v9 = vadd.f32 %v3181_v33, %v8696_v24  ;;  %v3296_v46 = vsel %vm3278_vm5, %v3294_v18, %v3295_v3  ;;  %v3211_v38 = vmul.f32 0.7978846, %v3195_v7  ;;  %6266 = vmatpush3.bf16.xpose.msra.mxu0 %v3668_v53  ;;  %v3644_v19 = vpop.permute.xlu0 %3643  ;;  %v4028_v24 = vsel %vm501_vm2, %v10056_v30, 0  ;;  %v10060_v18 = vld [vmem:[#allocation19_spill] sm:$0xff]  ;;  %v5724_v33 = vld [vmem:[%s9826_s13] ss:$0 sm:$0xff] }
 0xaa3   :  { %v3313_v54 = vpack.c.bf16 %v3296_v46, %v3293_v11  ;;  %v3212_v44 = vmul.f32 0.7978846, %v3196_v62  ;;  %6435 = vmatprep.subr.msk.bf16.mxu0 %vm501_vm2, %v10056_v30  ;;  %6667 = vtanh.f32 %v3210_v49  ;;  %v4019_v55 = vsel %vm501_vm2, %v3999_v8, 0  ;;  %v3993_v43 = vpop.permute.xlu1 %3992  ;;  %v10061_v62 = vld [vmem:[#allocation24_spill] sm:$0xff]  ;;  %v10062_v46 = vld [vmem:[#allocation15_spill] sm:$0xff] }
 0xaa4   :  { %v3213_v36 = vmul.f32 0.7978846, %v3197_v9  ;;  %6669 = vtanh.f32 %v3211_v38 }
 0xaa5   :  { %6239 = vmatprep.mubr.bf16.mxu0 %v3313_v54  ;;  %6671 = vtanh.f32 %v3212_v44  ;;  %v10063_v44 = vld [vmem:[#allocation26_spill] sm:$0xff] }
 0xaa6   :  { %6673 = vtanh.f32 %v3213_v36  ;;  %v3646_v27 = vpop.permute.xlu0 %3645 }
 0xaa7   :  { %v3997_v40 = vpop.permute.xlu1 %3996 }
 0xaaa   :  { %v4001_v58 = vpop.permute.xlu0 %4000 }
 0xaab   :  { %v4022_v37 = vsel %vm501_vm2, %v4001_v58, 0 }
 0xaae   :  { %v3991_v48 = vpop.permute.xlu0 %3990 }
 0xab0   :  { %v6668_v45 = vpop.eup %6667 }
 0xab1   :  { %v6670_v22 = vpop.eup %6669  ;;  %v3242_v25 = vadd.f32 1.0, %v6668_v45 }
 0xab2   :  { %v6672_v52 = vpop.eup %6671  ;;  %v3243_v42 = vadd.f32 1.0, %v6670_v22  ;;  %v3995_v14 = vpop.permute.xlu0 %3994 }
 0xab3   :  { %v6674_v47 = vpop.eup %6673  ;;  %v3244_v2 = vadd.f32 1.0, %v6672_v52  ;;  %v3258_v4 = vmul.f32 %v3242_v25, %v3130_v10  ;;  %v10065_v52 = vld [vmem:[#allocation28_spill] sm:$0xff] }
 0xab4   :  { %v3245_v26 = vadd.f32 1.0, %v6674_v47  ;;  %v3259_v16 = vmul.f32 %v3243_v42, %v3131_v13 }
 0xab5   :  { %v3260_v59 = vmul.f32 %v3244_v2, %v3132_v5  ;;  %v3297_v41 = vrot.slane %v3258_v4, 7  ;;  %v10066_v5 = vld [vmem:[#allocation27_spill] sm:$0xff] }
 0xab6   :  { %v3261_v34 = vmul.f32 %v3245_v26, %v3133_v32  ;;  %v3298_v61 = vrot.slane %v3259_v16, 7  ;;  %v8780_v32 = vpop.f32.mrf.mxu1  ;;  %v10067_v16 = vld [vmem:[#allocation30_spill] sm:$0xff] }
 0xab7   :  { %v3300_v23 = vrot.slane %v3260_v59, 7 }
 0xab8   :  { %v3299_v28 = vsel %vm3278_vm5, %v3297_v41, %v3298_v61  ;;  %v3301_v39 = vrot.slane %v3261_v34, 7  ;;  %v10068_v34 = vld [vmem:[#allocation29_spill] sm:$0xff] }
 0xaba   :  { %v3302_v57 = vsel %vm3278_vm5, %v3300_v23, %v3301_v39 }
 0xabb   :  { %v3314_v50 = vpack.c.bf16 %v3302_v57, %v3299_v28  ;;  %v8796_v28 = vpop.f32.mrf.mxu1 }
 0xabd   :  { %6240 = vmatmul.mubr.bf16.gmra.mxu0 %v3314_v50  ;;  %v8808_v50 = vpop.f32.mrf.mxu1 }
 0xabe   :  { %6267 = vmatprep.mubr.msk.bf16.mxu0 %vm501_vm2, %v3640_v12  ;;  %v10064_v12 = vld [vmem:[#allocation25_spill] sm:$0xff] }
 0xac5   :  { %6268 = vmatmul.mubr.msk.bf16.vlgmr.msra.gmra.mxu0 %vm501_vm2, %v3642_v60 }
 0xac6   :  { %6271 = vmatprep.mubr.msk.bf16.mxu0 %vm501_vm2, %v3644_v19  ;;  %6308 = vmatpush3.bf16.xpose.msra.mxu0 %v4028_v24 }
 0xac7   :  { %6436 = vmatprep.subr.msk.bf16.mxu0 %vm501_vm2, %v4003_v63 }
 0xacd   :  { %6272 = vmatmul.mubr.msk.bf16.gmra.mxu0 %vm501_vm2, %v3646_v27 }
 0xace   :  { %6310 = vmatpush3.bf16.xpose.msra.mxu0 %v4025_v21  ;;  %6315 = vmatprep.mubr.msk.bf16.mxu0 %vm501_vm2, %v3991_v48  ;;  %v8818_v48 = vpop.f32.mrf.mxu1 }
 0xacf   :  { %6437 = vmatprep.subr.msk.bf16.mxu0 %vm501_vm2, %v4001_v58 }
 0xad6   :  { %6312 = vmatpush3.bf16.xpose.msra.mxu0 %v4022_v37 }
 0xad7   :  { %6438 = vmatprep.subr.msk.bf16.mxu0 %vm501_vm2, %v3999_v8 }
 0xade   :  { %6314 = vmatpush3.bf16.xpose.msra.mxu0 %v4019_v55 }
 0xadf   :  { %6355 = vmatprep.subr.bf16.mxu0 %v10057_v56 }
 0xae5   :  { %6316 = vmatmul.mubr.msk.bf16.vlgmr.msra.gmra.mxu0 %vm501_vm2, %v3993_v43 }
 0xae6   :  { %6319 = vmatprep.mubr.msk.bf16.mxu0 %vm501_vm2, %v3995_v14  ;;  %6356 = vmatpush3.bf16.msra.mxu0 %v10057_v56  ;;  %v8828_v56 = vpop.f32.mrf.mxu1 }
 0xae7   :  { %6357 = vmatprep.subr.bf16.mxu0 %v10058_v0 }
 0xaea   :  { %6358 = vmatpush3.bf16.msra.mxu0 %v10058_v0 }
 0xaeb   :  { %6359 = vmatprep.subr.bf16.mxu0 %v10059_v15 }
 0xaed   :  { %6320 = vmatmul.mubr.msk.bf16.gmra.mxu0 %vm501_vm2, %v3997_v40  ;;  %v3547_v40 = vsel %vm1229_vm3, %v8796_v28, -inf }
 0xaee   :  { %6360 = vmatpush3.bf16.msra.mxu0 %v10059_v15  ;;  %v8836_v15 = vpop.f32.mrf.mxu1 }
 0xaef   :  { %6361 = vmatprep.subr.bf16.mxu0 %v10060_v18 }
 0xaf2   :  { %6362 = vmatpush3.bf16.msra.mxu0 %v10060_v18  ;;  %v3550_v18 = vsel %vm1229_vm3, %v8818_v48, -inf }
 0xaf3   :  { %6371 = vmatprep.subr.bf16.mxu0 %v6859_v31  ;;  %v8842_v31 = vpop.f32.mrf.mxu1 }
 0xb49   :  { %v6237_v3 = vpop.f32.mrf.mxu0 }
 0xb4a   :  { %v3412_v51 = vadd.f32 %v6237_v3, %v5724_v33  ;;  %v3556_v3 = vsel %vm1229_vm3, %v8808_v50, -inf }
 0xb4b   :  { %v3403_v7 = vpop.f32.mrf.mxu0 }
 0xb4c   :  { %v3436_v9 = vadd.f32 %v3412_v51, %v10061_v62  ;;  %v3404_v53 = vadd.f32 %v5724_v33, %v3403_v7  ;;  %v8848_v51 = vpop.f32.mrf.mxu1  ;;  %v3559_v7 = vsel %vm1229_vm3, %v8836_v15, -inf }
 0xb4d   :  { %v6238_v11 = vpop.f32.mrf.mxu0  ;;  %v3562_v62 = vsel %vm1229_vm3, %v8848_v51, -inf }
 0xb4e   :  { %3444 = vst.msk [vmem:[%s9827_s14 + $0x10] sm:$0xff] %vm66_vm0, %v3436_v9  ;;  %v3434_v49 = vadd.f32 %v3404_v53, %v10062_v46  ;;  %v3415_v38 = vadd.f32 %v6238_v11, %v5724_v33  ;;  %v3565_v53 = vsel %vm1229_vm3, %v8828_v56, -inf  ;;  %v3568_v11 = vsel %vm1229_vm3, %v8842_v31, -inf }
 0xb4f   :  { %v3406_v54 = vpop.f32.mrf.mxu0 }
 0xb50   :  { %3442 = vst.msk [vmem:[%s9827_s14] sm:$0xff] %vm66_vm0, %v3434_v49  ;;  %v3437_v36 = vadd.f32 %v3415_v38, %v10063_v44  ;;  %v3407_v30 = vadd.f32 %v5724_v33, %v3406_v54 }
 0xb52   :  { %3445 = vst.msk [vmem:[%s9827_s14 + $0x18] sm:$0xff] %vm66_vm0, %v3437_v36  ;;  %v3435_v45 = vadd.f32 %v3407_v30, %v10064_v12 }
 0xb54   :  { %3443 = vst.msk [vmem:[%s9827_s14 + $0x8] sm:$0xff] %vm66_vm0, %v3435_v45 }
 0xb7d   :  { %v6241_v22 = vpop.f32.mrf.mxu0 }
 0xb7e   :  { %v3428_v10 = vadd.f32 %v6241_v22, %v5724_v33 }
 0xb7f   :  { %v3419_v25 = vpop.f32.mrf.mxu0 }
 0xb80   :  { %v3440_v13 = vadd.f32 %v3428_v10, %v10065_v52  ;;  %v3420_v42 = vadd.f32 %v5724_v33, %v3419_v25 }
 0xb81   :  { %v6242_v47 = vpop.f32.mrf.mxu0 }
 0xb82   :  { %3448 = vst.msk [vmem:[%s9827_s14 + $0x30] sm:$0xff] %vm66_vm0, %v3440_v13  ;;  %v3438_v2 = vadd.f32 %v3420_v42, %v10066_v5  ;;  %v3431_v4 = vadd.f32 %v6242_v47, %v5724_v33 }
 0xb83   :  { %v3422_v26 = vpop.f32.mrf.mxu0 }
 0xb84   :  { %3446 = vst.msk [vmem:[%s9827_s14 + $0x20] sm:$0xff] %vm66_vm0, %v3438_v2  ;;  %v3441_v60 = vadd.f32 %v3431_v4, %v10067_v16  ;;  %v3423_v59 = vadd.f32 %v5724_v33, %v3422_v26  ;;  %v3553_v33 = vsel %vm1229_vm3, %v8780_v32, -inf }
 0xb85   :  { %v8787_v41 = vpop.f32.mrf.mxu0 }
 0xb86   :  { %3449 = vst.msk [vmem:[%s9827_s14 + $0x38] sm:$0xff] %vm66_vm0, %v3441_v60  ;;  %v3439_v61 = vadd.f32 %v3423_v59, %v10068_v34  ;;  %v3750_v23 = vsel %vm1229_vm3, %v8787_v41, -inf }
 0xb87   :  { %3751 = vmax.xlane.f32.xlu0 %v3750_v23  ;;  %v8798_v39 = vpop.f32.mrf.mxu0 }
 0xb88   :  { %3447 = vst.msk [vmem:[%s9827_s14 + $0x28] sm:$0xff] %vm66_vm0, %v3439_v61  ;;  %v3744_v19 = vsel %vm1229_vm3, %v8798_v39, -inf }
 0xb89   :  { %v8804_v57 = vpop.f32.mrf.mxu0 }
 0xb8a   :  { %v3753_v58 = vsel %vm1229_vm3, %v8804_v57, -inf }
 0xb8b   :  { %3745 = vmax.xlane.f32.xlu0 %v3744_v19  ;;  %v8810_v27 = vpop.f32.mrf.mxu0 }
 0xb8c   :  { %v3747_v24 = vsel %vm1229_vm3, %v8810_v27, -inf }
 0xb8d   :  { %3748 = vmax.xlane.f32.xlu1 %v3747_v24  ;;  %v8814_v63 = vpop.f32.mrf.mxu0 }
 0xb8e   :  { %v3762_v14 = vsel %vm1229_vm3, %v8814_v63, -inf }
 0xb8f   :  { %3754 = vmax.xlane.f32.xlu0 %v3753_v58  ;;  %v8820_v21 = vpop.f32.mrf.mxu0 }
 0xb90   :  { %v3756_v8 = vsel %vm1229_vm3, %v8820_v21, -inf }
 0xb91   :  { %v8822_v37 = vpop.f32.mrf.mxu0 }
 0xb92   :  { %v3765_v55 = vsel %vm1229_vm3, %v8822_v37, -inf }
 0xb93   :  { %3757 = vmax.xlane.f32.xlu0 %v3756_v8  ;;  %3766 = vmax.xlane.f32.xlu1 %v3765_v55  ;;  %v8830_v43 = vpop.f32.mrf.mxu0 }
 0xb94   :  { %v3759_v0 = vsel %vm1229_vm3, %v8830_v43, -inf }
 0xb97   :  { %3763 = vmax.xlane.f32.xlu0 %v3762_v14  ;;  %3760 = vmax.xlane.f32.xlu1 %v3759_v0 }
 0xb9b   :  { %3548 = vmax.xlane.f32.xlu0 %v3547_v40  ;;  %3551 = vmax.xlane.f32.xlu1 %v3550_v18 }
 0xb9f   :  { %3554 = vmax.xlane.f32.xlu0 %v3553_v33  ;;  %3557 = vmax.xlane.f32.xlu1 %v3556_v3 }
 0xba3   :  { %3560 = vmax.xlane.f32.xlu0 %v3559_v7  ;;  %3563 = vmax.xlane.f32.xlu1 %v3562_v62 }
 0xba5   :  { %v8854_v9 = vpop.f32.mrf.mxu0 }
 0xba6   :  { %v4101_v30 = vsel %vm1229_vm3, %v8854_v9, -inf }
 0xba7   :  { %3566 = vmax.xlane.f32.xlu0 %v3565_v53  ;;  %3569 = vmax.xlane.f32.xlu1 %v3568_v11  ;;  %v8860_v46 = vpop.f32.mrf.mxu0 }
 0xba8   :  { %v4095_v38 = vsel %vm1229_vm3, %v8860_v46, -inf }
 0xba9   :  { %v8862_v49 = vpop.f32.mrf.mxu0 }
 0xbaa   :  { %v4104_v54 = vsel %vm1229_vm3, %v8862_v49, -inf }
 0xbab   :  { %4096 = vmax.xlane.f32.xlu0 %v4095_v38  ;;  %4105 = vmax.xlane.f32.xlu1 %v4104_v54  ;;  %v8868_v44 = vpop.f32.mrf.mxu0 }
 0xbac   :  { %v4098_v12 = vsel %vm1229_vm3, %v8868_v44, -inf }
 0xbad   :  { %v8870_v36 = vpop.f32.mrf.mxu0 }
 0xbae   :  { %v4113_v10 = vsel %vm1229_vm3, %v8870_v36, -inf }
 0xbaf   :  { %4102 = vmax.xlane.f32.xlu0 %v4101_v30  ;;  %4099 = vmax.xlane.f32.xlu1 %v4098_v12  ;;  %v8876_v45 = vpop.f32.mrf.mxu0 }
 0xbb0   :  { %v4107_v22 = vsel %vm1229_vm3, %v8876_v45, -inf }
 0xbb3   :  { %4108 = vmax.xlane.f32.xlu0 %v4107_v22 }
 0xbb7   :  { %4114 = vmax.xlane.f32.xlu0 %v4113_v10 }
 0xc10   :  { %v3752_v25 = vpop.xlane.xlu0 %3751 }
 0xc11   :  { %v3770_v23 = vsub.f32 %v8787_v41, %v3752_v25 }
 0xc13   :  { %v3780_v0 = vmul.f32 1.442695, %v3770_v23 }
 0xc14   :  { %v3746_v52 = vpop.xlane.xlu0 %3745 }
 0xc15   :  { %v3768_v40 = vsub.f32 %v8798_v39, %v3746_v52 }
 0xc16   :  { %v3749_v13 = vpop.xlane.xlu1 %3748 }
 0xc17   :  { %v3776_v41 = vmul.f32 1.442695, %v3768_v40 }
 0xc18   :  { %v3755_v42 = vpop.xlane.xlu0 %3754 }
 0xc1c   :  { %v8882_v47 = vpop.xlane.xlu1 %3766  ;;  %v3758_v5 = vpop.xlane.xlu0 %3757 }
 0xc1d   :  { %v3772_v7 = vsub.f32 %v8820_v21, %v3758_v5 }
 0xc1f   :  { %v3784_v54 = vmul.f32 1.442695, %v3772_v7 }
 0xc20   :  { %v8884_v2 = vpop.xlane.xlu1 %3760  ;;  %v3764_v4 = vpop.xlane.xlu0 %3763 }
 0xc21   :  { %v3774_v18 = vsub.f32 %v8814_v63, %v3764_v4 }
 0xc23   :  { %v3788_v62 = vmul.f32 1.442695, %v3774_v18 }
 0xc24   :  { %v3552_v26 = vpop.xlane.xlu1 %3551  ;;  %v3549_v16 = vpop.xlane.xlu0 %3548 }
 0xc25   :  { %v3572_v60 = vsub.f32 %v8818_v48, %v3552_v26  ;;  %v3571_v59 = vsub.f32 %v8796_v28, %v3549_v16  ;;  %v3771_v28 = vsub.f32 %v8804_v57, %v3755_v42  ;;  %v3775_v26 = vsub.f32 %v8822_v37, %v8882_v47 }
 0xc27   :  { %v3581_v34 = vmul.f32 1.442695, %v3572_v60  ;;  %v3579_v61 = vmul.f32 1.442695, %v3571_v59  ;;  %v3790_v47 = vmul.f32 1.442695, %v3775_v26 }
 0xc28   :  { %v3558_v19 = vpop.xlane.xlu1 %3557  ;;  %v3555_v24 = vpop.xlane.xlu0 %3554 }
 0xc29   :  { %6675 = vpow2.f32 %v3581_v34  ;;  %v3574_v58 = vsub.f32 %v8808_v50, %v3558_v19  ;;  %v3573_v8 = vsub.f32 %v8780_v32, %v3555_v24  ;;  %v3769_v50 = vsub.f32 %v8810_v27, %v3749_v13  ;;  %v8913_v13 = vpop.f32.mrf.mxu0 }
 0xc2a   :  { %6677 = vpow2.f32 %v3579_v61  ;;  %v3782_v32 = vmul.f32 1.442695, %v3771_v28  ;;  %v4116_v60 = vsel %vm1229_vm3, %v8913_v13, -inf  ;;  %v3773_v19 = vsub.f32 %v8830_v43, %v8884_v2 }
 0xc2b   :  { %v3585_v55 = vmul.f32 1.442695, %v3574_v58  ;;  %v3583_v14 = vmul.f32 1.442695, %v3573_v8  ;;  %v3778_v38 = vmul.f32 1.442695, %v3769_v50  ;;  %v8924_v59 = vpop.f32.mrf.mxu0 }
 0xc2c   :  { %v3561_v48 = vpop.xlane.xlu0 %3560  ;;  %v3564_v3 = vpop.xlane.xlu1 %3563  ;;  %v4110_v24 = vsel %vm1229_vm3, %v8924_v59, -inf  ;;  %v3786_v43 = vmul.f32 1.442695, %v3773_v19  ;;  %v10070_v19 = vld [vmem:[#allocation3_spill] sm:$0xff] }
 0xc2d   :  { %6679 = vpow2.f32 %v3585_v55  ;;  %v3576_v57 = vsub.f32 %v8848_v51, %v3564_v3  ;;  %v3575_v27 = vsub.f32 %v8836_v15, %v3561_v48 }
 0xc2e   :  { %6681 = vpow2.f32 %v3583_v14 }
 0xc2f   :  { %6683 = vpow2.f32 %v3780_v0  ;;  %v3589_v51 = vmul.f32 1.442695, %v3576_v57  ;;  %v3587_v15 = vmul.f32 1.442695, %v3575_v27 }
 0xc30   :  { %v3567_v33 = vpop.xlane.xlu0 %3566  ;;  %6685 = vpow2.f32 %v3776_v41  ;;  %v3570_v30 = vpop.xlane.xlu1 %3569 }
 0xc31   :  { %6687 = vpow2.f32 %v3782_v32  ;;  %v3578_v25 = vsub.f32 %v8842_v31, %v3570_v30  ;;  %v3577_v42 = vsub.f32 %v8828_v56, %v3567_v33 }
 0xc32   :  { %6689 = vpow2.f32 %v3788_v62 }
 0xc33   :  { %6691 = vpow2.f32 %v3778_v38  ;;  %v3593_v31 = vmul.f32 1.442695, %v3578_v25  ;;  %v3591_v56 = vmul.f32 1.442695, %v3577_v42 }
 0xc34   :  { %v4097_v53 = vpop.xlane.xlu0 %4096  ;;  %6693 = vpow2.f32 %v3784_v54  ;;  %v4106_v37 = vpop.xlane.xlu1 %4105 }
 0xc35   :  { %6695 = vpow2.f32 %v3589_v51  ;;  %v4122_v2 = vsub.f32 %v8862_v49, %v4106_v37 }
 0xc36   :  { %v8896_v39 = vpop.eup %6675  ;;  %6697 = vpow2.f32 %v3587_v15 }
 0xc37   :  { %v8898_v11 = vpop.eup %6677  ;;  %v3598_v63 = vsel %vm1229_vm3, %v8896_v39, 0.0  ;;  %6699 = vpow2.f32 %v3593_v31  ;;  %v4133_v3 = vmul.f32 1.442695, %v4122_v2 }
 0xc38   :  { %3599 = vadd.xlane.f32.xlu1 %v3598_v63  ;;  %v3595_v21 = vsel %vm1229_vm3, %v8898_v11, 0.0  ;;  %v4103_v12 = vpop.xlane.xlu0 %4102  ;;  %6701 = vpow2.f32 %v3591_v56 }
 0xc39   :  { %3596 = vadd.xlane.f32.xlu0 %v3595_v21  ;;  %v4121_v34 = vsub.f32 %v8854_v9, %v4103_v12  ;;  %v4119_v9 = vsub.f32 %v8860_v46, %v4097_v53  ;;  %6703 = vpow2.f32 %v3790_v47  ;;  %v4100_v46 = vpop.xlane.xlu1 %4099  ;;  %v10069_v47 = vld [vmem:[#allocation6_spill] sm:$0xff] }
 0xc3a   :  { %v8906_v22 = vpop.eup %6679  ;;  %v4120_v49 = vsub.f32 %v8868_v44, %v4100_v46 }
 0xc3b   :  { %v8908_v10 = vpop.eup %6681  ;;  %v3604_v52 = vsel %vm1229_vm3, %v8906_v22, 0.0  ;;  %v4131_v8 = vmul.f32 1.442695, %v4121_v34  ;;  %v4127_v28 = vmul.f32 1.442695, %v4119_v9  ;;  %v10072_v9 = vld [vmem:[#allocation4_spill] sm:$0xff] }
 0xc3c   :  { %3605 = vadd.xlane.f32.xlu1 %v3604_v52  ;;  %v3601_v5 = vsel %vm1229_vm3, %v8908_v10, 0.0  ;;  %v8918_v4 = vpop.eup %6683  ;;  %v4109_v16 = vpop.xlane.xlu0 %4108  ;;  %v4129_v38 = vmul.f32 1.442695, %v4120_v49 }
 0xc3d   :  { %3602 = vadd.xlane.f32.xlu0 %v3601_v5  ;;  %v3798_v61 = vsel %vm1229_vm3, %v8918_v4, 0.0  ;;  %v8929_v23 = vpop.eup %6685  ;;  %6705 = vpow2.f32 %v4131_v8  ;;  %v4123_v7 = vsub.f32 %v8876_v45, %v4109_v16 }
 0xc3e   :  { %v8935_v58 = vpop.eup %6687  ;;  %v3792_v55 = vsel %vm1229_vm3, %v8929_v23, 0.0  ;;  %6707 = vpow2.f32 %v3786_v43 }
 0xc3f   :  { %v8940_v14 = vpop.eup %6689  ;;  %v3801_v40 = vsel %vm1229_vm3, %v8935_v58, 0.0  ;;  %6709 = vpow2.f32 %v4127_v28  ;;  %v4135_v63 = vmul.f32 1.442695, %v4123_v7 }
 0xc40   :  { %4117 = vmax.xlane.f32.xlu1 %v4116_v60  ;;  %v4115_v0 = vpop.xlane.xlu0 %4114  ;;  %v8945_v48 = vpop.eup %6691  ;;  %v3810_v18 = vsel %vm1229_vm3, %v8940_v14, 0.0  ;;  %6711 = vpow2.f32 %v4133_v3 }
 0xc41   :  { %3799 = vadd.xlane.f32.xlu0 %v3798_v61  ;;  %v4125_v41 = vsub.f32 %v8870_v36, %v4115_v0  ;;  %v8950_v33 = vpop.eup %6693  ;;  %v3795_v50 = vsel %vm1229_vm3, %v8945_v48, 0.0 }
 0xc42   :  { %v8955_v32 = vpop.eup %6695  ;;  %v3804_v62 = vsel %vm1229_vm3, %v8950_v33, 0.0 }
 0xc43   :  { %v4139_v36 = vmul.f32 1.442695, %v4125_v41  ;;  %v8960_v53 = vpop.eup %6697  ;;  %v3610_v44 = vsel %vm1229_vm3, %v8955_v32, 0.0 }
 0xc44   :  { %4111 = vmax.xlane.f32.xlu1 %v4110_v24  ;;  %v8964_v57 = vpop.eup %6699  ;;  %v3607_v45 = vsel %vm1229_vm3, %v8960_v53, 0.0  ;;  %v10071_v24 = vld [vmem:[#allocation5_spill] sm:$0xff] }
 0xc45   :  { %3793 = vadd.xlane.f32.xlu0 %v3792_v55  ;;  %6713 = vpow2.f32 %v4139_v36  ;;  %v8968_v54 = vpop.eup %6701  ;;  %v3616_v27 = vsel %vm1229_vm3, %v8964_v57, 0.0 }
 0xc46   :  { %6715 = vpow2.f32 %v4129_v38  ;;  %v8972_v30 = vpop.eup %6703  ;;  %v3613_v21 = vsel %vm1229_vm3, %v8968_v54, 0.0 }
 0xc47   :  { %6717 = vpow2.f32 %v4135_v63  ;;  %v3813_v51 = vsel %vm1229_vm3, %v8972_v30, 0.0 }
 0xc48   :  { %3802 = vadd.xlane.f32.xlu1 %v3801_v40 }
 0xc49   :  { %3811 = vadd.xlane.f32.xlu0 %v3810_v18 }
 0xc4a   :  { %v8976_v12 = vpop.eup %6705 }
 0xc4b   :  { %v8980_v25 = vpop.eup %6707  ;;  %v4149_v52 = vsel %vm1229_vm3, %v8976_v12, 0.0 }
 0xc4c   :  { %3796 = vadd.xlane.f32.xlu1 %v3795_v50  ;;  %v8984_v15 = vpop.eup %6709  ;;  %v3807_v42 = vsel %vm1229_vm3, %v8980_v25, 0.0 }
 0xc4d   :  { %3805 = vadd.xlane.f32.xlu0 %v3804_v62  ;;  %v8988_v5 = vpop.eup %6711  ;;  %v4143_v26 = vsel %vm1229_vm3, %v8984_v15, 0.0 }
 0xc4e   :  { %v4152_v16 = vsel %vm1229_vm3, %v8988_v5, 0.0 }
 0xc50   :  { %3611 = vadd.xlane.f32.xlu1 %v3610_v44 }
 0xc51   :  { %3608 = vadd.xlane.f32.xlu0 %v3607_v45 }
 0xc52   :  { %v8992_v31 = vpop.eup %6713 }
 0xc53   :  { %v8996_v60 = vpop.eup %6715  ;;  %v4161_v56 = vsel %vm1229_vm3, %v8992_v31, 0.0 }
 0xc54   :  { %3617 = vadd.xlane.f32.xlu1 %v3616_v27  ;;  %v9000_v34 = vpop.eup %6717  ;;  %v4146_v61 = vsel %vm1229_vm3, %v8996_v60, 0.0 }
 0xc55   :  { %3614 = vadd.xlane.f32.xlu0 %v3613_v21  ;;  %v4155_v37 = vsel %vm1229_vm3, %v9000_v34, 0.0 }
 0xc58   :  { %3814 = vadd.xlane.f32.xlu1 %v3813_v51 }
 0xc59   :  { %4150 = vadd.xlane.f32.xlu0 %v4149_v52 }
 0xc5c   :  { %3808 = vadd.xlane.f32.xlu1 %v3807_v42 }
 0xc5d   :  { %4144 = vadd.xlane.f32.xlu0 %v4143_v26 }
 0xc60   :  { %4153 = vadd.xlane.f32.xlu1 %v4152_v16 }
 0xc61   :  { %4162 = vadd.xlane.f32.xlu0 %v4161_v56 }
 0xc64   :  { %4147 = vadd.xlane.f32.xlu1 %v4146_v61 }
 0xc65   :  { %4156 = vadd.xlane.f32.xlu0 %v4155_v37 }
 0xc75   :  { %4284 = vrot.lane.b32.xlu1 %v10069_v47, %s6894_s4 }
 0xc79   :  { %4282 = vrot.lane.b32.xlu1 %v10070_v19, %s6894_s4 }
 0xc7b   :  { %4286 = vrot.lane.b32.xlu0 %v10071_v24, %s6894_s4 }
 0xc7f   :  { %4272 = vrot.lane.b32.xlu0 %v10072_v9, %s6895_s18 }
 0xc83   :  { %4276 = vrot.lane.b32.xlu0 %v10069_v47, %s6895_s18 }
 0xcc1   :  { %v3600_v8 = vpop.xlane.xlu1 %3599 }
 0xcc2   :  { %v3597_v55 = vpop.xlane.xlu0 %3596 }
 0xcc5   :  { %v3606_v0 = vpop.xlane.xlu1 %3605 }
 0xcc6   :  { %v3603_v43 = vpop.xlane.xlu0 %3602 }
 0xcc9   :  { %v4118_v2 = vpop.xlane.xlu1 %4117 }
 0xcca   :  { %v4126_v40 = vsub.f32 %v8913_v13, %v4118_v2  ;;  %v3800_v28 = vpop.xlane.xlu0 %3799 }
 0xccc   :  { %v4141_v46 = vmul.f32 1.442695, %v4126_v40 }
 0xccd   :  { %v4112_v41 = vpop.xlane.xlu1 %4111 }
 0xcce   :  { %6719 = vpow2.f32 %v4141_v46  ;;  %v4124_v18 = vsub.f32 %v8924_v59, %v4112_v41  ;;  %v3794_v3 = vpop.xlane.xlu0 %3793  ;;  %v10075_v46 = vld [vmem:[#allocation7_spill] sm:$0xff] }
 0xcd0   :  { %v4137_v49 = vmul.f32 1.442695, %v4124_v18 }
 0xcd1   :  { %v3803_v50 = vpop.xlane.xlu1 %3802 }
 0xcd2   :  { %6721 = vpow2.f32 %v4137_v49  ;;  %v3812_v7 = vpop.xlane.xlu0 %3811 }
 0xcd3   :  { %6723 = vrcp.f32 %v3803_v50  ;;  %v10076_v50 = vld [vmem:[#allocation8_spill] sm:$0xff] }
 0xcd4   :  { %6725 = vrcp.f32 %v3794_v3 }
 0xcd5   :  { %6727 = vrcp.f32 %v3800_v28  ;;  %v3797_v36 = vpop.xlane.xlu1 %3796 }
 0xcd6   :  { %6729 = vrcp.f32 %v3797_v36  ;;  %v3806_v13 = vpop.xlane.xlu0 %3805 }
 0xcd7   :  { %6731 = vrcp.f32 %v3600_v8 }
 0xcd8   :  { %6733 = vrcp.f32 %v3597_v55  ;;  %v10074_v55 = vld [vmem:[#allocation10_spill] sm:$0xff] }
 0xcd9   :  { %v3612_v62 = vpop.xlane.xlu1 %3611 }
 0xcda   :  { %v3609_v51 = vpop.xlane.xlu0 %3608 }
 0xcdb   :  { %v9018_v38 = vpop.eup %6719 }
 0xcdc   :  { %v4164_v44 = vsel %vm1229_vm3, %v9018_v38, 0.0 }
 0xcdd   :  { %4165 = vadd.xlane.f32.xlu1 %v4164_v44  ;;  %v3618_v63 = vpop.xlane.xlu1 %3617 }
 0xcde   :  { %v3615_v40 = vpop.xlane.xlu0 %3614 }
 0xcdf   :  { %v9022_v59 = vpop.eup %6721 }
 0xce0   :  { %v6724_v45 = vpop.eup %6723  ;;  %v4158_v27 = vsel %vm1229_vm3, %v9022_v59, 0.0 }
 0xce1   :  { %v6726_v21 = vpop.eup %6725  ;;  %4159 = vadd.xlane.f32.xlu1 %v4158_v27  ;;  %v3815_v52 = vpop.xlane.xlu1 %3814  ;;  %v3827_v16 = vmul.f32 %v6724_v45, %v8935_v58  ;;  %v10073_v58 = vld [vmem:[#allocation9_spill] sm:$0xff]  ;;  %v10077_v27 = vld [vmem:[#allocation22_spill] sm:$0xff] }
 0xce2   :  { %v6728_v42 = vpop.eup %6727  ;;  %6735 = vrcp.f32 %v3815_v52  ;;  %v3824_v56 = vmul.f32 %v6726_v21, %v8929_v23 }
 0xce3   :  { %v6730_v26 = vpop.eup %6729  ;;  %6737 = vrcp.f32 %v3806_v13  ;;  %v3826_v37 = vmul.f32 %v6728_v42, %v8918_v4  ;;  %v4151_v4 = vpop.xlane.xlu0 %4150 }
 0xce4   :  { %v3825_v61 = vmul.f32 %v6730_v26, %v8945_v48  ;;  %6739 = vrcp.f32 %v3812_v7  ;;  %v6732_v48 = vpop.eup %6731 }
 0xce5   :  { %v3809_v47 = vpop.xlane.xlu1 %3808  ;;  %v3833_v2 = vpack.c.bf16 %v3827_v16, %v3826_v37  ;;  %v6734_v28 = vpop.eup %6733  ;;  %v3628_v36 = vmul.f32 %v6732_v48, %v8896_v39 }
 0xce6   :  { %6741 = vrcp.f32 %v3809_v47  ;;  %v3832_v8 = vpack.c.bf16 %v3825_v61, %v3824_v56  ;;  %v3627_v44 = vmul.f32 %v6734_v28, %v8898_v11  ;;  %v10079_v47 = vld [vmem:[#allocation16_spill] sm:$0xff] }
 0xce7   :  { %6743 = vrcp.f32 %v3606_v0  ;;  %v4145_v49 = vpop.xlane.xlu0 %4144 }
 0xce8   :  { %6283 = vmatprep.mubr.msk.bf16.mxu1 %vm1229_vm3, %v3832_v8  ;;  %6745 = vrcp.f32 %v3603_v43 }
 0xce9   :  { %6284 = vmatmul.mubr.msk.bf16.vlgmr.msra.gmra.mxu1 %vm1229_vm3, %v3833_v2  ;;  %6747 = vrcp.f32 %v3612_v62  ;;  %v4154_v23 = vpop.xlane.xlu1 %4153 }
 0xcea   :  { %6292 = vmatpush3.bf16.msra.mxu1 %v10073_v58  ;;  %6749 = vrcp.f32 %v3609_v51 }
 0xceb   :  { %6293 = vmatprep.subr.bf16.mxu1 %v10074_v55  ;;  %6751 = vrcp.f32 %v3618_v63 }
 0xcec   :  { %6753 = vrcp.f32 %v3615_v40 }
 0xced   :  { %v4148_v0 = vpop.xlane.xlu1 %4147 }
 0xcee   :  { %6294 = vmatpush3.bf16.msra.mxu1 %v10074_v55  ;;  %6755 = vrcp.f32 %v4148_v0 }
 0xcef   :  { %6295 = vmatprep.subr.bf16.mxu1 %v10075_v46  ;;  %v6736_v41 = vpop.eup %6735  ;;  %6757 = vrcp.f32 %v4145_v49 }
 0xcf0   :  { %v6738_v18 = vpop.eup %6737  ;;  %v3831_v7 = vmul.f32 %v6736_v41, %v8972_v30  ;;  %6759 = vrcp.f32 %v4154_v23 }
 0xcf1   :  { %v6740_v3 = vpop.eup %6739  ;;  %v3828_v62 = vmul.f32 %v6738_v18, %v8950_v33  ;;  %v3635_v33 = vpack.c.bf16 %v3628_v36, %v3627_v44  ;;  %6761 = vrcp.f32 %v4151_v4  ;;  %v4285_v48 = vpop.permute.xlu1 %4284 }
 0xcf2   :  { %6296 = vmatpush3.bf16.msra.mxu1 %v10075_v46  ;;  %4280 = vrot.lane.b32.xlu1 %v10072_v9, %s6894_s4  ;;  %v3830_v63 = vmul.f32 %v6740_v3, %v8940_v14  ;;  %v6860_v3 = vld [vmem:[%s9819_s12 + $0x38] sm:$0xff]  }
 0xcf3   :  { %v6742_v43 = vpop.eup %6741  ;;  %6297 = vmatprep.subr.bf16.mxu1 %v10076_v50 }
 0xcf4   :  { %v3829_v13 = vmul.f32 %v6742_v43, %v8980_v25  ;;  %v6744_v45 = vpop.eup %6743  ;;  %v3835_v39 = vpack.c.bf16 %v3831_v7, %v3830_v63 }
 0xcf5   :  { %v6746_v30 = vpop.eup %6745  ;;  %v3630_v11 = vmul.f32 %v6744_v45, %v8906_v22  ;;  %v4283_v28 = vpop.permute.xlu1 %4282 }
 0xcf6   :  { %6298 = vmatpush3.bf16.msra.mxu1 %v10076_v50  ;;  %4274 = vrot.lane.b32.xlu1 %v10070_v19, %s6895_s18  ;;  %v3834_v9 = vpack.c.bf16 %v3829_v13, %v3828_v62  ;;  %v6748_v21 = vpop.eup %6747  ;;  %v3629_v14 = vmul.f32 %v6746_v30, %v8908_v10  ;;  %v10078_v10 = vld [vmem:[#allocation23_spill] sm:$0xff] }
 0xcf7   :  { %6323 = vmatprep.subr.bf16.mxu1 %v10077_v27  ;;  %v6750_v25 = vpop.eup %6749  ;;  %v3632_v51 = vmul.f32 %v6748_v21, %v8955_v32  ;;  %v6865_v21 = vld [vmem:[%s9819_s12 + $0x10] sm:$0xff]  }
 0xcf8   :  { %6287 = vmatprep.mubr.msk.bf16.mxu1 %vm1229_vm3, %v3834_v9  ;;  %v3631_v19 = vmul.f32 %v6750_v25, %v8960_v53  ;;  %v6752_v52 = vpop.eup %6751  ;;  %v3636_v42 = vpack.c.bf16 %v3630_v11, %v3629_v14  ;;  %v6867_v25 = vld [vmem:[%s9819_s12] sm:$0xff]  }
 0xcf9   :  { %6288 = vmatmul.mubr.msk.bf16.gmra.mxu1 %vm1229_vm3, %v3835_v39  ;;  %v6754_v26 = vpop.eup %6753  ;;  %v3634_v32 = vmul.f32 %v6752_v52, %v8964_v57  ;;  %v6864_v39 = vld [vmem:[%s9819_s12 + $0x18] sm:$0xff]  }
 0xcfa   :  { %4278 = vrot.lane.b32.xlu1 %v10071_v24, %s6895_s18  ;;  %6299 = vmatprep.mubr.msk.bf16.mxu1 %vm1229_vm3, %v3635_v33  ;;  %v3637_v16 = vpack.c.bf16 %v3632_v51, %v3631_v19  ;;  %v4163_v24 = vpop.xlane.xlu0 %4162  ;;  %v3633_v53 = vmul.f32 %v6754_v26, %v8968_v54  ;;  %v10080_v54 = vld [vmem:[#allocation18_spill] sm:$0xff] }
 0xcfb   :  { %v6756_v56 = vpop.eup %6755  ;;  %v6866_v33 = vld [vmem:[%s9819_s12 + $0x8] sm:$0xff]  }
 0xcfc   :  { %v6758_v22 = vpop.eup %6757  ;;  %v4176_v61 = vmul.f32 %v6756_v56, %v8996_v60  ;;  %v3638_v8 = vpack.c.bf16 %v3634_v32, %v3633_v53 }
 0xcfd   :  { %v4175_v37 = vmul.f32 %v6758_v22, %v8984_v15  ;;  %v6760_v2 = vpop.eup %6759 }
 0xcfe   :  { %v4157_v40 = vpop.xlane.xlu0 %4156  ;;  %v6762_v23 = vpop.eup %6761  ;;  %v4178_v57 = vmul.f32 %v6760_v2, %v8988_v5  ;;  %v4307_v5 = vsel %vm501_vm2, %v4285_v48, 0 }
 0xcff   :  { %v4183_v58 = vpack.c.bf16 %v4176_v61, %v4175_v37  ;;  %v4177_v60 = vmul.f32 %v6762_v23, %v8976_v12  ;;  %v4304_v12 = vsel %vm501_vm2, %v4283_v28, 0 }
 0xd01   :  { %6300 = vmatmul.mubr.msk.bf16.vlgmr.msra.gmra.mxu1 %vm1229_vm3, %v3636_v42  ;;  %v4184_v55 = vpack.c.bf16 %v4178_v57, %v4177_v60 }
 0xd02   :  { %6324 = vmatpush3.bf16.msra.mxu1 %v10077_v27  ;;  %6303 = vmatprep.mubr.msk.bf16.mxu1 %vm1229_vm3, %v3637_v16  ;;  %v4287_v15 = vpop.permute.xlu0 %4286 }
 0xd03   :  { %6325 = vmatprep.subr.bf16.mxu1 %v10078_v10  ;;  %v4310_v4 = vsel %vm501_vm2, %v4287_v15, 0 }
 0xd06   :  { %6326 = vmatpush3.bf16.msra.mxu1 %v10078_v10  ;;  %v4273_v9 = vpop.permute.xlu0 %4272 }
 0xd07   :  { %6327 = vmatprep.subr.bf16.mxu1 %v10079_v47 }
 0xd09   :  { %6304 = vmatmul.mubr.msk.bf16.gmra.mxu1 %vm1229_vm3, %v3638_v8 }
 0xd0a   :  { %6328 = vmatpush3.bf16.msra.mxu1 %v10079_v47  ;;  %6331 = vmatprep.mubr.msk.bf16.mxu1 %vm1229_vm3, %v4183_v58  ;;  %v4277_v27 = vpop.permute.xlu0 %4276 }
 0xd0b   :  { %6329 = vmatprep.subr.bf16.mxu1 %v10080_v54 }
 0xd0e   :  { %6330 = vmatpush3.bf16.msra.mxu1 %v10080_v54 }
 0xd0f   :  { %6439 = vmatprep.subr.msk.bf16.mxu1 %vm501_vm2, %v4287_v15 }
 0xd11   :  { %6332 = vmatmul.mubr.msk.bf16.vlgmr.msra.gmra.mxu1 %vm1229_vm3, %v4184_v55 }
 0xd12   :  { %6340 = vmatpush3.bf16.xpose.msra.mxu1 %v4310_v4 }
 0xd13   :  { %6440 = vmatprep.subr.msk.bf16.mxu1 %vm501_vm2, %v4285_v48 }
 0xd1a   :  { %6342 = vmatpush3.bf16.xpose.msra.mxu1 %v4307_v5 }
 0xd1b   :  { %6441 = vmatprep.subr.msk.bf16.mxu1 %vm501_vm2, %v4283_v28 }
 0xd22   :  { %6344 = vmatpush3.bf16.xpose.msra.mxu1 %v4304_v12 }
 0xd66   :  { %v4166_v46 = vpop.xlane.xlu1 %4165 }
 0xd67   :  { %6763 = vrcp.f32 %v4166_v46 }
 0xd68   :  { %6765 = vrcp.f32 %v4157_v40 }
 0xd69   :  { %6767 = vrcp.f32 %v4163_v24 }
 0xd6a   :  { %v4160_v41 = vpop.xlane.xlu1 %4159 }
 0xd6b   :  { %6769 = vrcp.f32 %v4160_v41 }
 0xd6e   :  { %v4281_v18 = vpop.permute.xlu1 %4280 }
 0xd6f   :  { %v4301_v0 = vsel %vm501_vm2, %v4281_v18, 0  ;;  %6442 = vmatprep.subr.msk.bf16.mxu1 %vm501_vm2, %v4281_v18 }
 0xd70   :  { %6346 = vmatpush3.bf16.xpose.msra.mxu1 %v4301_v0 }
 0xd71   :  { %6383 = vmatprep.subr.bf16.mxu1 %v6860_v3 }
 0xd72   :  { %v4275_v30 = vpop.permute.xlu1 %4274 }
 0xd74   :  { %v6764_v43 = vpop.eup %6763 }
 0xd75   :  { %v6766_v49 = vpop.eup %6765  ;;  %v4182_v36 = vmul.f32 %v6764_v43, %v9018_v38 }
 0xd76   :  { %v6768_v50 = vpop.eup %6767  ;;  %v4179_v62 = vmul.f32 %v6766_v49, %v9000_v34  ;;  %v6862_v34 = vld [vmem:[%s9819_s12 + $0x28] sm:$0xff]   ;;  %v4279_v38 = vpop.permute.xlu1 %4278 }
 0xd77   :  { %v4181_v44 = vmul.f32 %v6768_v50, %v8992_v31  ;;  %v6861_v31 = vld [vmem:[%s9819_s12 + $0x30] sm:$0xff]  }
 0xd78   :  { %v6770_v7 = vpop.eup %6769 }
 0xd79   :  { %v4180_v13 = vmul.f32 %v6770_v7, %v9022_v59  ;;  %v4186_v45 = vpack.c.bf16 %v4182_v36, %v4181_v44  ;;  %v6863_v59 = vld [vmem:[%s9819_s12 + $0x20] sm:$0xff]  }
 0xd7b   :  { %v4185_v63 = vpack.c.bf16 %v4180_v13, %v4179_v62 }
 0xd7d   :  { %6335 = vmatprep.mubr.msk.bf16.mxu1 %vm1229_vm3, %v4185_v63 }
 0xd7e   :  { %6336 = vmatmul.mubr.msk.bf16.gmra.mxu1 %vm1229_vm3, %v4186_v45 }
 0xd7f   :  { %6347 = vmatprep.mubr.msk.bf16.mxu1 %vm501_vm2, %v4273_v9 }
 0xd86   :  { %6348 = vmatmul.mubr.msk.bf16.vlgmr.msra.gmra.mxu1 %vm501_vm2, %v4275_v30 }
 0xd87   :  { %6351 = vmatprep.mubr.msk.bf16.mxu1 %vm501_vm2, %v4277_v27  ;;  %6384 = vmatpush3.bf16.msra.mxu1 %v6860_v3 }
 0xd88   :  { %6385 = vmatprep.subr.bf16.mxu1 %v6861_v31 }
 0xd8b   :  { %6386 = vmatpush3.bf16.msra.mxu1 %v6861_v31 }
 0xd8c   :  { %6387 = vmatprep.subr.bf16.mxu1 %v6862_v34 }
 0xd8e   :  { %6352 = vmatmul.mubr.msk.bf16.gmra.mxu1 %vm501_vm2, %v4279_v38 }
 0xd8f   :  { %6388 = vmatpush3.bf16.msra.mxu1 %v6862_v34 }
 0xd90   :  { %6389 = vmatprep.subr.bf16.mxu1 %v6863_v59 }
 0xd93   :  { %6390 = vmatpush3.bf16.msra.mxu1 %v6863_v59 }
 0xd94   :  { %6391 = vmatprep.subr.bf16.mxu1 %v6864_v39 }
 0xd97   :  { %6392 = vmatpush3.bf16.msra.mxu1 %v6864_v39 }
 0xd98   :  { %6393 = vmatprep.subr.bf16.mxu1 %v6865_v21 }
 0xd9b   :  { %6394 = vmatpush3.bf16.msra.mxu1 %v6865_v21 }
 0xd9c   :  { %6395 = vmatprep.subr.bf16.mxu1 %v6866_v33 }
 0xd9f   :  { %6396 = vmatpush3.bf16.msra.mxu1 %v6866_v33 }
 0xda0   :  { %6397 = vmatprep.subr.bf16.mxu1 %v6867_v25 }
 0xda3   :  { %6398 = vmatpush3.bf16.msra.mxu1 %v6867_v25 }
 0xda9   :  { %v6285_v11 = vpop.f32.mrf.mxu1 }
 0xdab   :  { %v3882_v14 = vpop.f32.mrf.mxu1 }
 0xdad   :  { %v6286_v19 = vpop.f32.mrf.mxu1 }
 0xdaf   :  { %v3885_v51 = vpop.f32.mrf.mxu1 }
 0xdb9   :  { %v6289_v52 = vpop.f32.mrf.mxu1 }
 0xdbb   :  { %v3898_v42 = vpop.f32.mrf.mxu1 }
 0xdbd   :  { %v6290_v26 = vpop.f32.mrf.mxu1 }
 0xdbf   :  { %v3901_v16 = vpop.f32.mrf.mxu1 }
 0xdc1   :  { %v6301_v56 = vpop.f32.mrf.mxu1 }
 0xdc2   :  { %v3968_v24 = vadd.f32 %v6301_v56, %v6285_v11 }
 0xdc3   :  { %v3959_v22 = vpop.f32.mrf.mxu1 }
 0xdc4   :  { %v3960_v10 = vadd.f32 %v3959_v22, %v3882_v14 }
 0xdc5   :  { %v6302_v53 = vpop.f32.mrf.mxu1 }
 0xdc6   :  { %v3971_v32 = vadd.f32 %v6302_v53, %v6286_v19 }
 0xdc7   :  { %v3962_v61 = vpop.f32.mrf.mxu1 }
 0xdc8   :  { %v9119_v37 = vadd.f32 %v3962_v61, %v3885_v51 }
 0xdc9   :  { %v6305_v47 = vpop.f32.mrf.mxu1 }
 0xdca   :  { %v3984_v8 = vadd.f32 %v6305_v47, %v6289_v52 }
 0xdcb   :  { %v3975_v2 = vpop.f32.mrf.mxu1 }
 0xdcc   :  { %v3976_v40 = vadd.f32 %v3975_v2, %v3898_v42 }
 0xdcd   :  { %v6306_v58 = vpop.f32.mrf.mxu1 }
 0xdce   :  { %v3987_v23 = vadd.f32 %v6306_v58, %v6290_v26 }
 0xdcf   :  { %v3978_v57 = vpop.f32.mrf.mxu1 }
 0xdd0   :  { %v3979_v54 = vadd.f32 %v3978_v57, %v3901_v16 }
 0xdd1   :  { %v6333_v60 = vpop.f32.mrf.mxu1 }
 0xdd2   :  { %v9121_v15 = vadd.f32 %v6333_v60, %v3968_v24 }
 0xdd3   :  { %v4233_v55 = vpop.f32.mrf.mxu1 }
 0xdd4   :  { %v9123_v4 = vadd.f32 %v4233_v55, %v3960_v10 }
 0xdd5   :  { %v6334_v48 = vpop.f32.mrf.mxu1 }
 0xdd6   :  { %v9125_v5 = vadd.f32 %v6334_v48, %v3971_v32 }
 0xdd7   :  { %v9127_v28 = vpop.f32.mrf.mxu1 }
 0xe3e   :  { %v6337_v12 = vpop.f32.mrf.mxu1 }
 0xe3f   :  { %v9129_v46 = vadd.f32 %v6337_v12, %v3984_v8 }
 0xe40   :  { %v4249_v41 = vpop.f32.mrf.mxu1 }
 0xe41   :  { %v9131_v18 = vadd.f32 %v4249_v41, %v3976_v40 }
 0xe42   :  { %v6338_v0 = vpop.f32.mrf.mxu1 }
 0xe43   :  { %v9133_v3 = vadd.f32 %v6338_v0, %v3987_v23 }
 0xe44   :  { %v4252_v43 = vpop.f32.mrf.mxu1 }
 0xe45   :  { %v9135_v49 = vadd.f32 %v4252_v43, %v3979_v54 }
 0xe46   :  { %v6349_v50 = vpop.f32.mrf.mxu1 }
 0xe47   :  { %v4383_v44 = vsel %vm1229_vm3, %v6349_v50, -inf }
 0xe48   :  { %v4346_v7 = vpop.f32.mrf.mxu1 }
 0xe49   :  { %v4377_v36 = vsel %vm1229_vm3, %v4346_v7, -inf }
 0xe4a   :  { %4378 = vmax.xlane.f32.xlu0 %v4377_v36  ;;  %v6350_v62 = vpop.f32.mrf.mxu1 }
 0xe4b   :  { %v4386_v30 = vsel %vm1229_vm3, %v6350_v62, -inf }
 0xe4c   :  { %v4349_v13 = vpop.f32.mrf.mxu1 }
 0xe4d   :  { %v4380_v63 = vsel %vm1229_vm3, %v4349_v13, -inf }
 0xe4e   :  { %4384 = vmax.xlane.f32.xlu0 %v4383_v44  ;;  %4381 = vmax.xlane.f32.xlu1 %v4380_v63  ;;  %v6353_v45 = vpop.f32.mrf.mxu1 }
 0xe4f   :  { %v4395_v59 = vsel %vm1229_vm3, %v6353_v45, -inf }
 0xe50   :  { %v4362_v9 = vpop.f32.mrf.mxu1 }
 0xe51   :  { %v4389_v34 = vsel %vm1229_vm3, %v4362_v9, -inf }
 0xe52   :  { %4387 = vmax.xlane.f32.xlu0 %v4386_v30  ;;  %v6354_v27 = vpop.f32.mrf.mxu1 }
 0xe53   :  { %v4398_v39 = vsel %vm1229_vm3, %v6354_v27, -inf }
 0xe54   :  { %v4365_v31 = vpop.f32.mrf.mxu1 }
 0xe55   :  { %v4392_v38 = vsel %vm1229_vm3, %v4365_v31, -inf }
 0xe56   :  { %4390 = vmax.xlane.f32.xlu0 %v4389_v34  ;;  %4393 = vmax.xlane.f32.xlu1 %v4392_v38 }
 0xe5a   :  { %4396 = vmax.xlane.f32.xlu0 %v4395_v59  ;;  %4399 = vmax.xlane.f32.xlu1 %v4398_v39 }
 0xed3   :  { %v4379_v21 = vpop.xlane.xlu0 %4378 }
 0xed4   :  { %v4401_v33 = vsub.f32 %v4346_v7, %v4379_v21 }
 0xed6   :  { %v4409_v25 = vmul.f32 1.442695, %v4401_v33 }
 0xed7   :  { %v4382_v11 = vpop.xlane.xlu1 %4381  ;;  %v4385_v14 = vpop.xlane.xlu0 %4384 }
 0xed8   :  { %6771 = vpow2.f32 %v4409_v25  ;;  %v4402_v19 = vsub.f32 %v4349_v13, %v4382_v11  ;;  %v4403_v51 = vsub.f32 %v6349_v50, %v4385_v14 }
 0xeda   :  { %v4411_v52 = vmul.f32 1.442695, %v4402_v19  ;;  %v4413_v42 = vmul.f32 1.442695, %v4403_v51 }
 0xedb   :  { %v4388_v26 = vpop.xlane.xlu0 %4387 }
 0xedc   :  { %6773 = vpow2.f32 %v4411_v52  ;;  %v4404_v16 = vsub.f32 %v6350_v62, %v4388_v26 }
 0xedd   :  { %6775 = vpow2.f32 %v4413_v42 }
 0xede   :  { %v4415_v56 = vmul.f32 1.442695, %v4404_v16 }
 0xedf   :  { %v4394_v24 = vpop.xlane.xlu1 %4393  ;;  %v4391_v22 = vpop.xlane.xlu0 %4390 }
 0xee0   :  { %6777 = vpow2.f32 %v4415_v56  ;;  %v4406_v10 = vsub.f32 %v4365_v31, %v4394_v24  ;;  %v4405_v53 = vsub.f32 %v4362_v9, %v4391_v22  ;;  %v6868_v22 = vld [vmem:[%s9820_s8 + $0x8] sm:$0xff]  }
 0xee2   :  { %v4419_v32 = vmul.f32 1.442695, %v4406_v10  ;;  %v4417_v61 = vmul.f32 1.442695, %v4405_v53  ;;  %v6869_v10 = vld [vmem:[%s9820_s8] sm:$0xff]  }
 0xee3   :  { %v4400_v47 = vpop.xlane.xlu1 %4399  ;;  %v4397_v8 = vpop.xlane.xlu0 %4396 }
 0xee4   :  { %6779 = vpow2.f32 %v4419_v32  ;;  %v4408_v2 = vsub.f32 %v6354_v27, %v4400_v47  ;;  %v4407_v40 = vsub.f32 %v6353_v45, %v4397_v8 }
 0xee5   :  { %v6772_v58 = vpop.eup %6771  ;;  %6781 = vpow2.f32 %v4417_v61 }
 0xee6   :  { %v4423_v23 = vmul.f32 1.442695, %v4408_v2  ;;  %v4421_v57 = vmul.f32 1.442695, %v4407_v40  ;;  %v4425_v54 = vsel %vm1229_vm3, %v6772_v58, 0.0 }
 0xee7   :  { %4426 = vadd.xlane.f32.xlu0 %v4425_v54 }
 0xee8   :  { %6783 = vpow2.f32 %v4423_v23 }
 0xee9   :  { %v6774_v60 = vpop.eup %6773  ;;  %6785 = vpow2.f32 %v4421_v57 }
 0xeea   :  { %v6776_v55 = vpop.eup %6775  ;;  %v4428_v48 = vsel %vm1229_vm3, %v6774_v60, 0.0 }
 0xeeb   :  { %4429 = vadd.xlane.f32.xlu1 %v4428_v48  ;;  %v4431_v12 = vsel %vm1229_vm3, %v6776_v55, 0.0 }
 0xeec   :  { %4432 = vadd.xlane.f32.xlu0 %v4431_v12  ;;  %v6871_v12 = vld [vmem:[%s9813_s0 + $0x40] sm:$0xff] }
 0xeed   :  { %v6778_v41 = vpop.eup %6777 }
 0xeee   :  { %v4434_v0 = vsel %vm1229_vm3, %v6778_v41, 0.0 }
 0xeef   :  { %4435 = vadd.xlane.f32.xlu1 %v4434_v0 }
 0xef1   :  { %v6780_v43 = vpop.eup %6779 }
 0xef2   :  { %v6782_v50 = vpop.eup %6781  ;;  %v4440_v7 = vsel %vm1229_vm3, %v6780_v43, 0.0 }
 0xef3   :  { %4441 = vadd.xlane.f32.xlu1 %v4440_v7  ;;  %v4437_v36 = vsel %vm1229_vm3, %v6782_v50, 0.0 }
 0xef4   :  { %4438 = vadd.xlane.f32.xlu0 %v4437_v36  ;;  %v6874_v36 = vld [vmem:[%s9813_s0 + $0x48] sm:$0xff] }
 0xef5   :  { %v6784_v62 = vpop.eup %6783 }
 0xef6   :  { %v6786_v13 = vpop.eup %6785  ;;  %v4446_v44 = vsel %vm1229_vm3, %v6784_v62, 0.0 }
 0xef7   :  { %4447 = vadd.xlane.f32.xlu1 %v4446_v44  ;;  %v4443_v63 = vsel %vm1229_vm3, %v6786_v13, 0.0 }
 0xef8   :  { %4444 = vadd.xlane.f32.xlu0 %v4443_v63 }
 0xf70   :  { %v4427_v45 = vpop.xlane.xlu0 %4426 }
 0xf71   :  { %6787 = vrcp.f32 %v4427_v45 }
 0xf74   :  { %v4430_v9 = vpop.xlane.xlu1 %4429 }
 0xf75   :  { %6789 = vrcp.f32 %v4430_v9  ;;  %v4433_v30 = vpop.xlane.xlu0 %4432 }
 0xf76   :  { %6791 = vrcp.f32 %v4433_v30 }
 0xf78   :  { %v4436_v27 = vpop.xlane.xlu1 %4435 }
 0xf79   :  { %6793 = vrcp.f32 %v4436_v27 }
 0xf7c   :  { %v4442_v31 = vpop.xlane.xlu1 %4441 }
 0xf7d   :  { %6795 = vrcp.f32 %v4442_v31  ;;  %v4439_v34 = vpop.xlane.xlu0 %4438 }
 0xf7e   :  { %6797 = vrcp.f32 %v4439_v34  ;;  %v6788_v38 = vpop.eup %6787 }
 0xf7f   :  { %v4457_v33 = vmul.f32 %v6788_v38, %v6772_v58  ;;  %v6875_v38 = vld [vmem:[%s9813_s0 + $0x70] sm:$0xff] }
 0xf80   :  { %v4448_v59 = vpop.xlane.xlu1 %4447 }
 0xf81   :  { %6799 = vrcp.f32 %v4448_v59  ;;  %v4445_v39 = vpop.xlane.xlu0 %4444  ;;  %v6876_v59 = vld [vmem:[%s9813_s0 + $0x60] sm:$0xff] }
 0xf82   :  { %v6790_v21 = vpop.eup %6789  ;;  %6801 = vrcp.f32 %v4445_v39 }
 0xf83   :  { %v4458_v25 = vmul.f32 %v6790_v21, %v6774_v60  ;;  %v6792_v11 = vpop.eup %6791  ;;  %v4265_v60 = vadd.f32 %v9127_v28, %v9119_v37 }
 0xf84   :  { %v4459_v51 = vmul.f32 %v6792_v11, %v6776_v55  ;;  %v6870_v55 = vld [vmem:[%s9813_s0 + $0x50] sm:$0xff] }
 0xf85   :  { %v4465_v14 = vpack.c.bf16 %v4458_v25, %v4457_v33 }
 0xf86   :  { %v6794_v19 = vpop.eup %6793 }
 0xf87   :  { %v4460_v52 = vmul.f32 %v6794_v19, %v6778_v41  ;;  %6363 = vmatprep.mubr.msk.bf16.mxu0 %vm1229_vm3, %v4465_v14  ;;  %v6877_v19 = vld [vmem:[%s9813_s0 + $0x78] sm:$0xff] }
 0xf89   :  { %v4466_v42 = vpack.c.bf16 %v4460_v52, %v4459_v51 }
 0xf8a   :  { %v6796_v26 = vpop.eup %6795 }
 0xf8b   :  { %v6798_v16 = vpop.eup %6797  ;;  %6364 = vmatmul.mubr.msk.bf16.vlgmr.msra.gmra.mxu0 %vm1229_vm3, %v4466_v42  ;;  %v4462_v56 = vmul.f32 %v6796_v26, %v6780_v43 }
 0xf8c   :  { %v4461_v24 = vmul.f32 %v6798_v16, %v6782_v50  ;;  %6372 = vmatpush3.bf16.msra.mxu0 %v6868_v22  ;;  %v6873_v50 = vld [vmem:[%s9813_s0 + $0x58] sm:$0xff] }
 0xf8d   :  { %6373 = vmatprep.subr.bf16.mxu0 %v6869_v10 }
 0xf8e   :  { %v6800_v53 = vpop.eup %6799  ;;  %v4467_v32 = vpack.c.bf16 %v4462_v56, %v4461_v24 }
 0xf8f   :  { %v6802_v61 = vpop.eup %6801  ;;  %v4464_v47 = vmul.f32 %v6800_v53, %v6784_v62 }
 0xf90   :  { %6367 = vmatprep.mubr.msk.bf16.mxu0 %vm1229_vm3, %v4467_v32  ;;  %v4463_v8 = vmul.f32 %v6802_v61, %v6786_v13  ;;  %6374 = vmatpush3.bf16.msra.mxu0 %v6869_v10 }
 0xf92   :  { %v4468_v2 = vpack.c.bf16 %v4464_v47, %v4463_v8 }
 0xf94   :  { %6368 = vmatmul.mubr.msk.bf16.gmra.mxu0 %vm1229_vm3, %v4468_v2 }
0x104b   :  { %v6365_v40 = vpop.f32.mrf.mxu0 }
0x104c   :  { %v4548_v58 = vadd.f32 %v6365_v40, %v9121_v15 }
0x104d   :  { %v4515_v23 = vpop.f32.mrf.mxu0 }
0x104e   :  { %v4546_v57 = vadd.f32 %v4515_v23, %v9123_v4  ;;  %v4556_v48 = vadd.f32 %v6870_v55, %v4548_v58  ;;  %v6872_v4 = vld [vmem:[%s9818_s5] ss:$0 sm:$0xff] }
0x104f   :  { %v6366_v54 = vpop.f32.mrf.mxu0 }
0x1050   :  { %v4554_v41 = vadd.f32 %v6871_v12, %v4546_v57  ;;  %v4549_v0 = vadd.f32 %v6366_v54, %v9125_v5  ;;  %v9179_v28 = vadd.f32 %v6872_v4, %v4556_v48 }
0x1051   :  { %v4518_v15 = vpop.f32.mrf.mxu0 }
0x1052   :  { %v9177_v43 = vadd.f32 %v6872_v4, %v4554_v41  ;;  %v4547_v37 = vadd.f32 %v4518_v15, %v4265_v60  ;;  %10082 = vst [vmem:[#allocation36_spill] sm:$0xff] %v9179_v28  ;;  %v4557_v7 = vadd.f32 %v6873_v50, %v4549_v0  ;;  %v4576_v31 = vsel %vm66_vm0, %v9179_v28, 0.0 }
0x1054   :  { %10081 = vst [vmem:[#allocation35_spill] sm:$0xff] %v9177_v43  ;;  %v4555_v5 = vadd.f32 %v6874_v36, %v4547_v37  ;;  %v6369_v62 = vpop.f32.mrf.mxu0  ;;  %v4570_v13 = vsel %vm66_vm0, %v9177_v43, 0.0  ;;  %v9193_v30 = vadd.f32 %v6872_v4, %v4557_v7 }
0x1055   :  { %v4552_v44 = vadd.f32 %v6369_v62, %v9129_v46  ;;  %4571 = vadd.xlane.f32.xlu0 %v4570_v13 }
0x1056   :  { %v9190_v63 = vadd.f32 %v6872_v4, %v4555_v5  ;;  %v4531_v45 = vpop.f32.mrf.mxu0  ;;  %10084 = vst [vmem:[#allocation51_spill] sm:$0xff] %v9193_v30  ;;  %v4579_v11 = vsel %vm66_vm0, %v9193_v30, 0.0 }
0x1057   :  { %v4550_v9 = vadd.f32 %v4531_v45, %v9131_v18  ;;  %v4560_v46 = vadd.f32 %v6875_v38, %v4552_v44 }
0x1058   :  { %10083 = vst [vmem:[#allocation37_spill] sm:$0xff] %v9190_v63  ;;  %v6370_v27 = vpop.f32.mrf.mxu0  ;;  %v4573_v34 = vsel %vm66_vm0, %v9190_v63, 0.0 }
0x1059   :  { %v4558_v39 = vadd.f32 %v6876_v59, %v4550_v9  ;;  %v4553_v18 = vadd.f32 %v6370_v27, %v9133_v3  ;;  %4577 = vadd.xlane.f32.xlu0 %v4576_v31  ;;  %4574 = vadd.xlane.f32.xlu1 %v4573_v34  ;;  %v9211_v14 = vadd.f32 %v6872_v4, %v4560_v46  ;;  %v6878_v3 = vld [vmem:[%s9813_s0 + $0x68] sm:$0xff] }
0x105a   :  { %v4534_v21 = vpop.f32.mrf.mxu0 }
0x105b   :  { %v9206_v33 = vadd.f32 %v6872_v4, %v4558_v39  ;;  %v4551_v25 = vadd.f32 %v4534_v21, %v9135_v49  ;;  %10086 = vst [vmem:[#allocation52_spill] sm:$0xff] %v9211_v14  ;;  %v4561_v51 = vadd.f32 %v6877_v19, %v4553_v18  ;;  %v4588_v16 = vsel %vm66_vm0, %v9211_v14, 0.0 }
0x105d   :  { %10085 = vst [vmem:[#allocation38_spill] sm:$0xff] %v9206_v33  ;;  %v4559_v52 = vadd.f32 %v6878_v3, %v4551_v25  ;;  %4580 = vadd.xlane.f32.xlu1 %v4579_v11  ;;  %v4582_v42 = vsel %vm66_vm0, %v9206_v33, 0.0  ;;  %v9223_v26 = vadd.f32 %v6872_v4, %v4561_v51 }
0x105e   :  { %4583 = vadd.xlane.f32.xlu0 %v4582_v42 }
0x105f   :  { %v9221_v49 = vadd.f32 %v6872_v4, %v4559_v52  ;;  %10088 = vst [vmem:[#allocation39_spill] sm:$0xff] %v9223_v26  ;;  %v4591_v24 = vsel %vm66_vm0, %v9223_v26, 0.0 }
0x1061   :  { %10087 = vst [vmem:[#allocation53_spill] sm:$0xff] %v9221_v49  ;;  %v4585_v56 = vsel %vm66_vm0, %v9221_v49, 0.0 }
0x1062   :  { %4589 = vadd.xlane.f32.xlu0 %v4588_v16  ;;  %4586 = vadd.xlane.f32.xlu1 %v4585_v56 }
0x1066   :  { %4592 = vadd.xlane.f32.xlu1 %v4591_v24 }
0x10de   :  { %v4572_v22 = vpop.xlane.xlu0 %4571 }
0x10df   :  { %v4594_v10 = vmul.f32 0.03125, %v4572_v22 }
0x10e1   :  { %v9232_v53 = vsub.f32 %v9177_v43, %v4594_v10 }
0x10e2   :  { %v4575_v32 = vpop.xlane.xlu1 %4574  ;;  %v4578_v61 = vpop.xlane.xlu0 %4577 }
0x10e3   :  { %v4595_v47 = vmul.f32 0.03125, %v4575_v32  ;;  %v4596_v8 = vmul.f32 0.03125, %v4578_v61  ;;  %v4610_v2 = vmul.f32 %v9232_v53, %v9232_v53 }
0x10e5   :  { %v9237_v40 = vsub.f32 %v9190_v63, %v4595_v47  ;;  %v9240_v58 = vsub.f32 %v9179_v28, %v4596_v8  ;;  %v4618_v23 = vsel %vm66_vm0, %v4610_v2, 0.0 }
0x10e6   :  { %v4581_v57 = vpop.xlane.xlu1 %4580  ;;  %4619 = vadd.xlane.f32.xlu0 %v4618_v23 }
0x10e7   :  { %v4597_v54 = vmul.f32 0.03125, %v4581_v57  ;;  %v4584_v60 = vpop.xlane.xlu0 %4583  ;;  %v4611_v55 = vmul.f32 %v9237_v40, %v9237_v40  ;;  %v4612_v48 = vmul.f32 %v9240_v58, %v9240_v58 }
0x10e8   :  { %v4598_v12 = vmul.f32 0.03125, %v4584_v60 }
0x10e9   :  { %v9248_v41 = vsub.f32 %v9193_v30, %v4597_v54  ;;  %v4621_v0 = vsel %vm66_vm0, %v4611_v55, 0.0  ;;  %v4624_v15 = vsel %vm66_vm0, %v4612_v48, 0.0 }
0x10ea   :  { %v9253_v4 = vsub.f32 %v9206_v33, %v4598_v12  ;;  %4622 = vadd.xlane.f32.xlu1 %v4621_v0  ;;  %4625 = vadd.xlane.f32.xlu0 %v4624_v15 }
0x10eb   :  { %v4587_v37 = vpop.xlane.xlu1 %4586  ;;  %v4590_v50 = vpop.xlane.xlu0 %4589  ;;  %v4613_v7 = vmul.f32 %v9248_v41, %v9248_v41 }
0x10ec   :  { %v4599_v36 = vmul.f32 0.03125, %v4587_v37  ;;  %v4600_v5 = vmul.f32 0.03125, %v4590_v50  ;;  %v4614_v62 = vmul.f32 %v9253_v4, %v9253_v4 }
0x10ed   :  { %v4627_v13 = vsel %vm66_vm0, %v4613_v7, 0.0 }
0x10ee   :  { %v9261_v44 = vsub.f32 %v9221_v49, %v4599_v36  ;;  %v9264_v45 = vsub.f32 %v9211_v14, %v4600_v5  ;;  %4628 = vadd.xlane.f32.xlu1 %v4627_v13  ;;  %v4630_v9 = vsel %vm66_vm0, %v4614_v62, 0.0  ;;  %v6879_v36 = vld [vmem:[%s9821_s6] ss:$0 sm:$0xff] }
0x10ef   :  { %v4593_v27 = vpop.xlane.xlu1 %4592  ;;  %4631 = vadd.xlane.f32.xlu0 %v4630_v9 }
0x10f0   :  { %v4601_v31 = vmul.f32 0.03125, %v4593_v27  ;;  %v4615_v34 = vmul.f32 %v9261_v44, %v9261_v44  ;;  %v4616_v38 = vmul.f32 %v9264_v45, %v9264_v45 }
0x10f2   :  { %v9272_v46 = vsub.f32 %v9223_v26, %v4601_v31  ;;  %v4633_v59 = vsel %vm66_vm0, %v4615_v34, 0.0  ;;  %v4636_v39 = vsel %vm66_vm0, %v4616_v38, 0.0 }
0x10f3   :  { %4634 = vadd.xlane.f32.xlu1 %v4633_v59  ;;  %4637 = vadd.xlane.f32.xlu0 %v4636_v39 }
0x10f4   :  { %v4617_v18 = vmul.f32 %v9272_v46, %v9272_v46 }
0x10f6   :  { %v4639_v21 = vsel %vm66_vm0, %v4617_v18, 0.0 }
0x10f7   :  { %4640 = vadd.xlane.f32.xlu1 %v4639_v21 }
0x116f   :  { %v4620_v25 = vpop.xlane.xlu0 %4619 }
0x1170   :  { %v4642_v11 = vmul.f32 0.03125, %v4620_v25 }
0x1172   :  { %v4650_v19 = vadd.f32 1e-05, %v4642_v11 }
0x1173   :  { %v4623_v51 = vpop.xlane.xlu1 %4622  ;;  %v4626_v3 = vpop.xlane.xlu0 %4625 }
0x1174   :  { %6803 = vrsqrt.f32 %v4650_v19  ;;  %v4643_v52 = vmul.f32 0.03125, %v4623_v51  ;;  %v4644_v42 = vmul.f32 0.03125, %v4626_v3 }
0x1176   :  { %v4651_v16 = vadd.f32 1e-05, %v4643_v52  ;;  %v4652_v56 = vadd.f32 1e-05, %v4644_v42 }
0x1177   :  { %v4629_v24 = vpop.xlane.xlu1 %4628 }
0x1178   :  { %6805 = vrsqrt.f32 %v4651_v16  ;;  %v4645_v22 = vmul.f32 0.03125, %v4629_v24  ;;  %v4632_v10 = vpop.xlane.xlu0 %4631 }
0x1179   :  { %6807 = vrsqrt.f32 %v4652_v56  ;;  %v4646_v32 = vmul.f32 0.03125, %v4632_v10 }
0x117a   :  { %v4653_v61 = vadd.f32 1e-05, %v4645_v22 }
0x117b   :  { %v4654_v47 = vadd.f32 1e-05, %v4646_v32 }
0x117c   :  { %6809 = vrsqrt.f32 %v4653_v61  ;;  %v4635_v8 = vpop.xlane.xlu1 %4634  ;;  %v4638_v2 = vpop.xlane.xlu0 %4637 }
0x117d   :  { %6811 = vrsqrt.f32 %v4654_v47  ;;  %v4647_v23 = vmul.f32 0.03125, %v4635_v8  ;;  %v4648_v57 = vmul.f32 0.03125, %v4638_v2  ;;  %v4781_v47 = vld [vmem:[#allocation2 + $0x98] sm:$0x1]  ;;  %v10090_v8 = vld [vmem:[#allocation13_spill] sm:$0xff] }
0x117f   :  { %v4655_v54 = vadd.f32 1e-05, %v4647_v23  ;;  %v4656_v60 = vadd.f32 1e-05, %v4648_v57  ;;  %v4790_v23 = vld [vmem:[#allocation2 + $0x8] sm:$0x1] }
0x1180   :  { %v4641_v55 = vpop.xlane.xlu1 %4640  ;;  %v4784_v57 = vld [vmem:[#allocation2 + $0x28] sm:$0x1] }
0x1181   :  { %v6804_v48 = vpop.eup %6803  ;;  %6813 = vrsqrt.f32 %v4655_v54  ;;  %v4649_v12 = vmul.f32 0.03125, %v4641_v55  ;;  %v10091_v54 = vld [vmem:[#allocation11_spill] sm:$0xff] }
0x1182   :  { %6815 = vrsqrt.f32 %v4656_v60  ;;  %v4666_v0 = vmul.f32 %v6804_v48, %v9232_v53  ;;  %v6880_v53 = vld [vmem:[%s9822_s7] ss:$0 sm:$0xff]  ;;  %v4868_v55 = vmul.f32 %v4781_v47, %v10091_v54  ;;  %v4957_v48 = vld [vmem:[#allocation2 + $0x28] sm:$0x1]  ;;  %v4802_v47 = vld [vmem:[#allocation2 + $0x30] sm:$0x1] }
0x1183   :  { %v4657_v15 = vadd.f32 1e-05, %v4649_v12  ;;  %v4960_v12 = vld [vmem:[#allocation2 + $0x48] sm:$0x1] }
0x1184   :  { %v4674_v5 = vmul.f32 %v6879_v36, %v4666_v0  ;;  %v10092_v0 = vld [vmem:[#allocation14_spill] sm:$0xff] }
0x1185   :  { %v6806_v37 = vpop.eup %6805  ;;  %6817 = vrsqrt.f32 %v4657_v15 }
0x1186   :  { %v6808_v50 = vpop.eup %6807  ;;  %v4667_v7 = vmul.f32 %v6806_v37, %v9237_v40  ;;  %v4682_v38 = vadd.f32 %v6880_v53, %v4674_v5  ;;  %v9309_v37 = vmul.f32 %v4790_v23, %v10091_v54  ;;  %v9318_v5 = vmul.f32 %v4957_v48, %v8081_v20 }
0x1187   :  { %v4668_v62 = vmul.f32 %v6808_v50, %v9240_v58 }
0x1188   :  { %v4675_v13 = vmul.f32 %v6879_v36, %v4667_v7 }
0x1189   :  { %v6810_v9 = vpop.eup %6809  ;;  %v4676_v31 = vmul.f32 %v6879_v36, %v4668_v62  ;;  %v9321_v62 = vmul.f32 %v4960_v12, %v8081_v20 }
0x118a   :  { %v6812_v27 = vpop.eup %6811  ;;  %v4669_v34 = vmul.f32 %v6810_v9, %v9248_v41  ;;  %v4683_v59 = vadd.f32 %v6880_v53, %v4675_v13  ;;  %v4900_v9 = vrot.slane %v4868_v55, 2 }
0x118b   :  { %v4670_v40 = vmul.f32 %v6812_v27, %v9253_v4  ;;  %v4684_v25 = vadd.f32 %v6880_v53, %v4676_v31 }
0x118c   :  { %v4677_v39 = vmul.f32 %v6879_v36, %v4669_v34  ;;  %v4690_v18 = vpack.c.bf16 %v4683_v59, %v4682_v38 }
0x118d   :  { %v4678_v51 = vmul.f32 %v6879_v36, %v4670_v40 }
0x118e   :  { %v6814_v21 = vpop.eup %6813  ;;  %v4685_v11 = vadd.f32 %v6880_v53, %v4677_v39  ;;  %6375 = vmatprep.mubr.msk.bf16.mxu0 %vm66_vm0, %v4690_v18  ;;  %v5149_v39 = vld [vmem:[#allocation2 + $0x48] sm:$0x1] }
0x118f   :  { %v6816_v58 = vpop.eup %6815  ;;  %v4671_v19 = vmul.f32 %v6814_v21, %v9261_v44  ;;  %v4686_v16 = vadd.f32 %v6880_v53, %v4678_v51  ;;  %v5152_v18 = vld [vmem:[#allocation2 + $0x8] sm:$0x1] }
0x1190   :  { %v4691_v41 = vpack.c.bf16 %v4685_v11, %v4684_v25  ;;  %v4672_v3 = vmul.f32 %v6816_v58, %v9264_v45  ;;  %v9297_v45 = vld [vmem:[#allocation2 + $0x58] sm:$0xff]  ;;  %v4963_v21 = vld [vmem:[#allocation2 + $0x8] sm:$0x1]  ;;  %v4966_v25 = vld [vmem:[#allocation2 + $0x40] sm:$0x1] }
0x1191   :  { %v4679_v52 = vmul.f32 %v6879_v36, %v4671_v19  ;;  %10089 = vst [vmem:[#allocation40_spill] sm:$0xff] %v9297_v45  ;;  %v4819_v2 = vmul.f32 %v9297_v45, %v10090_v8  ;;  %v4867_v60 = vmul.f32 %v9297_v45, %v10091_v54  ;;  %v9306_v15 = vmul.f32 %v9297_v45, %v10092_v0  ;;  %v5155_v11 = vld [vmem:[#allocation2 + $0x40] sm:$0x1] }
0x1192   :  { %v6818_v42 = vpop.eup %6817  ;;  %6376 = vmatmul.mubr.msk.bf16.vlgmr.msra.gmra.mxu0 %vm66_vm0, %v4691_v41  ;;  %v4680_v24 = vmul.f32 %v6879_v36, %v4672_v3  ;;  %v4793_v58 = vld [vmem:[#allocation2 + $0x40] sm:$0x1]  ;;  %v9332_v51 = vmul.f32 %v9297_v45, %v8102_v6  ;;  %v5158_v41 = vld [vmem:[#allocation2 + $0x50] sm:$0x1]  ;;  %v9353_v23 = vmul.f32 %v5155_v11, %v8079_v17 }
0x1193   :  { %v4673_v4 = vmul.f32 %v6818_v42, %v9272_v46  ;;  %v4687_v56 = vadd.f32 %v6880_v53, %v4679_v52  ;;  %v4787_v46 = vld [vmem:[#allocation2 + $0x48] sm:$0x1]  ;;  %v4835_v50 = vrot.slane %v4819_v2, 1  ;;  %v4899_v13 = vrot.slane %v4867_v60, 2  ;;  %v4796_v3 = vld [vmem:[#allocation2 + $0x50] sm:$0x1] }
0x1194   :  { %v4688_v32 = vadd.f32 %v6880_v53, %v4680_v24  ;;  %v9312_v7 = vmul.f32 %v4787_v46, %v10091_v54  ;;  %v4969_v52 = vld [vmem:[#allocation2 + $0x50] sm:$0x1]  ;;  %v9356_v46 = vmul.f32 %v5158_v41, %v8079_v17  ;;  %v9362_v60 = vmul.f32 %v4796_v3, %v10091_v54 }
0x1195   :  { %v4692_v22 = vpack.c.bf16 %v4687_v56, %v4686_v16  ;;  %v4681_v10 = vmul.f32 %v6879_v36, %v4673_v4  ;;  %v9315_v36 = vmul.f32 %v4784_v57, %v10091_v54  ;;  %v4851_v31 = vadd.f32 %v4835_v50, %v9306_v15  ;;  %v4972_v16 = vld [vmem:[#allocation2 + $0x10] sm:$0x1] }
0x1196   :  { %v4901_v40 = vsel %vm2630_vm4, %v4899_v13, %v4900_v9  ;;  %v9338_v4 = vmul.f32 %v9297_v45, %v8123_v35  ;;  %v5161_v56 = vld [vmem:[#allocation2 + $0x10] sm:$0x1]  ;;  %v9359_v57 = vmul.f32 %v4793_v58, %v10091_v54  ;;  %10093 = vst [vmem:[#allocation41_spill] sm:$0xff] %v9362_v60  ;;  %v9368_v48 = vmul.f32 %v4969_v52, %v8081_v20  ;;  %v4978_v52 = vld [vmem:[#allocation2 + $0xe8] sm:$0x1] }
0x1197   :  { %6379 = vmatprep.mubr.msk.bf16.mxu0 %vm66_vm0, %v4692_v22  ;;  %v4689_v61 = vadd.f32 %v6880_v53, %v4681_v10  ;;  %v4939_v19 = vadd.f32 %v4899_v13, %v4851_v31  ;;  %v9334_v42 = vadd.f32 %v4901_v40, %v4851_v31  ;;  %v5164_v24 = vld [vmem:[#allocation2 + $0x30] sm:$0x1]  ;;  %v9341_v22 = vmul.f32 %v5149_v39, %v8079_v17 }
0x1198   :  { %v9344_v10 = vmul.f32 %v5152_v18, %v8079_v17  ;;  %v4975_v2 = vld [vmem:[#allocation2 + $0x30] sm:$0x1]  ;;  %10094 = vst [vmem:[#allocation42_spill] sm:$0xff] %v9368_v48  ;;  %v9371_v12 = vmul.f32 %v4972_v16, %v8081_v20  ;;  %v9374_v50 = vmul.f32 %v5164_v24, %v8079_v17  ;;  %v9377_v13 = vmul.f32 %v5161_v56, %v8079_v17  ;;  %v9399_v16 = vld [vmem:[%s9824_s9] ss:$0 sm:$0xff] }
0x1199   :  { %v4693_v44 = vpack.c.bf16 %v4689_v61, %v4688_v32  ;;  %v9347_v32 = vmul.f32 %v4963_v21, %v8081_v20  ;;  %v9350_v61 = vmul.f32 %v4966_v25, %v8081_v20  ;;  %v9365_v55 = vadd.f32 %v9332_v51, %v4939_v19 }
0x119a   :  { %10095 = vst [vmem:[#allocation44_spill] sm:$0xff] %v9371_v12  ;;  %10096 = vst [vmem:[#allocation43_spill] sm:$0xff] %v9374_v50  ;;  %v9383_v31 = vmul.f32 %v4802_v47, %v10091_v54  ;;  %v9386_v40 = vmul.f32 %v4975_v2, %v8081_v20  ;;  %v9416_v24 = vmul.f32 %v4978_v52, %v8081_v20 }
0x119b   :  { %6380 = vmatmul.mubr.msk.bf16.gmra.mxu0 %vm66_vm0, %v4693_v44  ;;  %v4799_v44 = vld [vmem:[#allocation2 + $0x10] sm:$0x1]  ;;  %10097 = vst [vmem:[#allocation56_spill] sm:$0xff] %v9377_v13  ;;  %v9420_v47 = vmul.f32 %v9297_v45, %v8128_v29 }
0x119c   :  { %v9380_v9 = vmul.f32 %v4799_v44, %v10091_v54  ;;  %10099 = vst [vmem:[#allocation55_spill] sm:$0xff] %v9383_v31  ;;  %10100 = vst [vmem:[#allocation58_spill] sm:$0xff] %v9386_v40 }
0x119d   :  { %10101 = vst [vmem:[#allocation54_spill] sm:$0xff] %v9416_v24  ;;  %10102 = vst [vmem:[#allocation12_spill] sm:$0xff] %v9420_v47 }
0x119e   :  { %10098 = vst [vmem:[#allocation57_spill] sm:$0xff] %v9380_v9 }
0x1252   :  { %v6377_v11 = vpop.f32.mrf.mxu0 }
0x1253   :  { %v9402_v56 = vadd.f32 %v9399_v16, %v6377_v11 }
0x1254   :  { %v4740_v2 = vpop.f32.mrf.mxu0 }
0x1255   :  { %v4822_v25 = vmul.f32 %v9402_v56, %v10090_v8  ;;  %v4873_v11 = vmul.f32 %v9402_v56, %v10091_v54  ;;  %v4810_v3 = vmul.f32 %v9402_v56, %v10092_v0  ;;  %v9426_v19 = vmul.f32 %v9402_v56, %v8121_v1 }
0x1256   :  { %v9430_v58 = vmul.f32 %v9402_v56, %v8081_v20  ;;  %v4741_v41 = vadd.f32 %v9399_v16, %v4740_v2  ;;  %v6378_v44 = vpop.f32.mrf.mxu0  ;;  %v9435_v18 = vmul.f32 %v9402_v56, %v8102_v6  ;;  %v9444_v53 = vmul.f32 %v9402_v56, %v8123_v35 }
0x1257   :  { %v4838_v52 = vrot.slane %v4822_v25, 1  ;;  %v4908_v21 = vrot.slane %v4873_v11, 2  ;;  %v9438_v39 = vadd.f32 %v9399_v16, %v6378_v44  ;;  %v9448_v25 = vmul.f32 %v9402_v56, %v8128_v29 }
0x1258   :  { %v4820_v38 = vmul.f32 %v4741_v41, %v10090_v8  ;;  %v4743_v34 = vpop.f32.mrf.mxu0  ;;  %v10103_v44 = vrot.slane %v9309_v37, 2  ;;  %v4806_v33 = vmul.f32 %v4741_v41, %v10092_v0  ;;  %v4869_v37 = vmul.f32 %v4741_v41, %v10091_v54 }
0x1259   :  { %v4857_v2 = vadd.f32 %v4838_v52, %v9306_v15  ;;  %v4858_v11 = vadd.f32 %v4838_v52, %v4810_v3  ;;  %v9457_v49 = vmul.f32 %v9438_v39, %v8121_v1  ;;  %v4744_v26 = vadd.f32 %v9399_v16, %v4743_v34 }
0x125a   :  { %v4910_v59 = vsel %vm2630_vm4, %v4908_v21, %v10103_v44  ;;  %v4836_v14 = vrot.slane %v4820_v38, 1  ;;  %v4986_v63 = vmul.f32 %v9438_v39, %v8102_v6  ;;  %v9465_v3 = vmul.f32 %v9438_v39, %v8081_v20 }
0x125b   :  { %v6381_v52 = vpop.f32.mrf.mxu0  ;;  %v4980_v44 = vmul.f32 %v4741_v41, %v8102_v6  ;;  %v4945_v27 = vadd.f32 %v4908_v21, %v4857_v2  ;;  %v4946_v30 = vadd.f32 %v4910_v59, %v4858_v11  ;;  %v4821_v34 = vmul.f32 %v4744_v26, %v10090_v8 }
0x125c   :  { %v4808_v38 = vmul.f32 %v4744_v26, %v10092_v0  ;;  %v4871_v28 = vmul.f32 %v4744_v26, %v10091_v54  ;;  %v9474_v40 = vadd.f32 %v9399_v16, %v6381_v52  ;;  %v4853_v24 = vadd.f32 %v4836_v14, %v9306_v15 }
0x125d   :  { %v4756_v47 = vpop.f32.mrf.mxu0  ;;  %v4837_v31 = vrot.slane %v4821_v34, 1  ;;  %v4854_v21 = vadd.f32 %v4836_v14, %v4806_v33  ;;  %v4902_v59 = vrot.slane %v4869_v37, 2  ;;  %v4982_v43 = vmul.f32 %v4744_v26, %v8102_v6 }
0x125e   :  { %10104 = vst [vmem:[#allocation31_spill] sm:$0xff] %v9474_v40  ;;  %v9478_v9 = vadd.f32 %v9399_v16, %v4756_v47  ;;  %v4905_v2 = vrot.slane %v4871_v28, 2  ;;  %v4996_v45 = vadd.f32 %v4980_v44, %v9334_v42  ;;  %v5011_v50 = vmul.f32 %v4741_v41, %v8121_v1 }
0x125f   :  { %v6382_v11 = vpop.f32.mrf.mxu0  ;;  %v4855_v52 = vadd.f32 %v4837_v31, %v9306_v15  ;;  %v4856_v13 = vadd.f32 %v4837_v31, %v4808_v38  ;;  %v10106_v34 = vrot.slane %v9315_v36, 2  ;;  %v10107_v33 = vrot.slane %v9312_v7, 2 }
0x1260   :  { %v9485_v12 = vadd.f32 %v9399_v16, %v6382_v11  ;;  %v4941_v37 = vadd.f32 %v4902_v59, %v4853_v24  ;;  %v5012_v42 = vmul.f32 %v4744_v26, %v8121_v1  ;;  %v5002_v44 = vadd.f32 %v4986_v63, %v4946_v30 }
0x1261   :  { %v4904_v47 = vsel %vm2630_vm4, %v4902_v59, %v10106_v34  ;;  %v4907_v28 = vsel %vm2630_vm4, %v4905_v2, %v10107_v33  ;;  %v4759_v14 = vpop.f32.mrf.mxu0  ;;  %v4943_v40 = vadd.f32 %v4905_v2, %v4855_v52  ;;  %v5027_v38 = vrot.slane %v5011_v50, 1 }
0x1262   :  { %10105 = vst [vmem:[#allocation45_spill] sm:$0xff] %v9485_v12  ;;  %v4942_v48 = vadd.f32 %v4904_v47, %v4854_v21  ;;  %v9495_v31 = vadd.f32 %v9399_v16, %v4759_v14  ;;  %v4997_v11 = vadd.f32 %v9332_v51, %v4941_v37  ;;  %v5028_v12 = vrot.slane %v5012_v42, 1 }
0x1263   :  { %v5059_v34 = vmul.f32 %v4741_v41, %v8081_v20  ;;  %v4944_v7 = vadd.f32 %v4907_v28, %v4856_v13  ;;  %v5043_v33 = vadd.f32 %v5027_v38, %v9365_v55  ;;  %v5044_v60 = vadd.f32 %v5027_v38, %v4996_v45 }
0x1264   :  { %v4998_v36 = vadd.f32 %v4982_v43, %v4942_v48  ;;  %v5061_v24 = vmul.f32 %v4744_v26, %v8081_v20  ;;  %v5045_v21 = vadd.f32 %v5028_v12, %v4997_v11  ;;  %v5203_v30 = vmul.f32 %v4744_v26, %v8128_v29 }
0x1265   :  { %v5091_v63 = vrot.slane %v5059_v34, 2  ;;  %v5172_v50 = vmul.f32 %v4744_v26, %v8123_v35  ;;  %v5251_v2 = vmul.f32 %v4744_v26, %v8079_v17  ;;  %v5253_v43 = vmul.f32 %v9402_v56, %v8079_v17 }
0x1266   :  { %v5046_v59 = vadd.f32 %v5028_v12, %v4998_v36  ;;  %v5094_v16 = vrot.slane %v5061_v24, 2  ;;  %v10108_v48 = vrot.slane %v9318_v5, 2  ;;  %v5220_v13 = vrot.slane %v9448_v25, 1 }
0x1267   :  { %v5131_v45 = vadd.f32 %v5091_v63, %v5043_v33  ;;  %v4999_v12 = vadd.f32 %v9332_v51, %v4943_v40  ;;  %v10109_v41 = vrot.slane %v9321_v62, 2  ;;  %v5219_v14 = vrot.slane %v5203_v30, 1 }
0x1268   :  { %v5093_v55 = vsel %vm2630_vm4, %v5091_v63, %v10108_v48  ;;  %v5133_v28 = vadd.f32 %v5094_v16, %v5045_v21  ;;  %v5283_v56 = vrot.slane %v5251_v2, 2  ;;  %v5000_v5 = vadd.f32 %v9435_v18, %v4944_v7 }
0x1269   :  { %v5096_v52 = vsel %vm2630_vm4, %v5094_v16, %v10109_v41  ;;  %v5132_v47 = vadd.f32 %v5093_v55, %v5044_v60  ;;  %v5187_v37 = vadd.f32 %v9338_v4, %v5131_v45  ;;  %v5286_v11 = vrot.slane %v5253_v43, 2 }
0x126a   :  { %v5134_v26 = vadd.f32 %v5096_v52, %v5046_v59  ;;  %v5189_v38 = vadd.f32 %v9338_v4, %v5133_v28  ;;  %v5001_v25 = vadd.f32 %v9332_v51, %v4945_v27  ;;  %v5100_v40 = vrot.slane %v9465_v3, 2 }
0x126b   :  { %v5188_v42 = vadd.f32 %v5172_v50, %v5132_v47  ;;  %v5235_v36 = vadd.f32 %v5219_v14, %v5187_v37  ;;  %v10110_v60 = vrot.slane %v9426_v19, 1  ;;  %v10112_v18 = vrot.slane %v9457_v49, 1 }
0x126c   :  { %v5190_v62 = vadd.f32 %v9444_v53, %v5134_v26  ;;  %v5237_v24 = vadd.f32 %v5220_v13, %v5189_v38  ;;  %v10113_v30 = vrot.slane %v9341_v22, 2  ;;  %v10115_v50 = vrot.slane %v9344_v10, 2  ;;  %v9542_v22 = vld [vmem:[%s9825_s11] ss:$0 sm:$0xff] }
0x126d   :  { %v5047_v34 = vadd.f32 %v10110_v60, %v4999_v12  ;;  %v5236_v33 = vadd.f32 %v5219_v14, %v5188_v42  ;;  %v10111_v21 = vmov %v10110_v60  ;;  %v5049_v7 = vadd.f32 %v10112_v18, %v5001_v25 }
0x126e   :  { %v5048_v59 = vadd.f32 %v10111_v21, %v5000_v5  ;;  %v5238_v63 = vadd.f32 %v5220_v13, %v5190_v62  ;;  %v5285_v27 = vsel %vm2630_vm4, %v5283_v56, %v10113_v30  ;;  %v5323_v3 = vadd.f32 %v5283_v56, %v5235_v36 }
0x126f   :  { %v10114_v53 = vmov %v10112_v18  ;;  %v5288_v2 = vsel %vm2630_vm4, %v5286_v11, %v10115_v50  ;;  %v5324_v43 = vadd.f32 %v5285_v27, %v5236_v33  ;;  %v5325_v48 = vadd.f32 %v5286_v11, %v5237_v24 }
0x1270   :  { %v5050_v16 = vadd.f32 %v10114_v53, %v5002_v44  ;;  %v10116_v19 = vrot.slane %v9347_v32, 2  ;;  %v10117_v55 = vrot.slane %v9430_v58, 2  ;;  %v5326_v13 = vadd.f32 %v5288_v2, %v5238_v63 }
0x1271   :  { %v5339_v49 = vadd.f32 %v9542_v22, %v5323_v3  ;;  %v10118_v10 = vrot.slane %v9350_v61, 2  ;;  %v5340_v32 = vadd.f32 %v9542_v22, %v5324_v43  ;;  %v5341_v52 = vadd.f32 %v9542_v22, %v5325_v48 }
0x1272   :  { %v5099_v45 = vsel %vm2630_vm4, %v10117_v55, %v10116_v19  ;;  %v10119_v12 = vmov %v10117_v55  ;;  %v5137_v28 = vadd.f32 %v5100_v40, %v5049_v7  ;;  %v5342_v14 = vadd.f32 %v9542_v22, %v5326_v13 }
0x1273   :  { %v5102_v44 = vsel %vm2630_vm4, %v5100_v40, %v10118_v10  ;;  %v5135_v41 = vadd.f32 %v10119_v12, %v5047_v34  ;;  %v5136_v47 = vadd.f32 %v5099_v45, %v5048_v59  ;;  %v5371_v26 = vmul.f32 0.044715, %v5339_v49 }
0x1274   :  { %v5138_v37 = vadd.f32 %v5102_v44, %v5050_v16  ;;  %v5176_v56 = vmul.f32 %v9438_v39, %v8123_v35  ;;  %v9555_v5 = vmul.f32 0.5, %v5339_v49  ;;  %v5372_v61 = vmul.f32 0.044715, %v5340_v32 }
0x1275   :  { %v5373_v42 = vmul.f32 0.044715, %v5341_v52  ;;  %v5178_v58 = vmul.f32 %v9478_v9, %v8123_v35  ;;  %v9559_v38 = vmul.f32 0.5, %v5340_v32  ;;  %v5374_v11 = vmul.f32 0.044715, %v5342_v14 }
0x1276   :  { %v5387_v25 = vmul.f32 %v5371_v26, %v5339_v49  ;;  %v5191_v40 = vadd.f32 %v9338_v4, %v5135_v41  ;;  %v5388_v62 = vmul.f32 %v5372_v61, %v5340_v32  ;;  %v5192_v60 = vadd.f32 %v5176_v56, %v5136_v47 }
0x1277   :  { %v5389_v36 = vmul.f32 %v5373_v42, %v5341_v52  ;;  %v5193_v34 = vadd.f32 %v9338_v4, %v5137_v28  ;;  %v5390_v33 = vmul.f32 %v5374_v11, %v5342_v14  ;;  %v5194_v21 = vadd.f32 %v5178_v58, %v5138_v37 }
0x1278   :  { %v5403_v24 = vmul.f32 %v5387_v25, %v5339_v49  ;;  %v5205_v59 = vmul.f32 %v9438_v39, %v8128_v29  ;;  %v5404_v18 = vmul.f32 %v5388_v62, %v5340_v32  ;;  %v5206_v63 = vmul.f32 %v9478_v9, %v8128_v29 }
0x1279   :  { %v5405_v7 = vmul.f32 %v5389_v36, %v5341_v52  ;;  %v5255_v30 = vmul.f32 %v9438_v39, %v8079_v17  ;;  %v5406_v27 = vmul.f32 %v5390_v33, %v5342_v14  ;;  %v5257_v16 = vmul.f32 %v9478_v9, %v8079_v17 }
0x127a   :  { %v5419_v3 = vadd.f32 %v5403_v24, %v5339_v49  ;;  %v5221_v53 = vrot.slane %v5205_v59, 1  ;;  %v5420_v50 = vadd.f32 %v5404_v18, %v5340_v32  ;;  %v5222_v43 = vrot.slane %v5206_v63, 1 }
0x127b   :  { %v5421_v2 = vadd.f32 %v5405_v7, %v5341_v52  ;;  %v5289_v48 = vrot.slane %v5255_v30, 2  ;;  %v5422_v19 = vadd.f32 %v5406_v27, %v5342_v14  ;;  %v10120_v49 = vrot.slane %v9353_v23, 2 }
0x127c   :  { %v5435_v55 = vmul.f32 0.7978846, %v5419_v3  ;;  %v5239_v45 = vadd.f32 %v5221_v53, %v5191_v40  ;;  %v5240_v13 = vadd.f32 %v5221_v53, %v5192_v60  ;;  %v5436_v10 = vmul.f32 0.7978846, %v5420_v50 }
0x127d   :  { %v5437_v44 = vmul.f32 0.7978846, %v5421_v2  ;;  %v5241_v12 = vadd.f32 %v5222_v43, %v5193_v34  ;;  %v5242_v41 = vadd.f32 %v5222_v43, %v5194_v21  ;;  %v5438_v47 = vmul.f32 0.7978846, %v5422_v19 }
0x127e   :  { %6819 = vtanh.f32 %v5435_v55  ;;  %v5291_v28 = vsel %vm2630_vm4, %v5289_v48, %v10120_v49  ;;  %v5292_v26 = vrot.slane %v5257_v16, 2  ;;  %v9574_v37 = vmul.f32 0.5, %v5341_v52 }
0x127f   :  { %6821 = vtanh.f32 %v5436_v10  ;;  %v5327_v32 = vadd.f32 %v5289_v48, %v5239_v45  ;;  %v5328_v56 = vadd.f32 %v5291_v28, %v5240_v13  ;;  %v9576_v61 = vmul.f32 0.5, %v5342_v14 }
0x1280   :  { %6823 = vtanh.f32 %v5437_v44  ;;  %v10121_v42 = vrot.slane %v9356_v46, 2  ;;  %v5329_v11 = vadd.f32 %v5292_v26, %v5241_v12  ;;  %v4812_v62 = vmul.f32 %v9438_v39, %v10092_v0 }
0x1281   :  { %6825 = vtanh.f32 %v5438_v47  ;;  %v5343_v23 = vadd.f32 %v9542_v22, %v5327_v32  ;;  %v5344_v40 = vadd.f32 %v9542_v22, %v5328_v56  ;;  %v4823_v14 = vmul.f32 %v9438_v39, %v10090_v8 }
0x1282   :  { %v5294_v58 = vsel %vm2630_vm4, %v5292_v26, %v10121_v42  ;;  %v5345_v52 = vadd.f32 %v9542_v22, %v5329_v11  ;;  %v4824_v46 = vmul.f32 %v9478_v9, %v10090_v8  ;;  %v4814_v34 = vmul.f32 %v9478_v9, %v10092_v0 }
0x1283   :  { %v5330_v25 = vadd.f32 %v5294_v58, %v5242_v41  ;;  %v5375_v60 = vmul.f32 0.044715, %v5343_v23  ;;  %v4875_v33 = vmul.f32 %v9438_v39, %v10091_v54  ;;  %v9597_v24 = vmul.f32 0.5, %v5343_v23 }
0x1284   :  { %v5376_v21 = vmul.f32 0.044715, %v5344_v40  ;;  %v5377_v59 = vmul.f32 0.044715, %v5345_v52  ;;  %v4839_v18 = vrot.slane %v4823_v14, 1  ;;  %v9599_v7 = vmul.f32 0.5, %v5344_v40 }
0x1285   :  { %v9591_v36 = vadd.f32 %v9542_v22, %v5330_v25  ;;  %v5391_v30 = vmul.f32 %v5375_v60, %v5343_v23  ;;  %v4840_v27 = vrot.slane %v4824_v46, 1  ;;  %v9602_v3 = vmul.f32 0.5, %v5345_v52  ;;  %v10123_v60 = vld [vmem:[#allocation41_spill] sm:$0xff] }
0x1286   :  { %v5392_v53 = vmul.f32 %v5376_v21, %v5344_v40  ;;  %v5393_v16 = vmul.f32 %v5377_v59, %v5345_v52  ;;  %v4859_v50 = vadd.f32 %v4839_v18, %v9306_v15  ;;  %v4860_v43 = vadd.f32 %v4839_v18, %v4812_v62 }
0x1287   :  { %v5378_v63 = vmul.f32 0.044715, %v9591_v36  ;;  %v5407_v39 = vmul.f32 %v5391_v30, %v5343_v23  ;;  %v4861_v48 = vadd.f32 %v4840_v27, %v9306_v15  ;;  %v4877_v45 = vmul.f32 %v9478_v9, %v10091_v54 }
0x1288   :  { %v5408_v19 = vmul.f32 %v5392_v53, %v5344_v40  ;;  %v5409_v55 = vmul.f32 %v5393_v16, %v5345_v52  ;;  %v4911_v13 = vrot.slane %v4875_v33, 2  ;;  %v4862_v12 = vadd.f32 %v4840_v27, %v4814_v34 }
0x1289   :  { %v5394_v2 = vmul.f32 %v5378_v63, %v9591_v36  ;;  %v5423_v44 = vadd.f32 %v5407_v39, %v5343_v23  ;;  %v4988_v41 = vmul.f32 %v9478_v9, %v8102_v6  ;;  %v10122_v28 = vrot.slane %v9359_v57, 2 }
0x128a   :  { %v5424_v47 = vadd.f32 %v5408_v19, %v5344_v40  ;;  %v5425_v49 = vadd.f32 %v5409_v55, %v5345_v52  ;;  %v4914_v32 = vrot.slane %v4877_v45, 2  ;;  %v4947_v11 = vadd.f32 %v4911_v13, %v4859_v50 }
0x128b   :  { %v5410_v10 = vmul.f32 %v5394_v2, %v9591_v36  ;;  %v4913_v26 = vsel %vm2630_vm4, %v4911_v13, %v10122_v28  ;;  %v6820_v56 = vpop.eup %6819  ;;  %v5439_v58 = vmul.f32 0.7978846, %v5423_v44  ;;  %v10124_v34 = vrot.slane %v10123_v60, 2 }
0x128c   :  { %v4948_v25 = vadd.f32 %v4913_v26, %v4860_v43  ;;  %v6822_v62 = vpop.eup %6821  ;;  %v5467_v14 = vadd.f32 1.0, %v6820_v56  ;;  %v5440_v23 = vmul.f32 0.7978846, %v5424_v47  ;;  %v5441_v46 = vmul.f32 0.7978846, %v5425_v49 }
0x128d   :  { %v5426_v42 = vadd.f32 %v5410_v10, %v9591_v36  ;;  %v4916_v40 = vsel %vm2630_vm4, %v4914_v32, %v10124_v34  ;;  %v6824_v52 = vpop.eup %6823  ;;  %v5468_v33 = vadd.f32 1.0, %v6822_v62  ;;  %6827 = vtanh.f32 %v5439_v58  ;;  %v10126_v62 = vld [vmem:[#allocation42_spill] sm:$0xff]  ;;  %v10128_v34 = vld [vmem:[#allocation44_spill] sm:$0xff] }
0x128e   :  { %v4949_v21 = vadd.f32 %v4914_v32, %v4861_v48  ;;  %v6826_v59 = vpop.eup %6825  ;;  %v5469_v18 = vadd.f32 1.0, %v6824_v52  ;;  %v5483_v63 = vmul.f32 %v5467_v14, %v9555_v5  ;;  %6829 = vtanh.f32 %v5440_v23 }
0x128f   :  { %v5442_v57 = vmul.f32 0.7978846, %v5426_v42  ;;  %v4990_v30 = vmul.f32 %v9495_v31, %v8102_v6  ;;  %v5470_v27 = vadd.f32 1.0, %v6826_v59  ;;  %v5484_v53 = vmul.f32 %v5468_v33, %v9559_v38 }
0x1290   :  { %6831 = vtanh.f32 %v5441_v46  ;;  %v4950_v16 = vadd.f32 %v4916_v40, %v4862_v12  ;;  %v5485_v50 = vmul.f32 %v5469_v18, %v9574_v37  ;;  %v5515_v2 = vrot.slane %v5483_v63, 7 }
0x1291   :  { %6833 = vtanh.f32 %v5442_v57  ;;  %v5003_v39 = vadd.f32 %v9332_v51, %v4947_v11  ;;  %v5486_v43 = vmul.f32 %v5470_v27, %v9576_v61  ;;  %v5516_v48 = vrot.slane %v5484_v53, 7 }
0x1292   :  { %v5004_v19 = vadd.f32 %v4988_v41, %v4948_v25  ;;  %v5005_v5 = vadd.f32 %v9332_v51, %v4949_v21  ;;  %v5518_v55 = vrot.slane %v5485_v50, 7  ;;  %v5015_v45 = vmul.f32 %v9478_v9, %v8121_v1 }
0x1293   :  { %v5016_v38 = vmul.f32 %v9495_v31, %v8121_v1  ;;  %v5067_v37 = vmul.f32 %v9478_v9, %v8081_v20  ;;  %v5519_v13 = vrot.slane %v5486_v43, 7  ;;  %v5362_v10 = vmul.f32 0.5, %v9591_v36  ;;  %v10125_v9 = vld [vmem:[#allocation31_spill] sm:$0xff] }
0x1294   :  { %v5006_v44 = vadd.f32 %v4990_v30, %v4950_v16  ;;  %v5069_v61 = vmul.f32 %v9495_v31, %v8081_v20  ;;  %v5517_v12 = vsel %vm3278_vm5, %v5515_v2, %v5516_v48  ;;  %v5031_v41 = vrot.slane %v5015_v45, 1 }
0x1295   :  { %v5032_v47 = vrot.slane %v5016_v38, 1  ;;  %v5103_v49 = vrot.slane %v5067_v37, 2  ;;  %v5520_v28 = vsel %vm3278_vm5, %v5518_v55, %v5519_v13  ;;  %v5207_v32 = vmul.f32 %v9495_v31, %v8128_v29 }
0x1296   :  { %v5106_v26 = vrot.slane %v5069_v61, 2  ;;  %v5208_v56 = vmul.f32 %v10125_v9, %v8128_v29  ;;  %v5547_v42 = vpack.c.bf16 %v5520_v28, %v5517_v12  ;;  %v5051_v36 = vadd.f32 %v5031_v41, %v5003_v39 }
0x1297   :  { %v5052_v58 = vadd.f32 %v5031_v41, %v5004_v19  ;;  %v5053_v11 = vadd.f32 %v5032_v47, %v5005_v5  ;;  %v5054_v25 = vadd.f32 %v5032_v47, %v5006_v44  ;;  %v10127_v14 = vrot.slane %v10126_v62, 2  ;;  %v10130_v47 = vld [vmem:[#allocation56_spill] sm:$0xff] }
0x1298   :  { %v5180_v46 = vmul.f32 %v9495_v31, %v8123_v35  ;;  %v5182_v60 = vmul.f32 %v10125_v9, %v8123_v35  ;;  %6399 = vmatprep.mubr.bf16.mxu1 %v5547_v42  ;;  %v10129_v40 = vrot.slane %v10128_v34, 2  ;;  %v5139_v33 = vadd.f32 %v5103_v49, %v5051_v36  ;;  %v5170_v34 = vld [vmem:[#allocation2 + $0xc0] sm:$0x1] }
0x1299   :  { %v5105_v23 = vsel %vm2630_vm4, %v5103_v49, %v10127_v14  ;;  %v5141_v21 = vadd.f32 %v5106_v26, %v5053_v11  ;;  %v5223_v18 = vrot.slane %v5207_v32, 1  ;;  %v5259_v63 = vmul.f32 %v9495_v31, %v8079_v17 }
0x129a   :  { %v5108_v52 = vsel %vm2630_vm4, %v5106_v26, %v10129_v40  ;;  %v5140_v57 = vadd.f32 %v5105_v23, %v5052_v58  ;;  %v5261_v30 = vmul.f32 %v10125_v9, %v8079_v17  ;;  %v6828_v27 = vpop.eup %6827  ;;  %v5195_v53 = vadd.f32 %v9338_v4, %v5139_v33  ;;  %v10134_v33 = vld [vmem:[#allocation40_spill] sm:$0xff] }
0x129b   :  { %v5142_v59 = vadd.f32 %v5108_v52, %v5054_v25  ;;  %v5197_v50 = vadd.f32 %v9338_v4, %v5141_v21  ;;  %v5224_v2 = vrot.slane %v5208_v56, 1  ;;  %v6830_v39 = vpop.eup %6829  ;;  %v5471_v43 = vadd.f32 1.0, %v6828_v27  ;;  %v10132_v56 = vld [vmem:[#allocation43_spill] sm:$0xff] }
0x129c   :  { %v5196_v16 = vadd.f32 %v5180_v46, %v5140_v57  ;;  %v5295_v19 = vrot.slane %v5259_v63, 2  ;;  %v5298_v5 = vrot.slane %v5261_v30, 2  ;;  %v5472_v45 = vadd.f32 1.0, %v6830_v39 }
0x129d   :  { %v5198_v48 = vadd.f32 %v5182_v60, %v5142_v59  ;;  %v6832_v55 = vpop.eup %6831  ;;  %v5243_v38 = vadd.f32 %v5223_v18, %v5195_v53  ;;  %v5245_v13 = vadd.f32 %v5224_v2, %v5197_v50  ;;  %v5487_v12 = vmul.f32 %v5471_v43, %v9597_v24 }
0x129e   :  { %v5244_v37 = vadd.f32 %v5223_v18, %v5196_v16  ;;  %v6834_v44 = vpop.eup %6833  ;;  %v5473_v61 = vadd.f32 1.0, %v6832_v55  ;;  %v10131_v49 = vrot.slane %v10130_v47, 2  ;;  %v5488_v32 = vmul.f32 %v5472_v45, %v9599_v7 }
0x129f   :  { %v5246_v41 = vadd.f32 %v5224_v2, %v5198_v48  ;;  %v5474_v26 = vadd.f32 1.0, %v6834_v44  ;;  %v10133_v42 = vrot.slane %v10132_v56, 2  ;;  %v5331_v58 = vadd.f32 %v5295_v19, %v5243_v38 }
0x12a0   :  { %v5297_v28 = vsel %vm2630_vm4, %v5295_v19, %v10131_v49  ;;  %v5489_v11 = vmul.f32 %v5473_v61, %v9602_v3  ;;  %v5521_v25 = vrot.slane %v5487_v12, 7  ;;  %v5333_v14 = vadd.f32 %v5298_v5, %v5245_v13 }
0x12a1   :  { %v5300_v36 = vsel %vm2630_vm4, %v5298_v5, %v10133_v42  ;;  %v5332_v62 = vadd.f32 %v5297_v28, %v5244_v37  ;;  %v5490_v23 = vmul.f32 %v5474_v26, %v5362_v10  ;;  %v5522_v24 = vrot.slane %v5488_v32, 7 }
0x12a2   :  { %v5334_v46 = vadd.f32 %v5300_v36, %v5246_v41  ;;  %v9668_v60 = vadd.f32 %v9542_v22, %v5331_v58  ;;  %v5524_v40 = vrot.slane %v5489_v11, 7  ;;  %v9674_v52 = vadd.f32 %v9542_v22, %v5333_v14  ;;  %v10135_v11 = vld [vmem:[#allocation45_spill] sm:$0xff] }
0x12a3   :  { %v9671_v7 = vadd.f32 %v9542_v22, %v5332_v62  ;;  %v9678_v3 = vmul.f32 %v10134_v33, %v8079_v17  ;;  %v5523_v57 = vsel %vm3278_vm5, %v5521_v25, %v5522_v24  ;;  %v5525_v10 = vrot.slane %v5490_v23, 7  ;;  %v10136_v23 = vld [vmem:[#allocation57_spill] sm:$0xff] }
0x12a4   :  { %v9682_v21 = vadd.f32 %v9542_v22, %v5334_v46  ;;  %v4825_v59 = vmul.f32 %v9495_v31, %v10090_v8  ;;  %v5379_v18 = vmul.f32 0.044715, %v9668_v60  ;;  %v4816_v30 = vmul.f32 %v9495_v31, %v10092_v0  ;;  %v10138_v46 = vld [vmem:[#allocation55_spill] sm:$0xff] }
0x12a5   :  { %v5380_v63 = vmul.f32 0.044715, %v9671_v7  ;;  %v9691_v27 = vmul.f32 %v5170_v34, %v8079_v17  ;;  %v5526_v53 = vsel %vm3278_vm5, %v5524_v40, %v5525_v10  ;;  %v5381_v16 = vmul.f32 0.044715, %v9674_v52 }
0x12a6   :  { %v5382_v50 = vmul.f32 0.044715, %v9682_v21  ;;  %v4818_v2 = vmul.f32 %v10125_v9, %v10092_v0  ;;  %v5548_v39 = vpack.c.bf16 %v5526_v53, %v5523_v57  ;;  %v5395_v43 = vmul.f32 %v5379_v18, %v9668_v60 }
0x12a7   :  { %v5396_v48 = vmul.f32 %v5380_v63, %v9671_v7  ;;  %v4826_v19 = vmul.f32 %v10125_v9, %v10090_v8  ;;  %v5397_v5 = vmul.f32 %v5381_v16, %v9674_v52  ;;  %v4841_v45 = vrot.slane %v4825_v59, 1  ;;  %v5167_v63 = vld [vmem:[#allocation2 + $0xe8] sm:$0x1] }
0x12a8   :  { %v5398_v55 = vmul.f32 %v5382_v50, %v9682_v21  ;;  %v4879_v38 = vmul.f32 %v9495_v31, %v10091_v54  ;;  %6400 = vmatmul.mubr.bf16.vlgmr.msra.gmra.mxu1 %v5548_v39  ;;  %v5411_v37 = vmul.f32 %v5395_v43, %v9668_v60  ;;  %v4881_v44 = vmul.f32 %v10125_v9, %v10091_v54 }
0x12a9   :  { %v5412_v0 = vmul.f32 %v5396_v48, %v9671_v7  ;;  %v4842_v13 = vrot.slane %v4826_v19, 1  ;;  %v5413_v61 = vmul.f32 %v5397_v5, %v9674_v52  ;;  %v4863_v12 = vadd.f32 %v4841_v45, %v9306_v15  ;;  %v10140_v19 = vld [vmem:[#allocation54_spill] sm:$0xff] }
0x12aa   :  { %v5414_v8 = vmul.f32 %v5398_v55, %v9682_v21  ;;  %v4864_v41 = vadd.f32 %v4841_v45, %v4816_v30  ;;  %v5427_v47 = vadd.f32 %v5411_v37, %v9668_v60  ;;  %v4917_v56 = vrot.slane %v4879_v38, 2 }
0x12ab   :  { %v5428_v31 = vadd.f32 %v5412_v0, %v9671_v7  ;;  %v4865_v49 = vadd.f32 %v4842_v13, %v9306_v15  ;;  %v4866_v28 = vadd.f32 %v4842_v13, %v4818_v2  ;;  %v5429_v26 = vadd.f32 %v5413_v61, %v9674_v52 }
0x12ac   :  { %v5430_v32 = vadd.f32 %v5414_v8, %v9682_v21  ;;  %v4920_v54 = vrot.slane %v4881_v44, 2  ;;  %v5443_v42 = vmul.f32 0.7978846, %v5427_v47  ;;  %v4992_v58 = vmul.f32 %v10125_v9, %v8102_v6 }
0x12ad   :  { %v5444_v36 = vmul.f32 0.7978846, %v5428_v31  ;;  %v4994_v25 = vmul.f32 %v10135_v11, %v8102_v6  ;;  %v5445_v62 = vmul.f32 0.7978846, %v5429_v26  ;;  %v10137_v24 = vrot.slane %v10136_v23, 2 }
0x12ae   :  { %v5446_v14 = vmul.f32 0.7978846, %v5430_v32  ;;  %v10139_v34 = vrot.slane %v10138_v46, 2  ;;  %6835 = vtanh.f32 %v5443_v42  ;;  %v4951_v33 = vadd.f32 %v4917_v56, %v4863_v12  ;;  %v10142_v12 = vld [vmem:[#allocation58_spill] sm:$0xff] }
0x12af   :  { %v4919_v15 = vsel %vm2630_vm4, %v4917_v56, %v10137_v24  ;;  %v4953_v10 = vadd.f32 %v4920_v54, %v4865_v49  ;;  %6837 = vtanh.f32 %v5444_v36  ;;  %v5017_v18 = vmul.f32 %v10125_v9, %v8121_v1 }
0x12b0   :  { %v4922_v40 = vsel %vm2630_vm4, %v4920_v54, %v10139_v34  ;;  %v4952_v57 = vadd.f32 %v4919_v15, %v4864_v41  ;;  %v5018_v6 = vmul.f32 %v10135_v11, %v8121_v1  ;;  %6839 = vtanh.f32 %v5445_v62 }
0x12b1   :  { %v4954_v59 = vadd.f32 %v4922_v40, %v4866_v28  ;;  %v5007_v30 = vadd.f32 %v9332_v51, %v4951_v33  ;;  %v5009_v16 = vadd.f32 %v9332_v51, %v4953_v10  ;;  %6841 = vtanh.f32 %v5446_v14 }
0x12b2   :  { %v5008_v53 = vadd.f32 %v4992_v58, %v4952_v57  ;;  %v5033_v2 = vrot.slane %v5017_v18, 1  ;;  %v5034_v39 = vrot.slane %v5018_v6, 1  ;;  %v5071_v43 = vmul.f32 %v10125_v9, %v8081_v20  ;;  %v10141_v9 = vld [vmem:[#allocation12_spill] sm:$0xff] }
0x12b3   :  { %v5010_v50 = vadd.f32 %v4994_v25, %v4954_v59  ;;  %v5073_v48 = vmul.f32 %v10135_v11, %v8081_v20  ;;  %v5113_v5 = vrot.slane %v10140_v19, 2  ;;  %v5264_v1 = vmul.f32 %v5167_v63, %v8079_v17 }
0x12b4   :  { %v5055_v55 = vadd.f32 %v5033_v2, %v5007_v30  ;;  %v5056_v45 = vadd.f32 %v5033_v2, %v5008_v53  ;;  %v5057_v38 = vadd.f32 %v5034_v39, %v5009_v16  ;;  %v5109_v0 = vrot.slane %v5071_v43, 2 }
0x12b5   :  { %v5058_v37 = vadd.f32 %v5034_v39, %v5010_v50  ;;  %v5112_v51 = vrot.slane %v5073_v48, 2  ;;  %v5209_v13 = vmul.f32 %v10135_v11, %v8128_v29  ;;  %v5263_v44 = vmul.f32 %v10135_v11, %v8079_v17 }
0x12b6   :  { %v5226_v61 = vrot.slane %v10141_v9, 1  ;;  %v5304_v20 = vrot.slane %v9678_v3, 2  ;;  %v5305_v8 = vrot.slane %v9691_v27, 2  ;;  %v10143_v41 = vrot.slane %v10142_v12, 2 }
0x12b7   :  { %v5114_v31 = vsel %vm2630_vm4, %v5112_v51, %v5113_v5  ;;  %v5143_v49 = vadd.f32 %v5109_v0, %v5055_v55  ;;  %v5145_v28 = vadd.f32 %v5112_v51, %v5057_v38  ;;  %v5184_v29 = vmul.f32 %v10135_v11, %v8123_v35 }
0x12b8   :  { %v5111_v47 = vsel %vm2630_vm4, %v5109_v0, %v10143_v41  ;;  %v5146_v32 = vadd.f32 %v5114_v31, %v5058_v37  ;;  %v5302_v17 = vrot.slane %v5264_v1, 2  ;;  %v5225_v54 = vrot.slane %v5209_v13, 1 }
0x12b9   :  { %v5144_v26 = vadd.f32 %v5111_v47, %v5056_v45  ;;  %v5199_v56 = vadd.f32 %v9338_v4, %v5143_v49  ;;  %v5201_v3 = vadd.f32 %v9338_v4, %v5145_v28  ;;  %v5301_v27 = vrot.slane %v5263_v44, 2 }
0x12ba   :  { %v5202_v36 = vadd.f32 %v9338_v4, %v5146_v32  ;;  %v5363_v58 = vmul.f32 0.5, %v9668_v60  ;;  %v5306_v14 = vsel %vm2630_vm4, %v5304_v20, %v5305_v8  ;;  %v5364_v24 = vmul.f32 0.5, %v9671_v7 }
0x12bb   :  { %v5200_v42 = vadd.f32 %v5184_v29, %v5144_v26  ;;  %v5247_v25 = vadd.f32 %v5225_v54, %v5199_v56  ;;  %v5249_v62 = vadd.f32 %v5226_v61, %v5201_v3  ;;  %v6836_v23 = vpop.eup %6835  ;;  %v5365_v35 = vmul.f32 0.5, %v9674_v52 }
0x12bc   :  { %v5250_v15 = vadd.f32 %v5226_v61, %v5202_v36  ;;  %v6838_v46 = vpop.eup %6837  ;;  %v5475_v34 = vadd.f32 1.0, %v6836_v23  ;;  %v5303_v40 = vsel %vm2630_vm4, %v5301_v27, %v5302_v17  ;;  %v5366_v60 = vmul.f32 0.5, %v9682_v21 }
0x12bd   :  { %v5248_v11 = vadd.f32 %v5225_v54, %v5200_v42  ;;  %v5335_v33 = vadd.f32 %v5301_v27, %v5247_v25  ;;  %v5337_v57 = vadd.f32 %v5304_v20, %v5249_v62  ;;  %v6840_v4 = vpop.eup %6839  ;;  %v5476_v10 = vadd.f32 1.0, %v6838_v46 }
0x12be   :  { %v5338_v18 = vadd.f32 %v5306_v14, %v5250_v15  ;;  %v6842_v6 = vpop.eup %6841  ;;  %v5477_v63 = vadd.f32 1.0, %v6840_v4  ;;  %v5491_v30 = vmul.f32 %v5475_v34, %v5363_v58 }
0x12bf   :  { %v5336_v59 = vadd.f32 %v5303_v40, %v5248_v11  ;;  %v5351_v7 = vadd.f32 %v9542_v22, %v5335_v33  ;;  %v5353_v52 = vadd.f32 %v9542_v22, %v5337_v57  ;;  %v5478_v53 = vadd.f32 1.0, %v6842_v6 }
0x12c0   :  { %v5492_v16 = vmul.f32 %v5476_v10, %v5364_v24  ;;  %v5354_v2 = vadd.f32 %v9542_v22, %v5338_v18  ;;  %v5493_v39 = vmul.f32 %v5477_v63, %v5365_v35  ;;  %v5527_v48 = vrot.slane %v5491_v30, 7  ;;  %v10144_v63 = vld [vmem:[#allocation36_spill] sm:$0xff] }
0x12c1   :  { %v5352_v50 = vadd.f32 %v9542_v22, %v5336_v59  ;;  %v5494_v43 = vmul.f32 %v5478_v53, %v5366_v60  ;;  %v5383_v5 = vmul.f32 0.044715, %v5351_v7  ;;  %v5385_v45 = vmul.f32 0.044715, %v5353_v52  ;;  %v6884_v59 = vld [vmem:[%s9826_s13] ss:$0 sm:$0xff] }
0x12c2   :  { %v5528_v21 = vrot.slane %v5492_v16, 7  ;;  %v5530_v19 = vrot.slane %v5493_v39, 7  ;;  %v5386_v38 = vmul.f32 0.044715, %v5354_v2  ;;  %v5367_v3 = vmul.f32 0.5, %v5351_v7  ;;  %v10145_v53 = vld [vmem:[#allocation35_spill] sm:$0xff] }
0x12c3   :  { %v5384_v1 = vmul.f32 0.044715, %v5352_v50  ;;  %v5531_v55 = vrot.slane %v5494_v43, 7  ;;  %v5399_v37 = vmul.f32 %v5383_v5, %v5351_v7  ;;  %v5401_v44 = vmul.f32 %v5385_v45, %v5353_v52  ;;  %v10146_v39 = vld [vmem:[#allocation51_spill] sm:$0xff]  ;;  %v10148_v45 = vld [vmem:[#allocation52_spill] sm:$0xff] }
0x12c4   :  { %v5529_v51 = vsel %vm3278_vm5, %v5527_v48, %v5528_v21  ;;  %v5402_v9 = vmul.f32 %v5386_v38, %v5354_v2  ;;  %v5368_v42 = vmul.f32 0.5, %v5352_v50  ;;  %v5369_v25 = vmul.f32 0.5, %v5353_v52  ;;  %v10147_v21 = vld [vmem:[#allocation37_spill] sm:$0xff] }
0x12c5   :  { %v5400_v0 = vmul.f32 %v5384_v1, %v5352_v50  ;;  %v5532_v13 = vsel %vm3278_vm5, %v5530_v19, %v5531_v55  ;;  %v5415_v22 = vmul.f32 %v5399_v37, %v5351_v7  ;;  %v5417_v8 = vmul.f32 %v5401_v44, %v5353_v52 }
0x12c6   :  { %v5549_v61 = vpack.c.bf16 %v5532_v13, %v5529_v51  ;;  %v5418_v12 = vmul.f32 %v5402_v9, %v5354_v2  ;;  %v5370_v23 = vmul.f32 0.5, %v5354_v2  ;;  %v10149_v51 = vld [vmem:[#allocation38_spill] sm:$0xff] }
0x12c7   :  { %v5416_v20 = vmul.f32 %v5400_v0, %v5352_v50  ;;  %v5431_v41 = vadd.f32 %v5415_v22, %v5351_v7  ;;  %v5433_v31 = vadd.f32 %v5417_v8, %v5353_v52  ;;  %v10151_v8 = vld [vmem:[#allocation53_spill] sm:$0xff] }
0x12c8   :  { %6403 = vmatprep.mubr.bf16.mxu1 %v5549_v61  ;;  %v5434_v49 = vadd.f32 %v5418_v12, %v5354_v2  ;;  %v10150_v61 = vld [vmem:[#allocation39_spill] sm:$0xff] }
0x12c9   :  { %v5432_v47 = vadd.f32 %v5416_v20, %v5352_v50  ;;  %v5447_v28 = vmul.f32 0.7978846, %v5431_v41  ;;  %v5449_v32 = vmul.f32 0.7978846, %v5433_v31 }
0x12ca   :  { %v5450_v29 = vmul.f32 0.7978846, %v5434_v49 }
0x12cb   :  { %v5448_v26 = vmul.f32 0.7978846, %v5432_v47  ;;  %6843 = vtanh.f32 %v5447_v28 }
0x12cd   :  { %6845 = vtanh.f32 %v5448_v26 }
0x12ce   :  { %6847 = vtanh.f32 %v5449_v32 }
0x12cf   :  { %6849 = vtanh.f32 %v5450_v29 }
0x12d8   :  { %v6844_v17 = vpop.eup %6843 }
0x12d9   :  { %v5479_v54 = vadd.f32 1.0, %v6844_v17 }
0x12da   :  { %v6846_v56 = vpop.eup %6845 }
0x12db   :  { %v6848_v27 = vpop.eup %6847  ;;  %v5480_v36 = vadd.f32 1.0, %v6846_v56  ;;  %v5495_v14 = vmul.f32 %v5479_v54, %v5367_v3 }
0x12dc   :  { %v6850_v58 = vpop.eup %6849  ;;  %v5481_v62 = vadd.f32 1.0, %v6848_v27 }
0x12dd   :  { %v5482_v24 = vadd.f32 1.0, %v6850_v58  ;;  %v5496_v35 = vmul.f32 %v5480_v36, %v5368_v42  ;;  %v5533_v15 = vrot.slane %v5495_v14, 7 }
0x12de   :  { %v5497_v11 = vmul.f32 %v5481_v62, %v5369_v25 }
0x12df   :  { %v5498_v46 = vmul.f32 %v5482_v24, %v5370_v23  ;;  %v5534_v34 = vrot.slane %v5496_v35, 7 }
0x12e0   :  { %v5536_v40 = vrot.slane %v5497_v11, 7 }
0x12e1   :  { %v5535_v33 = vsel %vm3278_vm5, %v5533_v15, %v5534_v34  ;;  %v5537_v57 = vrot.slane %v5498_v46, 7 }
0x12e3   :  { %v5538_v4 = vsel %vm3278_vm5, %v5536_v40, %v5537_v57 }
0x12e4   :  { %v5550_v60 = vpack.c.bf16 %v5538_v4, %v5535_v33 }
0x12e6   :  { %6404 = vmatmul.mubr.bf16.gmra.mxu1 %v5550_v60 }
0x1368   :  { %v6401_v10 = vpop.f32.mrf.mxu1 }
0x1369   :  { %v5594_v18 = vadd.f32 %v6884_v59, %v6401_v10 }
0x136a   :  { %v5585_v6 = vpop.f32.mrf.mxu1 }
0x136b   :  { %v5618_v30 = vadd.f32 %v5594_v18, %v10144_v63  ;;  %v5586_v7 = vadd.f32 %v6884_v59, %v5585_v6 }
0x136c   :  { %v6402_v52 = vpop.f32.mrf.mxu1 }
0x136d   :  { %5771 = vst.msk [vmem:[%s9827_s14 + $0x50] sm:$0xff] %vm66_vm0, %v5618_v30  ;;  %v5616_v16 = vadd.f32 %v5586_v7, %v10145_v53  ;;  %v5597_v50 = vadd.f32 %v6884_v59, %v6402_v52 }
0x136e   :  { %v5588_v2 = vpop.f32.mrf.mxu1 }
0x136f   :  { %5769 = vst.msk [vmem:[%s9827_s14 + $0x40] sm:$0xff] %vm66_vm0, %v5616_v16  ;;  %v5619_v43 = vadd.f32 %v5597_v50, %v10146_v39  ;;  %v5589_v48 = vadd.f32 %v6884_v59, %v5588_v2 }
0x1371   :  { %5772 = vst.msk [vmem:[%s9827_s14 + $0x58] sm:$0xff] %vm66_vm0, %v5619_v43  ;;  %v5617_v19 = vadd.f32 %v5589_v48, %v10147_v21 }
0x1373   :  { %5770 = vst.msk [vmem:[%s9827_s14 + $0x48] sm:$0xff] %vm66_vm0, %v5617_v19 }
0x13a6   :  { %v6405_v5 = vpop.f32.mrf.mxu1 }
0x13a7   :  { %v5610_v1 = vadd.f32 %v6884_v59, %v6405_v5 }
0x13a8   :  { %v5601_v55 = vpop.f32.mrf.mxu1 }
0x13a9   :  { %v5622_v38 = vadd.f32 %v5610_v1, %v10148_v45  ;;  %v5602_v37 = vadd.f32 %v6884_v59, %v5601_v55 }
0x13aa   :  { %v6406_v0 = vpop.f32.mrf.mxu1 }
0x13ab   :  { %5775 = vst.msk [vmem:[%s9827_s14 + $0x70] sm:$0xff] %vm66_vm0, %v5622_v38  ;;  %v5620_v13 = vadd.f32 %v5602_v37, %v10149_v51  ;;  %v5613_v44 = vadd.f32 %v6884_v59, %v6406_v0 }
0x13ac   :  { %v5604_v9 = vpop.f32.mrf.mxu1 }
0x13ad   :  { %5773 = vst.msk [vmem:[%s9827_s14 + $0x60] sm:$0xff] %vm66_vm0, %v5620_v13  ;;  %v5623_v22 = vadd.f32 %v5613_v44, %v10150_v61  ;;  %v5605_v20 = vadd.f32 %v6884_v59, %v5604_v9 }
0x13af   :  { %5776 = vst.msk [vmem:[%s9827_s14 + $0x78] sm:$0xff] %vm66_vm0, %v5623_v22  ;;  %v5621_v12 = vadd.f32 %v5605_v20, %v10151_v8 }
0x13b1   :  { %5774 = vst.msk [vmem:[%s9827_s14 + $0x68] sm:$0xff] %vm66_vm0, %v5621_v12 }

</bundles_post_ra>
